<compile_context>
chip_gen: v6e
topology: v6e:2x2x1
jax: 0.10.0
libtpu: 0.0.40
codegen_flags: <defaults>
</compile_context>

<pallas_src>
import functools
import math

import jax
import jax.numpy as jnp
from jax import lax
from jax.experimental import pallas as pl
from jax.experimental.pallas import tpu as pltpu

CP = 128        # lane-dense padded channel width for all internal activations
CP_OUT = 256    # lane-dense padded channel width for the 176-channel head
_EPS = 1e-5


# ----------------------------------------------------------------------------
# Pallas kernels (one kernel = one whole conv problem, grid=(1,))
# ----------------------------------------------------------------------------
def _bn_scale_shift(acc, gamma, beta, inv_m, eps):
    """BatchNorm scale/shift from the f32 conv accumulator (two-pass var)."""
    mean = jnp.sum(acc, axis=0, keepdims=True) * inv_m
    ctr = acc - mean
    var = jnp.sum(ctr * ctr, axis=0, keepdims=True) * inv_m   # biased (PyTorch train)
    scale = gamma * lax.rsqrt(var + eps)
    shift = beta - mean * scale
    return scale, shift


def _conv_bn_relu_kernel(a_ref, w_ref, g_ref, b_ref, o_ref, *, inv_m, eps):
    acc = jnp.dot(a_ref[...], w_ref[...], preferred_element_type=jnp.float32)
    scale, shift = _bn_scale_shift(acc, g_ref[...], b_ref[...], inv_m, eps)
    o_ref[...] = jnp.maximum(acc * scale + shift, 0.0).astype(o_ref.dtype)


def _conv_bn_add_relu_kernel(a_ref, w_ref, g_ref, b_ref, skip_ref, o_ref,
                             *, inv_m, eps):
    acc = jnp.dot(a_ref[...], w_ref[...], preferred_element_type=jnp.float32)
    scale, shift = _bn_scale_shift(acc, g_ref[...], b_ref[...], inv_m, eps)
    out = acc * scale + shift + skip_ref[...].astype(jnp.float32)
    o_ref[...] = jnp.maximum(out, 0.0).astype(o_ref.dtype)


def _conv_bn_proj_add_relu_kernel(a2_ref, w2_ref, g2_ref, b2_ref,
                                  ad_ref, wd_ref, gd_ref, bd_ref, o_ref,
                                  *, inv_m, eps):
    acc2 = jnp.dot(a2_ref[...], w2_ref[...], preferred_element_type=jnp.float32)
    sc2, sh2 = _bn_scale_shift(acc2, g2_ref[...], b2_ref[...], inv_m, eps)
    accd = jnp.dot(ad_ref[...], wd_ref[...], preferred_element_type=jnp.float32)
    scd, shd = _bn_scale_shift(accd, gd_ref[...], bd_ref[...], inv_m, eps)
    out = (acc2 * sc2 + sh2) + (accd * scd + shd)
    o_ref[...] = jnp.maximum(out, 0.0).astype(o_ref.dtype)


def _conv_bn_add_relu_out_kernel(a_ref, w_ref, g_ref, b_ref, skip_ref,
                                 wo_ref, bo_ref, o_ref, *, inv_m, eps):
    """Last residual block + fused final 1x1 conv (bias, no BN/act)."""
    acc = jnp.dot(a_ref[...], w_ref[...], preferred_element_type=jnp.float32)
    scale, shift = _bn_scale_shift(acc, g_ref[...], b_ref[...], inv_m, eps)
    act = jnp.maximum(acc * scale + shift + skip_ref[...].astype(jnp.float32), 0.0)
    o_ref[...] = (jnp.dot(act.astype(jnp.bfloat16), wo_ref[...],
                          preferred_element_type=jnp.float32) + bo_ref[...])


def _matmul_bias_kernel(a_ref, w_ref, b_ref, o_ref):
    """Fallback standalone out_layer (only used if the last block projects)."""
    o_ref[...] = (jnp.dot(a_ref[...], w_ref[...],
                          preferred_element_type=jnp.float32) + b_ref[...])


# ----------------------------------------------------------------------------
# pallas_call wrappers — full-array blocks, single grid step
# ----------------------------------------------------------------------------
def _spec(shape):
    return pl.BlockSpec(shape, lambda i: (0, 0))


def _fused_call(kernel, out_shape, inputs):
    return pl.pallas_call(
        kernel,
        out_shape=out_shape,
        grid=(1,),
        in_specs=[_spec(a.shape) for a in inputs],
        out_specs=_spec(out_shape.shape),
        compiler_params=pltpu.CompilerParams(
            dimension_semantics=("arbitrary",)),
    )(*inputs)


def im2col(x_nhwc, cin, k, stride, pad):
    """(N,H,W,Cpad) -> patches (N*OH*OW, k*k*cin), column order (kh, kw, cin).

    Only the `cin` real channels are kept, so the matmul K dim carries no
    padding (the lane-dense 128-wide padding stays on the *output* side)."""
    x = x_nhwc[..., :cin]
    n, h, w, _ = x.shape
    if k == 1 and pad == 0:
        xs = x[:, ::stride, ::stride, :]
        oh, ow = xs.shape[1], xs.shape[2]
        return xs.reshape(n * oh * ow, cin), (n, oh, ow)
    xp = jnp.pad(x, ((0, 0), (pad, pad), (pad, pad), (0, 0)))
    oh = (h + 2 * pad - k) // stride + 1
    ow = (w + 2 * pad - k) // stride + 1
    cols = [xp[:, i:i + stride * oh:stride, j:j + stride * ow:stride, :]
            for i in range(k) for j in range(k)]
    patches = jnp.concatenate(cols, axis=-1)            # (n, oh, ow, k*k*cin)
    return patches.reshape(n * oh * ow, k * k * cin), (n, oh, ow)


def conv_bn_relu(patches, w_mat, bn):
    M = patches.shape[0]
    return _fused_call(
        functools.partial(_conv_bn_relu_kernel, inv_m=1.0 / M, eps=_EPS),
        jax.ShapeDtypeStruct((M, w_mat.shape[1]), jnp.bfloat16),
        [patches, w_mat, bn[0], bn[1]])


def conv_bn_add_relu(patches, w_mat, bn, skip2d):
    M = patches.shape[0]
    return _fused_call(
        functools.partial(_conv_bn_add_relu_kernel, inv_m=1.0 / M, eps=_EPS),
        jax.ShapeDtypeStruct((M, w_mat.shape[1]), jnp.bfloat16),
        [patches, w_mat, bn[0], bn[1], skip2d])


def conv_bn_proj_add_relu(p2, w2, bn2, pd, wd, bnd):
    M = p2.shape[0]
    return _fused_call(
        functools.partial(_conv_bn_proj_add_relu_kernel, inv_m=1.0 / M, eps=_EPS),
        jax.ShapeDtypeStruct((M, w2.shape[1]), jnp.bfloat16),
        [p2, w2, bn2[0], bn2[1], pd, wd, bnd[0], bnd[1]])


def conv_bn_add_relu_out(patches, w_mat, bn, skip2d, w_out, b_out):
    M = patches.shape[0]
    return _fused_call(
        functools.partial(_conv_bn_add_relu_out_kernel, inv_m=1.0 / M, eps=_EPS),
        jax.ShapeDtypeStruct((M, w_out.shape[1]), jnp.float32),
        [patches, w_mat, bn[0], bn[1], skip2d, w_out, b_out])


def out_conv(a2d, w_out, b_out):
    M = a2d.shape[0]
    return _fused_call(
        _matmul_bias_kernel,
        jax.ShapeDtypeStruct((M, w_out.shape[1]), jnp.float32),
        [a2d, w_out, b_out])


# ----------------------------------------------------------------------------
# Network composition
# ----------------------------------------------------------------------------
def res_block(a_in, p):
    """a_in: (N, H, W, CP) bf16, padded channels exactly zero."""
    n, _, _, cp = a_in.shape
    p1, (n, oh, ow) = im2col(a_in, p['cin'], 3, p['stride'], 1)
    a1 = conv_bn_relu(p1, p['w1'], p['bn1']).reshape(n, oh, ow, cp)
    p2, _ = im2col(a1, p['cout'], 3, 1, 1)
    if 'wd' in p:
        pd, _ = im2col(a_in, p['cin'], 1, p['stride'], 0)
        out = conv_bn_proj_add_relu(p2, p['w2'], p['bn2'], pd, p['wd'], p['bnd'])
    else:
        out = conv_bn_add_relu(p2, p['w2'], p['bn2'], a_in.reshape(-1, cp))
    return out.reshape(n, oh, ow, cp)


def res_block_with_out(a_in, p, w_out, b_out):
    """Last (identity) residual block with the final 1x1 conv fused in."""
    n, _, _, cp = a_in.shape
    p1, (n, oh, ow) = im2col(a_in, p['cin'], 3, p['stride'], 1)
    a1 = conv_bn_relu(p1, p['w1'], p['bn1']).reshape(n, oh, ow, cp)
    p2, _ = im2col(a1, p['cout'], 3, 1, 1)
    y = conv_bn_add_relu_out(p2, p['w2'], p['bn2'], a_in.reshape(-1, cp),
                             w_out, b_out)
    return y.reshape(n, oh, ow, w_out.shape[1])


def alphanet_forward(params, x_nchw, n_out=176):
    x = jnp.transpose(x_nchw, (0, 2, 3, 1)).astype(jnp.bfloat16)   # NCHW -> NHWC
    n_in = x.shape[-1]
    # in_layer: conv7x7 stride 2 + BN + ReLU in one fused call
    p0, (n, oh, ow) = im2col(x, n_in, 7, 2, 3)
    a = conv_bn_relu(p0, params['in_w'], params['in_bn']).reshape(n, oh, ow, CP)
    blocks = params['blocks']
    last_fused = 'wd' not in blocks[-1]          # default config: identity last block
    body = blocks[:-1] if last_fused else blocks
    for bp in body:
        a = res_block(a, bp)
    if last_fused:
        y = res_block_with_out(a, blocks[-1], params['out_w'], params['out_b'])
    else:
        y = out_conv(a.reshape(-1, CP), params['out_w'], params['out_b'])
        y = y.reshape(a.shape[0], a.shape[1], a.shape[2], -1)
    y = y[..., :n_out]                           # drop padded head channels
    return jnp.transpose(y, (0, 3, 1, 2))        # NHWC -> NCHW


# ----------------------------------------------------------------------------
# Deterministic synthetic parameters (real-Cin / padded-Cout bf16 weights)
# ----------------------------------------------------------------------------
def _conv_w(key, cin, cout, k, cout_p):
    bound = 1.0 / math.sqrt(cin * k * k)
    w = jax.random.uniform(key, (k, k, cin, cout), jnp.float32, -bound, bound)
    wp = jnp.zeros((k, k, cin, cout_p), jnp.float32).at[..., :cout].set(w)
    return wp.reshape(k * k * cin, cout_p).astype(jnp.bfloat16)


def _out_w(key, cin, cout, cin_p, cout_p):
    bound = 1.0 / math.sqrt(cin)
    w = jax.random.uniform(key, (cin, cout), jnp.float32, -bound, bound)
    wp = jnp.zeros((cin_p, cout_p), jnp.float32).at[:cin, :cout].set(w)
    return wp.astype(jnp.bfloat16)


def _bn_params(key, c, c_p):
    kg, kb = jax.random.split(key)
    gamma = jnp.zeros((1, c_p), jnp.float32).at[0, :c].set(
        1.0 + 0.1 * jax.random.normal(kg, (c,), jnp.float32))
    beta = jnp.zeros((1, c_p), jnp.float32).at[0, :c].set(
        0.05 * jax.random.normal(kb, (c,), jnp.float32))
    return gamma, beta


def init_resblock(key, cin, cout, stride):
    keys = jax.random.split(key, 6)
    p = {
        'cin': cin, 'cout': cout, 'stride': stride,
        'w1': _conv_w(keys[0], cin, cout, 3, CP),
        'bn1': _bn_params(keys[1], cout, CP),
        'w2': _conv_w(keys[2], cout, cout, 3, CP),
        'bn2': _bn_params(keys[3], cout, CP),
    }
    if stride != 1 or cin != cout:
        p['wd'] = _conv_w(keys[4], cin, cout, 1, CP)
        p['bnd'] = _bn_params(keys[5], cout, CP)
    return p


def init_alphanet(key, n_in=1, n_out=176, n_filters=16, n_blocks=(3, 4, 6)):
    keys = jax.random.split(key, 4)
    params = {
        'in_w': _conv_w(keys[0], n_in, n_filters, 7, CP),
        'in_bn': _bn_params(keys[1], n_filters, CP),
    }
    c = n_filters
    cfg = []
    cfg += [(c, c, 1)] * n_blocks[0]
    cfg += [(c, 2 * c, 2)] + [(2 * c, 2 * c, 1)] * (n_blocks[1] - 1)
    cfg += [(2 * c, 4 * c, 2)] + [(4 * c, 4 * c, 1)] * (n_blocks[2] - 1)
    bkeys = jax.random.split(keys[2], len(cfg))
    params['blocks'] = [init_resblock(k, ci, co, s)
                        for k, (ci, co, s) in zip(bkeys, cfg)]
    ko_w, ko_b = jax.random.split(keys[3])
    params['out_w'] = _out_w(ko_w, 4 * n_filters, n_out, CP, CP_OUT)
    bound = 1.0 / math.sqrt(4 * n_filters)
    b = jax.random.uniform(ko_b, (n_out,), jnp.float32, -bound, bound)
    params['out_b'] = jnp.zeros((1, CP_OUT), jnp.float32).at[0, :n_out].set(b)
    return params


if __name__ == "__main__":
    key = jax.random.PRNGKey(0)
    pkey, xkey = jax.random.split(key)
    params = init_alphanet(pkey)
    # n_in=1 single-channel input, 32x32 spatial (3 stride-2 stages -> 4x4 out)
    x = jax.random.normal(xkey, (2, 1, 32, 32), jnp.float32)   # NCHW, like PyTorch
    fwd = jax.jit(lambda xin: alphanet_forward(params, xin))
    out = jax.block_until_ready(fwd(x))
    assert out.shape == (2, 176, 4, 4), out.shape
    assert bool(jnp.all(jnp.isfinite(out)))
    print("KERNEL_OK")
</pallas_src>

<mosaic_0001>
module attributes {stable_mosaic.version = 11 : i64} {
  func.func @_conv_bn_relu_kernel(%arg0: i32, %arg1: memref<512x49xbf16, #tpu.memory_space<vmem>>, %arg2: memref<49x128xbf16, #tpu.memory_space<vmem>>, %arg3: memref<1x128xf32, #tpu.memory_space<vmem>>, %arg4: memref<1x128xf32, #tpu.memory_space<vmem>>, %arg5: memref<512x128xbf16, #tpu.memory_space<vmem>>) attributes {dimension_semantics = [#tpu.dimension_semantics<arbitrary>], iteration_bounds = array<i64: 1>, scalar_prefetch = 0 : i64, scratch_operands = 0 : i64, tpu.core_type = #tpu.core_type<tc>, window_params = [{pipeline_mode = #tpu.pipeline_mode<synchronous>, transform_indices = @transform_0, window_bounds = array<i64: 512, 49>}, {pipeline_mode = #tpu.pipeline_mode<synchronous>, transform_indices = @transform_1, window_bounds = array<i64: 49, 128>}, {pipeline_mode = #tpu.pipeline_mode<synchronous>, transform_indices = @transform_2, window_bounds = array<i64: 1, 128>}, {pipeline_mode = #tpu.pipeline_mode<synchronous>, transform_indices = @transform_3, window_bounds = array<i64: 1, 128>}, {pipeline_mode = #tpu.pipeline_mode<synchronous>, transform_indices = @transform_4, window_bounds = array<i64: 512, 128>}]} {
    %c0 = arith.constant 0 : index
    %c0_0 = arith.constant 0 : index
    %0 = vector.load %arg1[%c0, %c0_0] : memref<512x49xbf16, #tpu.memory_space<vmem>>, vector<512x49xbf16>
    %c0_1 = arith.constant 0 : index
    %c0_2 = arith.constant 0 : index
    %1 = vector.load %arg2[%c0_1, %c0_2] : memref<49x128xbf16, #tpu.memory_space<vmem>>, vector<49x128xbf16>
    %cst = arith.constant dense<0.000000e+00> : vector<512x128xf32>
    %2 = tpu.matmul %0, %1, %cst {dimension_numbers = #tpu.dot_dimension_numbers<[1], [0], [0], [1], [0, 0, 1, 1], [], []>} : vector<512x49xbf16>, vector<49x128xbf16>, vector<512x128xf32> -> vector<512x128xf32>
    %c0_3 = arith.constant 0 : index
    %c0_4 = arith.constant 0 : index
    %3 = vector.load %arg3[%c0_3, %c0_4] : memref<1x128xf32, #tpu.memory_space<vmem>>, vector<1x128xf32>
    %c0_5 = arith.constant 0 : index
    %c0_6 = arith.constant 0 : index
    %4 = vector.load %arg4[%c0_5, %c0_6] : memref<1x128xf32, #tpu.memory_space<vmem>>, vector<1x128xf32>
    %cst_7 = arith.constant dense<0.000000e+00> : vector<128xf32>
    %5 = vector.multi_reduction <add>, %2, %cst_7 [0] : vector<512x128xf32> to vector<128xf32>
    %6 = vector.shape_cast %5 : vector<128xf32> to vector<1x128xf32>
    %cst_8 = arith.constant 0.001953125 : f32
    %7 = vector.broadcast %cst_8 : f32 to vector<1x128xf32>
    %8 = arith.mulf %6, %7 : vector<1x128xf32>
    %9 = vector.broadcast %8 : vector<1x128xf32> to vector<512x128xf32>
    %10 = arith.subf %2, %9 : vector<512x128xf32>
    %11 = arith.mulf %10, %10 : vector<512x128xf32>
    %cst_9 = arith.constant dense<0.000000e+00> : vector<128xf32>
    %12 = vector.multi_reduction <add>, %11, %cst_9 [0] : vector<512x128xf32> to vector<128xf32>
    %13 = vector.shape_cast %12 : vector<128xf32> to vector<1x128xf32>
    %cst_10 = arith.constant 0.001953125 : f32
    %14 = vector.broadcast %cst_10 : f32 to vector<1x128xf32>
    %15 = arith.mulf %13, %14 : vector<1x128xf32>
    %cst_11 = arith.constant 9.99999974E-6 : f32
    %16 = vector.broadcast %cst_11 : f32 to vector<1x128xf32>
    %17 = arith.addf %15, %16 : vector<1x128xf32>
    %18 = math.rsqrt %17 : vector<1x128xf32>
    %19 = arith.mulf %3, %18 : vector<1x128xf32>
    %20 = arith.mulf %8, %19 : vector<1x128xf32>
    %21 = arith.subf %4, %20 : vector<1x128xf32>
    %22 = vector.broadcast %19 : vector<1x128xf32> to vector<512x128xf32>
    %23 = arith.mulf %2, %22 : vector<512x128xf32>
    %24 = vector.broadcast %21 : vector<1x128xf32> to vector<512x128xf32>
    %25 = arith.addf %23, %24 : vector<512x128xf32>
    %cst_12 = arith.constant 0.000000e+00 : f32
    %26 = vector.broadcast %cst_12 : f32 to vector<512x128xf32>
    %27 = arith.maximumf %25, %26 : vector<512x128xf32>
    %28 = arith.truncf %27 : vector<512x128xf32> to vector<512x128xbf16>
    %c0_13 = arith.constant 0 : index
    %c0_14 = arith.constant 0 : index
    %29 = vector.load %arg5[%c0_13, %c0_14] : memref<512x128xbf16, #tpu.memory_space<vmem>>, vector<512x128xbf16>
    tpu.vector_store %arg5[%c0_13, %c0_14], %28 {strides = array<i32>} : memref<512x128xbf16, #tpu.memory_space<vmem>>, vector<512x128xbf16>,
    return
  }
  func.func @transform_0(%arg0: i32) -> (i32, i32) {
    %c0_i32 = arith.constant 0 : i32
    %c0_i32_0 = arith.constant 0 : i32
    %c0_i32_1 = arith.constant 0 : i32
    return %c0_i32, %c0_i32_0 : i32, i32
  }
  func.func @transform_1(%arg0: i32) -> (i32, i32) {
    %c0_i32 = arith.constant 0 : i32
    %c0_i32_0 = arith.constant 0 : i32
    %c0_i32_1 = arith.constant 0 : i32
    return %c0_i32, %c0_i32_0 : i32, i32
  }
  func.func @transform_2(%arg0: i32) -> (i32, i32) {
    %c0_i32 = arith.constant 0 : i32
    %c0_i32_0 = arith.constant 0 : i32
    %c0_i32_1 = arith.constant 0 : i32
    return %c0_i32, %c0_i32_0 : i32, i32
  }
  func.func @transform_3(%arg0: i32) -> (i32, i32) {
    %c0_i32 = arith.constant 0 : i32
    %c0_i32_0 = arith.constant 0 : i32
    %c0_i32_1 = arith.constant 0 : i32
    return %c0_i32, %c0_i32_0 : i32, i32
  }
  func.func @transform_4(%arg0: i32) -> (i32, i32) {
    %c0_i32 = arith.constant 0 : i32
    %c0_i32_0 = arith.constant 0 : i32
    %c0_i32_1 = arith.constant 0 : i32
    return %c0_i32, %c0_i32_0 : i32, i32
  }
}

module attributes {stable_mosaic.version = 11 : i64} {
  func.func @_conv_bn_relu_kernel(%arg0: i32, %arg1: memref<512x144xbf16, #tpu.memory_space<vmem>>, %arg2: memref<144x128xbf16, #tpu.memory_space<vmem>>, %arg3: memref<1x128xf32, #tpu.memory_space<vmem>>, %arg4: memref<1x128xf32, #tpu.memory_space<vmem>>, %arg5: memref<512x128xbf16, #tpu.memory_space<vmem>>) attributes {dimension_semantics = [#tpu.dimension_semantics<arbitrary>], iteration_bounds = array<i64: 1>, scalar_prefetch = 0 : i64, scratch_operands = 0 : i64, tpu.core_type = #tpu.core_type<tc>, window_params = [{pipeline_mode = #tpu.pipeline_mode<synchronous>, transform_indices = @transform_0, window_bounds = array<i64: 512, 144>}, {pipeline_mode = #tpu.pipeline_mode<synchronous>, transform_indices = @transform_1, window_bounds = array<i64: 144, 128>}, {pipeline_mode = #tpu.pipeline_mode<synchronous>, transform_indices = @transform_2, window_bounds = array<i64: 1, 128>}, {pipeline_mode = #tpu.pipeline_mode<synchronous>, transform_indices = @transform_3, window_bounds = array<i64: 1, 128>}, {pipeline_mode = #tpu.pipeline_mode<synchronous>, transform_indices = @transform_4, window_bounds = array<i64: 512, 128>}]} {
    %c0 = arith.constant 0 : index
    %c0_0 = arith.constant 0 : index
    %0 = vector.load %arg1[%c0, %c0_0] : memref<512x144xbf16, #tpu.memory_space<vmem>>, vector<512x144xbf16>
    %c0_1 = arith.constant 0 : index
    %c0_2 = arith.constant 0 : index
    %1 = vector.load %arg2[%c0_1, %c0_2] : memref<144x128xbf16, #tpu.memory_space<vmem>>, vector<144x128xbf16>
    %cst = arith.constant dense<0.000000e+00> : vector<512x128xf32>
    %2 = tpu.matmul %0, %1, %cst {dimension_numbers = #tpu.dot_dimension_numbers<[1], [0], [0], [1], [0, 0, 1, 1], [], []>} : vector<512x144xbf16>, vector<144x128xbf16>, vector<512x128xf32> -> vector<512x128xf32>
    %c0_3 = arith.constant 0 : index
    %c0_4 = arith.constant 0 : index
    %3 = vector.load %arg3[%c0_3, %c0_4] : memref<1x128xf32, #tpu.memory_space<vmem>>, vector<1x128xf32>
    %c0_5 = arith.constant 0 : index
    %c0_6 = arith.constant 0 : index
    %4 = vector.load %arg4[%c0_5, %c0_6] : memref<1x128xf32, #tpu.memory_space<vmem>>, vector<1x128xf32>
    %cst_7 = arith.constant dense<0.000000e+00> : vector<128xf32>
    %5 = vector.multi_reduction <add>, %2, %cst_7 [0] : vector<512x128xf32> to vector<128xf32>
    %6 = vector.shape_cast %5 : vector<128xf32> to vector<1x128xf32>
    %cst_8 = arith.constant 0.001953125 : f32
    %7 = vector.broadcast %cst_8 : f32 to vector<1x128xf32>
    %8 = arith.mulf %6, %7 : vector<1x128xf32>
    %9 = vector.broadcast %8 : vector<1x128xf32> to vector<512x128xf32>
    %10 = arith.subf %2, %9 : vector<512x128xf32>
    %11 = arith.mulf %10, %10 : vector<512x128xf32>
    %cst_9 = arith.constant dense<0.000000e+00> : vector<128xf32>
    %12 = vector.multi_reduction <add>, %11, %cst_9 [0] : vector<512x128xf32> to vector<128xf32>
    %13 = vector.shape_cast %12 : vector<128xf32> to vector<1x128xf32>
    %cst_10 = arith.constant 0.001953125 : f32
    %14 = vector.broadcast %cst_10 : f32 to vector<1x128xf32>
    %15 = arith.mulf %13, %14 : vector<1x128xf32>
    %cst_11 = arith.constant 9.99999974E-6 : f32
    %16 = vector.broadcast %cst_11 : f32 to vector<1x128xf32>
    %17 = arith.addf %15, %16 : vector<1x128xf32>
    %18 = math.rsqrt %17 : vector<1x128xf32>
    %19 = arith.mulf %3, %18 : vector<1x128xf32>
    %20 = arith.mulf %8, %19 : vector<1x128xf32>
    %21 = arith.subf %4, %20 : vector<1x128xf32>
    %22 = vector.broadcast %19 : vector<1x128xf32> to vector<512x128xf32>
    %23 = arith.mulf %2, %22 : vector<512x128xf32>
    %24 = vector.broadcast %21 : vector<1x128xf32> to vector<512x128xf32>
    %25 = arith.addf %23, %24 : vector<512x128xf32>
    %cst_12 = arith.constant 0.000000e+00 : f32
    %26 = vector.broadcast %cst_12 : f32 to vector<512x128xf32>
    %27 = arith.maximumf %25, %26 : vector<512x128xf32>
    %28 = arith.truncf %27 : vector<512x128xf32> to vector<512x128xbf16>
    %c0_13 = arith.constant 0 : index
    %c0_14 = arith.constant 0 : index
    %29 = vector.load %arg5[%c0_13, %c0_14] : memref<512x128xbf16, #tpu.memory_space<vmem>>, vector<512x128xbf16>
    tpu.vector_store %arg5[%c0_13, %c0_14], %28 {strides = array<i32>} : memref<512x128xbf16, #tpu.memory_space<vmem>>, vector<512x128xbf16>,
    return
  }
  func.func @transform_0(%arg0: i32) -> (i32, i32) {
    %c0_i32 = arith.constant 0 : i32
    %c0_i32_0 = arith.constant 0 : i32
    %c0_i32_1 = arith.constant 0 : i32
    return %c0_i32, %c0_i32_0 : i32, i32
  }
  func.func @transform_1(%arg0: i32) -> (i32, i32) {
    %c0_i32 = arith.constant 0 : i32
    %c0_i32_0 = arith.constant 0 : i32
    %c0_i32_1 = arith.constant 0 : i32
    return %c0_i32, %c0_i32_0 : i32, i32
  }
  func.func @transform_2(%arg0: i32) -> (i32, i32) {
    %c0_i32 = arith.constant 0 : i32
    %c0_i32_0 = arith.constant 0 : i32
    %c0_i32_1 = arith.constant 0 : i32
    return %c0_i32, %c0_i32_0 : i32, i32
  }
  func.func @transform_3(%arg0: i32) -> (i32, i32) {
    %c0_i32 = arith.constant 0 : i32
    %c0_i32_0 = arith.constant 0 : i32
    %c0_i32_1 = arith.constant 0 : i32
    return %c0_i32, %c0_i32_0 : i32, i32
  }
  func.func @transform_4(%arg0: i32) -> (i32, i32) {
    %c0_i32 = arith.constant 0 : i32
    %c0_i32_0 = arith.constant 0 : i32
    %c0_i32_1 = arith.constant 0 : i32
    return %c0_i32, %c0_i32_0 : i32, i32
  }
}

module attributes {stable_mosaic.version = 11 : i64} {
  func.func @_conv_bn_add_relu_kernel(%arg0: i32, %arg1: memref<512x144xbf16, #tpu.memory_space<vmem>>, %arg2: memref<144x128xbf16, #tpu.memory_space<vmem>>, %arg3: memref<1x128xf32, #tpu.memory_space<vmem>>, %arg4: memref<1x128xf32, #tpu.memory_space<vmem>>, %arg5: memref<512x128xbf16, #tpu.memory_space<vmem>>, %arg6: memref<512x128xbf16, #tpu.memory_space<vmem>>) attributes {dimension_semantics = [#tpu.dimension_semantics<arbitrary>], iteration_bounds = array<i64: 1>, scalar_prefetch = 0 : i64, scratch_operands = 0 : i64, tpu.core_type = #tpu.core_type<tc>, window_params = [{pipeline_mode = #tpu.pipeline_mode<synchronous>, transform_indices = @transform_0, window_bounds = array<i64: 512, 144>}, {pipeline_mode = #tpu.pipeline_mode<synchronous>, transform_indices = @transform_1, window_bounds = array<i64: 144, 128>}, {pipeline_mode = #tpu.pipeline_mode<synchronous>, transform_indices = @transform_2, window_bounds = array<i64: 1, 128>}, {pipeline_mode = #tpu.pipeline_mode<synchronous>, transform_indices = @transform_3, window_bounds = array<i64: 1, 128>}, {pipeline_mode = #tpu.pipeline_mode<synchronous>, transform_indices = @transform_4, window_bounds = array<i64: 512, 128>}, {pipeline_mode = #tpu.pipeline_mode<synchronous>, transform_indices = @transform_5, window_bounds = array<i64: 512, 128>}]} {
    %c0 = arith.constant 0 : index
    %c0_0 = arith.constant 0 : index
    %0 = vector.load %arg1[%c0, %c0_0] : memref<512x144xbf16, #tpu.memory_space<vmem>>, vector<512x144xbf16>
    %c0_1 = arith.constant 0 : index
    %c0_2 = arith.constant 0 : index
    %1 = vector.load %arg2[%c0_1, %c0_2] : memref<144x128xbf16, #tpu.memory_space<vmem>>, vector<144x128xbf16>
    %cst = arith.constant dense<0.000000e+00> : vector<512x128xf32>
    %2 = tpu.matmul %0, %1, %cst {dimension_numbers = #tpu.dot_dimension_numbers<[1], [0], [0], [1], [0, 0, 1, 1], [], []>} : vector<512x144xbf16>, vector<144x128xbf16>, vector<512x128xf32> -> vector<512x128xf32>
    %c0_3 = arith.constant 0 : index
    %c0_4 = arith.constant 0 : index
    %3 = vector.load %arg3[%c0_3, %c0_4] : memref<1x128xf32, #tpu.memory_space<vmem>>, vector<1x128xf32>
    %c0_5 = arith.constant 0 : index
    %c0_6 = arith.constant 0 : index
    %4 = vector.load %arg4[%c0_5, %c0_6] : memref<1x128xf32, #tpu.memory_space<vmem>>, vector<1x128xf32>
    %cst_7 = arith.constant dense<0.000000e+00> : vector<128xf32>
    %5 = vector.multi_reduction <add>, %2, %cst_7 [0] : vector<512x128xf32> to vector<128xf32>
    %6 = vector.shape_cast %5 : vector<128xf32> to vector<1x128xf32>
    %cst_8 = arith.constant 0.001953125 : f32
    %7 = vector.broadcast %cst_8 : f32 to vector<1x128xf32>
    %8 = arith.mulf %6, %7 : vector<1x128xf32>
    %9 = vector.broadcast %8 : vector<1x128xf32> to vector<512x128xf32>
    %10 = arith.subf %2, %9 : vector<512x128xf32>
    %11 = arith.mulf %10, %10 : vector<512x128xf32>
    %cst_9 = arith.constant dense<0.000000e+00> : vector<128xf32>
    %12 = vector.multi_reduction <add>, %11, %cst_9 [0] : vector<512x128xf32> to vector<128xf32>
    %13 = vector.shape_cast %12 : vector<128xf32> to vector<1x128xf32>
    %cst_10 = arith.constant 0.001953125 : f32
    %14 = vector.broadcast %cst_10 : f32 to vector<1x128xf32>
    %15 = arith.mulf %13, %14 : vector<1x128xf32>
    %cst_11 = arith.constant 9.99999974E-6 : f32
    %16 = vector.broadcast %cst_11 : f32 to vector<1x128xf32>
    %17 = arith.addf %15, %16 : vector<1x128xf32>
    %18 = math.rsqrt %17 : vector<1x128xf32>
    %19 = arith.mulf %3, %18 : vector<1x128xf32>
    %20 = arith.mulf %8, %19 : vector<1x128xf32>
    %21 = arith.subf %4, %20 : vector<1x128xf32>
    %22 = vector.broadcast %19 : vector<1x128xf32> to vector<512x128xf32>
    %23 = arith.mulf %2, %22 : vector<512x128xf32>
    %24 = vector.broadcast %21 : vector<1x128xf32> to vector<512x128xf32>
    %25 = arith.addf %23, %24 : vector<512x128xf32>
    %c0_12 = arith.constant 0 : index
    %c0_13 = arith.constant 0 : index
    %26 = vector.load %arg5[%c0_12, %c0_13] : memref<512x128xbf16, #tpu.memory_space<vmem>>, vector<512x128xbf16>
    %27 = arith.extf %26 : vector<512x128xbf16> to vector<512x128xf32>
    %28 = arith.addf %25, %27 : vector<512x128xf32>
    %cst_14 = arith.constant 0.000000e+00 : f32
    %29 = vector.broadcast %cst_14 : f32 to vector<512x128xf32>
    %30 = arith.maximumf %28, %29 : vector<512x128xf32>
    %31 = arith.truncf %30 : vector<512x128xf32> to vector<512x128xbf16>
    %c0_15 = arith.constant 0 : index
    %c0_16 = arith.constant 0 : index
    %32 = vector.load %arg6[%c0_15, %c0_16] : memref<512x128xbf16, #tpu.memory_space<vmem>>, vector<512x128xbf16>
    tpu.vector_store %arg6[%c0_15, %c0_16], %31 {strides = array<i32>} : memref<512x128xbf16, #tpu.memory_space<vmem>>, vector<512x128xbf16>,
    return
  }
  func.func @transform_0(%arg0: i32) -> (i32, i32) {
    %c0_i32 = arith.constant 0 : i32
    %c0_i32_0 = arith.constant 0 : i32
    %c0_i32_1 = arith.constant 0 : i32
    return %c0_i32, %c0_i32_0 : i32, i32
  }
  func.func @transform_1(%arg0: i32) -> (i32, i32) {
    %c0_i32 = arith.constant 0 : i32
    %c0_i32_0 = arith.constant 0 : i32
    %c0_i32_1 = arith.constant 0 : i32
    return %c0_i32, %c0_i32_0 : i32, i32
  }
  func.func @transform_2(%arg0: i32) -> (i32, i32) {
    %c0_i32 = arith.constant 0 : i32
    %c0_i32_0 = arith.constant 0 : i32
    %c0_i32_1 = arith.constant 0 : i32
    return %c0_i32, %c0_i32_0 : i32, i32
  }
  func.func @transform_3(%arg0: i32) -> (i32, i32) {
    %c0_i32 = arith.constant 0 : i32
    %c0_i32_0 = arith.constant 0 : i32
    %c0_i32_1 = arith.constant 0 : i32
    return %c0_i32, %c0_i32_0 : i32, i32
  }
  func.func @transform_4(%arg0: i32) -> (i32, i32) {
    %c0_i32 = arith.constant 0 : i32
    %c0_i32_0 = arith.constant 0 : i32
    %c0_i32_1 = arith.constant 0 : i32
    return %c0_i32, %c0_i32_0 : i32, i32
  }
  func.func @transform_5(%arg0: i32) -> (i32, i32) {
    %c0_i32 = arith.constant 0 : i32
    %c0_i32_0 = arith.constant 0 : i32
    %c0_i32_1 = arith.constant 0 : i32
    return %c0_i32, %c0_i32_0 : i32, i32
  }
}

module attributes {stable_mosaic.version = 11 : i64} {
  func.func @_conv_bn_relu_kernel(%arg0: i32, %arg1: memref<128x144xbf16, #tpu.memory_space<vmem>>, %arg2: memref<144x128xbf16, #tpu.memory_space<vmem>>, %arg3: memref<1x128xf32, #tpu.memory_space<vmem>>, %arg4: memref<1x128xf32, #tpu.memory_space<vmem>>, %arg5: memref<128x128xbf16, #tpu.memory_space<vmem>>) attributes {dimension_semantics = [#tpu.dimension_semantics<arbitrary>], iteration_bounds = array<i64: 1>, scalar_prefetch = 0 : i64, scratch_operands = 0 : i64, tpu.core_type = #tpu.core_type<tc>, window_params = [{pipeline_mode = #tpu.pipeline_mode<synchronous>, transform_indices = @transform_0, window_bounds = array<i64: 128, 144>}, {pipeline_mode = #tpu.pipeline_mode<synchronous>, transform_indices = @transform_1, window_bounds = array<i64: 144, 128>}, {pipeline_mode = #tpu.pipeline_mode<synchronous>, transform_indices = @transform_2, window_bounds = array<i64: 1, 128>}, {pipeline_mode = #tpu.pipeline_mode<synchronous>, transform_indices = @transform_3, window_bounds = array<i64: 1, 128>}, {pipeline_mode = #tpu.pipeline_mode<synchronous>, transform_indices = @transform_4, window_bounds = array<i64: 128, 128>}]} {
    %c0 = arith.constant 0 : index
    %c0_0 = arith.constant 0 : index
    %0 = vector.load %arg1[%c0, %c0_0] : memref<128x144xbf16, #tpu.memory_space<vmem>>, vector<128x144xbf16>
    %c0_1 = arith.constant 0 : index
    %c0_2 = arith.constant 0 : index
    %1 = vector.load %arg2[%c0_1, %c0_2] : memref<144x128xbf16, #tpu.memory_space<vmem>>, vector<144x128xbf16>
    %cst = arith.constant dense<0.000000e+00> : vector<128x128xf32>
    %2 = tpu.matmul %0, %1, %cst {dimension_numbers = #tpu.dot_dimension_numbers<[1], [0], [0], [1], [0, 0, 1, 1], [], []>} : vector<128x144xbf16>, vector<144x128xbf16>, vector<128x128xf32> -> vector<128x128xf32>
    %c0_3 = arith.constant 0 : index
    %c0_4 = arith.constant 0 : index
    %3 = vector.load %arg3[%c0_3, %c0_4] : memref<1x128xf32, #tpu.memory_space<vmem>>, vector<1x128xf32>
    %c0_5 = arith.constant 0 : index
    %c0_6 = arith.constant 0 : index
    %4 = vector.load %arg4[%c0_5, %c0_6] : memref<1x128xf32, #tpu.memory_space<vmem>>, vector<1x128xf32>
    %cst_7 = arith.constant dense<0.000000e+00> : vector<128xf32>
    %5 = vector.multi_reduction <add>, %2, %cst_7 [0] : vector<128x128xf32> to vector<128xf32>
    %6 = vector.shape_cast %5 : vector<128xf32> to vector<1x128xf32>
    %cst_8 = arith.constant 7.812500e-03 : f32
    %7 = vector.broadcast %cst_8 : f32 to vector<1x128xf32>
    %8 = arith.mulf %6, %7 : vector<1x128xf32>
    %9 = vector.broadcast %8 : vector<1x128xf32> to vector<128x128xf32>
    %10 = arith.subf %2, %9 : vector<128x128xf32>
    %11 = arith.mulf %10, %10 : vector<128x128xf32>
    %cst_9 = arith.constant dense<0.000000e+00> : vector<128xf32>
    %12 = vector.multi_reduction <add>, %11, %cst_9 [0] : vector<128x128xf32> to vector<128xf32>
    %13 = vector.shape_cast %12 : vector<128xf32> to vector<1x128xf32>
    %cst_10 = arith.constant 7.812500e-03 : f32
    %14 = vector.broadcast %cst_10 : f32 to vector<1x128xf32>
    %15 = arith.mulf %13, %14 : vector<1x128xf32>
    %cst_11 = arith.constant 9.99999974E-6 : f32
    %16 = vector.broadcast %cst_11 : f32 to vector<1x128xf32>
    %17 = arith.addf %15, %16 : vector<1x128xf32>
    %18 = math.rsqrt %17 : vector<1x128xf32>
    %19 = arith.mulf %3, %18 : vector<1x128xf32>
    %20 = arith.mulf %8, %19 : vector<1x128xf32>
    %21 = arith.subf %4, %20 : vector<1x128xf32>
    %22 = vector.broadcast %19 : vector<1x128xf32> to vector<128x128xf32>
    %23 = arith.mulf %2, %22 : vector<128x128xf32>
    %24 = vector.broadcast %21 : vector<1x128xf32> to vector<128x128xf32>
    %25 = arith.addf %23, %24 : vector<128x128xf32>
    %cst_12 = arith.constant 0.000000e+00 : f32
    %26 = vector.broadcast %cst_12 : f32 to vector<128x128xf32>
    %27 = arith.maximumf %25, %26 : vector<128x128xf32>
    %28 = arith.truncf %27 : vector<128x128xf32> to vector<128x128xbf16>
    %c0_13 = arith.constant 0 : index
    %c0_14 = arith.constant 0 : index
    %29 = vector.load %arg5[%c0_13, %c0_14] : memref<128x128xbf16, #tpu.memory_space<vmem>>, vector<128x128xbf16>
    tpu.vector_store %arg5[%c0_13, %c0_14], %28 {strides = array<i32>} : memref<128x128xbf16, #tpu.memory_space<vmem>>, vector<128x128xbf16>,
    return
  }
  func.func @transform_0(%arg0: i32) -> (i32, i32) {
    %c0_i32 = arith.constant 0 : i32
    %c0_i32_0 = arith.constant 0 : i32
    %c0_i32_1 = arith.constant 0 : i32
    return %c0_i32, %c0_i32_0 : i32, i32
  }
  func.func @transform_1(%arg0: i32) -> (i32, i32) {
    %c0_i32 = arith.constant 0 : i32
    %c0_i32_0 = arith.constant 0 : i32
    %c0_i32_1 = arith.constant 0 : i32
    return %c0_i32, %c0_i32_0 : i32, i32
  }
  func.func @transform_2(%arg0: i32) -> (i32, i32) {
    %c0_i32 = arith.constant 0 : i32
    %c0_i32_0 = arith.constant 0 : i32
    %c0_i32_1 = arith.constant 0 : i32
    return %c0_i32, %c0_i32_0 : i32, i32
  }
  func.func @transform_3(%arg0: i32) -> (i32, i32) {
    %c0_i32 = arith.constant 0 : i32
    %c0_i32_0 = arith.constant 0 : i32
    %c0_i32_1 = arith.constant 0 : i32
    return %c0_i32, %c0_i32_0 : i32, i32
  }
  func.func @transform_4(%arg0: i32) -> (i32, i32) {
    %c0_i32 = arith.constant 0 : i32
    %c0_i32_0 = arith.constant 0 : i32
    %c0_i32_1 = arith.constant 0 : i32
    return %c0_i32, %c0_i32_0 : i32, i32
  }
}

module attributes {stable_mosaic.version = 11 : i64} {
  func.func @_conv_bn_proj_add_relu_kernel(%arg0: i32, %arg1: memref<128x288xbf16, #tpu.memory_space<vmem>>, %arg2: memref<288x128xbf16, #tpu.memory_space<vmem>>, %arg3: memref<1x128xf32, #tpu.memory_space<vmem>>, %arg4: memref<1x128xf32, #tpu.memory_space<vmem>>, %arg5: memref<128x16xbf16, #tpu.memory_space<vmem>>, %arg6: memref<16x128xbf16, #tpu.memory_space<vmem>>, %arg7: memref<1x128xf32, #tpu.memory_space<vmem>>, %arg8: memref<1x128xf32, #tpu.memory_space<vmem>>, %arg9: memref<128x128xbf16, #tpu.memory_space<vmem>>) attributes {dimension_semantics = [#tpu.dimension_semantics<arbitrary>], iteration_bounds = array<i64: 1>, scalar_prefetch = 0 : i64, scratch_operands = 0 : i64, tpu.core_type = #tpu.core_type<tc>, window_params = [{pipeline_mode = #tpu.pipeline_mode<synchronous>, transform_indices = @transform_0, window_bounds = array<i64: 128, 288>}, {pipeline_mode = #tpu.pipeline_mode<synchronous>, transform_indices = @transform_1, window_bounds = array<i64: 288, 128>}, {pipeline_mode = #tpu.pipeline_mode<synchronous>, transform_indices = @transform_2, window_bounds = array<i64: 1, 128>}, {pipeline_mode = #tpu.pipeline_mode<synchronous>, transform_indices = @transform_3, window_bounds = array<i64: 1, 128>}, {pipeline_mode = #tpu.pipeline_mode<synchronous>, transform_indices = @transform_4, window_bounds = array<i64: 128, 16>}, {pipeline_mode = #tpu.pipeline_mode<synchronous>, transform_indices = @transform_5, window_bounds = array<i64: 16, 128>}, {pipeline_mode = #tpu.pipeline_mode<synchronous>, transform_indices = @transform_6, window_bounds = array<i64: 1, 128>}, {pipeline_mode = #tpu.pipeline_mode<synchronous>, transform_indices = @transform_7, window_bounds = array<i64: 1, 128>}, {pipeline_mode = #tpu.pipeline_mode<synchronous>, transform_indices = @transform_8, window_bounds = array<i64: 128, 128>}]} {
    %c0 = arith.constant 0 : index
    %c0_0 = arith.constant 0 : index
    %0 = vector.load %arg1[%c0, %c0_0] : memref<128x288xbf16, #tpu.memory_space<vmem>>, vector<128x288xbf16>
    %c0_1 = arith.constant 0 : index
    %c0_2 = arith.constant 0 : index
    %1 = vector.load %arg2[%c0_1, %c0_2] : memref<288x128xbf16, #tpu.memory_space<vmem>>, vector<288x128xbf16>
    %cst = arith.constant dense<0.000000e+00> : vector<128x128xf32>
    %2 = tpu.matmul %0, %1, %cst {dimension_numbers = #tpu.dot_dimension_numbers<[1], [0], [0], [1], [0, 0, 1, 1], [], []>} : vector<128x288xbf16>, vector<288x128xbf16>, vector<128x128xf32> -> vector<128x128xf32>
    %c0_3 = arith.constant 0 : index
    %c0_4 = arith.constant 0 : index
    %3 = vector.load %arg3[%c0_3, %c0_4] : memref<1x128xf32, #tpu.memory_space<vmem>>, vector<1x128xf32>
    %c0_5 = arith.constant 0 : index
    %c0_6 = arith.constant 0 : index
    %4 = vector.load %arg4[%c0_5, %c0_6] : memref<1x128xf32, #tpu.memory_space<vmem>>, vector<1x128xf32>
    %cst_7 = arith.constant dense<0.000000e+00> : vector<128xf32>
    %5 = vector.multi_reduction <add>, %2, %cst_7 [0] : vector<128x128xf32> to vector<128xf32>
    %6 = vector.shape_cast %5 : vector<128xf32> to vector<1x128xf32>
    %cst_8 = arith.constant 7.812500e-03 : f32
    %7 = vector.broadcast %cst_8 : f32 to vector<1x128xf32>
    %8 = arith.mulf %6, %7 : vector<1x128xf32>
    %9 = vector.broadcast %8 : vector<1x128xf32> to vector<128x128xf32>
    %10 = arith.subf %2, %9 : vector<128x128xf32>
    %11 = arith.mulf %10, %10 : vector<128x128xf32>
    %cst_9 = arith.constant dense<0.000000e+00> : vector<128xf32>
    %12 = vector.multi_reduction <add>, %11, %cst_9 [0] : vector<128x128xf32> to vector<128xf32>
    %13 = vector.shape_cast %12 : vector<128xf32> to vector<1x128xf32>
    %cst_10 = arith.constant 7.812500e-03 : f32
    %14 = vector.broadcast %cst_10 : f32 to vector<1x128xf32>
    %15 = arith.mulf %13, %14 : vector<1x128xf32>
    %cst_11 = arith.constant 9.99999974E-6 : f32
    %16 = vector.broadcast %cst_11 : f32 to vector<1x128xf32>
    %17 = arith.addf %15, %16 : vector<1x128xf32>
    %18 = math.rsqrt %17 : vector<1x128xf32>
    %19 = arith.mulf %3, %18 : vector<1x128xf32>
    %20 = arith.mulf %8, %19 : vector<1x128xf32>
    %21 = arith.subf %4, %20 : vector<1x128xf32>
    %c0_12 = arith.constant 0 : index
    %c0_13 = arith.constant 0 : index
    %22 = vector.load %arg5[%c0_12, %c0_13] : memref<128x16xbf16, #tpu.memory_space<vmem>>, vector<128x16xbf16>
    %c0_14 = arith.constant 0 : index
    %c0_15 = arith.constant 0 : index
    %23 = vector.load %arg6[%c0_14, %c0_15] : memref<16x128xbf16, #tpu.memory_space<vmem>>, vector<16x128xbf16>
    %cst_16 = arith.constant dense<0.000000e+00> : vector<128x128xf32>
    %24 = tpu.matmul %22, %23, %cst_16 {dimension_numbers = #tpu.dot_dimension_numbers<[1], [0], [0], [1], [0, 0, 1, 1], [], []>} : vector<128x16xbf16>, vector<16x128xbf16>, vector<128x128xf32> -> vector<128x128xf32>
    %c0_17 = arith.constant 0 : index
    %c0_18 = arith.constant 0 : index
    %25 = vector.load %arg7[%c0_17, %c0_18] : memref<1x128xf32, #tpu.memory_space<vmem>>, vector<1x128xf32>
    %c0_19 = arith.constant 0 : index
    %c0_20 = arith.constant 0 : index
    %26 = vector.load %arg8[%c0_19, %c0_20] : memref<1x128xf32, #tpu.memory_space<vmem>>, vector<1x128xf32>
    %cst_21 = arith.constant dense<0.000000e+00> : vector<128xf32>
    %27 = vector.multi_reduction <add>, %24, %cst_21 [0] : vector<128x128xf32> to vector<128xf32>
    %28 = vector.shape_cast %27 : vector<128xf32> to vector<1x128xf32>
    %cst_22 = arith.constant 7.812500e-03 : f32
    %29 = vector.broadcast %cst_22 : f32 to vector<1x128xf32>
    %30 = arith.mulf %28, %29 : vector<1x128xf32>
    %31 = vector.broadcast %30 : vector<1x128xf32> to vector<128x128xf32>
    %32 = arith.subf %24, %31 : vector<128x128xf32>
    %33 = arith.mulf %32, %32 : vector<128x128xf32>
    %cst_23 = arith.constant dense<0.000000e+00> : vector<128xf32>
    %34 = vector.multi_reduction <add>, %33, %cst_23 [0] : vector<128x128xf32> to vector<128xf32>
    %35 = vector.shape_cast %34 : vector<128xf32> to vector<1x128xf32>
    %cst_24 = arith.constant 7.812500e-03 : f32
    %36 = vector.broadcast %cst_24 : f32 to vector<1x128xf32>
    %37 = arith.mulf %35, %36 : vector<1x128xf32>
    %cst_25 = arith.constant 9.99999974E-6 : f32
    %38 = vector.broadcast %cst_25 : f32 to vector<1x128xf32>
    %39 = arith.addf %37, %38 : vector<1x128xf32>
    %40 = math.rsqrt %39 : vector<1x128xf32>
    %41 = arith.mulf %25, %40 : vector<1x128xf32>
    %42 = arith.mulf %30, %41 : vector<1x128xf32>
    %43 = arith.subf %26, %42 : vector<1x128xf32>
    %44 = vector.broadcast %19 : vector<1x128xf32> to vector<128x128xf32>
    %45 = arith.mulf %2, %44 : vector<128x128xf32>
    %46 = vector.broadcast %21 : vector<1x128xf32> to vector<128x128xf32>
    %47 = arith.addf %45, %46 : vector<128x128xf32>
    %48 = vector.broadcast %41 : vector<1x128xf32> to vector<128x128xf32>
    %49 = arith.mulf %24, %48 : vector<128x128xf32>
    %50 = vector.broadcast %43 : vector<1x128xf32> to vector<128x128xf32>
    %51 = arith.addf %49, %50 : vector<128x128xf32>
    %52 = arith.addf %47, %51 : vector<128x128xf32>
    %cst_26 = arith.constant 0.000000e+00 : f32
    %53 = vector.broadcast %cst_26 : f32 to vector<128x128xf32>
    %54 = arith.maximumf %52, %53 : vector<128x128xf32>
    %55 = arith.truncf %54 : vector<128x128xf32> to vector<128x128xbf16>
    %c0_27 = arith.constant 0 : index
    %c0_28 = arith.constant 0 : index
    %56 = vector.load %arg9[%c0_27, %c0_28] : memref<128x128xbf16, #tpu.memory_space<vmem>>, vector<128x128xbf16>
    tpu.vector_store %arg9[%c0_27, %c0_28], %55 {strides = array<i32>} : memref<128x128xbf16, #tpu.memory_space<vmem>>, vector<128x128xbf16>,
    return
  }
  func.func @transform_0(%arg0: i32) -> (i32, i32) {
    %c0_i32 = arith.constant 0 : i32
    %c0_i32_0 = arith.constant 0 : i32
    %c0_i32_1 = arith.constant 0 : i32
    return %c0_i32, %c0_i32_0 : i32, i32
  }
  func.func @transform_1(%arg0: i32) -> (i32, i32) {
    %c0_i32 = arith.constant 0 : i32
    %c0_i32_0 = arith.constant 0 : i32
    %c0_i32_1 = arith.constant 0 : i32
    return %c0_i32, %c0_i32_0 : i32, i32
  }
  func.func @transform_2(%arg0: i32) -> (i32, i32) {
    %c0_i32 = arith.constant 0 : i32
    %c0_i32_0 = arith.constant 0 : i32
    %c0_i32_1 = arith.constant 0 : i32
    return %c0_i32, %c0_i32_0 : i32, i32
  }
  func.func @transform_3(%arg0: i32) -> (i32, i32) {
    %c0_i32 = arith.constant 0 : i32
    %c0_i32_0 = arith.constant 0 : i32
    %c0_i32_1 = arith.constant 0 : i32
    return %c0_i32, %c0_i32_0 : i32, i32
  }
  func.func @transform_4(%arg0: i32) -> (i32, i32) {
    %c0_i32 = arith.constant 0 : i32
    %c0_i32_0 = arith.constant 0 : i32
    %c0_i32_1 = arith.constant 0 : i32
    return %c0_i32, %c0_i32_0 : i32, i32
  }
  func.func @transform_5(%arg0: i32) -> (i32, i32) {
    %c0_i32 = arith.constant 0 : i32
    %c0_i32_0 = arith.constant 0 : i32
    %c0_i32_1 = arith.constant 0 : i32
    return %c0_i32, %c0_i32_0 : i32, i32
  }
  func.func @transform_6(%arg0: i32) -> (i32, i32) {
    %c0_i32 = arith.constant 0 : i32
    %c0_i32_0 = arith.constant 0 : i32
    %c0_i32_1 = arith.constant 0 : i32
    return %c0_i32, %c0_i32_0 : i32, i32
  }
  func.func @transform_7(%arg0: i32) -> (i32, i32) {
    %c0_i32 = arith.constant 0 : i32
    %c0_i32_0 = arith.constant 0 : i32
    %c0_i32_1 = arith.constant 0 : i32
    return %c0_i32, %c0_i32_0 : i32, i32
  }
  func.func @transform_8(%arg0: i32) -> (i32, i32) {
    %c0_i32 = arith.constant 0 : i32
    %c0_i32_0 = arith.constant 0 : i32
    %c0_i32_1 = arith.constant 0 : i32
    return %c0_i32, %c0_i32_0 : i32, i32
  }
}

module attributes {stable_mosaic.version = 11 : i64} {
  func.func @_conv_bn_relu_kernel(%arg0: i32, %arg1: memref<128x288xbf16, #tpu.memory_space<vmem>>, %arg2: memref<288x128xbf16, #tpu.memory_space<vmem>>, %arg3: memref<1x128xf32, #tpu.memory_space<vmem>>, %arg4: memref<1x128xf32, #tpu.memory_space<vmem>>, %arg5: memref<128x128xbf16, #tpu.memory_space<vmem>>) attributes {dimension_semantics = [#tpu.dimension_semantics<arbitrary>], iteration_bounds = array<i64: 1>, scalar_prefetch = 0 : i64, scratch_operands = 0 : i64, tpu.core_type = #tpu.core_type<tc>, window_params = [{pipeline_mode = #tpu.pipeline_mode<synchronous>, transform_indices = @transform_0, window_bounds = array<i64: 128, 288>}, {pipeline_mode = #tpu.pipeline_mode<synchronous>, transform_indices = @transform_1, window_bounds = array<i64: 288, 128>}, {pipeline_mode = #tpu.pipeline_mode<synchronous>, transform_indices = @transform_2, window_bounds = array<i64: 1, 128>}, {pipeline_mode = #tpu.pipeline_mode<synchronous>, transform_indices = @transform_3, window_bounds = array<i64: 1, 128>}, {pipeline_mode = #tpu.pipeline_mode<synchronous>, transform_indices = @transform_4, window_bounds = array<i64: 128, 128>}]} {
    %c0 = arith.constant 0 : index
    %c0_0 = arith.constant 0 : index
    %0 = vector.load %arg1[%c0, %c0_0] : memref<128x288xbf16, #tpu.memory_space<vmem>>, vector<128x288xbf16>
    %c0_1 = arith.constant 0 : index
    %c0_2 = arith.constant 0 : index
    %1 = vector.load %arg2[%c0_1, %c0_2] : memref<288x128xbf16, #tpu.memory_space<vmem>>, vector<288x128xbf16>
    %cst = arith.constant dense<0.000000e+00> : vector<128x128xf32>
    %2 = tpu.matmul %0, %1, %cst {dimension_numbers = #tpu.dot_dimension_numbers<[1], [0], [0], [1], [0, 0, 1, 1], [], []>} : vector<128x288xbf16>, vector<288x128xbf16>, vector<128x128xf32> -> vector<128x128xf32>
    %c0_3 = arith.constant 0 : index
    %c0_4 = arith.constant 0 : index
    %3 = vector.load %arg3[%c0_3, %c0_4] : memref<1x128xf32, #tpu.memory_space<vmem>>, vector<1x128xf32>
    %c0_5 = arith.constant 0 : index
    %c0_6 = arith.constant 0 : index
    %4 = vector.load %arg4[%c0_5, %c0_6] : memref<1x128xf32, #tpu.memory_space<vmem>>, vector<1x128xf32>
    %cst_7 = arith.constant dense<0.000000e+00> : vector<128xf32>
    %5 = vector.multi_reduction <add>, %2, %cst_7 [0] : vector<128x128xf32> to vector<128xf32>
    %6 = vector.shape_cast %5 : vector<128xf32> to vector<1x128xf32>
    %cst_8 = arith.constant 7.812500e-03 : f32
    %7 = vector.broadcast %cst_8 : f32 to vector<1x128xf32>
    %8 = arith.mulf %6, %7 : vector<1x128xf32>
    %9 = vector.broadcast %8 : vector<1x128xf32> to vector<128x128xf32>
    %10 = arith.subf %2, %9 : vector<128x128xf32>
    %11 = arith.mulf %10, %10 : vector<128x128xf32>
    %cst_9 = arith.constant dense<0.000000e+00> : vector<128xf32>
    %12 = vector.multi_reduction <add>, %11, %cst_9 [0] : vector<128x128xf32> to vector<128xf32>
    %13 = vector.shape_cast %12 : vector<128xf32> to vector<1x128xf32>
    %cst_10 = arith.constant 7.812500e-03 : f32
    %14 = vector.broadcast %cst_10 : f32 to vector<1x128xf32>
    %15 = arith.mulf %13, %14 : vector<1x128xf32>
    %cst_11 = arith.constant 9.99999974E-6 : f32
    %16 = vector.broadcast %cst_11 : f32 to vector<1x128xf32>
    %17 = arith.addf %15, %16 : vector<1x128xf32>
    %18 = math.rsqrt %17 : vector<1x128xf32>
    %19 = arith.mulf %3, %18 : vector<1x128xf32>
    %20 = arith.mulf %8, %19 : vector<1x128xf32>
    %21 = arith.subf %4, %20 : vector<1x128xf32>
    %22 = vector.broadcast %19 : vector<1x128xf32> to vector<128x128xf32>
    %23 = arith.mulf %2, %22 : vector<128x128xf32>
    %24 = vector.broadcast %21 : vector<1x128xf32> to vector<128x128xf32>
    %25 = arith.addf %23, %24 : vector<128x128xf32>
    %cst_12 = arith.constant 0.000000e+00 : f32
    %26 = vector.broadcast %cst_12 : f32 to vector<128x128xf32>
    %27 = arith.maximumf %25, %26 : vector<128x128xf32>
    %28 = arith.truncf %27 : vector<128x128xf32> to vector<128x128xbf16>
    %c0_13 = arith.constant 0 : index
    %c0_14 = arith.constant 0 : index
    %29 = vector.load %arg5[%c0_13, %c0_14] : memref<128x128xbf16, #tpu.memory_space<vmem>>, vector<128x128xbf16>
    tpu.vector_store %arg5[%c0_13, %c0_14], %28 {strides = array<i32>} : memref<128x128xbf16, #tpu.memory_space<vmem>>, vector<128x128xbf16>,
    return
  }
  func.func @transform_0(%arg0: i32) -> (i32, i32) {
    %c0_i32 = arith.constant 0 : i32
    %c0_i32_0 = arith.constant 0 : i32
    %c0_i32_1 = arith.constant 0 : i32
    return %c0_i32, %c0_i32_0 : i32, i32
  }
  func.func @transform_1(%arg0: i32) -> (i32, i32) {
    %c0_i32 = arith.constant 0 : i32
    %c0_i32_0 = arith.constant 0 : i32
    %c0_i32_1 = arith.constant 0 : i32
    return %c0_i32, %c0_i32_0 : i32, i32
  }
  func.func @transform_2(%arg0: i32) -> (i32, i32) {
    %c0_i32 = arith.constant 0 : i32
    %c0_i32_0 = arith.constant 0 : i32
    %c0_i32_1 = arith.constant 0 : i32
    return %c0_i32, %c0_i32_0 : i32, i32
  }
  func.func @transform_3(%arg0: i32) -> (i32, i32) {
    %c0_i32 = arith.constant 0 : i32
    %c0_i32_0 = arith.constant 0 : i32
    %c0_i32_1 = arith.constant 0 : i32
    return %c0_i32, %c0_i32_0 : i32, i32
  }
  func.func @transform_4(%arg0: i32) -> (i32, i32) {
    %c0_i32 = arith.constant 0 : i32
    %c0_i32_0 = arith.constant 0 : i32
    %c0_i32_1 = arith.constant 0 : i32
    return %c0_i32, %c0_i32_0 : i32, i32
  }
}

module attributes {stable_mosaic.version = 11 : i64} {
  func.func @_conv_bn_add_relu_kernel(%arg0: i32, %arg1: memref<128x288xbf16, #tpu.memory_space<vmem>>, %arg2: memref<288x128xbf16, #tpu.memory_space<vmem>>, %arg3: memref<1x128xf32, #tpu.memory_space<vmem>>, %arg4: memref<1x128xf32, #tpu.memory_space<vmem>>, %arg5: memref<128x128xbf16, #tpu.memory_space<vmem>>, %arg6: memref<128x128xbf16, #tpu.memory_space<vmem>>) attributes {dimension_semantics = [#tpu.dimension_semantics<arbitrary>], iteration_bounds = array<i64: 1>, scalar_prefetch = 0 : i64, scratch_operands = 0 : i64, tpu.core_type = #tpu.core_type<tc>, window_params = [{pipeline_mode = #tpu.pipeline_mode<synchronous>, transform_indices = @transform_0, window_bounds = array<i64: 128, 288>}, {pipeline_mode = #tpu.pipeline_mode<synchronous>, transform_indices = @transform_1, window_bounds = array<i64: 288, 128>}, {pipeline_mode = #tpu.pipeline_mode<synchronous>, transform_indices = @transform_2, window_bounds = array<i64: 1, 128>}, {pipeline_mode = #tpu.pipeline_mode<synchronous>, transform_indices = @transform_3, window_bounds = array<i64: 1, 128>}, {pipeline_mode = #tpu.pipeline_mode<synchronous>, transform_indices = @transform_4, window_bounds = array<i64: 128, 128>}, {pipeline_mode = #tpu.pipeline_mode<synchronous>, transform_indices = @transform_5, window_bounds = array<i64: 128, 128>}]} {
    %c0 = arith.constant 0 : index
    %c0_0 = arith.constant 0 : index
    %0 = vector.load %arg1[%c0, %c0_0] : memref<128x288xbf16, #tpu.memory_space<vmem>>, vector<128x288xbf16>
    %c0_1 = arith.constant 0 : index
    %c0_2 = arith.constant 0 : index
    %1 = vector.load %arg2[%c0_1, %c0_2] : memref<288x128xbf16, #tpu.memory_space<vmem>>, vector<288x128xbf16>
    %cst = arith.constant dense<0.000000e+00> : vector<128x128xf32>
    %2 = tpu.matmul %0, %1, %cst {dimension_numbers = #tpu.dot_dimension_numbers<[1], [0], [0], [1], [0, 0, 1, 1], [], []>} : vector<128x288xbf16>, vector<288x128xbf16>, vector<128x128xf32> -> vector<128x128xf32>
    %c0_3 = arith.constant 0 : index
    %c0_4 = arith.constant 0 : index
    %3 = vector.load %arg3[%c0_3, %c0_4] : memref<1x128xf32, #tpu.memory_space<vmem>>, vector<1x128xf32>
    %c0_5 = arith.constant 0 : index
    %c0_6 = arith.constant 0 : index
    %4 = vector.load %arg4[%c0_5, %c0_6] : memref<1x128xf32, #tpu.memory_space<vmem>>, vector<1x128xf32>
    %cst_7 = arith.constant dense<0.000000e+00> : vector<128xf32>
    %5 = vector.multi_reduction <add>, %2, %cst_7 [0] : vector<128x128xf32> to vector<128xf32>
    %6 = vector.shape_cast %5 : vector<128xf32> to vector<1x128xf32>
    %cst_8 = arith.constant 7.812500e-03 : f32
    %7 = vector.broadcast %cst_8 : f32 to vector<1x128xf32>
    %8 = arith.mulf %6, %7 : vector<1x128xf32>
    %9 = vector.broadcast %8 : vector<1x128xf32> to vector<128x128xf32>
    %10 = arith.subf %2, %9 : vector<128x128xf32>
    %11 = arith.mulf %10, %10 : vector<128x128xf32>
    %cst_9 = arith.constant dense<0.000000e+00> : vector<128xf32>
    %12 = vector.multi_reduction <add>, %11, %cst_9 [0] : vector<128x128xf32> to vector<128xf32>
    %13 = vector.shape_cast %12 : vector<128xf32> to vector<1x128xf32>
    %cst_10 = arith.constant 7.812500e-03 : f32
    %14 = vector.broadcast %cst_10 : f32 to vector<1x128xf32>
    %15 = arith.mulf %13, %14 : vector<1x128xf32>
    %cst_11 = arith.constant 9.99999974E-6 : f32
    %16 = vector.broadcast %cst_11 : f32 to vector<1x128xf32>
    %17 = arith.addf %15, %16 : vector<1x128xf32>
    %18 = math.rsqrt %17 : vector<1x128xf32>
    %19 = arith.mulf %3, %18 : vector<1x128xf32>
    %20 = arith.mulf %8, %19 : vector<1x128xf32>
    %21 = arith.subf %4, %20 : vector<1x128xf32>
    %22 = vector.broadcast %19 : vector<1x128xf32> to vector<128x128xf32>
    %23 = arith.mulf %2, %22 : vector<128x128xf32>
    %24 = vector.broadcast %21 : vector<1x128xf32> to vector<128x128xf32>
    %25 = arith.addf %23, %24 : vector<128x128xf32>
    %c0_12 = arith.constant 0 : index
    %c0_13 = arith.constant 0 : index
    %26 = vector.load %arg5[%c0_12, %c0_13] : memref<128x128xbf16, #tpu.memory_space<vmem>>, vector<128x128xbf16>
    %27 = arith.extf %26 : vector<128x128xbf16> to vector<128x128xf32>
    %28 = arith.addf %25, %27 : vector<128x128xf32>
    %cst_14 = arith.constant 0.000000e+00 : f32
    %29 = vector.broadcast %cst_14 : f32 to vector<128x128xf32>
    %30 = arith.maximumf %28, %29 : vector<128x128xf32>
    %31 = arith.truncf %30 : vector<128x128xf32> to vector<128x128xbf16>
    %c0_15 = arith.constant 0 : index
    %c0_16 = arith.constant 0 : index
    %32 = vector.load %arg6[%c0_15, %c0_16] : memref<128x128xbf16, #tpu.memory_space<vmem>>, vector<128x128xbf16>
    tpu.vector_store %arg6[%c0_15, %c0_16], %31 {strides = array<i32>} : memref<128x128xbf16, #tpu.memory_space<vmem>>, vector<128x128xbf16>,
    return
  }
  func.func @transform_0(%arg0: i32) -> (i32, i32) {
    %c0_i32 = arith.constant 0 : i32
    %c0_i32_0 = arith.constant 0 : i32
    %c0_i32_1 = arith.constant 0 : i32
    return %c0_i32, %c0_i32_0 : i32, i32
  }
  func.func @transform_1(%arg0: i32) -> (i32, i32) {
    %c0_i32 = arith.constant 0 : i32
    %c0_i32_0 = arith.constant 0 : i32
    %c0_i32_1 = arith.constant 0 : i32
    return %c0_i32, %c0_i32_0 : i32, i32
  }
  func.func @transform_2(%arg0: i32) -> (i32, i32) {
    %c0_i32 = arith.constant 0 : i32
    %c0_i32_0 = arith.constant 0 : i32
    %c0_i32_1 = arith.constant 0 : i32
    return %c0_i32, %c0_i32_0 : i32, i32
  }
  func.func @transform_3(%arg0: i32) -> (i32, i32) {
    %c0_i32 = arith.constant 0 : i32
    %c0_i32_0 = arith.constant 0 : i32
    %c0_i32_1 = arith.constant 0 : i32
    return %c0_i32, %c0_i32_0 : i32, i32
  }
  func.func @transform_4(%arg0: i32) -> (i32, i32) {
    %c0_i32 = arith.constant 0 : i32
    %c0_i32_0 = arith.constant 0 : i32
    %c0_i32_1 = arith.constant 0 : i32
    return %c0_i32, %c0_i32_0 : i32, i32
  }
  func.func @transform_5(%arg0: i32) -> (i32, i32) {
    %c0_i32 = arith.constant 0 : i32
    %c0_i32_0 = arith.constant 0 : i32
    %c0_i32_1 = arith.constant 0 : i32
    return %c0_i32, %c0_i32_0 : i32, i32
  }
}

module attributes {stable_mosaic.version = 11 : i64} {
  func.func @_conv_bn_relu_kernel(%arg0: i32, %arg1: memref<32x288xbf16, #tpu.memory_space<vmem>>, %arg2: memref<288x128xbf16, #tpu.memory_space<vmem>>, %arg3: memref<1x128xf32, #tpu.memory_space<vmem>>, %arg4: memref<1x128xf32, #tpu.memory_space<vmem>>, %arg5: memref<32x128xbf16, #tpu.memory_space<vmem>>) attributes {dimension_semantics = [#tpu.dimension_semantics<arbitrary>], iteration_bounds = array<i64: 1>, scalar_prefetch = 0 : i64, scratch_operands = 0 : i64, tpu.core_type = #tpu.core_type<tc>, window_params = [{pipeline_mode = #tpu.pipeline_mode<synchronous>, transform_indices = @transform_0, window_bounds = array<i64: 32, 288>}, {pipeline_mode = #tpu.pipeline_mode<synchronous>, transform_indices = @transform_1, window_bounds = array<i64: 288, 128>}, {pipeline_mode = #tpu.pipeline_mode<synchronous>, transform_indices = @transform_2, window_bounds = array<i64: 1, 128>}, {pipeline_mode = #tpu.pipeline_mode<synchronous>, transform_indices = @transform_3, window_bounds = array<i64: 1, 128>}, {pipeline_mode = #tpu.pipeline_mode<synchronous>, transform_indices = @transform_4, window_bounds = array<i64: 32, 128>}]} {
    %c0 = arith.constant 0 : index
    %c0_0 = arith.constant 0 : index
    %0 = vector.load %arg1[%c0, %c0_0] : memref<32x288xbf16, #tpu.memory_space<vmem>>, vector<32x288xbf16>
    %c0_1 = arith.constant 0 : index
    %c0_2 = arith.constant 0 : index
    %1 = vector.load %arg2[%c0_1, %c0_2] : memref<288x128xbf16, #tpu.memory_space<vmem>>, vector<288x128xbf16>
    %cst = arith.constant dense<0.000000e+00> : vector<32x128xf32>
    %2 = tpu.matmul %0, %1, %cst {dimension_numbers = #tpu.dot_dimension_numbers<[1], [0], [0], [1], [0, 0, 1, 1], [], []>} : vector<32x288xbf16>, vector<288x128xbf16>, vector<32x128xf32> -> vector<32x128xf32>
    %c0_3 = arith.constant 0 : index
    %c0_4 = arith.constant 0 : index
    %3 = vector.load %arg3[%c0_3, %c0_4] : memref<1x128xf32, #tpu.memory_space<vmem>>, vector<1x128xf32>
    %c0_5 = arith.constant 0 : index
    %c0_6 = arith.constant 0 : index
    %4 = vector.load %arg4[%c0_5, %c0_6] : memref<1x128xf32, #tpu.memory_space<vmem>>, vector<1x128xf32>
    %cst_7 = arith.constant dense<0.000000e+00> : vector<128xf32>
    %5 = vector.multi_reduction <add>, %2, %cst_7 [0] : vector<32x128xf32> to vector<128xf32>
    %6 = vector.shape_cast %5 : vector<128xf32> to vector<1x128xf32>
    %cst_8 = arith.constant 3.125000e-02 : f32
    %7 = vector.broadcast %cst_8 : f32 to vector<1x128xf32>
    %8 = arith.mulf %6, %7 : vector<1x128xf32>
    %9 = vector.broadcast %8 : vector<1x128xf32> to vector<32x128xf32>
    %10 = arith.subf %2, %9 : vector<32x128xf32>
    %11 = arith.mulf %10, %10 : vector<32x128xf32>
    %cst_9 = arith.constant dense<0.000000e+00> : vector<128xf32>
    %12 = vector.multi_reduction <add>, %11, %cst_9 [0] : vector<32x128xf32> to vector<128xf32>
    %13 = vector.shape_cast %12 : vector<128xf32> to vector<1x128xf32>
    %cst_10 = arith.constant 3.125000e-02 : f32
    %14 = vector.broadcast %cst_10 : f32 to vector<1x128xf32>
    %15 = arith.mulf %13, %14 : vector<1x128xf32>
    %cst_11 = arith.constant 9.99999974E-6 : f32
    %16 = vector.broadcast %cst_11 : f32 to vector<1x128xf32>
    %17 = arith.addf %15, %16 : vector<1x128xf32>
    %18 = math.rsqrt %17 : vector<1x128xf32>
    %19 = arith.mulf %3, %18 : vector<1x128xf32>
    %20 = arith.mulf %8, %19 : vector<1x128xf32>
    %21 = arith.subf %4, %20 : vector<1x128xf32>
    %22 = vector.broadcast %19 : vector<1x128xf32> to vector<32x128xf32>
    %23 = arith.mulf %2, %22 : vector<32x128xf32>
    %24 = vector.broadcast %21 : vector<1x128xf32> to vector<32x128xf32>
    %25 = arith.addf %23, %24 : vector<32x128xf32>
    %cst_12 = arith.constant 0.000000e+00 : f32
    %26 = vector.broadcast %cst_12 : f32 to vector<32x128xf32>
    %27 = arith.maximumf %25, %26 : vector<32x128xf32>
    %28 = arith.truncf %27 : vector<32x128xf32> to vector<32x128xbf16>
    %c0_13 = arith.constant 0 : index
    %c0_14 = arith.constant 0 : index
    %29 = vector.load %arg5[%c0_13, %c0_14] : memref<32x128xbf16, #tpu.memory_space<vmem>>, vector<32x128xbf16>
    tpu.vector_store %arg5[%c0_13, %c0_14], %28 {strides = array<i32>} : memref<32x128xbf16, #tpu.memory_space<vmem>>, vector<32x128xbf16>,
    return
  }
  func.func @transform_0(%arg0: i32) -> (i32, i32) {
    %c0_i32 = arith.constant 0 : i32
    %c0_i32_0 = arith.constant 0 : i32
    %c0_i32_1 = arith.constant 0 : i32
    return %c0_i32, %c0_i32_0 : i32, i32
  }
  func.func @transform_1(%arg0: i32) -> (i32, i32) {
    %c0_i32 = arith.constant 0 : i32
    %c0_i32_0 = arith.constant 0 : i32
    %c0_i32_1 = arith.constant 0 : i32
    return %c0_i32, %c0_i32_0 : i32, i32
  }
  func.func @transform_2(%arg0: i32) -> (i32, i32) {
    %c0_i32 = arith.constant 0 : i32
    %c0_i32_0 = arith.constant 0 : i32
    %c0_i32_1 = arith.constant 0 : i32
    return %c0_i32, %c0_i32_0 : i32, i32
  }
  func.func @transform_3(%arg0: i32) -> (i32, i32) {
    %c0_i32 = arith.constant 0 : i32
    %c0_i32_0 = arith.constant 0 : i32
    %c0_i32_1 = arith.constant 0 : i32
    return %c0_i32, %c0_i32_0 : i32, i32
  }
  func.func @transform_4(%arg0: i32) -> (i32, i32) {
    %c0_i32 = arith.constant 0 : i32
    %c0_i32_0 = arith.constant 0 : i32
    %c0_i32_1 = arith.constant 0 : i32
    return %c0_i32, %c0_i32_0 : i32, i32
  }
}

module attributes {stable_mosaic.version = 11 : i64} {
  func.func @_conv_bn_proj_add_relu_kernel(%arg0: i32, %arg1: memref<32x576xbf16, #tpu.memory_space<vmem>>, %arg2: memref<576x128xbf16, #tpu.memory_space<vmem>>, %arg3: memref<1x128xf32, #tpu.memory_space<vmem>>, %arg4: memref<1x128xf32, #tpu.memory_space<vmem>>, %arg5: memref<32x32xbf16, #tpu.memory_space<vmem>>, %arg6: memref<32x128xbf16, #tpu.memory_space<vmem>>, %arg7: memref<1x128xf32, #tpu.memory_space<vmem>>, %arg8: memref<1x128xf32, #tpu.memory_space<vmem>>, %arg9: memref<32x128xbf16, #tpu.memory_space<vmem>>) attributes {dimension_semantics = [#tpu.dimension_semantics<arbitrary>], iteration_bounds = array<i64: 1>, scalar_prefetch = 0 : i64, scratch_operands = 0 : i64, tpu.core_type = #tpu.core_type<tc>, window_params = [{pipeline_mode = #tpu.pipeline_mode<synchronous>, transform_indices = @transform_0, window_bounds = array<i64: 32, 576>}, {pipeline_mode = #tpu.pipeline_mode<synchronous>, transform_indices = @transform_1, window_bounds = array<i64: 576, 128>}, {pipeline_mode = #tpu.pipeline_mode<synchronous>, transform_indices = @transform_2, window_bounds = array<i64: 1, 128>}, {pipeline_mode = #tpu.pipeline_mode<synchronous>, transform_indices = @transform_3, window_bounds = array<i64: 1, 128>}, {pipeline_mode = #tpu.pipeline_mode<synchronous>, transform_indices = @transform_4, window_bounds = array<i64: 32, 32>}, {pipeline_mode = #tpu.pipeline_mode<synchronous>, transform_indices = @transform_5, window_bounds = array<i64: 32, 128>}, {pipeline_mode = #tpu.pipeline_mode<synchronous>, transform_indices = @transform_6, window_bounds = array<i64: 1, 128>}, {pipeline_mode = #tpu.pipeline_mode<synchronous>, transform_indices = @transform_7, window_bounds = array<i64: 1, 128>}, {pipeline_mode = #tpu.pipeline_mode<synchronous>, transform_indices = @transform_8, window_bounds = array<i64: 32, 128>}]} {
    %c0 = arith.constant 0 : index
    %c0_0 = arith.constant 0 : index
    %0 = vector.load %arg1[%c0, %c0_0] : memref<32x576xbf16, #tpu.memory_space<vmem>>, vector<32x576xbf16>
    %c0_1 = arith.constant 0 : index
    %c0_2 = arith.constant 0 : index
    %1 = vector.load %arg2[%c0_1, %c0_2] : memref<576x128xbf16, #tpu.memory_space<vmem>>, vector<576x128xbf16>
    %cst = arith.constant dense<0.000000e+00> : vector<32x128xf32>
    %2 = tpu.matmul %0, %1, %cst {dimension_numbers = #tpu.dot_dimension_numbers<[1], [0], [0], [1], [0, 0, 1, 1], [], []>} : vector<32x576xbf16>, vector<576x128xbf16>, vector<32x128xf32> -> vector<32x128xf32>
    %c0_3 = arith.constant 0 : index
    %c0_4 = arith.constant 0 : index
    %3 = vector.load %arg3[%c0_3, %c0_4] : memref<1x128xf32, #tpu.memory_space<vmem>>, vector<1x128xf32>
    %c0_5 = arith.constant 0 : index
    %c0_6 = arith.constant 0 : index
    %4 = vector.load %arg4[%c0_5, %c0_6] : memref<1x128xf32, #tpu.memory_space<vmem>>, vector<1x128xf32>
    %cst_7 = arith.constant dense<0.000000e+00> : vector<128xf32>
    %5 = vector.multi_reduction <add>, %2, %cst_7 [0] : vector<32x128xf32> to vector<128xf32>
    %6 = vector.shape_cast %5 : vector<128xf32> to vector<1x128xf32>
    %cst_8 = arith.constant 3.125000e-02 : f32
    %7 = vector.broadcast %cst_8 : f32 to vector<1x128xf32>
    %8 = arith.mulf %6, %7 : vector<1x128xf32>
    %9 = vector.broadcast %8 : vector<1x128xf32> to vector<32x128xf32>
    %10 = arith.subf %2, %9 : vector<32x128xf32>
    %11 = arith.mulf %10, %10 : vector<32x128xf32>
    %cst_9 = arith.constant dense<0.000000e+00> : vector<128xf32>
    %12 = vector.multi_reduction <add>, %11, %cst_9 [0] : vector<32x128xf32> to vector<128xf32>
    %13 = vector.shape_cast %12 : vector<128xf32> to vector<1x128xf32>
    %cst_10 = arith.constant 3.125000e-02 : f32
    %14 = vector.broadcast %cst_10 : f32 to vector<1x128xf32>
    %15 = arith.mulf %13, %14 : vector<1x128xf32>
    %cst_11 = arith.constant 9.99999974E-6 : f32
    %16 = vector.broadcast %cst_11 : f32 to vector<1x128xf32>
    %17 = arith.addf %15, %16 : vector<1x128xf32>
    %18 = math.rsqrt %17 : vector<1x128xf32>
    %19 = arith.mulf %3, %18 : vector<1x128xf32>
    %20 = arith.mulf %8, %19 : vector<1x128xf32>
    %21 = arith.subf %4, %20 : vector<1x128xf32>
    %c0_12 = arith.constant 0 : index
    %c0_13 = arith.constant 0 : index
    %22 = vector.load %arg5[%c0_12, %c0_13] : memref<32x32xbf16, #tpu.memory_space<vmem>>, vector<32x32xbf16>
    %c0_14 = arith.constant 0 : index
    %c0_15 = arith.constant 0 : index
    %23 = vector.load %arg6[%c0_14, %c0_15] : memref<32x128xbf16, #tpu.memory_space<vmem>>, vector<32x128xbf16>
    %cst_16 = arith.constant dense<0.000000e+00> : vector<32x128xf32>
    %24 = tpu.matmul %22, %23, %cst_16 {dimension_numbers = #tpu.dot_dimension_numbers<[1], [0], [0], [1], [0, 0, 1, 1], [], []>} : vector<32x32xbf16>, vector<32x128xbf16>, vector<32x128xf32> -> vector<32x128xf32>
    %c0_17 = arith.constant 0 : index
    %c0_18 = arith.constant 0 : index
    %25 = vector.load %arg7[%c0_17, %c0_18] : memref<1x128xf32, #tpu.memory_space<vmem>>, vector<1x128xf32>
    %c0_19 = arith.constant 0 : index
    %c0_20 = arith.constant 0 : index
    %26 = vector.load %arg8[%c0_19, %c0_20] : memref<1x128xf32, #tpu.memory_space<vmem>>, vector<1x128xf32>
    %cst_21 = arith.constant dense<0.000000e+00> : vector<128xf32>
    %27 = vector.multi_reduction <add>, %24, %cst_21 [0] : vector<32x128xf32> to vector<128xf32>
    %28 = vector.shape_cast %27 : vector<128xf32> to vector<1x128xf32>
    %cst_22 = arith.constant 3.125000e-02 : f32
    %29 = vector.broadcast %cst_22 : f32 to vector<1x128xf32>
    %30 = arith.mulf %28, %29 : vector<1x128xf32>
    %31 = vector.broadcast %30 : vector<1x128xf32> to vector<32x128xf32>
    %32 = arith.subf %24, %31 : vector<32x128xf32>
    %33 = arith.mulf %32, %32 : vector<32x128xf32>
    %cst_23 = arith.constant dense<0.000000e+00> : vector<128xf32>
    %34 = vector.multi_reduction <add>, %33, %cst_23 [0] : vector<32x128xf32> to vector<128xf32>
    %35 = vector.shape_cast %34 : vector<128xf32> to vector<1x128xf32>
    %cst_24 = arith.constant 3.125000e-02 : f32
    %36 = vector.broadcast %cst_24 : f32 to vector<1x128xf32>
    %37 = arith.mulf %35, %36 : vector<1x128xf32>
    %cst_25 = arith.constant 9.99999974E-6 : f32
    %38 = vector.broadcast %cst_25 : f32 to vector<1x128xf32>
    %39 = arith.addf %37, %38 : vector<1x128xf32>
    %40 = math.rsqrt %39 : vector<1x128xf32>
    %41 = arith.mulf %25, %40 : vector<1x128xf32>
    %42 = arith.mulf %30, %41 : vector<1x128xf32>
    %43 = arith.subf %26, %42 : vector<1x128xf32>
    %44 = vector.broadcast %19 : vector<1x128xf32> to vector<32x128xf32>
    %45 = arith.mulf %2, %44 : vector<32x128xf32>
    %46 = vector.broadcast %21 : vector<1x128xf32> to vector<32x128xf32>
    %47 = arith.addf %45, %46 : vector<32x128xf32>
    %48 = vector.broadcast %41 : vector<1x128xf32> to vector<32x128xf32>
    %49 = arith.mulf %24, %48 : vector<32x128xf32>
    %50 = vector.broadcast %43 : vector<1x128xf32> to vector<32x128xf32>
    %51 = arith.addf %49, %50 : vector<32x128xf32>
    %52 = arith.addf %47, %51 : vector<32x128xf32>
    %cst_26 = arith.constant 0.000000e+00 : f32
    %53 = vector.broadcast %cst_26 : f32 to vector<32x128xf32>
    %54 = arith.maximumf %52, %53 : vector<32x128xf32>
    %55 = arith.truncf %54 : vector<32x128xf32> to vector<32x128xbf16>
    %c0_27 = arith.constant 0 : index
    %c0_28 = arith.constant 0 : index
    %56 = vector.load %arg9[%c0_27, %c0_28] : memref<32x128xbf16, #tpu.memory_space<vmem>>, vector<32x128xbf16>
    tpu.vector_store %arg9[%c0_27, %c0_28], %55 {strides = array<i32>} : memref<32x128xbf16, #tpu.memory_space<vmem>>, vector<32x128xbf16>,
    return
  }
  func.func @transform_0(%arg0: i32) -> (i32, i32) {
    %c0_i32 = arith.constant 0 : i32
    %c0_i32_0 = arith.constant 0 : i32
    %c0_i32_1 = arith.constant 0 : i32
    return %c0_i32, %c0_i32_0 : i32, i32
  }
  func.func @transform_1(%arg0: i32) -> (i32, i32) {
    %c0_i32 = arith.constant 0 : i32
    %c0_i32_0 = arith.constant 0 : i32
    %c0_i32_1 = arith.constant 0 : i32
    return %c0_i32, %c0_i32_0 : i32, i32
  }
  func.func @transform_2(%arg0: i32) -> (i32, i32) {
    %c0_i32 = arith.constant 0 : i32
    %c0_i32_0 = arith.constant 0 : i32
    %c0_i32_1 = arith.constant 0 : i32
    return %c0_i32, %c0_i32_0 : i32, i32
  }
  func.func @transform_3(%arg0: i32) -> (i32, i32) {
    %c0_i32 = arith.constant 0 : i32
    %c0_i32_0 = arith.constant 0 : i32
    %c0_i32_1 = arith.constant 0 : i32
    return %c0_i32, %c0_i32_0 : i32, i32
  }
  func.func @transform_4(%arg0: i32) -> (i32, i32) {
    %c0_i32 = arith.constant 0 : i32
    %c0_i32_0 = arith.constant 0 : i32
    %c0_i32_1 = arith.constant 0 : i32
    return %c0_i32, %c0_i32_0 : i32, i32
  }
  func.func @transform_5(%arg0: i32) -> (i32, i32) {
    %c0_i32 = arith.constant 0 : i32
    %c0_i32_0 = arith.constant 0 : i32
    %c0_i32_1 = arith.constant 0 : i32
    return %c0_i32, %c0_i32_0 : i32, i32
  }
  func.func @transform_6(%arg0: i32) -> (i32, i32) {
    %c0_i32 = arith.constant 0 : i32
    %c0_i32_0 = arith.constant 0 : i32
    %c0_i32_1 = arith.constant 0 : i32
    return %c0_i32, %c0_i32_0 : i32, i32
  }
  func.func @transform_7(%arg0: i32) -> (i32, i32) {
    %c0_i32 = arith.constant 0 : i32
    %c0_i32_0 = arith.constant 0 : i32
    %c0_i32_1 = arith.constant 0 : i32
    return %c0_i32, %c0_i32_0 : i32, i32
  }
  func.func @transform_8(%arg0: i32) -> (i32, i32) {
    %c0_i32 = arith.constant 0 : i32
    %c0_i32_0 = arith.constant 0 : i32
    %c0_i32_1 = arith.constant 0 : i32
    return %c0_i32, %c0_i32_0 : i32, i32
  }
}

module attributes {stable_mosaic.version = 11 : i64} {
  func.func @_conv_bn_relu_kernel(%arg0: i32, %arg1: memref<32x576xbf16, #tpu.memory_space<vmem>>, %arg2: memref<576x128xbf16, #tpu.memory_space<vmem>>, %arg3: memref<1x128xf32, #tpu.memory_space<vmem>>, %arg4: memref<1x128xf32, #tpu.memory_space<vmem>>, %arg5: memref<32x128xbf16, #tpu.memory_space<vmem>>) attributes {dimension_semantics = [#tpu.dimension_semantics<arbitrary>], iteration_bounds = array<i64: 1>, scalar_prefetch = 0 : i64, scratch_operands = 0 : i64, tpu.core_type = #tpu.core_type<tc>, window_params = [{pipeline_mode = #tpu.pipeline_mode<synchronous>, transform_indices = @transform_0, window_bounds = array<i64: 32, 576>}, {pipeline_mode = #tpu.pipeline_mode<synchronous>, transform_indices = @transform_1, window_bounds = array<i64: 576, 128>}, {pipeline_mode = #tpu.pipeline_mode<synchronous>, transform_indices = @transform_2, window_bounds = array<i64: 1, 128>}, {pipeline_mode = #tpu.pipeline_mode<synchronous>, transform_indices = @transform_3, window_bounds = array<i64: 1, 128>}, {pipeline_mode = #tpu.pipeline_mode<synchronous>, transform_indices = @transform_4, window_bounds = array<i64: 32, 128>}]} {
    %c0 = arith.constant 0 : index
    %c0_0 = arith.constant 0 : index
    %0 = vector.load %arg1[%c0, %c0_0] : memref<32x576xbf16, #tpu.memory_space<vmem>>, vector<32x576xbf16>
    %c0_1 = arith.constant 0 : index
    %c0_2 = arith.constant 0 : index
    %1 = vector.load %arg2[%c0_1, %c0_2] : memref<576x128xbf16, #tpu.memory_space<vmem>>, vector<576x128xbf16>
    %cst = arith.constant dense<0.000000e+00> : vector<32x128xf32>
    %2 = tpu.matmul %0, %1, %cst {dimension_numbers = #tpu.dot_dimension_numbers<[1], [0], [0], [1], [0, 0, 1, 1], [], []>} : vector<32x576xbf16>, vector<576x128xbf16>, vector<32x128xf32> -> vector<32x128xf32>
    %c0_3 = arith.constant 0 : index
    %c0_4 = arith.constant 0 : index
    %3 = vector.load %arg3[%c0_3, %c0_4] : memref<1x128xf32, #tpu.memory_space<vmem>>, vector<1x128xf32>
    %c0_5 = arith.constant 0 : index
    %c0_6 = arith.constant 0 : index
    %4 = vector.load %arg4[%c0_5, %c0_6] : memref<1x128xf32, #tpu.memory_space<vmem>>, vector<1x128xf32>
    %cst_7 = arith.constant dense<0.000000e+00> : vector<128xf32>
    %5 = vector.multi_reduction <add>, %2, %cst_7 [0] : vector<32x128xf32> to vector<128xf32>
    %6 = vector.shape_cast %5 : vector<128xf32> to vector<1x128xf32>
    %cst_8 = arith.constant 3.125000e-02 : f32
    %7 = vector.broadcast %cst_8 : f32 to vector<1x128xf32>
    %8 = arith.mulf %6, %7 : vector<1x128xf32>
    %9 = vector.broadcast %8 : vector<1x128xf32> to vector<32x128xf32>
    %10 = arith.subf %2, %9 : vector<32x128xf32>
    %11 = arith.mulf %10, %10 : vector<32x128xf32>
    %cst_9 = arith.constant dense<0.000000e+00> : vector<128xf32>
    %12 = vector.multi_reduction <add>, %11, %cst_9 [0] : vector<32x128xf32> to vector<128xf32>
    %13 = vector.shape_cast %12 : vector<128xf32> to vector<1x128xf32>
    %cst_10 = arith.constant 3.125000e-02 : f32
    %14 = vector.broadcast %cst_10 : f32 to vector<1x128xf32>
    %15 = arith.mulf %13, %14 : vector<1x128xf32>
    %cst_11 = arith.constant 9.99999974E-6 : f32
    %16 = vector.broadcast %cst_11 : f32 to vector<1x128xf32>
    %17 = arith.addf %15, %16 : vector<1x128xf32>
    %18 = math.rsqrt %17 : vector<1x128xf32>
    %19 = arith.mulf %3, %18 : vector<1x128xf32>
    %20 = arith.mulf %8, %19 : vector<1x128xf32>
    %21 = arith.subf %4, %20 : vector<1x128xf32>
    %22 = vector.broadcast %19 : vector<1x128xf32> to vector<32x128xf32>
    %23 = arith.mulf %2, %22 : vector<32x128xf32>
    %24 = vector.broadcast %21 : vector<1x128xf32> to vector<32x128xf32>
    %25 = arith.addf %23, %24 : vector<32x128xf32>
    %cst_12 = arith.constant 0.000000e+00 : f32
    %26 = vector.broadcast %cst_12 : f32 to vector<32x128xf32>
    %27 = arith.maximumf %25, %26 : vector<32x128xf32>
    %28 = arith.truncf %27 : vector<32x128xf32> to vector<32x128xbf16>
    %c0_13 = arith.constant 0 : index
    %c0_14 = arith.constant 0 : index
    %29 = vector.load %arg5[%c0_13, %c0_14] : memref<32x128xbf16, #tpu.memory_space<vmem>>, vector<32x128xbf16>
    tpu.vector_store %arg5[%c0_13, %c0_14], %28 {strides = array<i32>} : memref<32x128xbf16, #tpu.memory_space<vmem>>, vector<32x128xbf16>,
    return
  }
  func.func @transform_0(%arg0: i32) -> (i32, i32) {
    %c0_i32 = arith.constant 0 : i32
    %c0_i32_0 = arith.constant 0 : i32
    %c0_i32_1 = arith.constant 0 : i32
    return %c0_i32, %c0_i32_0 : i32, i32
  }
  func.func @transform_1(%arg0: i32) -> (i32, i32) {
    %c0_i32 = arith.constant 0 : i32
    %c0_i32_0 = arith.constant 0 : i32
    %c0_i32_1 = arith.constant 0 : i32
    return %c0_i32, %c0_i32_0 : i32, i32
  }
  func.func @transform_2(%arg0: i32) -> (i32, i32) {
    %c0_i32 = arith.constant 0 : i32
    %c0_i32_0 = arith.constant 0 : i32
    %c0_i32_1 = arith.constant 0 : i32
    return %c0_i32, %c0_i32_0 : i32, i32
  }
  func.func @transform_3(%arg0: i32) -> (i32, i32) {
    %c0_i32 = arith.constant 0 : i32
    %c0_i32_0 = arith.constant 0 : i32
    %c0_i32_1 = arith.constant 0 : i32
    return %c0_i32, %c0_i32_0 : i32, i32
  }
  func.func @transform_4(%arg0: i32) -> (i32, i32) {
    %c0_i32 = arith.constant 0 : i32
    %c0_i32_0 = arith.constant 0 : i32
    %c0_i32_1 = arith.constant 0 : i32
    return %c0_i32, %c0_i32_0 : i32, i32
  }
}

module attributes {stable_mosaic.version = 11 : i64} {
  func.func @_conv_bn_add_relu_out_kernel(%arg0: i32, %arg1: memref<32x576xbf16, #tpu.memory_space<vmem>>, %arg2: memref<576x128xbf16, #tpu.memory_space<vmem>>, %arg3: memref<1x128xf32, #tpu.memory_space<vmem>>, %arg4: memref<1x128xf32, #tpu.memory_space<vmem>>, %arg5: memref<32x128xbf16, #tpu.memory_space<vmem>>, %arg6: memref<128x256xbf16, #tpu.memory_space<vmem>>, %arg7: memref<1x256xf32, #tpu.memory_space<vmem>>, %arg8: memref<32x256xf32, #tpu.memory_space<vmem>>) attributes {dimension_semantics = [#tpu.dimension_semantics<arbitrary>], iteration_bounds = array<i64: 1>, scalar_prefetch = 0 : i64, scratch_operands = 0 : i64, tpu.core_type = #tpu.core_type<tc>, window_params = [{pipeline_mode = #tpu.pipeline_mode<synchronous>, transform_indices = @transform_0, window_bounds = array<i64: 32, 576>}, {pipeline_mode = #tpu.pipeline_mode<synchronous>, transform_indices = @transform_1, window_bounds = array<i64: 576, 128>}, {pipeline_mode = #tpu.pipeline_mode<synchronous>, transform_indices = @transform_2, window_bounds = array<i64: 1, 128>}, {pipeline_mode = #tpu.pipeline_mode<synchronous>, transform_indices = @transform_3, window_bounds = array<i64: 1, 128>}, {pipeline_mode = #tpu.pipeline_mode<synchronous>, transform_indices = @transform_4, window_bounds = array<i64: 32, 128>}, {pipeline_mode = #tpu.pipeline_mode<synchronous>, transform_indices = @transform_5, window_bounds = array<i64: 128, 256>}, {pipeline_mode = #tpu.pipeline_mode<synchronous>, transform_indices = @transform_6, window_bounds = array<i64: 1, 256>}, {pipeline_mode = #tpu.pipeline_mode<synchronous>, transform_indices = @transform_7, window_bounds = array<i64: 32, 256>}]} {
    %c0 = arith.constant 0 : index
    %c0_0 = arith.constant 0 : index
    %0 = vector.load %arg1[%c0, %c0_0] : memref<32x576xbf16, #tpu.memory_space<vmem>>, vector<32x576xbf16>
    %c0_1 = arith.constant 0 : index
    %c0_2 = arith.constant 0 : index
    %1 = vector.load %arg2[%c0_1, %c0_2] : memref<576x128xbf16, #tpu.memory_space<vmem>>, vector<576x128xbf16>
    %cst = arith.constant dense<0.000000e+00> : vector<32x128xf32>
    %2 = tpu.matmul %0, %1, %cst {dimension_numbers = #tpu.dot_dimension_numbers<[1], [0], [0], [1], [0, 0, 1, 1], [], []>} : vector<32x576xbf16>, vector<576x128xbf16>, vector<32x128xf32> -> vector<32x128xf32>
    %c0_3 = arith.constant 0 : index
    %c0_4 = arith.constant 0 : index
    %3 = vector.load %arg3[%c0_3, %c0_4] : memref<1x128xf32, #tpu.memory_space<vmem>>, vector<1x128xf32>
    %c0_5 = arith.constant 0 : index
    %c0_6 = arith.constant 0 : index
    %4 = vector.load %arg4[%c0_5, %c0_6] : memref<1x128xf32, #tpu.memory_space<vmem>>, vector<1x128xf32>
    %cst_7 = arith.constant dense<0.000000e+00> : vector<128xf32>
    %5 = vector.multi_reduction <add>, %2, %cst_7 [0] : vector<32x128xf32> to vector<128xf32>
    %6 = vector.shape_cast %5 : vector<128xf32> to vector<1x128xf32>
    %cst_8 = arith.constant 3.125000e-02 : f32
    %7 = vector.broadcast %cst_8 : f32 to vector<1x128xf32>
    %8 = arith.mulf %6, %7 : vector<1x128xf32>
    %9 = vector.broadcast %8 : vector<1x128xf32> to vector<32x128xf32>
    %10 = arith.subf %2, %9 : vector<32x128xf32>
    %11 = arith.mulf %10, %10 : vector<32x128xf32>
    %cst_9 = arith.constant dense<0.000000e+00> : vector<128xf32>
    %12 = vector.multi_reduction <add>, %11, %cst_9 [0] : vector<32x128xf32> to vector<128xf32>
    %13 = vector.shape_cast %12 : vector<128xf32> to vector<1x128xf32>
    %cst_10 = arith.constant 3.125000e-02 : f32
    %14 = vector.broadcast %cst_10 : f32 to vector<1x128xf32>
    %15 = arith.mulf %13, %14 : vector<1x128xf32>
    %cst_11 = arith.constant 9.99999974E-6 : f32
    %16 = vector.broadcast %cst_11 : f32 to vector<1x128xf32>
    %17 = arith.addf %15, %16 : vector<1x128xf32>
    %18 = math.rsqrt %17 : vector<1x128xf32>
    %19 = arith.mulf %3, %18 : vector<1x128xf32>
    %20 = arith.mulf %8, %19 : vector<1x128xf32>
    %21 = arith.subf %4, %20 : vector<1x128xf32>
    %22 = vector.broadcast %19 : vector<1x128xf32> to vector<32x128xf32>
    %23 = arith.mulf %2, %22 : vector<32x128xf32>
    %24 = vector.broadcast %21 : vector<1x128xf32> to vector<32x128xf32>
    %25 = arith.addf %23, %24 : vector<32x128xf32>
    %c0_12 = arith.constant 0 : index
    %c0_13 = arith.constant 0 : index
    %26 = vector.load %arg5[%c0_12, %c0_13] : memref<32x128xbf16, #tpu.memory_space<vmem>>, vector<32x128xbf16>
    %27 = arith.extf %26 : vector<32x128xbf16> to vector<32x128xf32>
    %28 = arith.addf %25, %27 : vector<32x128xf32>
    %cst_14 = arith.constant 0.000000e+00 : f32
    %29 = vector.broadcast %cst_14 : f32 to vector<32x128xf32>
    %30 = arith.maximumf %28, %29 : vector<32x128xf32>
    %31 = arith.truncf %30 : vector<32x128xf32> to vector<32x128xbf16>
    %c0_15 = arith.constant 0 : index
    %c0_16 = arith.constant 0 : index
    %32 = vector.load %arg6[%c0_15, %c0_16] : memref<128x256xbf16, #tpu.memory_space<vmem>>, vector<128x256xbf16>
    %cst_17 = arith.constant dense<0.000000e+00> : vector<32x256xf32>
    %33 = tpu.matmul %31, %32, %cst_17 {dimension_numbers = #tpu.dot_dimension_numbers<[1], [0], [0], [1], [0, 0, 1, 1], [], []>} : vector<32x128xbf16>, vector<128x256xbf16>, vector<32x256xf32> -> vector<32x256xf32>
    %c0_18 = arith.constant 0 : index
    %c0_19 = arith.constant 0 : index
    %34 = vector.load %arg7[%c0_18, %c0_19] : memref<1x256xf32, #tpu.memory_space<vmem>>, vector<1x256xf32>
    %35 = vector.broadcast %34 : vector<1x256xf32> to vector<32x256xf32>
    %36 = arith.addf %33, %35 : vector<32x256xf32>
    %c0_20 = arith.constant 0 : index
    %c0_21 = arith.constant 0 : index
    %37 = vector.load %arg8[%c0_20, %c0_21] : memref<32x256xf32, #tpu.memory_space<vmem>>, vector<32x256xf32>
    tpu.vector_store %arg8[%c0_20, %c0_21], %36 {strides = array<i32>} : memref<32x256xf32, #tpu.memory_space<vmem>>, vector<32x256xf32>,
    return
  }
  func.func @transform_0(%arg0: i32) -> (i32, i32) {
    %c0_i32 = arith.constant 0 : i32
    %c0_i32_0 = arith.constant 0 : i32
    %c0_i32_1 = arith.constant 0 : i32
    return %c0_i32, %c0_i32_0 : i32, i32
  }
  func.func @transform_1(%arg0: i32) -> (i32, i32) {
    %c0_i32 = arith.constant 0 : i32
    %c0_i32_0 = arith.constant 0 : i32
    %c0_i32_1 = arith.constant 0 : i32
    return %c0_i32, %c0_i32_0 : i32, i32
  }
  func.func @transform_2(%arg0: i32) -> (i32, i32) {
    %c0_i32 = arith.constant 0 : i32
    %c0_i32_0 = arith.constant 0 : i32
    %c0_i32_1 = arith.constant 0 : i32
    return %c0_i32, %c0_i32_0 : i32, i32
  }
  func.func @transform_3(%arg0: i32) -> (i32, i32) {
    %c0_i32 = arith.constant 0 : i32
    %c0_i32_0 = arith.constant 0 : i32
    %c0_i32_1 = arith.constant 0 : i32
    return %c0_i32, %c0_i32_0 : i32, i32
  }
  func.func @transform_4(%arg0: i32) -> (i32, i32) {
    %c0_i32 = arith.constant 0 : i32
    %c0_i32_0 = arith.constant 0 : i32
    %c0_i32_1 = arith.constant 0 : i32
    return %c0_i32, %c0_i32_0 : i32, i32
  }
  func.func @transform_5(%arg0: i32) -> (i32, i32) {
    %c0_i32 = arith.constant 0 : i32
    %c0_i32_0 = arith.constant 0 : i32
    %c0_i32_1 = arith.constant 0 : i32
    return %c0_i32, %c0_i32_0 : i32, i32
  }
  func.func @transform_6(%arg0: i32) -> (i32, i32) {
    %c0_i32 = arith.constant 0 : i32
    %c0_i32_0 = arith.constant 0 : i32
    %c0_i32_1 = arith.constant 0 : i32
    return %c0_i32, %c0_i32_0 : i32, i32
  }
  func.func @transform_7(%arg0: i32) -> (i32, i32) {
    %c0_i32 = arith.constant 0 : i32
    %c0_i32_0 = arith.constant 0 : i32
    %c0_i32_1 = arith.constant 0 : i32
    return %c0_i32, %c0_i32_0 : i32, i32
  }
}

module attributes {stable_mosaic.version = 11 : i64} {
  func.func @_conv_bn_add_relu_kernel(%arg0: i32, %arg1: memref<32x576xbf16, #tpu.memory_space<vmem>>, %arg2: memref<576x128xbf16, #tpu.memory_space<vmem>>, %arg3: memref<1x128xf32, #tpu.memory_space<vmem>>, %arg4: memref<1x128xf32, #tpu.memory_space<vmem>>, %arg5: memref<32x128xbf16, #tpu.memory_space<vmem>>, %arg6: memref<32x128xbf16, #tpu.memory_space<vmem>>) attributes {dimension_semantics = [#tpu.dimension_semantics<arbitrary>], iteration_bounds = array<i64: 1>, scalar_prefetch = 0 : i64, scratch_operands = 0 : i64, tpu.core_type = #tpu.core_type<tc>, window_params = [{pipeline_mode = #tpu.pipeline_mode<synchronous>, transform_indices = @transform_0, window_bounds = array<i64: 32, 576>}, {pipeline_mode = #tpu.pipeline_mode<synchronous>, transform_indices = @transform_1, window_bounds = array<i64: 576, 128>}, {pipeline_mode = #tpu.pipeline_mode<synchronous>, transform_indices = @transform_2, window_bounds = array<i64: 1, 128>}, {pipeline_mode = #tpu.pipeline_mode<synchronous>, transform_indices = @transform_3, window_bounds = array<i64: 1, 128>}, {pipeline_mode = #tpu.pipeline_mode<synchronous>, transform_indices = @transform_4, window_bounds = array<i64: 32, 128>}, {pipeline_mode = #tpu.pipeline_mode<synchronous>, transform_indices = @transform_5, window_bounds = array<i64: 32, 128>}]} {
    %c0 = arith.constant 0 : index
    %c0_0 = arith.constant 0 : index
    %0 = vector.load %arg1[%c0, %c0_0] : memref<32x576xbf16, #tpu.memory_space<vmem>>, vector<32x576xbf16>
    %c0_1 = arith.constant 0 : index
    %c0_2 = arith.constant 0 : index
    %1 = vector.load %arg2[%c0_1, %c0_2] : memref<576x128xbf16, #tpu.memory_space<vmem>>, vector<576x128xbf16>
    %cst = arith.constant dense<0.000000e+00> : vector<32x128xf32>
    %2 = tpu.matmul %0, %1, %cst {dimension_numbers = #tpu.dot_dimension_numbers<[1], [0], [0], [1], [0, 0, 1, 1], [], []>} : vector<32x576xbf16>, vector<576x128xbf16>, vector<32x128xf32> -> vector<32x128xf32>
    %c0_3 = arith.constant 0 : index
    %c0_4 = arith.constant 0 : index
    %3 = vector.load %arg3[%c0_3, %c0_4] : memref<1x128xf32, #tpu.memory_space<vmem>>, vector<1x128xf32>
    %c0_5 = arith.constant 0 : index
    %c0_6 = arith.constant 0 : index
    %4 = vector.load %arg4[%c0_5, %c0_6] : memref<1x128xf32, #tpu.memory_space<vmem>>, vector<1x128xf32>
    %cst_7 = arith.constant dense<0.000000e+00> : vector<128xf32>
    %5 = vector.multi_reduction <add>, %2, %cst_7 [0] : vector<32x128xf32> to vector<128xf32>
    %6 = vector.shape_cast %5 : vector<128xf32> to vector<1x128xf32>
    %cst_8 = arith.constant 3.125000e-02 : f32
    %7 = vector.broadcast %cst_8 : f32 to vector<1x128xf32>
    %8 = arith.mulf %6, %7 : vector<1x128xf32>
    %9 = vector.broadcast %8 : vector<1x128xf32> to vector<32x128xf32>
    %10 = arith.subf %2, %9 : vector<32x128xf32>
    %11 = arith.mulf %10, %10 : vector<32x128xf32>
    %cst_9 = arith.constant dense<0.000000e+00> : vector<128xf32>
    %12 = vector.multi_reduction <add>, %11, %cst_9 [0] : vector<32x128xf32> to vector<128xf32>
    %13 = vector.shape_cast %12 : vector<128xf32> to vector<1x128xf32>
    %cst_10 = arith.constant 3.125000e-02 : f32
    %14 = vector.broadcast %cst_10 : f32 to vector<1x128xf32>
    %15 = arith.mulf %13, %14 : vector<1x128xf32>
    %cst_11 = arith.constant 9.99999974E-6 : f32
    %16 = vector.broadcast %cst_11 : f32 to vector<1x128xf32>
    %17 = arith.addf %15, %16 : vector<1x128xf32>
    %18 = math.rsqrt %17 : vector<1x128xf32>
    %19 = arith.mulf %3, %18 : vector<1x128xf32>
    %20 = arith.mulf %8, %19 : vector<1x128xf32>
    %21 = arith.subf %4, %20 : vector<1x128xf32>
    %22 = vector.broadcast %19 : vector<1x128xf32> to vector<32x128xf32>
    %23 = arith.mulf %2, %22 : vector<32x128xf32>
    %24 = vector.broadcast %21 : vector<1x128xf32> to vector<32x128xf32>
    %25 = arith.addf %23, %24 : vector<32x128xf32>
    %c0_12 = arith.constant 0 : index
    %c0_13 = arith.constant 0 : index
    %26 = vector.load %arg5[%c0_12, %c0_13] : memref<32x128xbf16, #tpu.memory_space<vmem>>, vector<32x128xbf16>
    %27 = arith.extf %26 : vector<32x128xbf16> to vector<32x128xf32>
    %28 = arith.addf %25, %27 : vector<32x128xf32>
    %cst_14 = arith.constant 0.000000e+00 : f32
    %29 = vector.broadcast %cst_14 : f32 to vector<32x128xf32>
    %30 = arith.maximumf %28, %29 : vector<32x128xf32>
    %31 = arith.truncf %30 : vector<32x128xf32> to vector<32x128xbf16>
    %c0_15 = arith.constant 0 : index
    %c0_16 = arith.constant 0 : index
    %32 = vector.load %arg6[%c0_15, %c0_16] : memref<32x128xbf16, #tpu.memory_space<vmem>>, vector<32x128xbf16>
    tpu.vector_store %arg6[%c0_15, %c0_16], %31 {strides = array<i32>} : memref<32x128xbf16, #tpu.memory_space<vmem>>, vector<32x128xbf16>,
    return
  }
  func.func @transform_0(%arg0: i32) -> (i32, i32) {
    %c0_i32 = arith.constant 0 : i32
    %c0_i32_0 = arith.constant 0 : i32
    %c0_i32_1 = arith.constant 0 : i32
    return %c0_i32, %c0_i32_0 : i32, i32
  }
  func.func @transform_1(%arg0: i32) -> (i32, i32) {
    %c0_i32 = arith.constant 0 : i32
    %c0_i32_0 = arith.constant 0 : i32
    %c0_i32_1 = arith.constant 0 : i32
    return %c0_i32, %c0_i32_0 : i32, i32
  }
  func.func @transform_2(%arg0: i32) -> (i32, i32) {
    %c0_i32 = arith.constant 0 : i32
    %c0_i32_0 = arith.constant 0 : i32
    %c0_i32_1 = arith.constant 0 : i32
    return %c0_i32, %c0_i32_0 : i32, i32
  }
  func.func @transform_3(%arg0: i32) -> (i32, i32) {
    %c0_i32 = arith.constant 0 : i32
    %c0_i32_0 = arith.constant 0 : i32
    %c0_i32_1 = arith.constant 0 : i32
    return %c0_i32, %c0_i32_0 : i32, i32
  }
  func.func @transform_4(%arg0: i32) -> (i32, i32) {
    %c0_i32 = arith.constant 0 : i32
    %c0_i32_0 = arith.constant 0 : i32
    %c0_i32_1 = arith.constant 0 : i32
    return %c0_i32, %c0_i32_0 : i32, i32
  }
  func.func @transform_5(%arg0: i32) -> (i32, i32) {
    %c0_i32 = arith.constant 0 : i32
    %c0_i32_0 = arith.constant 0 : i32
    %c0_i32_1 = arith.constant 0 : i32
    return %c0_i32, %c0_i32_0 : i32, i32
  }
}

</mosaic_0001>

<bundles_post_ra>
// kernel: _lambda_.27
= control target key start
LH: loop header
LB: loop body
LE: loop exit
PB: predicated region body
PF: predicated region fallthrough
CT: control target
= control target key end

     0   :  { %vm367_vm0 = vcmask 1040384   ;;  %v2007_v1 = vmov 0   ;;  %vm270_vm1 = vcmask 400384   ;;  %s3201_s1 = inlined_call_operand.vmem [shape: bf16[49,128], index: 1, kind: input, shape index: {}]   ;;  %s3202_s0 = inlined_call_operand.vmem [shape: bf16[512,49], index: 0, kind: input, shape index: {}]   ;;  %s3203_s2 = inlined_call_operand.vmem [shape: f32[1,128], index: 2, kind: input, shape index: {}]   ;;  %s3204_s3 = inlined_call_operand.vmem [shape: f32[1,128], index: 3, kind: input, shape index: {}]   ;;  %s3205_s4 = inlined_call_operand.vmem [shape: bf16[512,128], index: 4, kind: output, shape index: {}]  }
   0x1   :  { %v1969_v0 = vld [vmem:[%s3201_s1 + $0x18] ss:$0 sps:$4 sm:$0x11]   ;;  %v369_v2 = vsel %vm367_vm0, 65535, %v2007_v1  ;;  %v1970_v4 = vld [vmem:[%s3201_s1 + $0x10] sm:$0xff]   ;;  %v1973_v5 = vld [vmem:[%s3202_s0] sm:$0xff]  }
   0x2   :  { %v371_v3 = vand.u32 %v1969_v0, %v369_v2  ;;  %v1971_v6 = vld [vmem:[%s3201_s1 + $0x8] sm:$0xff]   ;;  %1896 = vmatprep.mubr.msk.bf16.mxu0 %vm270_vm1, %v1973_v5  ;;  %v1972_v7 = vld [vmem:[%s3201_s1] sm:$0xff]   ;;  %v1975_v9 = vld [vmem:[%s3202_s0 + $0x10] sm:$0xff]  }
   0x3   :  { %v1974_v8 = vld [vmem:[%s3202_s0 + $0x8] sm:$0xff]   ;;  %v1989_v10 = vld [vmem:[%s3202_s0 + $0x80] sm:$0xff]   ;;  %v1991_v12 = vld [vmem:[%s3202_s0 + $0x90] sm:$0xff]  }
   0x4   :  { %1888 = vmatprep.subr.bf16.mxu0 %v371_v3  ;;  %1960 = vmatprep.subr.bf16.mxu1 %v371_v3  ;;  %v1990_v11 = vld [vmem:[%s3202_s0 + $0x88] sm:$0xff]   ;;  %v1976_v13 = vld [vmem:[%s3202_s0 + $0x18] sm:$0xff]   ;;  %v1977_v14 = vld [vmem:[%s3202_s0 + $0x20] sm:$0xff]  }
   0x5   :  { %1889 = vmatpush3.bf16.msra.mxu0 %v371_v3  ;;  %1964 = vmatpush3.bf16.msra.mxu1 %v371_v3  ;;  %v1992_v15 = vld [vmem:[%s3202_s0 + $0x98] sm:$0xff]   ;;  %v1993_v16 = vld [vmem:[%s3202_s0 + $0xa0] sm:$0xff]   ;;  %v1978_v17 = vld [vmem:[%s3202_s0 + $0x28] sm:$0xff]  }
   0x6   :  { %1890 = vmatprep.subr.bf16.mxu0 %v1970_v4  ;;  %1961 = vmatprep.subr.bf16.mxu1 %v1970_v4  ;;  %v1979_v18 = vld [vmem:[%s3202_s0 + $0x30] sm:$0xff]   ;;  %v1994_v19 = vld [vmem:[%s3202_s0 + $0xa8] sm:$0xff]   ;;  %v1980_v21 = vld [vmem:[%s3202_s0 + $0x38] sm:$0xff]  }
   0x7   :  { %1928 = vmatprep.mubr.msk.bf16.mxu1 %vm270_vm1, %v1989_v10  ;;  %v1995_v20 = vld [vmem:[%s3202_s0 + $0xb0] sm:$0xff]   ;;  %v1981_v22 = vld [vmem:[%s3202_s0 + $0x40] sm:$0xff]   ;;  %v1996_v23 = vld [vmem:[%s3202_s0 + $0xb8] sm:$0xff]  }
   0x8   :  { %v1997_v24 = vld [vmem:[%s3202_s0 + $0xc0] sm:$0xff]   ;;  %v1982_v25 = vld [vmem:[%s3202_s0 + $0x48] sm:$0xff]   ;;  %v1983_v26 = vld [vmem:[%s3202_s0 + $0x50] sm:$0xff]  }
   0x9   :  { %1891 = vmatpush3.bf16.msra.mxu0 %v1970_v4  ;;  %1965 = vmatpush3.bf16.msra.mxu1 %v1970_v4  ;;  %v1998_v27 = vld [vmem:[%s3202_s0 + $0xc8] sm:$0xff]   ;;  %v1999_v28 = vld [vmem:[%s3202_s0 + $0xd0] sm:$0xff]   ;;  %v1984_v29 = vld [vmem:[%s3202_s0 + $0x58] sm:$0xff]  }
   0xa   :  { %1892 = vmatprep.subr.bf16.mxu0 %v1971_v6  ;;  %1962 = vmatprep.subr.bf16.mxu1 %v1971_v6  ;;  %v1985_v30 = vld [vmem:[%s3202_s0 + $0x60] sm:$0xff]   ;;  %v2000_v31 = vld [vmem:[%s3202_s0 + $0xd8] sm:$0xff]   ;;  %v1986_v33 = vld [vmem:[%s3202_s0 + $0x68] sm:$0xff]  }
   0xb   :  { %v2001_v32 = vld [vmem:[%s3202_s0 + $0xe0] sm:$0xff]   ;;  %v1987_v34 = vld [vmem:[%s3202_s0 + $0x70] sm:$0xff]   ;;  %v2002_v35 = vld [vmem:[%s3202_s0 + $0xe8] sm:$0xff]  }
   0xc   :  { %v2003_v36 = vld [vmem:[%s3202_s0 + $0xf0] sm:$0xff]   ;;  %v1988_v37 = vld [vmem:[%s3202_s0 + $0x78] sm:$0xff]  }
   0xd   :  { %1893 = vmatpush3.bf16.msra.mxu0 %v1971_v6  ;;  %1966 = vmatpush3.bf16.msra.mxu1 %v1971_v6  ;;  %v2004_v38 = vld [vmem:[%s3202_s0 + $0xf8] sm:$0xff]  }
   0xe   :  { %1894 = vmatprep.subr.bf16.mxu0 %v1972_v7  ;;  %1963 = vmatprep.subr.bf16.mxu1 %v1972_v7 }
  0x11   :  { %1895 = vmatpush3.bf16.msra.mxu0 %v1972_v7  ;;  %1967 = vmatpush3.bf16.msra.mxu1 %v1972_v7 }
  0x14   :  { %1897 = vmatmul.mubr.msk.bf16.vlgmr.msra.gmra.mxu0 %vm270_vm1, %v1974_v8  ;;  %1929 = vmatmul.mubr.msk.bf16.vlgmr.msra.gmra.mxu1 %vm270_vm1, %v1990_v11 }
  0x15   :  { %1900 = vmatprep.mubr.msk.bf16.mxu0 %vm270_vm1, %v1975_v9  ;;  %1932 = vmatprep.mubr.msk.bf16.mxu1 %vm270_vm1, %v1991_v12 }
  0x1c   :  { %1901 = vmatmul.mubr.msk.bf16.gmra.mxu0 %vm270_vm1, %v1976_v13  ;;  %1933 = vmatmul.mubr.msk.bf16.gmra.mxu1 %vm270_vm1, %v1992_v15 }
  0x1d   :  { %1904 = vmatprep.mubr.msk.bf16.mxu0 %vm270_vm1, %v1977_v14  ;;  %1936 = vmatprep.mubr.msk.bf16.mxu1 %vm270_vm1, %v1993_v16 }
  0x24   :  { %1905 = vmatmul.mubr.msk.bf16.gmra.mxu0 %vm270_vm1, %v1978_v17  ;;  %1937 = vmatmul.mubr.msk.bf16.gmra.mxu1 %vm270_vm1, %v1994_v19 }
  0x25   :  { %1908 = vmatprep.mubr.msk.bf16.mxu0 %vm270_vm1, %v1979_v18  ;;  %1940 = vmatprep.mubr.msk.bf16.mxu1 %vm270_vm1, %v1995_v20 }
  0x2c   :  { %1909 = vmatmul.mubr.msk.bf16.gmra.mxu0 %vm270_vm1, %v1980_v21  ;;  %1941 = vmatmul.mubr.msk.bf16.gmra.mxu1 %vm270_vm1, %v1996_v23 }
  0x2d   :  { %1912 = vmatprep.mubr.msk.bf16.mxu0 %vm270_vm1, %v1981_v22  ;;  %1944 = vmatprep.mubr.msk.bf16.mxu1 %vm270_vm1, %v1997_v24 }
  0x34   :  { %1913 = vmatmul.mubr.msk.bf16.gmra.mxu0 %vm270_vm1, %v1982_v25  ;;  %1945 = vmatmul.mubr.msk.bf16.gmra.mxu1 %vm270_vm1, %v1998_v27 }
  0x35   :  { %1916 = vmatprep.mubr.msk.bf16.mxu0 %vm270_vm1, %v1983_v26  ;;  %1948 = vmatprep.mubr.msk.bf16.mxu1 %vm270_vm1, %v1999_v28 }
  0x3c   :  { %1917 = vmatmul.mubr.msk.bf16.gmra.mxu0 %vm270_vm1, %v1984_v29  ;;  %1949 = vmatmul.mubr.msk.bf16.gmra.mxu1 %vm270_vm1, %v2000_v31 }
  0x3d   :  { %1920 = vmatprep.mubr.msk.bf16.mxu0 %vm270_vm1, %v1985_v30  ;;  %1952 = vmatprep.mubr.msk.bf16.mxu1 %vm270_vm1, %v2001_v32 }
  0x44   :  { %1921 = vmatmul.mubr.msk.bf16.gmra.mxu0 %vm270_vm1, %v1986_v33  ;;  %1953 = vmatmul.mubr.msk.bf16.gmra.mxu1 %vm270_vm1, %v2002_v35 }
  0x45   :  { %1924 = vmatprep.mubr.msk.bf16.mxu0 %vm270_vm1, %v1987_v34  ;;  %1956 = vmatprep.mubr.msk.bf16.mxu1 %vm270_vm1, %v2003_v36 }
  0x4c   :  { %1925 = vmatmul.mubr.msk.bf16.gmra.mxu0 %vm270_vm1, %v1988_v37  ;;  %1957 = vmatmul.mubr.msk.bf16.gmra.mxu1 %vm270_vm1, %v2004_v38 }
  0xd4   :  { %v2173_v39 = vpop.f32.mrf.mxu0  ;;  %v2181_v43 = vpop.f32.mrf.mxu1 }
  0xd5   :  { %3251 = vst [vmem:[#allocation2_spill] sm:$0xff] %v2173_v39 }
  0xd6   :  { %v2175_v40 = vpop.f32.mrf.mxu0  ;;  %v2190_v48 = vpop.f32.mrf.mxu1 }
  0xd8   :  { %v2177_v41 = vpop.f32.mrf.mxu0  ;;  %v2198_v53 = vpop.f32.mrf.mxu1 }
  0xd9   :  { %3252 = vst [vmem:[#allocation3_spill] sm:$0xff] %v2177_v41 }
  0xda   :  { %v2179_v42 = vpop.f32.mrf.mxu0  ;;  %v2206_v58 = vpop.f32.mrf.mxu1 }
  0xdb   :  { %3253 = vst [vmem:[#allocation4_spill] sm:$0xff] %v2179_v42  ;;  %v664_v44 = vadd.f32 %v2179_v42, %v2175_v40 }
  0xdc   :  { %v2185_v45 = vpop.f32.mrf.mxu0  ;;  %v2214_v63 = vpop.f32.mrf.mxu1 }
  0xdd   :  { %v665_v46 = vadd.f32 %v2173_v39, %v664_v44 }
  0xde   :  { %v2188_v47 = vpop.f32.mrf.mxu0  ;;  %v2222_v4 = vpop.f32.mrf.mxu1 }
  0xdf   :  { %3254 = vst [vmem:[#allocation5_spill] sm:$0xff] %v2188_v47  ;;  %v666_v49 = vadd.f32 %v2177_v41, %v665_v46 }
  0xe0   :  { %v2193_v50 = vpop.f32.mrf.mxu0  ;;  %v2230_v9 = vpop.f32.mrf.mxu1 }
  0xe1   :  { %v667_v51 = vadd.f32 %v666_v49, %v2188_v47  ;;  %3255 = vst [vmem:[#allocation6_spill] sm:$0xff] %v2230_v9 }
  0xe2   :  { %v2196_v52 = vpop.f32.mrf.mxu0  ;;  %v2238_v14 = vpop.f32.mrf.mxu1 }
  0xe3   :  { %v668_v54 = vadd.f32 %v667_v51, %v2196_v52  ;;  %3256 = vst [vmem:[#allocation7_spill] sm:$0xff] %v2238_v14 }
  0xe4   :  { %v2201_v55 = vpop.f32.mrf.mxu0  ;;  %v2246_v19 = vpop.f32.mrf.mxu1 }
  0xe5   :  { %v669_v56 = vadd.f32 %v2185_v45, %v668_v54 }
  0xe6   :  { %v2204_v57 = vpop.f32.mrf.mxu0  ;;  %v2254_v24 = vpop.f32.mrf.mxu1 }
  0xe7   :  { %v670_v59 = vadd.f32 %v2193_v50, %v669_v56 }
  0xe8   :  { %v2209_v60 = vpop.f32.mrf.mxu0  ;;  %v2262_v29 = vpop.f32.mrf.mxu1 }
  0xe9   :  { %v671_v61 = vadd.f32 %v670_v59, %v2204_v57  ;;  %3257 = vst [vmem:[#allocation8_spill] sm:$0xff] %v2262_v29 }
  0xea   :  { %v2212_v62 = vpop.f32.mrf.mxu0  ;;  %v2270_v34 = vpop.f32.mrf.mxu1 }
  0xeb   :  { %v672_v0 = vadd.f32 %v671_v61, %v2212_v62  ;;  %3258 = vst [vmem:[#allocation9_spill] sm:$0xff] %v2270_v34 }
  0xec   :  { %v2217_v1 = vpop.f32.mrf.mxu0  ;;  %v2278_v44 = vpop.f32.mrf.mxu1 }
  0xed   :  { %v673_v2 = vadd.f32 %v2201_v55, %v672_v0 }
  0xee   :  { %v2220_v3 = vpop.f32.mrf.mxu0  ;;  %v2286_v56 = vpop.f32.mrf.mxu1 }
  0xef   :  { %v674_v5 = vadd.f32 %v2209_v60, %v673_v2 }
  0xf0   :  { %v2225_v6 = vpop.f32.mrf.mxu0 }
  0xf1   :  { %v675_v7 = vadd.f32 %v674_v5, %v2220_v3  ;;  %v2294_v5 = vpop.f32.mrf.mxu1 }
  0xf2   :  { %v2228_v8 = vpop.f32.mrf.mxu0  ;;  %3259 = vst [vmem:[#allocation10_spill] sm:$0xff] %v2294_v5 }
  0xf3   :  { %v676_v10 = vadd.f32 %v675_v7, %v2228_v8 }
  0xf4   :  { %v2233_v11 = vpop.f32.mrf.mxu0 }
  0xf5   :  { %v677_v12 = vadd.f32 %v2217_v1, %v676_v10 }
  0xf6   :  { %v2236_v13 = vpop.f32.mrf.mxu0 }
  0xf7   :  { %v678_v15 = vadd.f32 %v2225_v6, %v677_v12  ;;  %v2298_v12 = vpop.f32.mrf.mxu1 }
  0xf8   :  { %v2241_v16 = vpop.f32.mrf.mxu0  ;;  %3260 = vst [vmem:[#allocation11_spill] sm:$0xff] %v2298_v12 }
  0xf9   :  { %v679_v17 = vadd.f32 %v678_v15, %v2236_v13 }
  0xfa   :  { %v2244_v18 = vpop.f32.mrf.mxu0 }
  0xfb   :  { %v680_v20 = vadd.f32 %v679_v17, %v2244_v18 }
  0xfc   :  { %v2249_v21 = vpop.f32.mrf.mxu0 }
  0xfd   :  { %v681_v22 = vadd.f32 %v2233_v11, %v680_v20  ;;  %v2302_v20 = vpop.f32.mrf.mxu1 }
  0xfe   :  { %v2252_v23 = vpop.f32.mrf.mxu0  ;;  %3261 = vst [vmem:[#allocation12_spill] sm:$0xff] %v2302_v20 }
  0xff   :  { %v682_v25 = vadd.f32 %v2241_v16, %v681_v22 }
 0x100   :  { %v2257_v26 = vpop.f32.mrf.mxu0 }
 0x101   :  { %v683_v27 = vadd.f32 %v682_v25, %v2252_v23 }
 0x102   :  { %v2260_v28 = vpop.f32.mrf.mxu0 }
 0x103   :  { %v684_v30 = vadd.f32 %v683_v27, %v2260_v28  ;;  %v2306_v27 = vpop.f32.mrf.mxu1 }
 0x104   :  { %v2265_v31 = vpop.f32.mrf.mxu0  ;;  %3262 = vst [vmem:[#allocation13_spill] sm:$0xff] %v2306_v27 }
 0x105   :  { %v685_v32 = vadd.f32 %v2249_v21, %v684_v30 }
 0x106   :  { %v2268_v33 = vpop.f32.mrf.mxu0 }
 0x107   :  { %v686_v35 = vadd.f32 %v2257_v26, %v685_v32 }
 0x108   :  { %v2273_v36 = vpop.f32.mrf.mxu0 }
 0x109   :  { %v687_v37 = vadd.f32 %v686_v35, %v2268_v33  ;;  %v2310_v35 = vpop.f32.mrf.mxu1 }
 0x10a   :  { %v2276_v38 = vpop.f32.mrf.mxu0  ;;  %3263 = vst [vmem:[#allocation14_spill] sm:$0xff] %v2310_v35 }
 0x10b   :  { %v688_v46 = vadd.f32 %v687_v37, %v2276_v38 }
 0x10c   :  { %v2281_v49 = vpop.f32.mrf.mxu0 }
 0x10d   :  { %v689_v51 = vadd.f32 %v2265_v31, %v688_v46 }
 0x10e   :  { %v2284_v54 = vpop.f32.mrf.mxu0 }
 0x10f   :  { %v690_v59 = vadd.f32 %v2273_v36, %v689_v51  ;;  %v2314_v51 = vpop.f32.mrf.mxu1 }
 0x110   :  { %v2289_v61 = vpop.f32.mrf.mxu0  ;;  %3264 = vst [vmem:[#allocation15_spill] sm:$0xff] %v2314_v51 }
 0x111   :  { %v691_v0 = vadd.f32 %v690_v59, %v2284_v54 }
 0x112   :  { %v2292_v2 = vpop.f32.mrf.mxu0 }
 0x113   :  { %v692_v7 = vadd.f32 %v691_v0, %v2292_v2 }
 0x115   :  { %v693_v10 = vadd.f32 %v2281_v49, %v692_v7  ;;  %v2318_v7 = vpop.f32.mrf.mxu1 }
 0x116   :  { %3265 = vst [vmem:[#allocation16_spill] sm:$0xff] %v2318_v7 }
 0x117   :  { %v694_v15 = vadd.f32 %v2289_v61, %v693_v10 }
 0x119   :  { %v695_v17 = vadd.f32 %v694_v15, %v2190_v48 }
 0x11b   :  { %v696_v22 = vadd.f32 %v695_v17, %v2206_v58  ;;  %v2322_v17 = vpop.f32.mrf.mxu1 }
 0x11c   :  { %3266 = vst [vmem:[#allocation17_spill] sm:$0xff] %v2322_v17 }
 0x11d   :  { %v697_v25 = vadd.f32 %v2181_v43, %v696_v22 }
 0x11f   :  { %v698_v30 = vadd.f32 %v2198_v53, %v697_v25 }
 0x121   :  { %v699_v32 = vadd.f32 %v698_v30, %v2222_v4  ;;  %v2326_v30 = vpop.f32.mrf.mxu1 }
 0x122   :  { %3267 = vst [vmem:[#allocation18_spill] sm:$0xff] %v2326_v30 }
 0x123   :  { %v700_v37 = vadd.f32 %v699_v32, %v2238_v14 }
 0x125   :  { %v701_v46 = vadd.f32 %v2214_v63, %v700_v37 }
 0x127   :  { %v702_v59 = vadd.f32 %v2230_v9, %v701_v46  ;;  %v2330_v46 = vpop.f32.mrf.mxu1 }
 0x128   :  { %3268 = vst [vmem:[#allocation19_spill] sm:$0xff] %v2330_v46 }
 0x129   :  { %v703_v0 = vadd.f32 %v702_v59, %v2254_v24 }
 0x12b   :  { %v704_v10 = vadd.f32 %v703_v0, %v2270_v34  ;;  %v2334_v34 = vpop.f32.mrf.mxu1 }
 0x12c   :  { %3269 = vst [vmem:[#allocation20_spill] sm:$0xff] %v2334_v34 }
 0x12d   :  { %v705_v15 = vadd.f32 %v2246_v19, %v704_v10 }
 0x12f   :  { %v706_v22 = vadd.f32 %v2262_v29, %v705_v15  ;;  %v2338_v29 = vpop.f32.mrf.mxu1 }
 0x130   :  { %3270 = vst [vmem:[#allocation21_spill] sm:$0xff] %v2338_v29 }
 0x131   :  { %v707_v25 = vadd.f32 %v706_v22, %v2286_v56 }
 0x133   :  { %v708_v32 = vadd.f32 %v707_v25, %v2298_v12  ;;  %v2342_v12 = vpop.f32.mrf.mxu1 }
 0x134   :  { %3271 = vst [vmem:[#allocation22_spill] sm:$0xff] %v2342_v12 }
 0x135   :  { %v709_v37 = vadd.f32 %v2278_v44, %v708_v32 }
 0x137   :  { %v710_v59 = vadd.f32 %v2294_v5, %v709_v37  ;;  %v2346_v5 = vpop.f32.mrf.mxu1 }
 0x138   :  { %3272 = vst [vmem:[#allocation23_spill] sm:$0xff] %v2346_v5 }
 0x139   :  { %v711_v0 = vadd.f32 %v710_v59, %v2306_v27 }
 0x13b   :  { %v712_v10 = vadd.f32 %v711_v0, %v2314_v51  ;;  %v2350_v51 = vpop.f32.mrf.mxu1 }
 0x13c   :  { %3273 = vst [vmem:[#allocation24_spill] sm:$0xff] %v2350_v51 }
 0x13d   :  { %v713_v15 = vadd.f32 %v2302_v20, %v712_v10 }
 0x13f   :  { %v714_v22 = vadd.f32 %v2310_v35, %v713_v15  ;;  %v2354_v35 = vpop.f32.mrf.mxu1 }
 0x140   :  { %3274 = vst [vmem:[#allocation25_spill] sm:$0xff] %v2354_v35 }
 0x141   :  { %v715_v25 = vadd.f32 %v714_v22, %v2322_v17  ;;  %v2357_v17 = vpop.f32.mrf.mxu1 }
 0x143   :  { %v716_v32 = vadd.f32 %v715_v25, %v2330_v46 }
 0x145   :  { %v717_v37 = vadd.f32 %v2318_v7, %v716_v32  ;;  %v2360_v32 = vpop.f32.mrf.mxu1 }
 0x146   :  { %3275 = vst [vmem:[#allocation26_spill] sm:$0xff] %v2360_v32 }
 0x147   :  { %v718_v59 = vadd.f32 %v2326_v30, %v717_v37 }
 0x149   :  { %v719_v0 = vadd.f32 %v718_v59, %v2338_v29 }
 0x14b   :  { %v720_v10 = vadd.f32 %v719_v0, %v2346_v5 }
 0x14d   :  { %v721_v15 = vadd.f32 %v2334_v34, %v720_v10 }
 0x14f   :  { %v722_v22 = vadd.f32 %v2342_v12, %v721_v15 }
 0x151   :  { %v723_v25 = vadd.f32 %v722_v22, %v2354_v35 }
 0x153   :  { %v724_v37 = vadd.f32 %v723_v25, %v2360_v32 }
 0x155   :  { %v725_v59 = vadd.f32 %v2350_v51, %v724_v37 }
 0x157   :  { %v726_v29 = vadd.f32 %v2357_v17, %v725_v59 }
 0x159   :  { %v727_v30 = vrot.slane %v726_v29, 4 }
 0x15b   :  { %v728_v0 = vadd.f32 %v727_v30, %v726_v29 }
 0x15d   :  { %v729_v5 = vrot.slane %v728_v0, 2 }
 0x15f   :  { %v730_v10 = vadd.f32 %v729_v5, %v728_v0 }
 0x161   :  { %v731_v34 = vrot.slane %v730_v10, 1 }
 0x163   :  { %v732_v7 = vadd.f32 %v731_v34, %v730_v10 }
 0x165   :  { %v2365_v46 = vmul.f32 0.001953125, %v732_v7 }
 0x167   :  { %v734_v15 = vsub.f32 %v2175_v40, %v2365_v46  ;;  %v735_v22 = vsub.f32 %v2179_v42, %v2365_v46  ;;  %v736_v25 = vsub.f32 %v2173_v39, %v2365_v46  ;;  %v737_v29 = vsub.f32 %v2177_v41, %v2365_v46 }
 0x168   :  { %v738_v5 = vsub.f32 %v2188_v47, %v2365_v46  ;;  %v739_v30 = vsub.f32 %v2196_v52, %v2365_v46  ;;  %v740_v10 = vsub.f32 %v2185_v45, %v2365_v46  ;;  %v742_v47 = vsub.f32 %v2204_v57, %v2365_v46 }
 0x169   :  { %v798_v37 = vmul.f32 %v734_v15, %v734_v15  ;;  %v799_v51 = vmul.f32 %v735_v22, %v735_v22  ;;  %v800_v34 = vmul.f32 %v736_v25, %v736_v25  ;;  %v801_v59 = vmul.f32 %v737_v29, %v737_v29 }
 0x16a   :  { %v802_v42 = vmul.f32 %v738_v5, %v738_v5  ;;  %v741_v15 = vsub.f32 %v2193_v50, %v2365_v46  ;;  %v803_v22 = vmul.f32 %v739_v30, %v739_v30  ;;  %v804_v25 = vmul.f32 %v740_v10, %v740_v10 }
 0x16b   :  { %v862_v7 = vadd.f32 %v799_v51, %v798_v37  ;;  %v743_v37 = vsub.f32 %v2212_v62, %v2365_v46  ;;  %v806_v5 = vmul.f32 %v742_v47, %v742_v47 }
 0x16c   :  { %v805_v29 = vmul.f32 %v741_v15, %v741_v15 }
 0x16d   :  { %v863_v0 = vadd.f32 %v862_v7, %v800_v34  ;;  %v744_v7 = vsub.f32 %v2201_v55, %v2365_v46  ;;  %v807_v30 = vmul.f32 %v743_v37, %v743_v37 }
 0x16f   :  { %v864_v39 = vadd.f32 %v863_v0, %v801_v59  ;;  %v745_v0 = vsub.f32 %v2209_v60, %v2365_v46  ;;  %v808_v10 = vmul.f32 %v744_v7, %v744_v7 }
 0x171   :  { %v865_v41 = vadd.f32 %v864_v39, %v802_v42  ;;  %v746_v42 = vsub.f32 %v2220_v3, %v2365_v46  ;;  %v809_v15 = vmul.f32 %v745_v0, %v745_v0 }
 0x173   :  { %v866_v51 = vadd.f32 %v865_v41, %v803_v22  ;;  %v747_v22 = vsub.f32 %v2228_v8, %v2365_v46  ;;  %v810_v47 = vmul.f32 %v746_v42, %v746_v42 }
 0x175   :  { %v867_v34 = vadd.f32 %v866_v51, %v804_v25  ;;  %v748_v51 = vsub.f32 %v2217_v1, %v2365_v46  ;;  %v811_v37 = vmul.f32 %v747_v22, %v747_v22 }
 0x177   :  { %v868_v59 = vadd.f32 %v867_v34, %v805_v29  ;;  %v749_v34 = vsub.f32 %v2225_v6, %v2365_v46  ;;  %v812_v7 = vmul.f32 %v748_v51, %v748_v51 }
 0x179   :  { %v869_v39 = vadd.f32 %v868_v59, %v806_v5  ;;  %v750_v59 = vsub.f32 %v2236_v13, %v2365_v46  ;;  %v813_v0 = vmul.f32 %v749_v34, %v749_v34 }
 0x17b   :  { %v870_v41 = vadd.f32 %v869_v39, %v807_v30  ;;  %v751_v39 = vsub.f32 %v2244_v18, %v2365_v46  ;;  %v814_v42 = vmul.f32 %v750_v59, %v750_v59 }
 0x17d   :  { %v871_v25 = vadd.f32 %v870_v41, %v808_v10  ;;  %v752_v41 = vsub.f32 %v2233_v11, %v2365_v46  ;;  %v815_v22 = vmul.f32 %v751_v39, %v751_v39 }
 0x17f   :  { %v872_v29 = vadd.f32 %v871_v25, %v809_v15  ;;  %v753_v25 = vsub.f32 %v2241_v16, %v2365_v46  ;;  %v816_v51 = vmul.f32 %v752_v41, %v752_v41 }
 0x181   :  { %v873_v5 = vadd.f32 %v872_v29, %v810_v47  ;;  %v754_v29 = vsub.f32 %v2252_v23, %v2365_v46  ;;  %v817_v34 = vmul.f32 %v753_v25, %v753_v25 }
 0x183   :  { %v874_v30 = vadd.f32 %v873_v5, %v811_v37  ;;  %v755_v5 = vsub.f32 %v2260_v28, %v2365_v46  ;;  %v818_v59 = vmul.f32 %v754_v29, %v754_v29 }
 0x185   :  { %v875_v10 = vadd.f32 %v874_v30, %v812_v7  ;;  %v756_v30 = vsub.f32 %v2249_v21, %v2365_v46  ;;  %v819_v39 = vmul.f32 %v755_v5, %v755_v5 }
 0x187   :  { %v876_v15 = vadd.f32 %v875_v10, %v813_v0  ;;  %v757_v10 = vsub.f32 %v2257_v26, %v2365_v46  ;;  %v820_v41 = vmul.f32 %v756_v30, %v756_v30 }
 0x189   :  { %v877_v47 = vadd.f32 %v876_v15, %v814_v42  ;;  %v758_v15 = vsub.f32 %v2268_v33, %v2365_v46  ;;  %v821_v25 = vmul.f32 %v757_v10, %v757_v10 }
 0x18b   :  { %v878_v37 = vadd.f32 %v877_v47, %v815_v22  ;;  %v759_v47 = vsub.f32 %v2276_v38, %v2365_v46  ;;  %v822_v29 = vmul.f32 %v758_v15, %v758_v15 }
 0x18d   :  { %v879_v7 = vadd.f32 %v878_v37, %v816_v51  ;;  %v760_v37 = vsub.f32 %v2265_v31, %v2365_v46  ;;  %v823_v5 = vmul.f32 %v759_v47, %v759_v47 }
 0x18f   :  { %v880_v0 = vadd.f32 %v879_v7, %v817_v34  ;;  %v761_v7 = vsub.f32 %v2273_v36, %v2365_v46  ;;  %v824_v30 = vmul.f32 %v760_v37, %v760_v37 }
 0x191   :  { %v881_v42 = vadd.f32 %v880_v0, %v818_v59  ;;  %v762_v0 = vsub.f32 %v2284_v54, %v2365_v46  ;;  %v825_v10 = vmul.f32 %v761_v7, %v761_v7 }
 0x193   :  { %v882_v22 = vadd.f32 %v881_v42, %v819_v39  ;;  %v763_v42 = vsub.f32 %v2292_v2, %v2365_v46  ;;  %v826_v15 = vmul.f32 %v762_v0, %v762_v0 }
 0x195   :  { %v883_v51 = vadd.f32 %v882_v22, %v820_v41  ;;  %v764_v22 = vsub.f32 %v2281_v49, %v2365_v46  ;;  %v827_v47 = vmul.f32 %v763_v42, %v763_v42 }
 0x197   :  { %v884_v34 = vadd.f32 %v883_v51, %v821_v25  ;;  %v765_v51 = vsub.f32 %v2289_v61, %v2365_v46  ;;  %v828_v37 = vmul.f32 %v764_v22, %v764_v22 }
 0x199   :  { %v885_v59 = vadd.f32 %v884_v34, %v822_v29  ;;  %v766_v34 = vsub.f32 %v2190_v48, %v2365_v46  ;;  %v829_v7 = vmul.f32 %v765_v51, %v765_v51 }
 0x19b   :  { %v886_v39 = vadd.f32 %v885_v59, %v823_v5  ;;  %v767_v59 = vsub.f32 %v2206_v58, %v2365_v46  ;;  %v830_v0 = vmul.f32 %v766_v34, %v766_v34 }
 0x19d   :  { %v887_v41 = vadd.f32 %v886_v39, %v824_v30  ;;  %v768_v39 = vsub.f32 %v2181_v43, %v2365_v46  ;;  %v831_v42 = vmul.f32 %v767_v59, %v767_v59 }
 0x19f   :  { %v888_v25 = vadd.f32 %v887_v41, %v825_v10  ;;  %v769_v41 = vsub.f32 %v2198_v53, %v2365_v46  ;;  %v832_v22 = vmul.f32 %v768_v39, %v768_v39 }
 0x1a1   :  { %v889_v29 = vadd.f32 %v888_v25, %v826_v15  ;;  %v770_v25 = vsub.f32 %v2222_v4, %v2365_v46  ;;  %v833_v51 = vmul.f32 %v769_v41, %v769_v41 }
 0x1a3   :  { %v890_v5 = vadd.f32 %v889_v29, %v827_v47  ;;  %v771_v29 = vsub.f32 %v2238_v14, %v2365_v46  ;;  %v834_v34 = vmul.f32 %v770_v25, %v770_v25 }
 0x1a5   :  { %v891_v30 = vadd.f32 %v890_v5, %v828_v37  ;;  %v772_v5 = vsub.f32 %v2214_v63, %v2365_v46  ;;  %v835_v59 = vmul.f32 %v771_v29, %v771_v29 }
 0x1a7   :  { %v892_v10 = vadd.f32 %v891_v30, %v829_v7  ;;  %v773_v30 = vsub.f32 %v2230_v9, %v2365_v46  ;;  %v836_v39 = vmul.f32 %v772_v5, %v772_v5 }
 0x1a9   :  { %v893_v15 = vadd.f32 %v892_v10, %v830_v0  ;;  %v774_v10 = vsub.f32 %v2254_v24, %v2365_v46  ;;  %v837_v41 = vmul.f32 %v773_v30, %v773_v30 }
 0x1ab   :  { %v894_v47 = vadd.f32 %v893_v15, %v831_v42  ;;  %v3276_v15 = vld [vmem:[#allocation9_spill] sm:$0xff]  ;;  %v838_v25 = vmul.f32 %v774_v10, %v774_v10 }
 0x1ac   :  { %v775_v14 = vsub.f32 %v3276_v15, %v2365_v46 }
 0x1ad   :  { %v895_v37 = vadd.f32 %v894_v47, %v832_v22  ;;  %v776_v47 = vsub.f32 %v2246_v19, %v2365_v46 }
 0x1ae   :  { %v839_v29 = vmul.f32 %v775_v14, %v775_v14 }
 0x1af   :  { %v896_v7 = vadd.f32 %v895_v37, %v833_v51  ;;  %v3277_v37 = vld [vmem:[#allocation8_spill] sm:$0xff]  ;;  %v840_v5 = vmul.f32 %v776_v47, %v776_v47 }
 0x1b0   :  { %v777_v9 = vsub.f32 %v3277_v37, %v2365_v46 }
 0x1b1   :  { %v897_v0 = vadd.f32 %v896_v7, %v834_v34  ;;  %v778_v7 = vsub.f32 %v2286_v56, %v2365_v46 }
 0x1b2   :  { %v841_v30 = vmul.f32 %v777_v9, %v777_v9 }
 0x1b3   :  { %v898_v42 = vadd.f32 %v897_v0, %v835_v59  ;;  %v3278_v0 = vld [vmem:[#allocation11_spill] sm:$0xff]  ;;  %v842_v10 = vmul.f32 %v778_v7, %v778_v7 }
 0x1b4   :  { %v779_v15 = vsub.f32 %v3278_v0, %v2365_v46 }
 0x1b5   :  { %v899_v22 = vadd.f32 %v898_v42, %v836_v39  ;;  %v780_v42 = vsub.f32 %v2278_v44, %v2365_v46 }
 0x1b6   :  { %v843_v14 = vmul.f32 %v779_v15, %v779_v15 }
 0x1b7   :  { %v900_v51 = vadd.f32 %v899_v22, %v837_v41  ;;  %v3279_v22 = vld [vmem:[#allocation10_spill] sm:$0xff]  ;;  %v844_v47 = vmul.f32 %v780_v42, %v780_v42 }
 0x1b8   :  { %v781_v37 = vsub.f32 %v3279_v22, %v2365_v46 }
 0x1b9   :  { %v901_v34 = vadd.f32 %v900_v51, %v838_v25  ;;  %v782_v51 = vsub.f32 %v2306_v27, %v2365_v46 }
 0x1ba   :  { %v845_v9 = vmul.f32 %v781_v37, %v781_v37 }
 0x1bb   :  { %v902_v59 = vadd.f32 %v901_v34, %v839_v29  ;;  %v3280_v34 = vld [vmem:[#allocation15_spill] sm:$0xff]  ;;  %v846_v7 = vmul.f32 %v782_v51, %v782_v51 }
 0x1bc   :  { %v783_v0 = vsub.f32 %v3280_v34, %v2365_v46 }
 0x1bd   :  { %v903_v39 = vadd.f32 %v902_v59, %v840_v5  ;;  %v784_v59 = vsub.f32 %v2302_v20, %v2365_v46 }
 0x1be   :  { %v847_v15 = vmul.f32 %v783_v0, %v783_v0 }
 0x1bf   :  { %v904_v41 = vadd.f32 %v903_v39, %v841_v30  ;;  %v3281_v39 = vld [vmem:[#allocation14_spill] sm:$0xff]  ;;  %v848_v42 = vmul.f32 %v784_v59, %v784_v59 }
 0x1c0   :  { %v785_v22 = vsub.f32 %v3281_v39, %v2365_v46 }
 0x1c1   :  { %v905_v25 = vadd.f32 %v904_v41, %v842_v10  ;;  %v3282_v41 = vld [vmem:[#allocation17_spill] sm:$0xff] }
 0x1c2   :  { %v786_v27 = vsub.f32 %v3282_v41, %v2365_v46  ;;  %v849_v37 = vmul.f32 %v785_v22, %v785_v22 }
 0x1c3   :  { %v906_v29 = vadd.f32 %v905_v25, %v843_v14  ;;  %v3283_v25 = vld [vmem:[#allocation19_spill] sm:$0xff] }
 0x1c4   :  { %v787_v34 = vsub.f32 %v3283_v25, %v2365_v46  ;;  %v850_v51 = vmul.f32 %v786_v27, %v786_v27 }
 0x1c5   :  { %v907_v5 = vadd.f32 %v906_v29, %v844_v47  ;;  %v3284_v29 = vld [vmem:[#allocation16_spill] sm:$0xff] }
 0x1c6   :  { %v788_v20 = vsub.f32 %v3284_v29, %v2365_v46  ;;  %v851_v0 = vmul.f32 %v787_v34, %v787_v34 }
 0x1c7   :  { %v908_v30 = vadd.f32 %v907_v5, %v845_v9  ;;  %v3285_v5 = vld [vmem:[#allocation18_spill] sm:$0xff] }
 0x1c8   :  { %v789_v39 = vsub.f32 %v3285_v5, %v2365_v46  ;;  %v852_v59 = vmul.f32 %v788_v20, %v788_v20 }
 0x1c9   :  { %v909_v10 = vadd.f32 %v908_v30, %v846_v7  ;;  %v3286_v30 = vld [vmem:[#allocation21_spill] sm:$0xff] }
 0x1ca   :  { %v790_v41 = vsub.f32 %v3286_v30, %v2365_v46  ;;  %v853_v22 = vmul.f32 %v789_v39, %v789_v39 }
 0x1cb   :  { %v910_v14 = vadd.f32 %v909_v10, %v847_v15  ;;  %v3287_v10 = vld [vmem:[#allocation23_spill] sm:$0xff] }
 0x1cc   :  { %v791_v25 = vsub.f32 %v3287_v10, %v2365_v46  ;;  %v854_v27 = vmul.f32 %v790_v41, %v790_v41 }
 0x1cd   :  { %v911_v47 = vadd.f32 %v910_v14, %v848_v42  ;;  %v3288_v14 = vld [vmem:[#allocation20_spill] sm:$0xff] }
 0x1ce   :  { %v792_v29 = vsub.f32 %v3288_v14, %v2365_v46  ;;  %v855_v34 = vmul.f32 %v791_v25, %v791_v25 }
 0x1cf   :  { %v912_v9 = vadd.f32 %v911_v47, %v849_v37  ;;  %v793_v47 = vsub.f32 %v2342_v12, %v2365_v46 }
 0x1d0   :  { %v856_v20 = vmul.f32 %v792_v29, %v792_v29 }
 0x1d1   :  { %v913_v7 = vadd.f32 %v912_v9, %v850_v51  ;;  %v794_v9 = vsub.f32 %v2354_v35, %v2365_v46  ;;  %v857_v39 = vmul.f32 %v793_v47, %v793_v47 }
 0x1d3   :  { %v914_v15 = vadd.f32 %v913_v7, %v851_v0  ;;  %v795_v7 = vsub.f32 %v2360_v32, %v2365_v46  ;;  %v858_v41 = vmul.f32 %v794_v9, %v794_v9  ;;  %v938_v9 = vlaneseq }
 0x1d5   :  { %v915_v42 = vadd.f32 %v914_v15, %v852_v59  ;;  %v3289_v15 = vld [vmem:[#allocation24_spill] sm:$0xff]  ;;  %v859_v25 = vmul.f32 %v795_v7, %v795_v7 }
 0x1d6   :  { %v796_v14 = vsub.f32 %v3289_v15, %v2365_v46 }
 0x1d7   :  { %v916_v37 = vadd.f32 %v915_v42, %v853_v22  ;;  %v797_v42 = vsub.f32 %v2357_v17, %v2365_v46 }
 0x1d9   :  { %v917_v51 = vadd.f32 %v916_v37, %v854_v27  ;;  %v860_v37 = vmul.f32 %v796_v14, %v796_v14  ;;  %v861_v35 = vmul.f32 %v797_v42, %v797_v42  ;;  %v662_v14 = vld [vmem:[%s3203_s2] sm:$0x1] }
 0x1da   :  { %v3291_v42 = vld [vmem:[#allocation2_spill] sm:$0xff] }
 0x1db   :  { %v918_v0 = vadd.f32 %v917_v51, %v855_v34 }
 0x1dd   :  { %v919_v59 = vadd.f32 %v918_v0, %v856_v20 }
 0x1df   :  { %v920_v22 = vadd.f32 %v919_v59, %v857_v39  ;;  %v2495_v39 = vshrl.u32 %v938_v9, 7  ;;  %v3295_v9 = vld [vmem:[#allocation6_spill] sm:$0xff] }
 0x1e1   :  { %v921_v27 = vadd.f32 %v920_v22, %v858_v41  ;;  %v3245_v7 = vsub.s32 0, %v2495_v39  ;;  %v3290_v41 = vld [vmem:[#allocation4_spill] sm:$0xff] }
 0x1e3   :  { %v922_v12 = vadd.f32 %v921_v27, %v859_v25 }
 0x1e5   :  { %v923_v29 = vadd.f32 %v922_v12, %v860_v37  ;;  %v3293_v37 = vld [vmem:[#allocation5_spill] sm:$0xff] }
 0x1e7   :  { %v924_v34 = vadd.f32 %v923_v29, %v861_v35 }
 0x1e9   :  { %v925_v51 = vrot.slane %v924_v34, 4 }
 0x1eb   :  { %v926_v10 = vadd.f32 %v925_v51, %v924_v34 }
 0x1ed   :  { %v927_v32 = vrot.slane %v926_v10, 2 }
 0x1ef   :  { %v928_v47 = vadd.f32 %v927_v32, %v926_v10  ;;  %v2504_v32 = vld [vmem:[%s3204_s3] sm:$0x1] }
 0x1f1   :  { %v929_v20 = vrot.slane %v928_v47, 1 }
 0x1f3   :  { %v930_v0 = vadd.f32 %v929_v20, %v928_v47 }
 0x1f5   :  { %v931_v30 = vmul.f32 0.001953125, %v930_v0  ;;  %v3294_v0 = vld [vmem:[#allocation7_spill] sm:$0xff] }
 0x1f7   :  { %v932_v15 = vadd.f32 1e-05, %v931_v30 }
 0x1f9   :  { %2005 = vrsqrt.f32 %v932_v15 }
 0x206   :  { %v2006_v12 = vpop.eup %2005 }
 0x207   :  { %v934_v35 = vmul.f32 %v2006_v12, %v662_v14  ;;  %v3296_v14 = vld [vmem:[#allocation9_spill] sm:$0xff] }
 0x209   :  { %v2507_v10 = vmul.f32 %v934_v35, %v2365_v46  ;;  %v2511_v30 = vrot.slane %v934_v35, %v3245_v7  ;;  %v3292_v46 = vld [vmem:[#allocation3_spill] sm:$0xff]  ;;  %v3297_v35 = vld [vmem:[#allocation8_spill] sm:$0xff] }
 0x20a   :  { %v3309_v7 = vld [vmem:[#allocation19_spill] sm:$0xff] }
 0x20b   :  { %v936_v59 = vsub.f32 %v2504_v32, %v2507_v10  ;;  %v2517_v15 = vmul.f32 %v2511_v30, %v2175_v40  ;;  %v2521_v22 = vmul.f32 %v2511_v30, %v3290_v41  ;;  %v2525_v25 = vmul.f32 %v3291_v42, %v2511_v30  ;;  %v3298_v10 = vld [vmem:[#allocation11_spill] sm:$0xff]  ;;  %v3299_v42 = vld [vmem:[#allocation10_spill] sm:$0xff] }
 0x20c   :  { %v2529_v27 = vmul.f32 %v3292_v46, %v2511_v30  ;;  %v2533_v29 = vmul.f32 %v2511_v30, %v3293_v37  ;;  %v2537_v40 = vmul.f32 %v2511_v30, %v2196_v52  ;;  %v2541_v34 = vmul.f32 %v2185_v45, %v2511_v30  ;;  %v3300_v46 = vld [vmem:[#allocation13_spill] sm:$0xff] }
 0x20d   :  { %v2545_v51 = vmul.f32 %v2193_v50, %v2511_v30  ;;  %v2549_v47 = vmul.f32 %v2511_v30, %v2204_v57  ;;  %v2553_v20 = vmul.f32 %v2511_v30, %v2212_v62  ;;  %v2557_v52 = vmul.f32 %v2201_v55, %v2511_v30 }
 0x20e   :  { %v2561_v45 = vmul.f32 %v2209_v60, %v2511_v30  ;;  %v2565_v50 = vmul.f32 %v2511_v30, %v2220_v3  ;;  %v2569_v57 = vmul.f32 %v2511_v30, %v2228_v8  ;;  %v2573_v62 = vmul.f32 %v2217_v1, %v2511_v30 }
 0x20f   :  { %v2577_v55 = vmul.f32 %v2225_v6, %v2511_v30  ;;  %v2581_v60 = vmul.f32 %v2511_v30, %v2236_v13  ;;  %v2585_v3 = vmul.f32 %v2511_v30, %v2244_v18  ;;  %v2589_v8 = vmul.f32 %v2233_v11, %v2511_v30 }
 0x210   :  { %v2593_v1 = vmul.f32 %v2241_v16, %v2511_v30  ;;  %v2597_v6 = vmul.f32 %v2511_v30, %v2252_v23  ;;  %v2601_v13 = vmul.f32 %v2511_v30, %v2260_v28  ;;  %v2605_v18 = vmul.f32 %v2249_v21, %v2511_v30 }
 0x211   :  { %v2609_v11 = vmul.f32 %v2257_v26, %v2511_v30  ;;  %v2613_v16 = vmul.f32 %v2511_v30, %v2268_v33  ;;  %v2617_v23 = vmul.f32 %v2511_v30, %v2276_v38  ;;  %v2621_v28 = vmul.f32 %v2265_v31, %v2511_v30 }
 0x212   :  { %v2625_v21 = vmul.f32 %v2273_v36, %v2511_v30  ;;  %v2629_v26 = vmul.f32 %v2511_v30, %v2284_v54  ;;  %v2633_v33 = vmul.f32 %v2511_v30, %v2292_v2  ;;  %v2637_v38 = vmul.f32 %v2281_v49, %v2511_v30 }
 0x213   :  { %v2641_v31 = vmul.f32 %v2289_v61, %v2511_v30  ;;  %v2645_v36 = vmul.f32 %v2511_v30, %v2190_v48  ;;  %v2649_v54 = vmul.f32 %v2511_v30, %v2206_v58  ;;  %v2653_v2 = vmul.f32 %v2181_v43, %v2511_v30 }
 0x214   :  { %v2657_v49 = vmul.f32 %v2198_v53, %v2511_v30  ;;  %v2661_v61 = vmul.f32 %v2511_v30, %v2222_v4  ;;  %v2665_v48 = vmul.f32 %v2511_v30, %v3294_v0  ;;  %v2669_v58 = vmul.f32 %v2214_v63, %v2511_v30  ;;  %v3302_v0 = vld [vmem:[#allocation15_spill] sm:$0xff] }
 0x215   :  { %v2673_v43 = vmul.f32 %v3295_v9, %v2511_v30  ;;  %v2677_v53 = vmul.f32 %v2511_v30, %v2254_v24  ;;  %v2681_v4 = vmul.f32 %v2511_v30, %v3296_v14  ;;  %v2685_v12 = vmul.f32 %v2246_v19, %v2511_v30  ;;  %v3303_v9 = vld [vmem:[#allocation12_spill] sm:$0xff] }
 0x216   :  { %v2689_v63 = vmul.f32 %v3297_v35, %v2511_v30  ;;  %v2693_v32 = vmul.f32 %v2511_v30, %v2286_v56  ;;  %v2697_v24 = vmul.f32 %v2511_v30, %v3298_v10  ;;  %v2701_v41 = vmul.f32 %v2278_v44, %v2511_v30  ;;  %v3305_v35 = vld [vmem:[#allocation14_spill] sm:$0xff]  ;;  %v3307_v10 = vld [vmem:[#allocation17_spill] sm:$0xff] }
 0x217   :  { %v2705_v19 = vmul.f32 %v3299_v42, %v2511_v30  ;;  %v2709_v37 = vmul.f32 %v2511_v30, %v3300_v46  ;;  %v2713_v56 = vmul.f32 %v2511_v30, %v3302_v0  ;;  %v2717_v14 = vmul.f32 %v3303_v9, %v2511_v30 }
 0x218   :  { %v2721_v44 = vmul.f32 %v3305_v35, %v2511_v30  ;;  %v2725_v42 = vmul.f32 %v2511_v30, %v3307_v10  ;;  %v2729_v46 = vmul.f32 %v2511_v30, %v3309_v7  ;;  %v2737_v9 = vmul.f32 %v3285_v5, %v2511_v30 }
 0x219   :  { %3301 = vst [vmem:[#allocation18_spill] sm:$0xff] %v2709_v37  ;;  %3304 = vst [vmem:[#allocation4_spill] sm:$0xff] %v2717_v14  ;;  %v3311_v37 = vld [vmem:[#allocation16_spill] sm:$0xff]  ;;  %v3314_v14 = vld [vmem:[#allocation21_spill] sm:$0xff] }
 0x21a   :  { %3306 = vst [vmem:[#allocation2_spill] sm:$0xff] %v2721_v44  ;;  %3308 = vst [vmem:[#allocation3_spill] sm:$0xff] %v2725_v42  ;;  %v2733_v0 = vmul.f32 %v3311_v37, %v2511_v30  ;;  %v2741_v35 = vmul.f32 %v2511_v30, %v3314_v14  ;;  %v3316_v44 = vld [vmem:[#allocation23_spill] sm:$0xff]  ;;  %v3318_v42 = vld [vmem:[#allocation20_spill] sm:$0xff] }
 0x21b   :  { %3310 = vst [vmem:[#allocation5_spill] sm:$0xff] %v2729_v46  ;;  %3313 = vst [vmem:[#allocation6_spill] sm:$0xff] %v2737_v9  ;;  %v2745_v10 = vmul.f32 %v2511_v30, %v3316_v44  ;;  %v2749_v7 = vmul.f32 %v3318_v42, %v2511_v30  ;;  %v3319_v46 = vld [vmem:[#allocation22_spill] sm:$0xff]  ;;  %v3321_v9 = vld [vmem:[#allocation25_spill] sm:$0xff] }
 0x21c   :  { %3312 = vst [vmem:[#allocation7_spill] sm:$0xff] %v2733_v0  ;;  %3315 = vst [vmem:[#allocation9_spill] sm:$0xff] %v2741_v35  ;;  %v2753_v37 = vmul.f32 %v3319_v46, %v2511_v30  ;;  %v3320_v0 = vsub.s32 0, %v2495_v39  ;;  %v2761_v14 = vmul.f32 %v2511_v30, %v3321_v9  ;;  %v3322_v35 = vld [vmem:[#allocation26_spill] sm:$0xff]  ;;  %v2773_v46 = vmul.f32 %v2357_v17, %v2511_v30 }
 0x21d   :  { %3317 = vst [vmem:[#allocation8_spill] sm:$0xff] %v2745_v10  ;;  %v2765_v44 = vmul.f32 %v2511_v30, %v3322_v35  ;;  %v3323_v10 = vld [vmem:[#allocation24_spill] sm:$0xff] }
 0x21e   :  { %v2757_v5 = vrot.slane %v936_v59, %v3320_v0  ;;  %v2769_v42 = vmul.f32 %v3323_v10, %v2511_v30 }
 0x220   :  { %v2777_v39 = vadd.f32 %v2757_v5, %v2517_v15  ;;  %v2781_v59 = vadd.f32 %v2757_v5, %v2521_v22  ;;  %v2785_v0 = vadd.f32 %v2757_v5, %v2525_v25  ;;  %v2789_v9 = vadd.f32 %v2757_v5, %v2529_v27  ;;  %v3334_v35 = vld [vmem:[#allocation4_spill] sm:$0xff] }
 0x221   :  { %v2793_v17 = vadd.f32 %v2757_v5, %v2533_v29  ;;  %v2797_v30 = vadd.f32 %v2757_v5, %v2537_v40  ;;  %v2801_v15 = vadd.f32 %v2757_v5, %v2541_v34  ;;  %v2805_v22 = vadd.f32 %v2757_v5, %v2545_v51  ;;  %v3336_v10 = vld [vmem:[#allocation2_spill] sm:$0xff] }
 0x222   :  { %3324 = vst [vmem:[#allocation11_spill] sm:$0xff] %v2777_v39  ;;  %3325 = vst [vmem:[#allocation10_spill] sm:$0xff] %v2781_v59  ;;  %v2809_v25 = vadd.f32 %v2757_v5, %v2549_v47  ;;  %v2813_v27 = vadd.f32 %v2757_v5, %v2553_v20  ;;  %v2817_v29 = vadd.f32 %v2757_v5, %v2557_v52 }
 0x223   :  { %3326 = vst [vmem:[#allocation13_spill] sm:$0xff] %v2785_v0  ;;  %3327 = vst [vmem:[#allocation15_spill] sm:$0xff] %v2789_v9  ;;  %v2821_v40 = vadd.f32 %v2757_v5, %v2561_v45  ;;  %v2825_v34 = vadd.f32 %v2757_v5, %v2565_v50  ;;  %v2829_v51 = vadd.f32 %v2757_v5, %v2569_v57 }
 0x224   :  { %3328 = vst [vmem:[#allocation12_spill] sm:$0xff] %v2793_v17  ;;  %v2833_v47 = vadd.f32 %v2757_v5, %v2573_v62  ;;  %v2837_v20 = vadd.f32 %v2757_v5, %v2577_v55  ;;  %v2841_v52 = vadd.f32 %v2757_v5, %v2581_v60  ;;  %v2845_v45 = vadd.f32 %v2757_v5, %v2585_v3 }
 0x225   :  { %v2849_v50 = vadd.f32 %v2757_v5, %v2589_v8  ;;  %v2853_v57 = vadd.f32 %v2757_v5, %v2593_v1  ;;  %v2857_v62 = vadd.f32 %v2757_v5, %v2597_v6  ;;  %v2861_v55 = vadd.f32 %v2757_v5, %v2601_v13 }
 0x226   :  { %v2865_v60 = vadd.f32 %v2757_v5, %v2605_v18  ;;  %v2869_v3 = vadd.f32 %v2757_v5, %v2609_v11  ;;  %v2873_v8 = vadd.f32 %v2757_v5, %v2613_v16  ;;  %v2877_v1 = vadd.f32 %v2757_v5, %v2617_v23 }
 0x227   :  { %v2881_v6 = vadd.f32 %v2757_v5, %v2621_v28  ;;  %v2885_v13 = vadd.f32 %v2757_v5, %v2625_v21  ;;  %v2889_v18 = vadd.f32 %v2757_v5, %v2629_v26  ;;  %v2893_v11 = vadd.f32 %v2757_v5, %v2633_v33 }
 0x228   :  { %v2897_v16 = vadd.f32 %v2757_v5, %v2637_v38  ;;  %v2901_v23 = vadd.f32 %v2757_v5, %v2641_v31  ;;  %v2905_v28 = vadd.f32 %v2757_v5, %v2645_v36  ;;  %v2909_v21 = vadd.f32 %v2757_v5, %v2649_v54 }
 0x229   :  { %v2913_v26 = vadd.f32 %v2757_v5, %v2653_v2  ;;  %v2917_v33 = vadd.f32 %v2757_v5, %v2657_v49  ;;  %v2921_v38 = vadd.f32 %v2757_v5, %v2661_v61  ;;  %v2925_v31 = vadd.f32 %v2757_v5, %v2665_v48 }
 0x22a   :  { %v2929_v36 = vadd.f32 %v2757_v5, %v2669_v58  ;;  %v2933_v54 = vadd.f32 %v2757_v5, %v2673_v43  ;;  %v2937_v2 = vadd.f32 %v2757_v5, %v2677_v53  ;;  %v2941_v49 = vadd.f32 %v2757_v5, %v2681_v4 }
 0x22b   :  { %v2945_v61 = vadd.f32 %v2757_v5, %v2685_v12  ;;  %v2949_v48 = vadd.f32 %v2757_v5, %v2689_v63  ;;  %v2953_v58 = vadd.f32 %v2757_v5, %v2693_v32  ;;  %v2957_v43 = vadd.f32 %v2757_v5, %v2697_v24  ;;  %v3331_v12 = vld [vmem:[#allocation18_spill] sm:$0xff] }
 0x22c   :  { %v2961_v53 = vadd.f32 %v2757_v5, %v2701_v41  ;;  %v2965_v4 = vadd.f32 %v2757_v5, %v2705_v19  ;;  %v2969_v63 = vadd.f32 %v2757_v5, %v3331_v12  ;;  %v2973_v32 = vadd.f32 %v2757_v5, %v2713_v56 }
 0x22d   :  { %v2977_v24 = vadd.f32 %v2757_v5, %v3334_v35  ;;  %v2981_v41 = vadd.f32 %v2757_v5, %v3336_v10 }
 0x22e   :  { %3329 = vst [vmem:[#allocation14_spill] sm:$0xff] %v2961_v53  ;;  %3330 = vst [vmem:[#allocation17_spill] sm:$0xff] %v2965_v4  ;;  %v3338_v53 = vld [vmem:[#allocation3_spill] sm:$0xff]  ;;  %v3339_v4 = vld [vmem:[#allocation5_spill] sm:$0xff] }
 0x22f   :  { %3332 = vst [vmem:[#allocation19_spill] sm:$0xff] %v2969_v63  ;;  %3333 = vst [vmem:[#allocation16_spill] sm:$0xff] %v2973_v32  ;;  %v2985_v19 = vadd.f32 %v2757_v5, %v3338_v53  ;;  %v2989_v12 = vadd.f32 %v2757_v5, %v3339_v4  ;;  %v3340_v63 = vld [vmem:[#allocation7_spill] sm:$0xff]  ;;  %v3341_v32 = vld [vmem:[#allocation6_spill] sm:$0xff]  ;;  %v3009_v4 = vadd.f32 %v2757_v5, %v2749_v7 }
 0x230   :  { %3335 = vst [vmem:[#allocation21_spill] sm:$0xff] %v2977_v24  ;;  %3337 = vst [vmem:[#allocation23_spill] sm:$0xff] %v2981_v41  ;;  %v2993_v56 = vadd.f32 %v2757_v5, %v3340_v63  ;;  %v2997_v35 = vadd.f32 %v2757_v5, %v3341_v32  ;;  %v3342_v24 = vld [vmem:[#allocation9_spill] sm:$0xff]  ;;  %v3343_v41 = vld [vmem:[#allocation8_spill] sm:$0xff]  ;;  %v3013_v63 = vadd.f32 %v2757_v5, %v2753_v37  ;;  %v1088_v37 = vmax.f32 %v2821_v40, 0.0 }
 0x231   :  { %v3001_v10 = vadd.f32 %v2757_v5, %v3342_v24  ;;  %v3005_v53 = vadd.f32 %v2757_v5, %v3343_v41  ;;  %3344 = vst [vmem:[#allocation20_spill] sm:$0xff] %v3009_v4  ;;  %v3017_v32 = vadd.f32 %v2757_v5, %v2761_v14  ;;  %v3021_v24 = vadd.f32 %v2757_v5, %v2765_v44 }
 0x232   :  { %3345 = vst [vmem:[#allocation22_spill] sm:$0xff] %v3013_v63  ;;  %v3025_v41 = vadd.f32 %v2757_v5, %v2769_v42  ;;  %v3029_v7 = vadd.f32 %v2757_v5, %v2773_v46  ;;  %v1082_v44 = vmax.f32 %v2797_v30, 0.0  ;;  %v1084_v42 = vmax.f32 %v2805_v22, 0.0 }
 0x233   :  { %3346 = vst [vmem:[#allocation25_spill] sm:$0xff] %v3017_v32  ;;  %3347 = vst [vmem:[#allocation26_spill] sm:$0xff] %v3021_v24  ;;  %v1083_v24 = vmax.f32 %v2801_v15, 0.0  ;;  %v1086_v5 = vmax.f32 %v2813_v27, 0.0  ;;  %v1087_v46 = vmax.f32 %v2817_v29, 0.0  ;;  %v1089_v63 = vmax.f32 %v2825_v34, 0.0 }
 0x234   :  { %3348 = vst [vmem:[#allocation24_spill] sm:$0xff] %v3025_v41  ;;  %3349 = vst [vmem:[#allocation18_spill] sm:$0xff] %v3029_v7  ;;  %v1085_v41 = vmax.f32 %v2809_v25, 0.0  ;;  %v1090_v14 = vmax.f32 %v2829_v51, 0.0  ;;  %v1091_v32 = vmax.f32 %v2833_v47, 0.0  ;;  %v1092_v30 = vmax.f32 %v2837_v20, 0.0 }
 0x235   :  { %v1093_v15 = vmax.f32 %v2841_v52, 0.0  ;;  %v1094_v22 = vmax.f32 %v2845_v45, 0.0  ;;  %v1095_v25 = vmax.f32 %v2849_v50, 0.0  ;;  %v1096_v27 = vmax.f32 %v2853_v57, 0.0  ;;  %v3350_v4 = vld [vmem:[#allocation14_spill] sm:$0xff]  ;;  %v3351_v17 = vld [vmem:[#allocation17_spill] sm:$0xff] }
 0x236   :  { %v1097_v29 = vmax.f32 %v2857_v62, 0.0  ;;  %v1098_v40 = vmax.f32 %v2861_v55, 0.0  ;;  %v1099_v34 = vmax.f32 %v2865_v60, 0.0  ;;  %v1100_v51 = vmax.f32 %v2869_v3, 0.0  ;;  %v3352_v9 = vld [vmem:[#allocation19_spill] sm:$0xff]  ;;  %v3353_v0 = vld [vmem:[#allocation16_spill] sm:$0xff] }
 0x237   :  { %v1101_v47 = vmax.f32 %v2873_v8, 0.0  ;;  %v1102_v20 = vmax.f32 %v2877_v1, 0.0  ;;  %v1103_v52 = vmax.f32 %v2881_v6, 0.0  ;;  %v1104_v45 = vmax.f32 %v2885_v13, 0.0  ;;  %v3354_v59 = vld [vmem:[#allocation21_spill] sm:$0xff]  ;;  %v3355_v39 = vld [vmem:[#allocation23_spill] sm:$0xff] }
 0x238   :  { %v1105_v50 = vmax.f32 %v2889_v18, 0.0  ;;  %v1106_v57 = vmax.f32 %v2893_v11, 0.0  ;;  %v1107_v62 = vmax.f32 %v2897_v16, 0.0  ;;  %v1108_v55 = vmax.f32 %v2901_v23, 0.0  ;;  %v3356_v7 = vld [vmem:[#allocation20_spill] sm:$0xff] }
 0x239   :  { %v1109_v60 = vmax.f32 %v2905_v28, 0.0  ;;  %v1110_v3 = vmax.f32 %v2909_v21, 0.0  ;;  %v1111_v8 = vmax.f32 %v2913_v26, 0.0  ;;  %v1112_v1 = vmax.f32 %v2917_v33, 0.0 }
 0x23a   :  { %v1113_v6 = vmax.f32 %v2921_v38, 0.0  ;;  %v1114_v13 = vmax.f32 %v2925_v31, 0.0  ;;  %v1115_v18 = vmax.f32 %v2929_v36, 0.0  ;;  %v1116_v11 = vmax.f32 %v2933_v54, 0.0 }
 0x23b   :  { %v1117_v16 = vmax.f32 %v2937_v2, 0.0  ;;  %v1118_v23 = vmax.f32 %v2941_v49, 0.0  ;;  %v1119_v28 = vmax.f32 %v2945_v61, 0.0  ;;  %v1120_v21 = vmax.f32 %v2949_v48, 0.0 }
 0x23c   :  { %v1121_v26 = vmax.f32 %v2953_v58, 0.0  ;;  %v1122_v33 = vmax.f32 %v2957_v43, 0.0  ;;  %v1123_v38 = vmax.f32 %v3350_v4, 0.0  ;;  %v1124_v31 = vmax.f32 %v3351_v17, 0.0 }
 0x23d   :  { %v1125_v36 = vmax.f32 %v3352_v9, 0.0  ;;  %v1126_v54 = vmax.f32 %v3353_v0, 0.0  ;;  %v1127_v2 = vmax.f32 %v3354_v59, 0.0  ;;  %v1128_v49 = vmax.f32 %v3355_v39, 0.0  ;;  %v3357_v0 = vld [vmem:[#allocation22_spill] sm:$0xff]  ;;  %v3358_v39 = vld [vmem:[#allocation25_spill] sm:$0xff] }
 0x23e   :  { %v1129_v61 = vmax.f32 %v2985_v19, 0.0  ;;  %v1130_v48 = vmax.f32 %v2989_v12, 0.0  ;;  %v1131_v58 = vmax.f32 %v2993_v56, 0.0  ;;  %v1132_v43 = vmax.f32 %v2997_v35, 0.0  ;;  %v3359_v12 = vld [vmem:[#allocation26_spill] sm:$0xff]  ;;  %v3360_v35 = vld [vmem:[#allocation24_spill] sm:$0xff] }
 0x23f   :  { %v1133_v4 = vmax.f32 %v3001_v10, 0.0  ;;  %v1134_v17 = vmax.f32 %v3005_v53, 0.0  ;;  %v1135_v9 = vmax.f32 %v3356_v7, 0.0  ;;  %v1136_v59 = vmax.f32 %v3357_v0, 0.0  ;;  %v3361_v53 = vld [vmem:[#allocation18_spill] sm:$0xff]  ;;  %v3362_v0 = vld [vmem:[#allocation11_spill] sm:$0xff] }
 0x240   :  { %v1137_v19 = vmax.f32 %v3358_v39, 0.0  ;;  %v1138_v56 = vmax.f32 %v3359_v12, 0.0  ;;  %v1139_v10 = vmax.f32 %v3360_v35, 0.0  ;;  %v1140_v7 = vmax.f32 %v3361_v53, 0.0  ;;  %v3364_v12 = vld [vmem:[#allocation10_spill] sm:$0xff] }
 0x241   :  { %v3363_v39 = vmax.f32 %v3362_v0, 0.0  ;;  %v3365_v35 = vmax.f32 %v3364_v12, 0.0  ;;  %v3366_v0 = vld [vmem:[#allocation13_spill] sm:$0xff] }
 0x242   :  { %v3367_v12 = vmax.f32 %v3366_v0, 0.0 }
 0x243   :  { %v1664_v53 = vpack.c.bf16 %v3365_v35, %v3363_v39  ;;  %v3368_v35 = vld [vmem:[#allocation15_spill] sm:$0xff] }
 0x244   :  { %v3369_v39 = vmax.f32 %v3368_v35, 0.0  ;;  %v3370_v35 = vld [vmem:[#allocation12_spill] sm:$0xff] }
 0x245   :  { %1665 = vst [vmem:[%s3205_s4] sm:$0xff] %v1664_v53  }
 0x246   :  { %v1669_v0 = vpack.c.bf16 %v3369_v39, %v3367_v12  ;;  %v3371_v12 = vmax.f32 %v3370_v35, 0.0  ;;  %v1679_v35 = vpack.c.bf16 %v1084_v42, %v1083_v24  ;;  %v1694_v24 = vpack.c.bf16 %v1090_v14, %v1089_v63 }
 0x247   :  { %v1699_v42 = vpack.c.bf16 %v1092_v30, %v1091_v32  ;;  %v1714_v63 = vpack.c.bf16 %v1098_v40, %v1097_v29  ;;  %v1719_v32 = vpack.c.bf16 %v1100_v51, %v1099_v34  ;;  %v1724_v14 = vpack.c.bf16 %v1102_v20, %v1101_v47 }
 0x248   :  { %v1674_v39 = vpack.c.bf16 %v1082_v44, %v3371_v12  ;;  %v1684_v12 = vpack.c.bf16 %v1086_v5, %v1085_v41  ;;  %v1689_v44 = vpack.c.bf16 %v1088_v37, %v1087_v46  ;;  %1821 = vst [vmem:[%s3205_s4 + $0x8] sm:$0xff] %v1669_v0   ;;  %1823 = vst [vmem:[%s3205_s4 + $0x18] sm:$0xff] %v1679_v35  }
 0x249   :  { %v1704_v41 = vpack.c.bf16 %v1094_v22, %v1093_v15  ;;  %v1709_v37 = vpack.c.bf16 %v1096_v27, %v1095_v25  ;;  %1826 = vst [vmem:[%s3205_s4 + $0x30] sm:$0xff] %v1694_v24   ;;  %1827 = vst [vmem:[%s3205_s4 + $0x38] sm:$0xff] %v1699_v42   ;;  %v1729_v5 = vpack.c.bf16 %v1104_v45, %v1103_v52 }
 0x24a   :  { %1822 = vst [vmem:[%s3205_s4 + $0x10] sm:$0xff] %v1674_v39   ;;  %1824 = vst [vmem:[%s3205_s4 + $0x20] sm:$0xff] %v1684_v12   ;;  %v1734_v46 = vpack.c.bf16 %v1106_v57, %v1105_v50  ;;  %v1739_v30 = vpack.c.bf16 %v1108_v55, %v1107_v62  ;;  %v1744_v15 = vpack.c.bf16 %v1110_v3, %v1109_v60 }
 0x24b   :  { %1825 = vst [vmem:[%s3205_s4 + $0x28] sm:$0xff] %v1689_v44   ;;  %1828 = vst [vmem:[%s3205_s4 + $0x40] sm:$0xff] %v1704_v41   ;;  %v1749_v22 = vpack.c.bf16 %v1112_v1, %v1111_v8  ;;  %v1754_v25 = vpack.c.bf16 %v1114_v13, %v1113_v6  ;;  %v1759_v27 = vpack.c.bf16 %v1116_v11, %v1115_v18 }
 0x24c   :  { %1829 = vst [vmem:[%s3205_s4 + $0x48] sm:$0xff] %v1709_v37   ;;  %1830 = vst [vmem:[%s3205_s4 + $0x50] sm:$0xff] %v1714_v63   ;;  %v1764_v29 = vpack.c.bf16 %v1118_v23, %v1117_v16  ;;  %v1769_v40 = vpack.c.bf16 %v1120_v21, %v1119_v28  ;;  %v1774_v34 = vpack.c.bf16 %v1122_v33, %v1121_v26 }
 0x24d   :  { %1831 = vst [vmem:[%s3205_s4 + $0x58] sm:$0xff] %v1719_v32   ;;  %1832 = vst [vmem:[%s3205_s4 + $0x60] sm:$0xff] %v1724_v14   ;;  %v1779_v51 = vpack.c.bf16 %v1124_v31, %v1123_v38  ;;  %v1784_v47 = vpack.c.bf16 %v1126_v54, %v1125_v36  ;;  %v1789_v20 = vpack.c.bf16 %v1128_v49, %v1127_v2 }
 0x24e   :  { %1833 = vst [vmem:[%s3205_s4 + $0x68] sm:$0xff] %v1729_v5   ;;  %1834 = vst [vmem:[%s3205_s4 + $0x70] sm:$0xff] %v1734_v46   ;;  %v1794_v52 = vpack.c.bf16 %v1130_v48, %v1129_v61  ;;  %v1799_v45 = vpack.c.bf16 %v1132_v43, %v1131_v58  ;;  %v1804_v50 = vpack.c.bf16 %v1134_v17, %v1133_v4 }
 0x24f   :  { %1835 = vst [vmem:[%s3205_s4 + $0x78] sm:$0xff] %v1739_v30   ;;  %1836 = vst [vmem:[%s3205_s4 + $0x80] sm:$0xff] %v1744_v15   ;;  %v1809_v57 = vpack.c.bf16 %v1136_v59, %v1135_v9  ;;  %v1814_v62 = vpack.c.bf16 %v1138_v56, %v1137_v19  ;;  %v1819_v55 = vpack.c.bf16 %v1140_v7, %v1139_v10 }
 0x250   :  { %1837 = vst [vmem:[%s3205_s4 + $0x88] sm:$0xff] %v1749_v22   ;;  %1838 = vst [vmem:[%s3205_s4 + $0x90] sm:$0xff] %v1754_v25  }
 0x251   :  { %1839 = vst [vmem:[%s3205_s4 + $0x98] sm:$0xff] %v1759_v27   ;;  %1840 = vst [vmem:[%s3205_s4 + $0xa0] sm:$0xff] %v1764_v29  }
 0x252   :  { %1841 = vst [vmem:[%s3205_s4 + $0xa8] sm:$0xff] %v1769_v40   ;;  %1842 = vst [vmem:[%s3205_s4 + $0xb0] sm:$0xff] %v1774_v34  }
 0x253   :  { %1843 = vst [vmem:[%s3205_s4 + $0xb8] sm:$0xff] %v1779_v51   ;;  %1844 = vst [vmem:[%s3205_s4 + $0xc0] sm:$0xff] %v1784_v47  }
 0x254   :  { %1845 = vst [vmem:[%s3205_s4 + $0xc8] sm:$0xff] %v1789_v20   ;;  %1846 = vst [vmem:[%s3205_s4 + $0xd0] sm:$0xff] %v1794_v52  }
 0x255   :  { %1847 = vst [vmem:[%s3205_s4 + $0xd8] sm:$0xff] %v1799_v45   ;;  %1848 = vst [vmem:[%s3205_s4 + $0xe0] sm:$0xff] %v1804_v50  }
 0x256   :  { %1849 = vst [vmem:[%s3205_s4 + $0xe8] sm:$0xff] %v1809_v57   ;;  %1850 = vst [vmem:[%s3205_s4 + $0xf0] sm:$0xff] %v1814_v62  }
 0x257   :  { %1851 = vst [vmem:[%s3205_s4 + $0xf8] sm:$0xff] %v1819_v55  }

// kernel: _lambda_.28
= control target key start
LH: loop header
LB: loop body
LE: loop exit
PB: predicated region body
PF: predicated region fallthrough
CT: control target
= control target key end

     0   :  { %v2181_v0 = vmov 0   ;;  %vm442_vm0 = vcmask 130048   ;;  %s3486_s1 = inlined_call_operand.vmem [shape: bf16[144,128], index: 1, kind: input, shape index: {}]   ;;  %s3487_s0 = inlined_call_operand.vmem [shape: bf16[512,144], index: 0, kind: input, shape index: {}]   ;;  %s3488_s2 = inlined_call_operand.vmem [shape: f32[1,128], index: 2, kind: input, shape index: {}]   ;;  %s3489_s3 = inlined_call_operand.vmem [shape: f32[1,128], index: 3, kind: input, shape index: {}]   ;;  %s3490_s4 = inlined_call_operand.vmem [shape: bf16[512,128], index: 4, kind: output, shape index: {}]  }
   0x1   :  { %539 = vmatprep.subr.bf16.mxu0 %v2181_v0  ;;  %v2074_v1 = vld [vmem:[%s3486_s1 + $0x38] sm:$0xff]   ;;  %2055 = vmatprep.subr.bf16.mxu1 %v2181_v0  ;;  %v2075_v2 = vld [vmem:[%s3486_s1 + $0x30] sm:$0xff]   ;;  %v2076_v3 = vld [vmem:[%s3486_s1 + $0x28] sm:$0xff]  }
   0x2   :  { %540 = vmatpush1.bf16.msra.mxu0 %v2074_v1  ;;  %2064 = vmatpush1.bf16.msra.mxu1 %v2074_v1  ;;  %v2077_v4 = vld [vmem:[%s3486_s1 + $0x20] sm:$0xff]   ;;  %v2078_v6 = vld [vmem:[%s3486_s1 + $0x18] sm:$0xff]   ;;  %v2079_v7 = vld [vmem:[%s3486_s1 + $0x10] sm:$0xff]  }
   0x3   :  { %541 = vmatprep.subr.bf16.mxu0 %v2181_v0  ;;  %2056 = vmatprep.subr.bf16.mxu1 %v2181_v0  ;;  %v2085_v5 = vld [vmem:[%s3487_s0 + $0x4] ss:$8 sps:$4 sm:$0xff]   ;;  %v2083_v12 = vld [vmem:[%s3487_s0] ss:$8 sps:$4 sm:$0xff]   ;;  %v2086_v13 = vld [vmem:[%s3487_s0 + $0x14] ss:$8 sps:$4 sm:$0xff]  }
   0x4   :  { %1704 = vmatprep.mubr.msk.bf16.mxu0 %vm442_vm0, %v2085_v5  ;;  %v2109_v8 = vld [vmem:[%s3487_s0 + $0x104] ss:$8 sps:$4 sm:$0xff]   ;;  %v2107_v14 = vld [vmem:[%s3487_s0 + $0x100] ss:$8 sps:$4 sm:$0xff]   ;;  %v2113_v15 = vld [vmem:[%s3487_s0 + $0x114] ss:$8 sps:$4 sm:$0xff]  }
   0x5   :  { %v2080_v9 = vld [vmem:[%s3486_s1 + $0x8] sm:$0xff]   ;;  %1720 = vmatprep.mubr.msk.bf16.mxu1 %vm442_vm0, %v2109_v8  ;;  %v2081_v10 = vld [vmem:[%s3486_s1] sm:$0xff]   ;;  %v2088_v16 = vld [vmem:[%s3487_s0 + $0x10] ss:$8 sps:$4 sm:$0xff]  }
   0x6   :  { %542 = vmatpush1.bf16.msra.mxu0 %v2075_v2  ;;  %2065 = vmatpush1.bf16.msra.mxu1 %v2075_v2  ;;  %v2082_v11 = vld [vmem:[%s3486_s1 + $0x40] sm:$0xff]   ;;  %v2115_v18 = vld [vmem:[%s3487_s0 + $0x110] ss:$8 sps:$4 sm:$0xff]   ;;  %v2092_v21 = vld [vmem:[%s3487_s0 + $0x34] ss:$8 sps:$4 sm:$0xff]  }
   0x7   :  { %543 = vmatprep.subr.bf16.mxu0 %v2181_v0  ;;  %2057 = vmatprep.subr.bf16.mxu1 %v2181_v0  ;;  %v2089_v17 = vld [vmem:[%s3487_s0 + $0x24] ss:$8 sps:$4 sm:$0xff]   ;;  %v2091_v20 = vld [vmem:[%s3487_s0 + $0x20] ss:$8 sps:$4 sm:$0xff]   ;;  %v2125_v23 = vld [vmem:[%s3487_s0 + $0x134] ss:$8 sps:$4 sm:$0xff]  }
   0x8   :  { %v2119_v19 = vld [vmem:[%s3487_s0 + $0x124] ss:$8 sps:$4 sm:$0xff]   ;;  %v2121_v22 = vld [vmem:[%s3487_s0 + $0x120] ss:$8 sps:$4 sm:$0xff]   ;;  %v2094_v24 = vld [vmem:[%s3487_s0 + $0x30] ss:$8 sps:$4 sm:$0xff]  }
   0x9   :  { %v2127_v25 = vld [vmem:[%s3487_s0 + $0x130] ss:$8 sps:$4 sm:$0xff]   ;;  %v2095_v26 = vld [vmem:[%s3487_s0 + $0x44] ss:$8 sps:$4 sm:$0xff]   ;;  %v2097_v28 = vld [vmem:[%s3487_s0 + $0x40] ss:$8 sps:$4 sm:$0xff]  }
   0xa   :  { %544 = vmatpush1.bf16.msra.mxu0 %v2076_v3  ;;  %2066 = vmatpush1.bf16.msra.mxu1 %v2076_v3  ;;  %v2131_v27 = vld [vmem:[%s3487_s0 + $0x144] ss:$8 sps:$4 sm:$0xff]   ;;  %v2133_v29 = vld [vmem:[%s3487_s0 + $0x140] ss:$8 sps:$4 sm:$0xff]   ;;  %v2098_v30 = vld [vmem:[%s3487_s0 + $0x54] ss:$8 sps:$4 sm:$0xff]  }
   0xb   :  { %545 = vmatprep.subr.bf16.mxu0 %v2181_v0  ;;  %2058 = vmatprep.subr.bf16.mxu1 %v2181_v0  ;;  %v2137_v31 = vld [vmem:[%s3487_s0 + $0x154] ss:$8 sps:$4 sm:$0xff]   ;;  %v2100_v32 = vld [vmem:[%s3487_s0 + $0x50] ss:$8 sps:$4 sm:$0xff]   ;;  %v2101_v34 = vld [vmem:[%s3487_s0 + $0x64] ss:$8 sps:$4 sm:$0xff]  }
   0xc   :  { %v2139_v33 = vld [vmem:[%s3487_s0 + $0x150] ss:$8 sps:$4 sm:$0xff]   ;;  %v2143_v35 = vld [vmem:[%s3487_s0 + $0x164] ss:$8 sps:$4 sm:$0xff]   ;;  %v2103_v36 = vld [vmem:[%s3487_s0 + $0x60] ss:$8 sps:$4 sm:$0xff]  }
   0xd   :  { %v2145_v37 = vld [vmem:[%s3487_s0 + $0x160] ss:$8 sps:$4 sm:$0xff]   ;;  %v2104_v38 = vld [vmem:[%s3487_s0 + $0x74] ss:$8 sps:$4 sm:$0xff]   ;;  %v2106_v40 = vld [vmem:[%s3487_s0 + $0x70] ss:$8 sps:$4 sm:$0xff]  }
   0xe   :  { %546 = vmatpush1.bf16.msra.mxu0 %v2077_v4  ;;  %2067 = vmatpush1.bf16.msra.mxu1 %v2077_v4  ;;  %v2149_v39 = vld [vmem:[%s3487_s0 + $0x174] ss:$8 sps:$4 sm:$0xff]   ;;  %v2151_v41 = vld [vmem:[%s3487_s0 + $0x170] ss:$8 sps:$4 sm:$0xff]   ;;  %v2110_v42 = vld [vmem:[%s3487_s0 + $0x84] ss:$8 sps:$4 sm:$0xff]  }
   0xf   :  { %547 = vmatprep.subr.bf16.mxu0 %v2181_v0  ;;  %2059 = vmatprep.subr.bf16.mxu1 %v2181_v0  ;;  %v2155_v43 = vld [vmem:[%s3487_s0 + $0x184] ss:$8 sps:$4 sm:$0xff]   ;;  %v2112_v44 = vld [vmem:[%s3487_s0 + $0x80] ss:$8 sps:$4 sm:$0xff]   ;;  %v2116_v46 = vld [vmem:[%s3487_s0 + $0x94] ss:$8 sps:$4 sm:$0xff]  }
  0x10   :  { %v2157_v45 = vld [vmem:[%s3487_s0 + $0x180] ss:$8 sps:$4 sm:$0xff]   ;;  %v2158_v47 = vld [vmem:[%s3487_s0 + $0x194] ss:$8 sps:$4 sm:$0xff]   ;;  %v2118_v48 = vld [vmem:[%s3487_s0 + $0x90] ss:$8 sps:$4 sm:$0xff]  }
  0x11   :  { %v2160_v49 = vld [vmem:[%s3487_s0 + $0x190] ss:$8 sps:$4 sm:$0xff]   ;;  %v2122_v50 = vld [vmem:[%s3487_s0 + $0xa4] ss:$8 sps:$4 sm:$0xff]   ;;  %v2124_v52 = vld [vmem:[%s3487_s0 + $0xa0] ss:$8 sps:$4 sm:$0xff]  }
  0x12   :  { %548 = vmatpush1.bf16.msra.mxu0 %v2078_v6  ;;  %2068 = vmatpush1.bf16.msra.mxu1 %v2078_v6  ;;  %v2161_v51 = vld [vmem:[%s3487_s0 + $0x1a4] ss:$8 sps:$4 sm:$0xff]   ;;  %v2163_v53 = vld [vmem:[%s3487_s0 + $0x1a0] ss:$8 sps:$4 sm:$0xff]   ;;  %v2128_v54 = vld [vmem:[%s3487_s0 + $0xb4] ss:$8 sps:$4 sm:$0xff]  }
  0x13   :  { %549 = vmatprep.subr.bf16.mxu0 %v2181_v0  ;;  %2060 = vmatprep.subr.bf16.mxu1 %v2181_v0  ;;  %v2164_v55 = vld [vmem:[%s3487_s0 + $0x1b4] ss:$8 sps:$4 sm:$0xff]   ;;  %v2130_v56 = vld [vmem:[%s3487_s0 + $0xb0] ss:$8 sps:$4 sm:$0xff]   ;;  %v2134_v58 = vld [vmem:[%s3487_s0 + $0xc4] ss:$8 sps:$4 sm:$0xff]  }
  0x14   :  { %v2166_v57 = vld [vmem:[%s3487_s0 + $0x1b0] ss:$8 sps:$4 sm:$0xff]   ;;  %v2167_v59 = vld [vmem:[%s3487_s0 + $0x1c4] ss:$8 sps:$4 sm:$0xff]   ;;  %v2136_v60 = vld [vmem:[%s3487_s0 + $0xc0] ss:$8 sps:$4 sm:$0xff]  }
  0x15   :  { %v2169_v61 = vld [vmem:[%s3487_s0 + $0x1c0] ss:$8 sps:$4 sm:$0xff]   ;;  %v2140_v62 = vld [vmem:[%s3487_s0 + $0xd4] ss:$8 sps:$4 sm:$0xff]   ;;  %v2172_v1 = vld [vmem:[%s3487_s0 + $0x1d0] ss:$8 sps:$4 sm:$0xff]  }
  0x16   :  { %550 = vmatpush1.bf16.msra.mxu0 %v2079_v7  ;;  %2069 = vmatpush1.bf16.msra.mxu1 %v2079_v7  ;;  %v2170_v63 = vld [vmem:[%s3487_s0 + $0x1d4] ss:$8 sps:$4 sm:$0xff]   ;;  %v2146_v2 = vld [vmem:[%s3487_s0 + $0xe4] ss:$8 sps:$4 sm:$0xff]   ;;  %v2148_v4 = vld [vmem:[%s3487_s0 + $0xe0] ss:$8 sps:$4 sm:$0xff]  }
  0x17   :  { %551 = vmatprep.subr.bf16.mxu0 %v2181_v0  ;;  %2061 = vmatprep.subr.bf16.mxu1 %v2181_v0  ;;  %v2173_v3 = vld [vmem:[%s3487_s0 + $0x1e4] ss:$8 sps:$4 sm:$0xff]   ;;  %v2175_v5 = vld [vmem:[%s3487_s0 + $0x1e0] ss:$8 sps:$4 sm:$0xff]   ;;  %v2152_v6 = vld [vmem:[%s3487_s0 + $0xf4] ss:$8 sps:$4 sm:$0xff]  }
  0x18   :  { %v2176_v7 = vld [vmem:[%s3487_s0 + $0x1f4] ss:$8 sps:$4 sm:$0xff]   ;;  %v2154_v8 = vld [vmem:[%s3487_s0 + $0xf0] ss:$8 sps:$4 sm:$0xff]  }
  0x1a   :  { %552 = vmatpush1.bf16.msra.mxu0 %v2080_v9  ;;  %2070 = vmatpush1.bf16.msra.mxu1 %v2080_v9  ;;  %v2178_v9 = vld [vmem:[%s3487_s0 + $0x1f0] ss:$8 sps:$4 sm:$0xff]  }
  0x1b   :  { %553 = vmatprep.subr.bf16.mxu0 %v2181_v0  ;;  %2062 = vmatprep.subr.bf16.mxu1 %v2181_v0 }
  0x1e   :  { %554 = vmatpush1.bf16.msra.mxu0 %v2081_v10  ;;  %2071 = vmatpush1.bf16.msra.mxu1 %v2081_v10 }
  0x1f   :  { %569 = vmatprep.subr.bf16.mxu0 %v2181_v0  ;;  %2063 = vmatprep.subr.bf16.mxu1 %v2181_v0  ;;  %v2142_v0 = vld [vmem:[%s3487_s0 + $0xd0] ss:$8 sps:$4 sm:$0xff]  }
  0x22   :  { %570 = vmatpush2.bf16.msra.mxu0 %v2082_v11  ;;  %2072 = vmatpush2.bf16.msra.mxu1 %v2082_v11 }
  0x25   :  { %572 = vmatmul.mubr.bf16.vlgmr.msra.gmra.mxu0 %v2083_v12  ;;  %700 = vmatmul.mubr.bf16.vlgmr.msra.gmra.mxu1 %v2107_v14 }
  0x26   :  { %1705 = vmatprep.mubr.msk.bf16.mxu0 %vm442_vm0, %v2086_v13  ;;  %1721 = vmatprep.mubr.msk.bf16.mxu1 %vm442_vm0, %v2113_v15 }
  0x2d   :  { %580 = vmatmul.mubr.bf16.gmra.mxu0 %v2088_v16  ;;  %708 = vmatmul.mubr.bf16.gmra.mxu1 %v2115_v18 }
  0x2e   :  { %1706 = vmatprep.mubr.msk.bf16.mxu0 %vm442_vm0, %v2089_v17  ;;  %1722 = vmatprep.mubr.msk.bf16.mxu1 %vm442_vm0, %v2119_v19 }
  0x35   :  { %588 = vmatmul.mubr.bf16.gmra.mxu0 %v2091_v20  ;;  %716 = vmatmul.mubr.bf16.gmra.mxu1 %v2121_v22 }
  0x36   :  { %1707 = vmatprep.mubr.msk.bf16.mxu0 %vm442_vm0, %v2092_v21  ;;  %1723 = vmatprep.mubr.msk.bf16.mxu1 %vm442_vm0, %v2125_v23 }
  0x3d   :  { %596 = vmatmul.mubr.bf16.gmra.mxu0 %v2094_v24  ;;  %724 = vmatmul.mubr.bf16.gmra.mxu1 %v2127_v25 }
  0x3e   :  { %1708 = vmatprep.mubr.msk.bf16.mxu0 %vm442_vm0, %v2095_v26  ;;  %1724 = vmatprep.mubr.msk.bf16.mxu1 %vm442_vm0, %v2131_v27 }
  0x45   :  { %604 = vmatmul.mubr.bf16.gmra.mxu0 %v2097_v28  ;;  %732 = vmatmul.mubr.bf16.gmra.mxu1 %v2133_v29 }
  0x46   :  { %1709 = vmatprep.mubr.msk.bf16.mxu0 %vm442_vm0, %v2098_v30  ;;  %1725 = vmatprep.mubr.msk.bf16.mxu1 %vm442_vm0, %v2137_v31 }
  0x4d   :  { %612 = vmatmul.mubr.bf16.gmra.mxu0 %v2100_v32  ;;  %740 = vmatmul.mubr.bf16.gmra.mxu1 %v2139_v33 }
  0x4e   :  { %1710 = vmatprep.mubr.msk.bf16.mxu0 %vm442_vm0, %v2101_v34  ;;  %1726 = vmatprep.mubr.msk.bf16.mxu1 %vm442_vm0, %v2143_v35 }
  0x55   :  { %620 = vmatmul.mubr.bf16.gmra.mxu0 %v2103_v36  ;;  %748 = vmatmul.mubr.bf16.gmra.mxu1 %v2145_v37 }
  0x56   :  { %1711 = vmatprep.mubr.msk.bf16.mxu0 %vm442_vm0, %v2104_v38  ;;  %1727 = vmatprep.mubr.msk.bf16.mxu1 %vm442_vm0, %v2149_v39 }
  0x5d   :  { %628 = vmatmul.mubr.bf16.gmra.mxu0 %v2106_v40  ;;  %756 = vmatmul.mubr.bf16.gmra.mxu1 %v2151_v41 }
  0x5e   :  { %1712 = vmatprep.mubr.msk.bf16.mxu0 %vm442_vm0, %v2110_v42  ;;  %1728 = vmatprep.mubr.msk.bf16.mxu1 %vm442_vm0, %v2155_v43 }
  0x65   :  { %636 = vmatmul.mubr.bf16.gmra.mxu0 %v2112_v44  ;;  %764 = vmatmul.mubr.bf16.gmra.mxu1 %v2157_v45 }
  0x66   :  { %1713 = vmatprep.mubr.msk.bf16.mxu0 %vm442_vm0, %v2116_v46  ;;  %1729 = vmatprep.mubr.msk.bf16.mxu1 %vm442_vm0, %v2158_v47 }
  0x6d   :  { %644 = vmatmul.mubr.bf16.gmra.mxu0 %v2118_v48  ;;  %772 = vmatmul.mubr.bf16.gmra.mxu1 %v2160_v49 }
  0x6e   :  { %1714 = vmatprep.mubr.msk.bf16.mxu0 %vm442_vm0, %v2122_v50  ;;  %1730 = vmatprep.mubr.msk.bf16.mxu1 %vm442_vm0, %v2161_v51 }
  0x75   :  { %652 = vmatmul.mubr.bf16.gmra.mxu0 %v2124_v52  ;;  %780 = vmatmul.mubr.bf16.gmra.mxu1 %v2163_v53 }
  0x76   :  { %1715 = vmatprep.mubr.msk.bf16.mxu0 %vm442_vm0, %v2128_v54  ;;  %1731 = vmatprep.mubr.msk.bf16.mxu1 %vm442_vm0, %v2164_v55 }
  0x7d   :  { %660 = vmatmul.mubr.bf16.gmra.mxu0 %v2130_v56  ;;  %788 = vmatmul.mubr.bf16.gmra.mxu1 %v2166_v57 }
  0x7e   :  { %1716 = vmatprep.mubr.msk.bf16.mxu0 %vm442_vm0, %v2134_v58  ;;  %1732 = vmatprep.mubr.msk.bf16.mxu1 %vm442_vm0, %v2167_v59 }
  0x85   :  { %668 = vmatmul.mubr.bf16.gmra.mxu0 %v2136_v60  ;;  %796 = vmatmul.mubr.bf16.gmra.mxu1 %v2169_v61 }
  0x86   :  { %1717 = vmatprep.mubr.msk.bf16.mxu0 %vm442_vm0, %v2140_v62  ;;  %1733 = vmatprep.mubr.msk.bf16.mxu1 %vm442_vm0, %v2170_v63 }
  0x8d   :  { %676 = vmatmul.mubr.bf16.gmra.mxu0 %v2142_v0  ;;  %804 = vmatmul.mubr.bf16.gmra.mxu1 %v2172_v1 }
  0x8e   :  { %1718 = vmatprep.mubr.msk.bf16.mxu0 %vm442_vm0, %v2146_v2  ;;  %1734 = vmatprep.mubr.msk.bf16.mxu1 %vm442_vm0, %v2173_v3 }
  0x95   :  { %684 = vmatmul.mubr.bf16.gmra.mxu0 %v2148_v4  ;;  %812 = vmatmul.mubr.bf16.gmra.mxu1 %v2175_v5 }
  0x96   :  { %1719 = vmatprep.mubr.msk.bf16.mxu0 %vm442_vm0, %v2152_v6  ;;  %1735 = vmatprep.mubr.msk.bf16.mxu1 %vm442_vm0, %v2176_v7 }
  0x9d   :  { %692 = vmatmul.mubr.bf16.gmra.mxu0 %v2154_v8  ;;  %820 = vmatmul.mubr.bf16.gmra.mxu1 %v2178_v9 }
  0xe5   :  { %v2458_v10 = vpop.f32.mrf.mxu0  ;;  %v2460_v11 = vpop.f32.mrf.mxu1 }
  0xe7   :  { %v575_v12 = vpop.f32.mrf.mxu0  ;;  %v703_v13 = vpop.f32.mrf.mxu1 }
  0xe9   :  { %v2462_v14 = vpop.f32.mrf.mxu0  ;;  %v2464_v15 = vpop.f32.mrf.mxu1 }
  0xeb   :  { %v578_v16 = vpop.f32.mrf.mxu0  ;;  %v706_v17 = vpop.f32.mrf.mxu1 }
  0xec   :  { %v830_v16 = vadd.f32 %v2462_v14, %v2458_v10 }
  0xed   :  { %v2466_v18 = vpop.f32.mrf.mxu0  ;;  %v2468_v19 = vpop.f32.mrf.mxu1 }
  0xee   :  { %3543 = vst [vmem:[#allocation2_spill] sm:$0xff] %v2466_v18 }
  0xef   :  { %v583_v20 = vpop.f32.mrf.mxu0  ;;  %v711_v21 = vpop.f32.mrf.mxu1 }
  0xf0   :  { %v831_v21 = vadd.f32 %v830_v16, %v2466_v18 }
  0xf1   :  { %v2470_v22 = vpop.f32.mrf.mxu0  ;;  %v2472_v23 = vpop.f32.mrf.mxu1 }
  0xf2   :  { %3544 = vst [vmem:[#allocation3_spill] sm:$0xff] %v2470_v22 }
  0xf3   :  { %v586_v24 = vpop.f32.mrf.mxu0  ;;  %v714_v25 = vpop.f32.mrf.mxu1 }
  0xf5   :  { %v2474_v26 = vpop.f32.mrf.mxu0  ;;  %v2476_v27 = vpop.f32.mrf.mxu1 }
  0xf6   :  { %3545 = vst [vmem:[#allocation4_spill] sm:$0xff] %v2474_v26 }
  0xf7   :  { %v591_v28 = vpop.f32.mrf.mxu0  ;;  %v719_v29 = vpop.f32.mrf.mxu1 }
  0xf8   :  { %v832_v28 = vadd.f32 %v831_v21, %v2470_v22 }
  0xf9   :  { %v2478_v30 = vpop.f32.mrf.mxu0  ;;  %v2480_v31 = vpop.f32.mrf.mxu1 }
  0xfb   :  { %v594_v32 = vpop.f32.mrf.mxu0  ;;  %v722_v33 = vpop.f32.mrf.mxu1 }
  0xfc   :  { %v833_v33 = vadd.f32 %v832_v28, %v2474_v26 }
  0xfd   :  { %v2482_v34 = vpop.f32.mrf.mxu0  ;;  %v2484_v35 = vpop.f32.mrf.mxu1 }
  0xff   :  { %v599_v36 = vpop.f32.mrf.mxu0  ;;  %v727_v37 = vpop.f32.mrf.mxu1 }
 0x101   :  { %v2486_v38 = vpop.f32.mrf.mxu0  ;;  %v2488_v39 = vpop.f32.mrf.mxu1 }
 0x103   :  { %v602_v40 = vpop.f32.mrf.mxu0  ;;  %v730_v41 = vpop.f32.mrf.mxu1 }
 0x104   :  { %v834_v40 = vadd.f32 %v833_v33, %v2478_v30 }
 0x105   :  { %v2490_v42 = vpop.f32.mrf.mxu0  ;;  %v2492_v43 = vpop.f32.mrf.mxu1 }
 0x107   :  { %v607_v44 = vpop.f32.mrf.mxu0  ;;  %v735_v45 = vpop.f32.mrf.mxu1 }
 0x108   :  { %v835_v45 = vadd.f32 %v834_v40, %v2482_v34 }
 0x109   :  { %v2494_v46 = vpop.f32.mrf.mxu0  ;;  %v2496_v47 = vpop.f32.mrf.mxu1 }
 0x10b   :  { %v610_v48 = vpop.f32.mrf.mxu0  ;;  %v738_v49 = vpop.f32.mrf.mxu1 }
 0x10d   :  { %v2498_v50 = vpop.f32.mrf.mxu0  ;;  %v2500_v51 = vpop.f32.mrf.mxu1 }
 0x10f   :  { %v615_v52 = vpop.f32.mrf.mxu0  ;;  %v743_v53 = vpop.f32.mrf.mxu1 }
 0x110   :  { %v836_v52 = vadd.f32 %v835_v45, %v2486_v38 }
 0x111   :  { %v2502_v54 = vpop.f32.mrf.mxu0  ;;  %v2504_v55 = vpop.f32.mrf.mxu1 }
 0x113   :  { %v618_v56 = vpop.f32.mrf.mxu0  ;;  %v746_v57 = vpop.f32.mrf.mxu1 }
 0x114   :  { %v837_v57 = vadd.f32 %v836_v52, %v2490_v42 }
 0x115   :  { %v2506_v58 = vpop.f32.mrf.mxu0  ;;  %v2508_v59 = vpop.f32.mrf.mxu1 }
 0x117   :  { %v623_v60 = vpop.f32.mrf.mxu0  ;;  %v751_v61 = vpop.f32.mrf.mxu1 }
 0x119   :  { %v2510_v62 = vpop.f32.mrf.mxu0  ;;  %v2512_v63 = vpop.f32.mrf.mxu1 }
 0x11b   :  { %v626_v0 = vpop.f32.mrf.mxu0  ;;  %v754_v1 = vpop.f32.mrf.mxu1 }
 0x11c   :  { %v838_v0 = vadd.f32 %v837_v57, %v2494_v46 }
 0x11d   :  { %v2514_v2 = vpop.f32.mrf.mxu0  ;;  %v2516_v3 = vpop.f32.mrf.mxu1 }
 0x11e   :  { %3546 = vst [vmem:[#allocation5_spill] sm:$0xff] %v2514_v2 }
 0x11f   :  { %v631_v4 = vpop.f32.mrf.mxu0  ;;  %v759_v5 = vpop.f32.mrf.mxu1 }
 0x120   :  { %v839_v5 = vadd.f32 %v838_v0, %v2498_v50 }
 0x121   :  { %v2518_v6 = vpop.f32.mrf.mxu0  ;;  %v2520_v7 = vpop.f32.mrf.mxu1 }
 0x122   :  { %3547 = vst [vmem:[#allocation6_spill] sm:$0xff] %v2518_v6  ;;  %v840_v16 = vadd.f32 %v839_v5, %v2502_v54 }
 0x123   :  { %v634_v8 = vpop.f32.mrf.mxu0  ;;  %v762_v9 = vpop.f32.mrf.mxu1 }
 0x124   :  { %v841_v21 = vadd.f32 %v840_v16, %v2506_v58 }
 0x125   :  { %v2522_v12 = vpop.f32.mrf.mxu0  ;;  %v2524_v13 = vpop.f32.mrf.mxu1 }
 0x126   :  { %3548 = vst [vmem:[#allocation7_spill] sm:$0xff] %v2522_v12 }
 0x127   :  { %v639_v17 = vpop.f32.mrf.mxu0  ;;  %v767_v20 = vpop.f32.mrf.mxu1 }
 0x129   :  { %v2529_v24 = vpop.f32.mrf.mxu0  ;;  %v2531_v25 = vpop.f32.mrf.mxu1 }
 0x12a   :  { %3549 = vst [vmem:[#allocation8_spill] sm:$0xff] %v2529_v24 }
 0x12b   :  { %v642_v29 = vpop.f32.mrf.mxu0  ;;  %v770_v32 = vpop.f32.mrf.mxu1 }
 0x12c   :  { %v842_v32 = vadd.f32 %v841_v21, %v2510_v62 }
 0x12d   :  { %v2535_v36 = vpop.f32.mrf.mxu0  ;;  %v2537_v37 = vpop.f32.mrf.mxu1 }
 0x12e   :  { %3550 = vst [vmem:[#allocation9_spill] sm:$0xff] %v2535_v36  ;;  %3551 = vst [vmem:[#allocation10_spill] sm:$0xff] %v2537_v37 }
 0x12f   :  { %v647_v41 = vpop.f32.mrf.mxu0  ;;  %v775_v44 = vpop.f32.mrf.mxu1 }
 0x130   :  { %v843_v41 = vadd.f32 %v842_v32, %v2514_v2 }
 0x131   :  { %v2541_v48 = vpop.f32.mrf.mxu0  ;;  %v2543_v49 = vpop.f32.mrf.mxu1 }
 0x132   :  { %3552 = vst [vmem:[#allocation11_spill] sm:$0xff] %v2541_v48  ;;  %3553 = vst [vmem:[#allocation12_spill] sm:$0xff] %v2543_v49  ;;  %v844_v52 = vadd.f32 %v843_v41, %v2518_v6 }
 0x133   :  { %v650_v53 = vpop.f32.mrf.mxu0  ;;  %v778_v56 = vpop.f32.mrf.mxu1 }
 0x134   :  { %v845_v57 = vadd.f32 %v844_v52, %v2522_v12 }
 0x135   :  { %v2547_v60 = vpop.f32.mrf.mxu0  ;;  %v2549_v61 = vpop.f32.mrf.mxu1 }
 0x136   :  { %3554 = vst [vmem:[#allocation13_spill] sm:$0xff] %v2547_v60  ;;  %3555 = vst [vmem:[#allocation14_spill] sm:$0xff] %v2549_v61 }
 0x137   :  { %v655_v1 = vpop.f32.mrf.mxu0  ;;  %v783_v4 = vpop.f32.mrf.mxu1 }
 0x138   :  { %v846_v4 = vadd.f32 %v845_v57, %v2529_v24 }
 0x139   :  { %v2553_v8 = vpop.f32.mrf.mxu0  ;;  %v2555_v9 = vpop.f32.mrf.mxu1 }
 0x13a   :  { %3556 = vst [vmem:[#allocation15_spill] sm:$0xff] %v2553_v8 }
 0x13b   :  { %v658_v17 = vpop.f32.mrf.mxu0  ;;  %v786_v20 = vpop.f32.mrf.mxu1 }
 0x13c   :  { %v847_v17 = vadd.f32 %v846_v4, %v2535_v36 }
 0x13d   :  { %v2559_v28 = vpop.f32.mrf.mxu0  ;;  %v2561_v29 = vpop.f32.mrf.mxu1 }
 0x13e   :  { %3557 = vst [vmem:[#allocation16_spill] sm:$0xff] %v2559_v28  ;;  %3558 = vst [vmem:[#allocation17_spill] sm:$0xff] %v2561_v29  ;;  %v848_v32 = vadd.f32 %v847_v17, %v2541_v48 }
 0x13f   :  { %v663_v33 = vpop.f32.mrf.mxu0  ;;  %v791_v40 = vpop.f32.mrf.mxu1 }
 0x140   :  { %v849_v41 = vadd.f32 %v848_v32, %v2547_v60 }
 0x141   :  { %v2565_v44 = vpop.f32.mrf.mxu0  ;;  %v2567_v45 = vpop.f32.mrf.mxu1 }
 0x142   :  { %3559 = vst [vmem:[#allocation18_spill] sm:$0xff] %v2565_v44  ;;  %3560 = vst [vmem:[#allocation19_spill] sm:$0xff] %v2567_v45 }
 0x143   :  { %v666_v53 = vpop.f32.mrf.mxu0  ;;  %v794_v56 = vpop.f32.mrf.mxu1 }
 0x144   :  { %v850_v56 = vadd.f32 %v849_v41, %v2553_v8 }
 0x145   :  { %v2571_v0 = vpop.f32.mrf.mxu0  ;;  %v2573_v1 = vpop.f32.mrf.mxu1 }
 0x146   :  { %3561 = vst [vmem:[#allocation20_spill] sm:$0xff] %v2571_v0  ;;  %3562 = vst [vmem:[#allocation21_spill] sm:$0xff] %v2573_v1  ;;  %v851_v4 = vadd.f32 %v850_v56, %v2559_v28 }
 0x147   :  { %v671_v5 = vpop.f32.mrf.mxu0  ;;  %v799_v16 = vpop.f32.mrf.mxu1 }
 0x148   :  { %v852_v17 = vadd.f32 %v851_v4, %v2565_v44 }
 0x149   :  { %v2577_v20 = vpop.f32.mrf.mxu0  ;;  %v2579_v21 = vpop.f32.mrf.mxu1 }
 0x14a   :  { %3563 = vst [vmem:[#allocation22_spill] sm:$0xff] %v2577_v20  ;;  %3564 = vst [vmem:[#allocation23_spill] sm:$0xff] %v2579_v21  ;;  %v853_v32 = vadd.f32 %v852_v17, %v2571_v0 }
 0x14b   :  { %v674_v33 = vpop.f32.mrf.mxu0  ;;  %v802_v40 = vpop.f32.mrf.mxu1 }
 0x14c   :  { %v854_v41 = vadd.f32 %v853_v32, %v2577_v20 }
 0x14d   :  { %v2583_v52 = vpop.f32.mrf.mxu0  ;;  %v2585_v53 = vpop.f32.mrf.mxu1 }
 0x14e   :  { %3565 = vst [vmem:[#allocation24_spill] sm:$0xff] %v2583_v52  ;;  %3566 = vst [vmem:[#allocation25_spill] sm:$0xff] %v2585_v53  ;;  %v855_v56 = vadd.f32 %v854_v41, %v2583_v52 }
 0x14f   :  { %v679_v57 = vpop.f32.mrf.mxu0  ;;  %v807_v5 = vpop.f32.mrf.mxu1 }
 0x151   :  { %v2589_v16 = vpop.f32.mrf.mxu0  ;;  %v2591_v36 = vpop.f32.mrf.mxu1 }
 0x152   :  { %3567 = vst [vmem:[#allocation26_spill] sm:$0xff] %v2589_v16  ;;  %3568 = vst [vmem:[#allocation27_spill] sm:$0xff] %v2591_v36  ;;  %v856_v4 = vadd.f32 %v855_v56, %v2589_v16 }
 0x153   :  { %v682_v33 = vpop.f32.mrf.mxu0  ;;  %v810_v40 = vpop.f32.mrf.mxu1 }
 0x155   :  { %v2595_v60 = vpop.f32.mrf.mxu0  ;;  %v2597_v48 = vpop.f32.mrf.mxu1 }
 0x156   :  { %3569 = vst [vmem:[#allocation28_spill] sm:$0xff] %v2595_v60  ;;  %3570 = vst [vmem:[#allocation29_spill] sm:$0xff] %v2597_v48  ;;  %v857_v17 = vadd.f32 %v856_v4, %v2595_v60 }
 0x157   :  { %v687_v57 = vpop.f32.mrf.mxu0  ;;  %v815_v5 = vpop.f32.mrf.mxu1 }
 0x159   :  { %v2601_v28 = vpop.f32.mrf.mxu0  ;;  %v2603_v8 = vpop.f32.mrf.mxu1 }
 0x15a   :  { %3571 = vst [vmem:[#allocation30_spill] sm:$0xff] %v2603_v8  ;;  %v858_v32 = vadd.f32 %v857_v17, %v2601_v28 }
 0x15b   :  { %v690_v33 = vpop.f32.mrf.mxu0  ;;  %v818_v40 = vpop.f32.mrf.mxu1 }
 0x15d   :  { %v2607_v0 = vpop.f32.mrf.mxu0  ;;  %v2609_v44 = vpop.f32.mrf.mxu1 }
 0x15e   :  { %3572 = vst [vmem:[#allocation31_spill] sm:$0xff] %v2607_v0  ;;  %3573 = vst [vmem:[#allocation32_spill] sm:$0xff] %v2609_v44  ;;  %v859_v41 = vadd.f32 %v858_v32, %v2607_v0 }
 0x15f   :  { %v695_v57 = vpop.f32.mrf.mxu0  ;;  %v823_v5 = vpop.f32.mrf.mxu1 }
 0x161   :  { %v2613_v52 = vpop.f32.mrf.mxu0  ;;  %v2615_v20 = vpop.f32.mrf.mxu1 }
 0x162   :  { %v860_v56 = vadd.f32 %v859_v41, %v2613_v52 }
 0x163   :  { %v698_v33 = vpop.f32.mrf.mxu0  ;;  %v826_v40 = vpop.f32.mrf.mxu1 }
 0x164   :  { %v861_v4 = vadd.f32 %v860_v56, %v2460_v11 }
 0x166   :  { %v862_v60 = vadd.f32 %v861_v4, %v2464_v15 }
 0x168   :  { %v863_v16 = vadd.f32 %v862_v60, %v2468_v19 }
 0x16a   :  { %v864_v17 = vadd.f32 %v863_v16, %v2472_v23 }
 0x16c   :  { %v865_v57 = vadd.f32 %v864_v17, %v2476_v27 }
 0x16e   :  { %v866_v32 = vadd.f32 %v865_v57, %v2480_v31 }
 0x170   :  { %v867_v5 = vadd.f32 %v866_v32, %v2484_v35 }
 0x172   :  { %v868_v0 = vadd.f32 %v867_v5, %v2488_v39 }
 0x174   :  { %v869_v41 = vadd.f32 %v868_v0, %v2492_v43 }
 0x176   :  { %v870_v33 = vadd.f32 %v869_v41, %v2496_v47 }
 0x178   :  { %v871_v56 = vadd.f32 %v870_v33, %v2500_v51 }
 0x17a   :  { %v872_v40 = vadd.f32 %v871_v56, %v2504_v55 }
 0x17c   :  { %v873_v60 = vadd.f32 %v872_v40, %v2508_v59 }
 0x17e   :  { %v874_v16 = vadd.f32 %v873_v60, %v2512_v63 }
 0x180   :  { %v875_v4 = vadd.f32 %v874_v16, %v2516_v3 }
 0x182   :  { %v876_v17 = vadd.f32 %v875_v4, %v2520_v7 }
 0x184   :  { %v877_v57 = vadd.f32 %v876_v17, %v2524_v13 }
 0x186   :  { %v878_v32 = vadd.f32 %v877_v57, %v2531_v25 }
 0x188   :  { %v879_v0 = vadd.f32 %v878_v32, %v2537_v37 }
 0x18a   :  { %v880_v5 = vadd.f32 %v879_v0, %v2543_v49 }
 0x18c   :  { %v881_v41 = vadd.f32 %v880_v5, %v2549_v61 }
 0x18e   :  { %v882_v33 = vadd.f32 %v881_v41, %v2555_v9 }
 0x190   :  { %v883_v56 = vadd.f32 %v882_v33, %v2561_v29 }
 0x192   :  { %v884_v40 = vadd.f32 %v883_v56, %v2567_v45 }
 0x194   :  { %v885_v60 = vadd.f32 %v884_v40, %v2573_v1 }
 0x196   :  { %v886_v16 = vadd.f32 %v885_v60, %v2579_v21 }
 0x198   :  { %v887_v4 = vadd.f32 %v886_v16, %v2585_v53 }
 0x19a   :  { %v888_v17 = vadd.f32 %v887_v4, %v2591_v36 }
 0x19c   :  { %v889_v57 = vadd.f32 %v888_v17, %v2597_v48 }
 0x19e   :  { %v890_v32 = vadd.f32 %v889_v57, %v2603_v8 }
 0x1a0   :  { %v891_v0 = vadd.f32 %v890_v32, %v2609_v44 }
 0x1a2   :  { %v892_v5 = vadd.f32 %v891_v0, %v2615_v20 }
 0x1a4   :  { %v893_v41 = vrot.slane %v892_v5, 4 }
 0x1a6   :  { %v894_v33 = vadd.f32 %v893_v41, %v892_v5 }
 0x1a8   :  { %v895_v29 = vrot.slane %v894_v33, 2 }
 0x1aa   :  { %v896_v56 = vadd.f32 %v895_v29, %v894_v33 }
 0x1ac   :  { %v897_v45 = vrot.slane %v896_v56, 1 }
 0x1ae   :  { %v898_v40 = vadd.f32 %v897_v45, %v896_v56 }
 0x1b0   :  { %v2650_v1 = vmul.f32 0.001953125, %v898_v40 }
 0x1b2   :  { %v900_v60 = vsub.f32 %v2458_v10, %v2650_v1  ;;  %v901_v16 = vsub.f32 %v2462_v14, %v2650_v1  ;;  %v902_v4 = vsub.f32 %v2466_v18, %v2650_v1  ;;  %v903_v32 = vsub.f32 %v2470_v22, %v2650_v1 }
 0x1b3   :  { %v904_v29 = vsub.f32 %v2474_v26, %v2650_v1  ;;  %v905_v5 = vsub.f32 %v2478_v30, %v2650_v1  ;;  %v906_v56 = vsub.f32 %v2482_v34, %v2650_v1  ;;  %v908_v26 = vsub.f32 %v2490_v42, %v2650_v1 }
 0x1b4   :  { %v964_v17 = vmul.f32 %v900_v60, %v900_v60  ;;  %v965_v57 = vmul.f32 %v901_v16, %v901_v16  ;;  %v966_v45 = vmul.f32 %v902_v4, %v902_v4  ;;  %v967_v41 = vmul.f32 %v903_v32, %v903_v32 }
 0x1b5   :  { %v968_v40 = vmul.f32 %v904_v29, %v904_v29  ;;  %v907_v60 = vsub.f32 %v2486_v38, %v2650_v1  ;;  %v969_v16 = vmul.f32 %v905_v5, %v905_v5  ;;  %v970_v4 = vmul.f32 %v906_v56, %v906_v56 }
 0x1b6   :  { %v1028_v0 = vadd.f32 %v965_v57, %v964_v17  ;;  %v909_v57 = vsub.f32 %v2494_v46, %v2650_v1  ;;  %v972_v29 = vmul.f32 %v908_v26, %v908_v26 }
 0x1b7   :  { %v971_v32 = vmul.f32 %v907_v60, %v907_v60 }
 0x1b8   :  { %v1029_v33 = vadd.f32 %v1028_v0, %v966_v45  ;;  %v910_v0 = vsub.f32 %v2498_v50, %v2650_v1  ;;  %v973_v5 = vmul.f32 %v909_v57, %v909_v57 }
 0x1ba   :  { %v1030_v18 = vadd.f32 %v1029_v33, %v967_v41  ;;  %v911_v33 = vsub.f32 %v2502_v54, %v2650_v1  ;;  %v974_v56 = vmul.f32 %v910_v0, %v910_v0 }
 0x1bc   :  { %v1031_v22 = vadd.f32 %v1030_v18, %v968_v40  ;;  %v912_v40 = vsub.f32 %v2506_v58, %v2650_v1  ;;  %v975_v60 = vmul.f32 %v911_v33, %v911_v33 }
 0x1be   :  { %v1032_v17 = vadd.f32 %v1031_v22, %v969_v16  ;;  %v913_v16 = vsub.f32 %v2510_v62, %v2650_v1  ;;  %v976_v26 = vmul.f32 %v912_v40, %v912_v40 }
 0x1c0   :  { %v1033_v45 = vadd.f32 %v1032_v17, %v970_v4  ;;  %v914_v17 = vsub.f32 %v2514_v2, %v2650_v1  ;;  %v977_v57 = vmul.f32 %v913_v16, %v913_v16 }
 0x1c2   :  { %v1034_v41 = vadd.f32 %v1033_v45, %v971_v32  ;;  %v915_v45 = vsub.f32 %v2518_v6, %v2650_v1  ;;  %v978_v0 = vmul.f32 %v914_v17, %v914_v17 }
 0x1c4   :  { %v1035_v18 = vadd.f32 %v1034_v41, %v972_v29  ;;  %v916_v41 = vsub.f32 %v2522_v12, %v2650_v1  ;;  %v979_v33 = vmul.f32 %v915_v45, %v915_v45 }
 0x1c6   :  { %v1036_v22 = vadd.f32 %v1035_v18, %v973_v5  ;;  %v917_v18 = vsub.f32 %v2529_v24, %v2650_v1  ;;  %v980_v40 = vmul.f32 %v916_v41, %v916_v41 }
 0x1c8   :  { %v1037_v4 = vadd.f32 %v1036_v22, %v974_v56  ;;  %v3574_v22 = vld [vmem:[#allocation9_spill] sm:$0xff]  ;;  %v981_v16 = vmul.f32 %v917_v18, %v917_v18 }
 0x1c9   :  { %v918_v2 = vsub.f32 %v3574_v22, %v2650_v1 }
 0x1ca   :  { %v1038_v32 = vadd.f32 %v1037_v4, %v975_v60  ;;  %v3575_v4 = vld [vmem:[#allocation11_spill] sm:$0xff] }
 0x1cb   :  { %v919_v6 = vsub.f32 %v3575_v4, %v2650_v1  ;;  %v982_v17 = vmul.f32 %v918_v2, %v918_v2 }
 0x1cc   :  { %v1039_v29 = vadd.f32 %v1038_v32, %v976_v26  ;;  %v3576_v32 = vld [vmem:[#allocation13_spill] sm:$0xff] }
 0x1cd   :  { %v920_v12 = vsub.f32 %v3576_v32, %v2650_v1  ;;  %v983_v45 = vmul.f32 %v919_v6, %v919_v6 }
 0x1ce   :  { %v1040_v5 = vadd.f32 %v1039_v29, %v977_v57  ;;  %v3577_v29 = vld [vmem:[#allocation15_spill] sm:$0xff] }
 0x1cf   :  { %v921_v24 = vsub.f32 %v3577_v29, %v2650_v1  ;;  %v984_v41 = vmul.f32 %v920_v12, %v920_v12 }
 0x1d0   :  { %v1041_v56 = vadd.f32 %v1040_v5, %v978_v0  ;;  %v3578_v5 = vld [vmem:[#allocation16_spill] sm:$0xff] }
 0x1d1   :  { %v922_v22 = vsub.f32 %v3578_v5, %v2650_v1  ;;  %v985_v18 = vmul.f32 %v921_v24, %v921_v24 }
 0x1d2   :  { %v1042_v60 = vadd.f32 %v1041_v56, %v979_v33  ;;  %v3579_v56 = vld [vmem:[#allocation18_spill] sm:$0xff] }
 0x1d3   :  { %v923_v4 = vsub.f32 %v3579_v56, %v2650_v1  ;;  %v986_v2 = vmul.f32 %v922_v22, %v922_v22 }
 0x1d4   :  { %v1043_v26 = vadd.f32 %v1042_v60, %v980_v40  ;;  %v3580_v60 = vld [vmem:[#allocation20_spill] sm:$0xff] }
 0x1d5   :  { %v924_v32 = vsub.f32 %v3580_v60, %v2650_v1  ;;  %v987_v6 = vmul.f32 %v923_v4, %v923_v4 }
 0x1d6   :  { %v1044_v57 = vadd.f32 %v1043_v26, %v981_v16  ;;  %v3581_v26 = vld [vmem:[#allocation22_spill] sm:$0xff] }
 0x1d7   :  { %v925_v29 = vsub.f32 %v3581_v26, %v2650_v1  ;;  %v988_v12 = vmul.f32 %v924_v32, %v924_v32 }
 0x1d8   :  { %v1045_v0 = vadd.f32 %v1044_v57, %v982_v17  ;;  %v3582_v57 = vld [vmem:[#allocation24_spill] sm:$0xff] }
 0x1d9   :  { %v926_v5 = vsub.f32 %v3582_v57, %v2650_v1  ;;  %v989_v24 = vmul.f32 %v925_v29, %v925_v29 }
 0x1da   :  { %v1046_v33 = vadd.f32 %v1045_v0, %v983_v45  ;;  %v3583_v0 = vld [vmem:[#allocation26_spill] sm:$0xff] }
 0x1db   :  { %v927_v56 = vsub.f32 %v3583_v0, %v2650_v1  ;;  %v990_v22 = vmul.f32 %v926_v5, %v926_v5 }
 0x1dc   :  { %v1047_v40 = vadd.f32 %v1046_v33, %v984_v41  ;;  %v3584_v33 = vld [vmem:[#allocation28_spill] sm:$0xff] }
 0x1dd   :  { %v928_v60 = vsub.f32 %v3584_v33, %v2650_v1  ;;  %v991_v4 = vmul.f32 %v927_v56, %v927_v56 }
 0x1de   :  { %v1048_v16 = vadd.f32 %v1047_v40, %v985_v18  ;;  %v929_v40 = vsub.f32 %v2601_v28, %v2650_v1 }
 0x1df   :  { %v992_v32 = vmul.f32 %v928_v60, %v928_v60 }
 0x1e0   :  { %v1049_v17 = vadd.f32 %v1048_v16, %v986_v2  ;;  %v3585_v16 = vld [vmem:[#allocation31_spill] sm:$0xff]  ;;  %v993_v29 = vmul.f32 %v929_v40, %v929_v40 }
 0x1e1   :  { %v930_v57 = vsub.f32 %v3585_v16, %v2650_v1 }
 0x1e2   :  { %v1050_v45 = vadd.f32 %v1049_v17, %v987_v6  ;;  %v931_v17 = vsub.f32 %v2613_v52, %v2650_v1 }
 0x1e3   :  { %v994_v5 = vmul.f32 %v930_v57, %v930_v57 }
 0x1e4   :  { %v1051_v41 = vadd.f32 %v1050_v45, %v988_v12  ;;  %v932_v45 = vsub.f32 %v2460_v11, %v2650_v1  ;;  %v995_v56 = vmul.f32 %v931_v17, %v931_v17 }
 0x1e6   :  { %v1052_v18 = vadd.f32 %v1051_v41, %v989_v24  ;;  %v933_v41 = vsub.f32 %v2464_v15, %v2650_v1  ;;  %v996_v60 = vmul.f32 %v932_v45, %v932_v45 }
 0x1e8   :  { %v1053_v2 = vadd.f32 %v1052_v18, %v990_v22  ;;  %v934_v18 = vsub.f32 %v2468_v19, %v2650_v1  ;;  %v997_v40 = vmul.f32 %v933_v41, %v933_v41 }
 0x1ea   :  { %v1054_v6 = vadd.f32 %v1053_v2, %v991_v4  ;;  %v935_v2 = vsub.f32 %v2472_v23, %v2650_v1  ;;  %v998_v57 = vmul.f32 %v934_v18, %v934_v18 }
 0x1ec   :  { %v1055_v12 = vadd.f32 %v1054_v6, %v992_v32  ;;  %v936_v6 = vsub.f32 %v2476_v27, %v2650_v1  ;;  %v999_v17 = vmul.f32 %v935_v2, %v935_v2 }
 0x1ee   :  { %v1056_v24 = vadd.f32 %v1055_v12, %v993_v29  ;;  %v937_v12 = vsub.f32 %v2480_v31, %v2650_v1  ;;  %v1000_v45 = vmul.f32 %v936_v6, %v936_v6 }
 0x1f0   :  { %v1057_v22 = vadd.f32 %v1056_v24, %v994_v5  ;;  %v938_v24 = vsub.f32 %v2484_v35, %v2650_v1  ;;  %v1001_v41 = vmul.f32 %v937_v12, %v937_v12 }
 0x1f2   :  { %v1058_v4 = vadd.f32 %v1057_v22, %v995_v56  ;;  %v939_v22 = vsub.f32 %v2488_v39, %v2650_v1  ;;  %v1002_v18 = vmul.f32 %v938_v24, %v938_v24 }
 0x1f4   :  { %v1059_v32 = vadd.f32 %v1058_v4, %v996_v60  ;;  %v940_v4 = vsub.f32 %v2492_v43, %v2650_v1  ;;  %v1003_v2 = vmul.f32 %v939_v22, %v939_v22 }
 0x1f6   :  { %v1060_v29 = vadd.f32 %v1059_v32, %v997_v40  ;;  %v941_v32 = vsub.f32 %v2496_v47, %v2650_v1  ;;  %v1004_v6 = vmul.f32 %v940_v4, %v940_v4 }
 0x1f8   :  { %v1061_v5 = vadd.f32 %v1060_v29, %v998_v57  ;;  %v942_v29 = vsub.f32 %v2500_v51, %v2650_v1  ;;  %v1005_v12 = vmul.f32 %v941_v32, %v941_v32 }
 0x1fa   :  { %v1062_v56 = vadd.f32 %v1061_v5, %v999_v17  ;;  %v943_v5 = vsub.f32 %v2504_v55, %v2650_v1  ;;  %v1006_v24 = vmul.f32 %v942_v29, %v942_v29 }
 0x1fc   :  { %v1063_v60 = vadd.f32 %v1062_v56, %v1000_v45  ;;  %v944_v56 = vsub.f32 %v2508_v59, %v2650_v1  ;;  %v1007_v22 = vmul.f32 %v943_v5, %v943_v5 }
 0x1fe   :  { %v1064_v40 = vadd.f32 %v1063_v60, %v1001_v41  ;;  %v945_v60 = vsub.f32 %v2512_v63, %v2650_v1  ;;  %v1008_v4 = vmul.f32 %v944_v56, %v944_v56 }
 0x200   :  { %v1065_v57 = vadd.f32 %v1064_v40, %v1002_v18  ;;  %v946_v40 = vsub.f32 %v2516_v3, %v2650_v1  ;;  %v1009_v32 = vmul.f32 %v945_v60, %v945_v60 }
 0x202   :  { %v1066_v17 = vadd.f32 %v1065_v57, %v1003_v2  ;;  %v947_v57 = vsub.f32 %v2520_v7, %v2650_v1  ;;  %v1010_v29 = vmul.f32 %v946_v40, %v946_v40 }
 0x204   :  { %v1067_v45 = vadd.f32 %v1066_v17, %v1004_v6  ;;  %v948_v17 = vsub.f32 %v2524_v13, %v2650_v1  ;;  %v1011_v5 = vmul.f32 %v947_v57, %v947_v57 }
 0x206   :  { %v1068_v41 = vadd.f32 %v1067_v45, %v1005_v12  ;;  %v949_v45 = vsub.f32 %v2531_v25, %v2650_v1  ;;  %v1012_v56 = vmul.f32 %v948_v17, %v948_v17 }
 0x208   :  { %v1069_v18 = vadd.f32 %v1068_v41, %v1006_v24  ;;  %v950_v41 = vsub.f32 %v2537_v37, %v2650_v1  ;;  %v1013_v60 = vmul.f32 %v949_v45, %v949_v45 }
 0x20a   :  { %v1070_v2 = vadd.f32 %v1069_v18, %v1007_v22  ;;  %v951_v18 = vsub.f32 %v2543_v49, %v2650_v1  ;;  %v1014_v40 = vmul.f32 %v950_v41, %v950_v41 }
 0x20c   :  { %v1071_v6 = vadd.f32 %v1070_v2, %v1008_v4  ;;  %v952_v2 = vsub.f32 %v2549_v61, %v2650_v1  ;;  %v1015_v57 = vmul.f32 %v951_v18, %v951_v18 }
 0x20e   :  { %v1072_v12 = vadd.f32 %v1071_v6, %v1009_v32  ;;  %v953_v6 = vsub.f32 %v2555_v9, %v2650_v1  ;;  %v1016_v17 = vmul.f32 %v952_v2, %v952_v2 }
 0x210   :  { %v1073_v24 = vadd.f32 %v1072_v12, %v1010_v29  ;;  %v3586_v12 = vld [vmem:[#allocation17_spill] sm:$0xff]  ;;  %v1017_v45 = vmul.f32 %v953_v6, %v953_v6 }
 0x211   :  { %v954_v37 = vsub.f32 %v3586_v12, %v2650_v1 }
 0x212   :  { %v1074_v22 = vadd.f32 %v1073_v24, %v1011_v5  ;;  %v3587_v24 = vld [vmem:[#allocation19_spill] sm:$0xff] }
 0x213   :  { %v955_v49 = vsub.f32 %v3587_v24, %v2650_v1  ;;  %v1018_v41 = vmul.f32 %v954_v37, %v954_v37 }
 0x214   :  { %v1075_v4 = vadd.f32 %v1074_v22, %v1012_v56  ;;  %v3588_v22 = vld [vmem:[#allocation21_spill] sm:$0xff] }
 0x215   :  { %v956_v61 = vsub.f32 %v3588_v22, %v2650_v1  ;;  %v1019_v18 = vmul.f32 %v955_v49, %v955_v49 }
 0x216   :  { %v1076_v32 = vadd.f32 %v1075_v4, %v1013_v60  ;;  %v957_v4 = vsub.f32 %v2579_v21, %v2650_v1 }
 0x217   :  { %v1020_v2 = vmul.f32 %v956_v61, %v956_v61 }
 0x218   :  { %v1077_v29 = vadd.f32 %v1076_v32, %v1014_v40  ;;  %v958_v32 = vsub.f32 %v2585_v53, %v2650_v1  ;;  %v1021_v6 = vmul.f32 %v957_v4, %v957_v4 }
 0x21a   :  { %v1078_v5 = vadd.f32 %v1077_v29, %v1015_v57  ;;  %v959_v29 = vsub.f32 %v2591_v36, %v2650_v1  ;;  %v1022_v37 = vmul.f32 %v958_v32, %v958_v32 }
 0x21c   :  { %v1079_v56 = vadd.f32 %v1078_v5, %v1016_v17  ;;  %v960_v5 = vsub.f32 %v2597_v48, %v2650_v1  ;;  %v1023_v49 = vmul.f32 %v959_v29, %v959_v29 }
 0x21e   :  { %v1080_v60 = vadd.f32 %v1079_v56, %v1017_v45  ;;  %v961_v56 = vsub.f32 %v2603_v8, %v2650_v1  ;;  %v1024_v61 = vmul.f32 %v960_v5, %v960_v5  ;;  %v1104_v5 = vlaneseq }
 0x220   :  { %v1081_v40 = vadd.f32 %v1080_v60, %v1018_v41  ;;  %v962_v60 = vsub.f32 %v2609_v44, %v2650_v1  ;;  %v1025_v4 = vmul.f32 %v961_v56, %v961_v56  ;;  %v828_v56 = vld [vmem:[%s3488_s2] sm:$0x1] }
 0x222   :  { %v1082_v57 = vadd.f32 %v1081_v40, %v1019_v18  ;;  %v963_v40 = vsub.f32 %v2615_v20, %v2650_v1 }
 0x224   :  { %v1083_v17 = vadd.f32 %v1082_v57, %v1020_v2  ;;  %v1026_v57 = vmul.f32 %v962_v60, %v962_v60  ;;  %v1027_v48 = vmul.f32 %v963_v40, %v963_v40 }
 0x226   :  { %v1084_v45 = vadd.f32 %v1083_v17, %v1021_v6 }
 0x228   :  { %v1085_v41 = vadd.f32 %v1084_v45, %v1022_v37 }
 0x22a   :  { %v1086_v18 = vadd.f32 %v1085_v41, %v1023_v49  ;;  %v2780_v49 = vshrl.u32 %v1104_v5, 7  ;;  %v3595_v5 = vld [vmem:[#allocation8_spill] sm:$0xff] }
 0x22c   :  { %v1087_v2 = vadd.f32 %v1086_v18, %v1024_v61  ;;  %v3537_v41 = vsub.s32 0, %v2780_v49  ;;  %v3589_v18 = vld [vmem:[#allocation2_spill] sm:$0xff] }
 0x22e   :  { %v1088_v36 = vadd.f32 %v1087_v2, %v1025_v4  ;;  %v3591_v2 = vld [vmem:[#allocation4_spill] sm:$0xff] }
 0x230   :  { %v1089_v32 = vadd.f32 %v1088_v36, %v1026_v57 }
 0x232   :  { %v1090_v6 = vadd.f32 %v1089_v32, %v1027_v48 }
 0x234   :  { %v1091_v17 = vrot.slane %v1090_v6, 4 }
 0x236   :  { %v1092_v53 = vadd.f32 %v1091_v17, %v1090_v6 }
 0x238   :  { %v1093_v8 = vrot.slane %v1092_v53, 2 }
 0x23a   :  { %v1094_v29 = vadd.f32 %v1093_v8, %v1092_v53  ;;  %v2789_v8 = vld [vmem:[%s3489_s3] sm:$0x1] }
 0x23c   :  { %v1095_v37 = vrot.slane %v1094_v29, 1 }
 0x23e   :  { %v1096_v45 = vadd.f32 %v1095_v37, %v1094_v29  ;;  %v3592_v29 = vld [vmem:[#allocation5_spill] sm:$0xff]  ;;  %v3593_v37 = vld [vmem:[#allocation6_spill] sm:$0xff] }
 0x240   :  { %v1097_v21 = vmul.f32 0.001953125, %v1096_v45  ;;  %v3594_v45 = vld [vmem:[#allocation7_spill] sm:$0xff] }
 0x242   :  { %v1098_v44 = vadd.f32 1e-05, %v1097_v21 }
 0x244   :  { %2179 = vrsqrt.f32 %v1098_v44 }
 0x251   :  { %v2180_v36 = vpop.eup %2179 }
 0x252   :  { %v1100_v48 = vmul.f32 %v2180_v36, %v828_v56  ;;  %v3596_v56 = vld [vmem:[#allocation9_spill] sm:$0xff]  ;;  %v3597_v36 = vld [vmem:[#allocation11_spill] sm:$0xff] }
 0x254   :  { %v2792_v53 = vmul.f32 %v1100_v48, %v2650_v1  ;;  %v2796_v44 = vrot.slane %v1100_v48, %v3537_v41  ;;  %v3590_v1 = vld [vmem:[#allocation3_spill] sm:$0xff]  ;;  %v3606_v41 = vld [vmem:[#allocation10_spill] sm:$0xff] }
 0x256   :  { %v1102_v21 = vsub.f32 %v2789_v8, %v2792_v53  ;;  %v2802_v60 = vmul.f32 %v2796_v44, %v2458_v10  ;;  %v2806_v61 = vmul.f32 %v2796_v44, %v2462_v14  ;;  %v2810_v40 = vmul.f32 %v2796_v44, %v3589_v18  ;;  %v3598_v8 = vld [vmem:[#allocation13_spill] sm:$0xff]  ;;  %v3599_v18 = vld [vmem:[#allocation15_spill] sm:$0xff] }
 0x257   :  { %v2814_v4 = vmul.f32 %v2796_v44, %v3590_v1  ;;  %v2818_v57 = vmul.f32 %v2796_v44, %v3591_v2  ;;  %v2822_v10 = vmul.f32 %v2796_v44, %v2478_v30  ;;  %v2826_v14 = vmul.f32 %v2796_v44, %v2482_v34  ;;  %v3600_v2 = vld [vmem:[#allocation16_spill] sm:$0xff] }
 0x258   :  { %v2830_v32 = vmul.f32 %v2796_v44, %v2486_v38  ;;  %v2834_v6 = vmul.f32 %v2796_v44, %v2490_v42  ;;  %v2838_v17 = vmul.f32 %v2796_v44, %v2494_v46  ;;  %v2842_v30 = vmul.f32 %v2796_v44, %v2498_v50 }
 0x259   :  { %v2846_v34 = vmul.f32 %v2796_v44, %v2502_v54  ;;  %v2850_v38 = vmul.f32 %v2796_v44, %v2506_v58  ;;  %v2854_v42 = vmul.f32 %v2796_v44, %v2510_v62  ;;  %v2858_v46 = vmul.f32 %v2796_v44, %v3592_v29 }
 0x25a   :  { %v2862_v50 = vmul.f32 %v2796_v44, %v3593_v37  ;;  %v2866_v54 = vmul.f32 %v2796_v44, %v3594_v45  ;;  %v2870_v58 = vmul.f32 %v2796_v44, %v3595_v5  ;;  %v2874_v62 = vmul.f32 %v2796_v44, %v3596_v56  ;;  %v3601_v37 = vld [vmem:[#allocation18_spill] sm:$0xff]  ;;  %v3602_v5 = vld [vmem:[#allocation20_spill] sm:$0xff] }
 0x25b   :  { %v2878_v48 = vmul.f32 %v2796_v44, %v3597_v36  ;;  %v2882_v53 = vmul.f32 %v2796_v44, %v3598_v8  ;;  %v2886_v1 = vmul.f32 %v2796_v44, %v3599_v18  ;;  %v2890_v29 = vmul.f32 %v2796_v44, %v3600_v2  ;;  %v3603_v8 = vld [vmem:[#allocation24_spill] sm:$0xff] }
 0x25c   :  { %v2894_v45 = vmul.f32 %v2796_v44, %v3601_v37  ;;  %v2898_v56 = vmul.f32 %v2796_v44, %v3602_v5  ;;  %v2902_v36 = vmul.f32 %v2796_v44, %v3581_v26  ;;  %v2906_v18 = vmul.f32 %v2796_v44, %v3603_v8 }
 0x25d   :  { %v2910_v2 = vmul.f32 %v2796_v44, %v3583_v0  ;;  %v2914_v37 = vmul.f32 %v2796_v44, %v3584_v33  ;;  %v2918_v5 = vmul.f32 %v2796_v44, %v2601_v28  ;;  %v2922_v26 = vmul.f32 %v2796_v44, %v3585_v16 }
 0x25e   :  { %v2926_v8 = vmul.f32 %v2796_v44, %v2613_v52  ;;  %v2930_v0 = vmul.f32 %v2796_v44, %v2460_v11  ;;  %v2934_v33 = vmul.f32 %v2796_v44, %v2464_v15  ;;  %v2938_v28 = vmul.f32 %v2796_v44, %v2468_v19 }
 0x25f   :  { %v2942_v16 = vmul.f32 %v2796_v44, %v2472_v23  ;;  %v2946_v52 = vmul.f32 %v2796_v44, %v2476_v27  ;;  %v2950_v11 = vmul.f32 %v2796_v44, %v2480_v31  ;;  %v2954_v15 = vmul.f32 %v2796_v44, %v2484_v35 }
 0x260   :  { %v2958_v19 = vmul.f32 %v2796_v44, %v2488_v39  ;;  %v2962_v23 = vmul.f32 %v2796_v44, %v2492_v43  ;;  %v2966_v27 = vmul.f32 %v2796_v44, %v2496_v47  ;;  %v2970_v31 = vmul.f32 %v2796_v44, %v2500_v51 }
 0x261   :  { %v2974_v35 = vmul.f32 %v2796_v44, %v2504_v55  ;;  %v2978_v39 = vmul.f32 %v2796_v44, %v2508_v59  ;;  %v2982_v43 = vmul.f32 %v2796_v44, %v2512_v63  ;;  %v2986_v47 = vmul.f32 %v2796_v44, %v2516_v3 }
 0x262   :  { %v2990_v51 = vmul.f32 %v2796_v44, %v2520_v7  ;;  %v2994_v55 = vmul.f32 %v2796_v44, %v2524_v13  ;;  %v2998_v59 = vmul.f32 %v2796_v44, %v2531_v25  ;;  %v3002_v63 = vmul.f32 %v2796_v44, %v3606_v41 }
 0x263   :  { %3604 = vst [vmem:[#allocation22_spill] sm:$0xff] %v2982_v43  ;;  %3605 = vst [vmem:[#allocation26_spill] sm:$0xff] %v2986_v47  ;;  %v3607_v43 = vld [vmem:[#allocation12_spill] sm:$0xff]  ;;  %v3609_v47 = vld [vmem:[#allocation14_spill] sm:$0xff]  ;;  %v3014_v13 = vmul.f32 %v2796_v44, %v2555_v9  ;;  %v3018_v25 = vmul.f32 %v2796_v44, %v3586_v12  ;;  %v3022_v41 = vmul.f32 %v2796_v44, %v3587_v24 }
 0x264   :  { %v3006_v3 = vmul.f32 %v2796_v44, %v3607_v43  ;;  %v3010_v7 = vmul.f32 %v2796_v44, %v3609_v47  ;;  %v3026_v43 = vmul.f32 %v2796_v44, %v3588_v22 }
 0x265   :  { %3611 = vst [vmem:[#allocation17_spill] sm:$0xff] %v3014_v13  ;;  %3612 = vst [vmem:[#allocation19_spill] sm:$0xff] %v3018_v25  ;;  %v3618_v13 = vld [vmem:[#allocation27_spill] sm:$0xff]  ;;  %v3619_v25 = vsub.s32 0, %v2780_v49 }
 0x266   :  { %3608 = vst [vmem:[#allocation28_spill] sm:$0xff] %v3006_v3  ;;  %3610 = vst [vmem:[#allocation31_spill] sm:$0xff] %v3010_v7  ;;  %v3615_v3 = vld [vmem:[#allocation23_spill] sm:$0xff]  ;;  %v3617_v7 = vld [vmem:[#allocation25_spill] sm:$0xff]  ;;  %v3038_v12 = vmul.f32 %v2796_v44, %v3618_v13  ;;  %v3058_v13 = vmul.f32 %v2796_v44, %v2615_v20 }
 0x267   :  { %3613 = vst [vmem:[#allocation21_spill] sm:$0xff] %v3022_v41  ;;  %3614 = vst [vmem:[#allocation2_spill] sm:$0xff] %v3026_v43  ;;  %v3030_v47 = vmul.f32 %v2796_v44, %v3615_v3  ;;  %v3034_v9 = vmul.f32 %v2796_v44, %v3617_v7  ;;  %v3042_v24 = vrot.slane %v1102_v21, %v3619_v25  ;;  %v3620_v41 = vld [vmem:[#allocation29_spill] sm:$0xff]  ;;  %v3621_v43 = vld [vmem:[#allocation30_spill] sm:$0xff] }
 0x268   :  { %v3046_v22 = vmul.f32 %v2796_v44, %v3620_v41  ;;  %v3050_v3 = vmul.f32 %v2796_v44, %v3621_v43 }
 0x269   :  { %3616 = vst [vmem:[#allocation3_spill] sm:$0xff] %v3030_v47  ;;  %v3622_v47 = vld [vmem:[#allocation32_spill] sm:$0xff]  ;;  %v3062_v49 = vadd.f32 %v3042_v24, %v2802_v60  ;;  %v3066_v21 = vadd.f32 %v3042_v24, %v2806_v61  ;;  %v3070_v25 = vadd.f32 %v3042_v24, %v2810_v40  ;;  %v3074_v41 = vadd.f32 %v3042_v24, %v2814_v4 }
 0x26a   :  { %v3054_v7 = vmul.f32 %v2796_v44, %v3622_v47  ;;  %v3078_v20 = vadd.f32 %v3042_v24, %v2818_v57  ;;  %v3082_v44 = vadd.f32 %v3042_v24, %v2822_v10  ;;  %v3086_v60 = vadd.f32 %v3042_v24, %v2826_v14  ;;  %v3629_v43 = vld [vmem:[#allocation26_spill] sm:$0xff] }
 0x26b   :  { %3623 = vst [vmem:[#allocation4_spill] sm:$0xff] %v3062_v49  ;;  %3624 = vst [vmem:[#allocation5_spill] sm:$0xff] %v3066_v21  ;;  %v3090_v61 = vadd.f32 %v3042_v24, %v2830_v32  ;;  %v3094_v40 = vadd.f32 %v3042_v24, %v2834_v6  ;;  %v3098_v4 = vadd.f32 %v3042_v24, %v2838_v17 }
 0x26c   :  { %3625 = vst [vmem:[#allocation6_spill] sm:$0xff] %v3070_v25  ;;  %3626 = vst [vmem:[#allocation7_spill] sm:$0xff] %v3074_v41  ;;  %v3102_v57 = vadd.f32 %v3042_v24, %v2842_v30  ;;  %v3106_v10 = vadd.f32 %v3042_v24, %v2846_v34  ;;  %v3110_v14 = vadd.f32 %v3042_v24, %v2850_v38 }
 0x26d   :  { %3627 = vst [vmem:[#allocation8_spill] sm:$0xff] %v3078_v20  ;;  %v3114_v32 = vadd.f32 %v3042_v24, %v2854_v42  ;;  %v3118_v6 = vadd.f32 %v3042_v24, %v2858_v46  ;;  %v3122_v17 = vadd.f32 %v3042_v24, %v2862_v50  ;;  %v3126_v30 = vadd.f32 %v3042_v24, %v2866_v54 }
 0x26e   :  { %v3130_v34 = vadd.f32 %v3042_v24, %v2870_v58  ;;  %v3134_v38 = vadd.f32 %v3042_v24, %v2874_v62  ;;  %v3138_v42 = vadd.f32 %v3042_v24, %v2878_v48  ;;  %v3142_v46 = vadd.f32 %v3042_v24, %v2882_v53 }
 0x26f   :  { %v3146_v50 = vadd.f32 %v3042_v24, %v2886_v1  ;;  %v3150_v54 = vadd.f32 %v3042_v24, %v2890_v29  ;;  %v3154_v58 = vadd.f32 %v3042_v24, %v2894_v45  ;;  %v3158_v62 = vadd.f32 %v3042_v24, %v2898_v56 }
 0x270   :  { %v3162_v48 = vadd.f32 %v3042_v24, %v2902_v36  ;;  %v3166_v53 = vadd.f32 %v3042_v24, %v2906_v18  ;;  %v3170_v1 = vadd.f32 %v3042_v24, %v2910_v2  ;;  %v3174_v29 = vadd.f32 %v3042_v24, %v2914_v37 }
 0x271   :  { %v3178_v45 = vadd.f32 %v3042_v24, %v2918_v5  ;;  %v3182_v56 = vadd.f32 %v3042_v24, %v2922_v26  ;;  %v3186_v36 = vadd.f32 %v3042_v24, %v2926_v8  ;;  %v3190_v18 = vadd.f32 %v3042_v24, %v2930_v0 }
 0x272   :  { %v3194_v2 = vadd.f32 %v3042_v24, %v2934_v33  ;;  %v3198_v37 = vadd.f32 %v3042_v24, %v2938_v28  ;;  %v3202_v5 = vadd.f32 %v3042_v24, %v2942_v16  ;;  %v3206_v26 = vadd.f32 %v3042_v24, %v2946_v52 }
 0x273   :  { %v3210_v8 = vadd.f32 %v3042_v24, %v2950_v11  ;;  %v3214_v0 = vadd.f32 %v3042_v24, %v2954_v15  ;;  %v3218_v33 = vadd.f32 %v3042_v24, %v2958_v19  ;;  %v3222_v28 = vadd.f32 %v3042_v24, %v2962_v23  ;;  %v3628_v19 = vld [vmem:[#allocation22_spill] sm:$0xff] }
 0x274   :  { %v3226_v16 = vadd.f32 %v3042_v24, %v2966_v27  ;;  %v3230_v52 = vadd.f32 %v3042_v24, %v2970_v31  ;;  %v3234_v11 = vadd.f32 %v3042_v24, %v2974_v35  ;;  %v3238_v15 = vadd.f32 %v3042_v24, %v2978_v39 }
 0x275   :  { %v3242_v23 = vadd.f32 %v3042_v24, %v3628_v19  ;;  %v3246_v27 = vadd.f32 %v3042_v24, %v3629_v43  ;;  %v3250_v31 = vadd.f32 %v3042_v24, %v2990_v51  ;;  %v3254_v35 = vadd.f32 %v3042_v24, %v2994_v55  ;;  %v3635_v19 = vld [vmem:[#allocation28_spill] sm:$0xff] }
 0x276   :  { %v3258_v39 = vadd.f32 %v3042_v24, %v2998_v59  ;;  %v3262_v47 = vadd.f32 %v3042_v24, %v3002_v63  ;;  %v3266_v43 = vadd.f32 %v3042_v24, %v3635_v19 }
 0x277   :  { %3630 = vst [vmem:[#allocation9_spill] sm:$0xff] %v3246_v27  ;;  %3631 = vst [vmem:[#allocation11_spill] sm:$0xff] %v3250_v31  ;;  %v3637_v27 = vld [vmem:[#allocation31_spill] sm:$0xff]  ;;  %v3638_v31 = vld [vmem:[#allocation17_spill] sm:$0xff] }
 0x278   :  { %3632 = vst [vmem:[#allocation13_spill] sm:$0xff] %v3254_v35  ;;  %3633 = vst [vmem:[#allocation15_spill] sm:$0xff] %v3258_v39  ;;  %v3270_v51 = vadd.f32 %v3042_v24, %v3637_v27  ;;  %v3274_v55 = vadd.f32 %v3042_v24, %v3638_v31  ;;  %v3639_v35 = vld [vmem:[#allocation19_spill] sm:$0xff]  ;;  %v3640_v39 = vld [vmem:[#allocation21_spill] sm:$0xff]  ;;  %v3294_v31 = vadd.f32 %v3042_v24, %v3034_v9 }
 0x279   :  { %3634 = vst [vmem:[#allocation16_spill] sm:$0xff] %v3262_v47  ;;  %3636 = vst [vmem:[#allocation18_spill] sm:$0xff] %v3266_v43  ;;  %v3278_v59 = vadd.f32 %v3042_v24, %v3639_v35  ;;  %v3282_v63 = vadd.f32 %v3042_v24, %v3640_v39  ;;  %v3641_v47 = vld [vmem:[#allocation2_spill] sm:$0xff]  ;;  %v3642_v43 = vld [vmem:[#allocation3_spill] sm:$0xff]  ;;  %v3298_v35 = vadd.f32 %v3042_v24, %v3038_v12  ;;  %v1254_v12 = vmax.f32 %v3106_v10, 0.0 }
 0x27a   :  { %v3286_v19 = vadd.f32 %v3042_v24, %v3641_v47  ;;  %v3290_v27 = vadd.f32 %v3042_v24, %v3642_v43  ;;  %3643 = vst [vmem:[#allocation20_spill] sm:$0xff] %v3294_v31  ;;  %v3302_v39 = vadd.f32 %v3042_v24, %v3046_v22  ;;  %v3306_v47 = vadd.f32 %v3042_v24, %v3050_v3 }
 0x27b   :  { %3644 = vst [vmem:[#allocation24_spill] sm:$0xff] %v3298_v35  ;;  %v3310_v43 = vadd.f32 %v3042_v24, %v3054_v7  ;;  %v3314_v9 = vadd.f32 %v3042_v24, %v3058_v13  ;;  %v1248_v3 = vmax.f32 %v3082_v44, 0.0  ;;  %v1250_v7 = vmax.f32 %v3090_v61, 0.0 }
 0x27c   :  { %3645 = vst [vmem:[#allocation10_spill] sm:$0xff] %v3302_v39  ;;  %3646 = vst [vmem:[#allocation12_spill] sm:$0xff] %v3306_v47  ;;  %v1249_v47 = vmax.f32 %v3086_v60, 0.0  ;;  %v1252_v24 = vmax.f32 %v3098_v4, 0.0  ;;  %v1253_v13 = vmax.f32 %v3102_v57, 0.0  ;;  %v1255_v35 = vmax.f32 %v3110_v14, 0.0 }
 0x27d   :  { %3647 = vst [vmem:[#allocation14_spill] sm:$0xff] %v3310_v43  ;;  %3648 = vst [vmem:[#allocation23_spill] sm:$0xff] %v3314_v9  ;;  %v1251_v43 = vmax.f32 %v3094_v40, 0.0  ;;  %v1256_v22 = vmax.f32 %v3114_v32, 0.0  ;;  %v1257_v39 = vmax.f32 %v3118_v6, 0.0  ;;  %v1258_v44 = vmax.f32 %v3122_v17, 0.0 }
 0x27e   :  { %v1259_v60 = vmax.f32 %v3126_v30, 0.0  ;;  %v1260_v61 = vmax.f32 %v3130_v34, 0.0  ;;  %v1261_v40 = vmax.f32 %v3134_v38, 0.0  ;;  %v1262_v4 = vmax.f32 %v3138_v42, 0.0  ;;  %v3649_v31 = vld [vmem:[#allocation9_spill] sm:$0xff]  ;;  %v3650_v20 = vld [vmem:[#allocation11_spill] sm:$0xff] }
 0x27f   :  { %v1263_v57 = vmax.f32 %v3142_v46, 0.0  ;;  %v1264_v10 = vmax.f32 %v3146_v50, 0.0  ;;  %v1265_v14 = vmax.f32 %v3150_v54, 0.0  ;;  %v1266_v32 = vmax.f32 %v3154_v58, 0.0  ;;  %v3651_v41 = vld [vmem:[#allocation13_spill] sm:$0xff]  ;;  %v3652_v25 = vld [vmem:[#allocation15_spill] sm:$0xff] }
 0x280   :  { %v1267_v6 = vmax.f32 %v3158_v62, 0.0  ;;  %v1268_v17 = vmax.f32 %v3162_v48, 0.0  ;;  %v1269_v30 = vmax.f32 %v3166_v53, 0.0  ;;  %v1270_v34 = vmax.f32 %v3170_v1, 0.0  ;;  %v3653_v21 = vld [vmem:[#allocation16_spill] sm:$0xff]  ;;  %v3654_v49 = vld [vmem:[#allocation18_spill] sm:$0xff] }
 0x281   :  { %v1271_v38 = vmax.f32 %v3174_v29, 0.0  ;;  %v1272_v42 = vmax.f32 %v3178_v45, 0.0  ;;  %v1273_v46 = vmax.f32 %v3182_v56, 0.0  ;;  %v1274_v50 = vmax.f32 %v3186_v36, 0.0  ;;  %v3655_v9 = vld [vmem:[#allocation20_spill] sm:$0xff] }
 0x282   :  { %v1275_v54 = vmax.f32 %v3190_v18, 0.0  ;;  %v1276_v58 = vmax.f32 %v3194_v2, 0.0  ;;  %v1277_v62 = vmax.f32 %v3198_v37, 0.0  ;;  %v1278_v48 = vmax.f32 %v3202_v5, 0.0 }
 0x283   :  { %v1279_v53 = vmax.f32 %v3206_v26, 0.0  ;;  %v1280_v1 = vmax.f32 %v3210_v8, 0.0  ;;  %v1281_v29 = vmax.f32 %v3214_v0, 0.0  ;;  %v1282_v45 = vmax.f32 %v3218_v33, 0.0 }
 0x284   :  { %v1283_v56 = vmax.f32 %v3222_v28, 0.0  ;;  %v1284_v36 = vmax.f32 %v3226_v16, 0.0  ;;  %v1285_v18 = vmax.f32 %v3230_v52, 0.0  ;;  %v1286_v2 = vmax.f32 %v3234_v11, 0.0 }
 0x285   :  { %v1287_v37 = vmax.f32 %v3238_v15, 0.0  ;;  %v1288_v5 = vmax.f32 %v3242_v23, 0.0  ;;  %v1289_v26 = vmax.f32 %v3649_v31, 0.0  ;;  %v1290_v8 = vmax.f32 %v3650_v20, 0.0 }
 0x286   :  { %v1291_v0 = vmax.f32 %v3651_v41, 0.0  ;;  %v1292_v33 = vmax.f32 %v3652_v25, 0.0  ;;  %v1293_v28 = vmax.f32 %v3653_v21, 0.0  ;;  %v1294_v16 = vmax.f32 %v3654_v49, 0.0  ;;  %v3656_v25 = vld [vmem:[#allocation24_spill] sm:$0xff]  ;;  %v3657_v49 = vld [vmem:[#allocation10_spill] sm:$0xff] }
 0x287   :  { %v1295_v52 = vmax.f32 %v3270_v51, 0.0  ;;  %v1296_v11 = vmax.f32 %v3274_v55, 0.0  ;;  %v1297_v15 = vmax.f32 %v3278_v59, 0.0  ;;  %v1298_v23 = vmax.f32 %v3282_v63, 0.0  ;;  %v3658_v55 = vld [vmem:[#allocation12_spill] sm:$0xff]  ;;  %v3659_v63 = vld [vmem:[#allocation14_spill] sm:$0xff] }
 0x288   :  { %v1299_v31 = vmax.f32 %v3286_v19, 0.0  ;;  %v1300_v20 = vmax.f32 %v3290_v27, 0.0  ;;  %v1301_v41 = vmax.f32 %v3655_v9, 0.0  ;;  %v1302_v21 = vmax.f32 %v3656_v25, 0.0  ;;  %v3660_v27 = vld [vmem:[#allocation23_spill] sm:$0xff]  ;;  %v3661_v25 = vld [vmem:[#allocation4_spill] sm:$0xff] }
 0x289   :  { %v1303_v51 = vmax.f32 %v3657_v49, 0.0  ;;  %v1304_v59 = vmax.f32 %v3658_v55, 0.0  ;;  %v1305_v19 = vmax.f32 %v3659_v63, 0.0  ;;  %v1306_v9 = vmax.f32 %v3660_v27, 0.0  ;;  %v3663_v55 = vld [vmem:[#allocation5_spill] sm:$0xff] }
 0x28a   :  { %v3662_v49 = vmax.f32 %v3661_v25, 0.0  ;;  %v3664_v63 = vmax.f32 %v3663_v55, 0.0  ;;  %v3665_v25 = vld [vmem:[#allocation6_spill] sm:$0xff] }
 0x28b   :  { %v3666_v55 = vmax.f32 %v3665_v25, 0.0 }
 0x28c   :  { %v1867_v27 = vpack.c.bf16 %v3664_v63, %v3662_v49  ;;  %v3667_v49 = vld [vmem:[#allocation7_spill] sm:$0xff] }
 0x28d   :  { %v3668_v63 = vmax.f32 %v3667_v49, 0.0  ;;  %v3669_v49 = vld [vmem:[#allocation8_spill] sm:$0xff] }
 0x28e   :  { %1868 = vst [vmem:[%s3490_s4] sm:$0xff] %v1867_v27  }
 0x28f   :  { %v1872_v25 = vpack.c.bf16 %v3668_v63, %v3666_v55  ;;  %v3670_v55 = vmax.f32 %v3669_v49, 0.0  ;;  %v1882_v49 = vpack.c.bf16 %v1250_v7, %v1249_v47  ;;  %v1897_v7 = vpack.c.bf16 %v1256_v22, %v1255_v35 }
 0x290   :  { %v1902_v47 = vpack.c.bf16 %v1258_v44, %v1257_v39  ;;  %v1917_v35 = vpack.c.bf16 %v1264_v10, %v1263_v57  ;;  %v1922_v39 = vpack.c.bf16 %v1266_v32, %v1265_v14  ;;  %v1927_v22 = vpack.c.bf16 %v1268_v17, %v1267_v6 }
 0x291   :  { %v1877_v63 = vpack.c.bf16 %v1248_v3, %v3670_v55  ;;  %v1887_v3 = vpack.c.bf16 %v1252_v24, %v1251_v43  ;;  %v1892_v55 = vpack.c.bf16 %v1254_v12, %v1253_v13  ;;  %2024 = vst [vmem:[%s3490_s4 + $0x8] sm:$0xff] %v1872_v25   ;;  %2026 = vst [vmem:[%s3490_s4 + $0x18] sm:$0xff] %v1882_v49  }
 0x292   :  { %v1907_v43 = vpack.c.bf16 %v1260_v61, %v1259_v60  ;;  %v1912_v12 = vpack.c.bf16 %v1262_v4, %v1261_v40  ;;  %2029 = vst [vmem:[%s3490_s4 + $0x30] sm:$0xff] %v1897_v7   ;;  %2030 = vst [vmem:[%s3490_s4 + $0x38] sm:$0xff] %v1902_v47   ;;  %v1932_v24 = vpack.c.bf16 %v1270_v34, %v1269_v30 }
 0x293   :  { %2025 = vst [vmem:[%s3490_s4 + $0x10] sm:$0xff] %v1877_v63   ;;  %2027 = vst [vmem:[%s3490_s4 + $0x20] sm:$0xff] %v1887_v3   ;;  %v1937_v13 = vpack.c.bf16 %v1272_v42, %v1271_v38  ;;  %v1942_v44 = vpack.c.bf16 %v1274_v50, %v1273_v46  ;;  %v1947_v60 = vpack.c.bf16 %v1276_v58, %v1275_v54 }
 0x294   :  { %2028 = vst [vmem:[%s3490_s4 + $0x28] sm:$0xff] %v1892_v55   ;;  %2031 = vst [vmem:[%s3490_s4 + $0x40] sm:$0xff] %v1907_v43   ;;  %v1952_v61 = vpack.c.bf16 %v1278_v48, %v1277_v62  ;;  %v1957_v40 = vpack.c.bf16 %v1280_v1, %v1279_v53  ;;  %v1962_v4 = vpack.c.bf16 %v1282_v45, %v1281_v29 }
 0x295   :  { %2032 = vst [vmem:[%s3490_s4 + $0x48] sm:$0xff] %v1912_v12   ;;  %2033 = vst [vmem:[%s3490_s4 + $0x50] sm:$0xff] %v1917_v35   ;;  %v1967_v57 = vpack.c.bf16 %v1284_v36, %v1283_v56  ;;  %v1972_v10 = vpack.c.bf16 %v1286_v2, %v1285_v18  ;;  %v1977_v14 = vpack.c.bf16 %v1288_v5, %v1287_v37 }
 0x296   :  { %2034 = vst [vmem:[%s3490_s4 + $0x58] sm:$0xff] %v1922_v39   ;;  %2035 = vst [vmem:[%s3490_s4 + $0x60] sm:$0xff] %v1927_v22   ;;  %v1982_v32 = vpack.c.bf16 %v1290_v8, %v1289_v26  ;;  %v1987_v6 = vpack.c.bf16 %v1292_v33, %v1291_v0  ;;  %v1992_v17 = vpack.c.bf16 %v1294_v16, %v1293_v28 }
 0x297   :  { %2036 = vst [vmem:[%s3490_s4 + $0x68] sm:$0xff] %v1932_v24   ;;  %2037 = vst [vmem:[%s3490_s4 + $0x70] sm:$0xff] %v1937_v13   ;;  %v1997_v30 = vpack.c.bf16 %v1296_v11, %v1295_v52  ;;  %v2002_v34 = vpack.c.bf16 %v1298_v23, %v1297_v15  ;;  %v2007_v38 = vpack.c.bf16 %v1300_v20, %v1299_v31 }
 0x298   :  { %2038 = vst [vmem:[%s3490_s4 + $0x78] sm:$0xff] %v1942_v44   ;;  %2039 = vst [vmem:[%s3490_s4 + $0x80] sm:$0xff] %v1947_v60   ;;  %v2012_v42 = vpack.c.bf16 %v1302_v21, %v1301_v41  ;;  %v2017_v46 = vpack.c.bf16 %v1304_v59, %v1303_v51  ;;  %v2022_v50 = vpack.c.bf16 %v1306_v9, %v1305_v19 }
 0x299   :  { %2040 = vst [vmem:[%s3490_s4 + $0x88] sm:$0xff] %v1952_v61   ;;  %2041 = vst [vmem:[%s3490_s4 + $0x90] sm:$0xff] %v1957_v40  }
 0x29a   :  { %2042 = vst [vmem:[%s3490_s4 + $0x98] sm:$0xff] %v1962_v4   ;;  %2043 = vst [vmem:[%s3490_s4 + $0xa0] sm:$0xff] %v1967_v57  }
 0x29b   :  { %2044 = vst [vmem:[%s3490_s4 + $0xa8] sm:$0xff] %v1972_v10   ;;  %2045 = vst [vmem:[%s3490_s4 + $0xb0] sm:$0xff] %v1977_v14  }
 0x29c   :  { %2046 = vst [vmem:[%s3490_s4 + $0xb8] sm:$0xff] %v1982_v32   ;;  %2047 = vst [vmem:[%s3490_s4 + $0xc0] sm:$0xff] %v1987_v6  }
 0x29d   :  { %2048 = vst [vmem:[%s3490_s4 + $0xc8] sm:$0xff] %v1992_v17   ;;  %2049 = vst [vmem:[%s3490_s4 + $0xd0] sm:$0xff] %v1997_v30  }
 0x29e   :  { %2050 = vst [vmem:[%s3490_s4 + $0xd8] sm:$0xff] %v2002_v34   ;;  %2051 = vst [vmem:[%s3490_s4 + $0xe0] sm:$0xff] %v2007_v38  }
 0x29f   :  { %2052 = vst [vmem:[%s3490_s4 + $0xe8] sm:$0xff] %v2012_v42   ;;  %2053 = vst [vmem:[%s3490_s4 + $0xf0] sm:$0xff] %v2017_v46  }
 0x2a0   :  { %2054 = vst [vmem:[%s3490_s4 + $0xf8] sm:$0xff] %v2022_v50  }

// kernel: _lambda_.29
= control target key start
LH: loop header
LB: loop body
LE: loop exit
PB: predicated region body
PF: predicated region fallthrough
CT: control target
= control target key end

     0   :  { %v2535_v0 = vmov 0   ;;  %vm445_vm0 = vcmask 130048   ;;  %s4392_s1 = inlined_call_operand.vmem [shape: bf16[144,128], index: 1, kind: input, shape index: {}]   ;;  %s4393_s0 = inlined_call_operand.vmem [shape: bf16[512,144], index: 0, kind: input, shape index: {}]   ;;  %s4394_s4 = inlined_call_operand.vmem [shape: bf16[512,128], index: 4, kind: input, shape index: {}]   ;;  %s4395_s2 = inlined_call_operand.vmem [shape: f32[1,128], index: 2, kind: input, shape index: {}]   ;;  %s4396_s3 = inlined_call_operand.vmem [shape: f32[1,128], index: 3, kind: input, shape index: {}]   ;;  %s4397_s5 = inlined_call_operand.vmem [shape: bf16[512,128], index: 5, kind: output, shape index: {}]  }
   0x1   :  { %542 = vmatprep.subr.bf16.mxu0 %v2535_v0  ;;  %v2428_v1 = vld [vmem:[%s4392_s1 + $0x38] sm:$0xff]   ;;  %2409 = vmatprep.subr.bf16.mxu1 %v2535_v0  ;;  %v2429_v2 = vld [vmem:[%s4392_s1 + $0x30] sm:$0xff]   ;;  %v2430_v3 = vld [vmem:[%s4392_s1 + $0x28] sm:$0xff]  }
   0x2   :  { %543 = vmatpush1.bf16.msra.mxu0 %v2428_v1  ;;  %2418 = vmatpush1.bf16.msra.mxu1 %v2428_v1  ;;  %v2431_v4 = vld [vmem:[%s4392_s1 + $0x20] sm:$0xff]   ;;  %v2432_v6 = vld [vmem:[%s4392_s1 + $0x18] sm:$0xff]   ;;  %v2433_v7 = vld [vmem:[%s4392_s1 + $0x10] sm:$0xff]  }
   0x3   :  { %544 = vmatprep.subr.bf16.mxu0 %v2535_v0  ;;  %2410 = vmatprep.subr.bf16.mxu1 %v2535_v0  ;;  %v2439_v5 = vld [vmem:[%s4393_s0 + $0x4] ss:$8 sps:$4 sm:$0xff]   ;;  %v2437_v12 = vld [vmem:[%s4393_s0] ss:$8 sps:$4 sm:$0xff]   ;;  %v2440_v13 = vld [vmem:[%s4393_s0 + $0x14] ss:$8 sps:$4 sm:$0xff]  }
   0x4   :  { %1899 = vmatprep.mubr.msk.bf16.mxu0 %vm445_vm0, %v2439_v5  ;;  %v2463_v8 = vld [vmem:[%s4393_s0 + $0x104] ss:$8 sps:$4 sm:$0xff]   ;;  %v2461_v14 = vld [vmem:[%s4393_s0 + $0x100] ss:$8 sps:$4 sm:$0xff]   ;;  %v2467_v15 = vld [vmem:[%s4393_s0 + $0x114] ss:$8 sps:$4 sm:$0xff]  }
   0x5   :  { %v2434_v9 = vld [vmem:[%s4392_s1 + $0x8] sm:$0xff]   ;;  %1915 = vmatprep.mubr.msk.bf16.mxu1 %vm445_vm0, %v2463_v8  ;;  %v2435_v10 = vld [vmem:[%s4392_s1] sm:$0xff]   ;;  %v2442_v16 = vld [vmem:[%s4393_s0 + $0x10] ss:$8 sps:$4 sm:$0xff]  }
   0x6   :  { %545 = vmatpush1.bf16.msra.mxu0 %v2429_v2  ;;  %2419 = vmatpush1.bf16.msra.mxu1 %v2429_v2  ;;  %v2436_v11 = vld [vmem:[%s4392_s1 + $0x40] sm:$0xff]   ;;  %v2469_v18 = vld [vmem:[%s4393_s0 + $0x110] ss:$8 sps:$4 sm:$0xff]   ;;  %v2446_v21 = vld [vmem:[%s4393_s0 + $0x34] ss:$8 sps:$4 sm:$0xff]  }
   0x7   :  { %546 = vmatprep.subr.bf16.mxu0 %v2535_v0  ;;  %2411 = vmatprep.subr.bf16.mxu1 %v2535_v0  ;;  %v2443_v17 = vld [vmem:[%s4393_s0 + $0x24] ss:$8 sps:$4 sm:$0xff]   ;;  %v2445_v20 = vld [vmem:[%s4393_s0 + $0x20] ss:$8 sps:$4 sm:$0xff]   ;;  %v2479_v23 = vld [vmem:[%s4393_s0 + $0x134] ss:$8 sps:$4 sm:$0xff]  }
   0x8   :  { %v2473_v19 = vld [vmem:[%s4393_s0 + $0x124] ss:$8 sps:$4 sm:$0xff]   ;;  %v2475_v22 = vld [vmem:[%s4393_s0 + $0x120] ss:$8 sps:$4 sm:$0xff]   ;;  %v2448_v24 = vld [vmem:[%s4393_s0 + $0x30] ss:$8 sps:$4 sm:$0xff]  }
   0x9   :  { %v2481_v25 = vld [vmem:[%s4393_s0 + $0x130] ss:$8 sps:$4 sm:$0xff]   ;;  %v2449_v26 = vld [vmem:[%s4393_s0 + $0x44] ss:$8 sps:$4 sm:$0xff]   ;;  %v2451_v28 = vld [vmem:[%s4393_s0 + $0x40] ss:$8 sps:$4 sm:$0xff]  }
   0xa   :  { %547 = vmatpush1.bf16.msra.mxu0 %v2430_v3  ;;  %2420 = vmatpush1.bf16.msra.mxu1 %v2430_v3  ;;  %v2485_v27 = vld [vmem:[%s4393_s0 + $0x144] ss:$8 sps:$4 sm:$0xff]   ;;  %v2487_v29 = vld [vmem:[%s4393_s0 + $0x140] ss:$8 sps:$4 sm:$0xff]   ;;  %v2452_v30 = vld [vmem:[%s4393_s0 + $0x54] ss:$8 sps:$4 sm:$0xff]  }
   0xb   :  { %548 = vmatprep.subr.bf16.mxu0 %v2535_v0  ;;  %2412 = vmatprep.subr.bf16.mxu1 %v2535_v0  ;;  %v2491_v31 = vld [vmem:[%s4393_s0 + $0x154] ss:$8 sps:$4 sm:$0xff]   ;;  %v2454_v32 = vld [vmem:[%s4393_s0 + $0x50] ss:$8 sps:$4 sm:$0xff]   ;;  %v2455_v34 = vld [vmem:[%s4393_s0 + $0x64] ss:$8 sps:$4 sm:$0xff]  }
   0xc   :  { %v2493_v33 = vld [vmem:[%s4393_s0 + $0x150] ss:$8 sps:$4 sm:$0xff]   ;;  %v2497_v35 = vld [vmem:[%s4393_s0 + $0x164] ss:$8 sps:$4 sm:$0xff]   ;;  %v2457_v36 = vld [vmem:[%s4393_s0 + $0x60] ss:$8 sps:$4 sm:$0xff]  }
   0xd   :  { %v2499_v37 = vld [vmem:[%s4393_s0 + $0x160] ss:$8 sps:$4 sm:$0xff]   ;;  %v2458_v38 = vld [vmem:[%s4393_s0 + $0x74] ss:$8 sps:$4 sm:$0xff]   ;;  %v2460_v40 = vld [vmem:[%s4393_s0 + $0x70] ss:$8 sps:$4 sm:$0xff]  }
   0xe   :  { %549 = vmatpush1.bf16.msra.mxu0 %v2431_v4  ;;  %2421 = vmatpush1.bf16.msra.mxu1 %v2431_v4  ;;  %v2503_v39 = vld [vmem:[%s4393_s0 + $0x174] ss:$8 sps:$4 sm:$0xff]   ;;  %v2505_v41 = vld [vmem:[%s4393_s0 + $0x170] ss:$8 sps:$4 sm:$0xff]   ;;  %v2464_v42 = vld [vmem:[%s4393_s0 + $0x84] ss:$8 sps:$4 sm:$0xff]  }
   0xf   :  { %550 = vmatprep.subr.bf16.mxu0 %v2535_v0  ;;  %2413 = vmatprep.subr.bf16.mxu1 %v2535_v0  ;;  %v2509_v43 = vld [vmem:[%s4393_s0 + $0x184] ss:$8 sps:$4 sm:$0xff]   ;;  %v2466_v44 = vld [vmem:[%s4393_s0 + $0x80] ss:$8 sps:$4 sm:$0xff]   ;;  %v2470_v46 = vld [vmem:[%s4393_s0 + $0x94] ss:$8 sps:$4 sm:$0xff]  }
  0x10   :  { %v2511_v45 = vld [vmem:[%s4393_s0 + $0x180] ss:$8 sps:$4 sm:$0xff]   ;;  %v2512_v47 = vld [vmem:[%s4393_s0 + $0x194] ss:$8 sps:$4 sm:$0xff]   ;;  %v2472_v48 = vld [vmem:[%s4393_s0 + $0x90] ss:$8 sps:$4 sm:$0xff]  }
  0x11   :  { %v2514_v49 = vld [vmem:[%s4393_s0 + $0x190] ss:$8 sps:$4 sm:$0xff]   ;;  %v2476_v50 = vld [vmem:[%s4393_s0 + $0xa4] ss:$8 sps:$4 sm:$0xff]   ;;  %v2478_v52 = vld [vmem:[%s4393_s0 + $0xa0] ss:$8 sps:$4 sm:$0xff]  }
  0x12   :  { %551 = vmatpush1.bf16.msra.mxu0 %v2432_v6  ;;  %2422 = vmatpush1.bf16.msra.mxu1 %v2432_v6  ;;  %v2515_v51 = vld [vmem:[%s4393_s0 + $0x1a4] ss:$8 sps:$4 sm:$0xff]   ;;  %v2517_v53 = vld [vmem:[%s4393_s0 + $0x1a0] ss:$8 sps:$4 sm:$0xff]   ;;  %v2482_v54 = vld [vmem:[%s4393_s0 + $0xb4] ss:$8 sps:$4 sm:$0xff]  }
  0x13   :  { %552 = vmatprep.subr.bf16.mxu0 %v2535_v0  ;;  %2414 = vmatprep.subr.bf16.mxu1 %v2535_v0  ;;  %v2518_v55 = vld [vmem:[%s4393_s0 + $0x1b4] ss:$8 sps:$4 sm:$0xff]   ;;  %v2484_v56 = vld [vmem:[%s4393_s0 + $0xb0] ss:$8 sps:$4 sm:$0xff]   ;;  %v2488_v58 = vld [vmem:[%s4393_s0 + $0xc4] ss:$8 sps:$4 sm:$0xff]  }
  0x14   :  { %v2520_v57 = vld [vmem:[%s4393_s0 + $0x1b0] ss:$8 sps:$4 sm:$0xff]   ;;  %v2521_v59 = vld [vmem:[%s4393_s0 + $0x1c4] ss:$8 sps:$4 sm:$0xff]   ;;  %v2490_v60 = vld [vmem:[%s4393_s0 + $0xc0] ss:$8 sps:$4 sm:$0xff]  }
  0x15   :  { %v2523_v61 = vld [vmem:[%s4393_s0 + $0x1c0] ss:$8 sps:$4 sm:$0xff]   ;;  %v2494_v62 = vld [vmem:[%s4393_s0 + $0xd4] ss:$8 sps:$4 sm:$0xff]   ;;  %v2526_v1 = vld [vmem:[%s4393_s0 + $0x1d0] ss:$8 sps:$4 sm:$0xff]  }
  0x16   :  { %553 = vmatpush1.bf16.msra.mxu0 %v2433_v7  ;;  %2423 = vmatpush1.bf16.msra.mxu1 %v2433_v7  ;;  %v2524_v63 = vld [vmem:[%s4393_s0 + $0x1d4] ss:$8 sps:$4 sm:$0xff]   ;;  %v2500_v2 = vld [vmem:[%s4393_s0 + $0xe4] ss:$8 sps:$4 sm:$0xff]   ;;  %v2502_v4 = vld [vmem:[%s4393_s0 + $0xe0] ss:$8 sps:$4 sm:$0xff]  }
  0x17   :  { %554 = vmatprep.subr.bf16.mxu0 %v2535_v0  ;;  %2415 = vmatprep.subr.bf16.mxu1 %v2535_v0  ;;  %v2527_v3 = vld [vmem:[%s4393_s0 + $0x1e4] ss:$8 sps:$4 sm:$0xff]   ;;  %v2529_v5 = vld [vmem:[%s4393_s0 + $0x1e0] ss:$8 sps:$4 sm:$0xff]   ;;  %v2506_v6 = vld [vmem:[%s4393_s0 + $0xf4] ss:$8 sps:$4 sm:$0xff]  }
  0x18   :  { %v2530_v7 = vld [vmem:[%s4393_s0 + $0x1f4] ss:$8 sps:$4 sm:$0xff]   ;;  %v2508_v8 = vld [vmem:[%s4393_s0 + $0xf0] ss:$8 sps:$4 sm:$0xff]  }
  0x1a   :  { %555 = vmatpush1.bf16.msra.mxu0 %v2434_v9  ;;  %2424 = vmatpush1.bf16.msra.mxu1 %v2434_v9  ;;  %v2532_v9 = vld [vmem:[%s4393_s0 + $0x1f0] ss:$8 sps:$4 sm:$0xff]  }
  0x1b   :  { %556 = vmatprep.subr.bf16.mxu0 %v2535_v0  ;;  %2416 = vmatprep.subr.bf16.mxu1 %v2535_v0 }
  0x1e   :  { %557 = vmatpush1.bf16.msra.mxu0 %v2435_v10  ;;  %2425 = vmatpush1.bf16.msra.mxu1 %v2435_v10 }
  0x1f   :  { %572 = vmatprep.subr.bf16.mxu0 %v2535_v0  ;;  %2417 = vmatprep.subr.bf16.mxu1 %v2535_v0  ;;  %v2496_v0 = vld [vmem:[%s4393_s0 + $0xd0] ss:$8 sps:$4 sm:$0xff]  }
  0x22   :  { %573 = vmatpush2.bf16.msra.mxu0 %v2436_v11  ;;  %2426 = vmatpush2.bf16.msra.mxu1 %v2436_v11 }
  0x25   :  { %575 = vmatmul.mubr.bf16.vlgmr.msra.gmra.mxu0 %v2437_v12  ;;  %703 = vmatmul.mubr.bf16.vlgmr.msra.gmra.mxu1 %v2461_v14 }
  0x26   :  { %1900 = vmatprep.mubr.msk.bf16.mxu0 %vm445_vm0, %v2440_v13  ;;  %1916 = vmatprep.mubr.msk.bf16.mxu1 %vm445_vm0, %v2467_v15 }
  0x2d   :  { %583 = vmatmul.mubr.bf16.gmra.mxu0 %v2442_v16  ;;  %711 = vmatmul.mubr.bf16.gmra.mxu1 %v2469_v18 }
  0x2e   :  { %1901 = vmatprep.mubr.msk.bf16.mxu0 %vm445_vm0, %v2443_v17  ;;  %1917 = vmatprep.mubr.msk.bf16.mxu1 %vm445_vm0, %v2473_v19 }
  0x35   :  { %591 = vmatmul.mubr.bf16.gmra.mxu0 %v2445_v20  ;;  %719 = vmatmul.mubr.bf16.gmra.mxu1 %v2475_v22 }
  0x36   :  { %1902 = vmatprep.mubr.msk.bf16.mxu0 %vm445_vm0, %v2446_v21  ;;  %1918 = vmatprep.mubr.msk.bf16.mxu1 %vm445_vm0, %v2479_v23 }
  0x3d   :  { %599 = vmatmul.mubr.bf16.gmra.mxu0 %v2448_v24  ;;  %727 = vmatmul.mubr.bf16.gmra.mxu1 %v2481_v25 }
  0x3e   :  { %1903 = vmatprep.mubr.msk.bf16.mxu0 %vm445_vm0, %v2449_v26  ;;  %1919 = vmatprep.mubr.msk.bf16.mxu1 %vm445_vm0, %v2485_v27 }
  0x45   :  { %607 = vmatmul.mubr.bf16.gmra.mxu0 %v2451_v28  ;;  %735 = vmatmul.mubr.bf16.gmra.mxu1 %v2487_v29 }
  0x46   :  { %1904 = vmatprep.mubr.msk.bf16.mxu0 %vm445_vm0, %v2452_v30  ;;  %1920 = vmatprep.mubr.msk.bf16.mxu1 %vm445_vm0, %v2491_v31 }
  0x4d   :  { %615 = vmatmul.mubr.bf16.gmra.mxu0 %v2454_v32  ;;  %743 = vmatmul.mubr.bf16.gmra.mxu1 %v2493_v33 }
  0x4e   :  { %1905 = vmatprep.mubr.msk.bf16.mxu0 %vm445_vm0, %v2455_v34  ;;  %1921 = vmatprep.mubr.msk.bf16.mxu1 %vm445_vm0, %v2497_v35 }
  0x55   :  { %623 = vmatmul.mubr.bf16.gmra.mxu0 %v2457_v36  ;;  %751 = vmatmul.mubr.bf16.gmra.mxu1 %v2499_v37 }
  0x56   :  { %1906 = vmatprep.mubr.msk.bf16.mxu0 %vm445_vm0, %v2458_v38  ;;  %1922 = vmatprep.mubr.msk.bf16.mxu1 %vm445_vm0, %v2503_v39 }
  0x5d   :  { %631 = vmatmul.mubr.bf16.gmra.mxu0 %v2460_v40  ;;  %759 = vmatmul.mubr.bf16.gmra.mxu1 %v2505_v41 }
  0x5e   :  { %1907 = vmatprep.mubr.msk.bf16.mxu0 %vm445_vm0, %v2464_v42  ;;  %1923 = vmatprep.mubr.msk.bf16.mxu1 %vm445_vm0, %v2509_v43 }
  0x65   :  { %639 = vmatmul.mubr.bf16.gmra.mxu0 %v2466_v44  ;;  %767 = vmatmul.mubr.bf16.gmra.mxu1 %v2511_v45 }
  0x66   :  { %1908 = vmatprep.mubr.msk.bf16.mxu0 %vm445_vm0, %v2470_v46  ;;  %1924 = vmatprep.mubr.msk.bf16.mxu1 %vm445_vm0, %v2512_v47 }
  0x6d   :  { %647 = vmatmul.mubr.bf16.gmra.mxu0 %v2472_v48  ;;  %775 = vmatmul.mubr.bf16.gmra.mxu1 %v2514_v49 }
  0x6e   :  { %1909 = vmatprep.mubr.msk.bf16.mxu0 %vm445_vm0, %v2476_v50  ;;  %1925 = vmatprep.mubr.msk.bf16.mxu1 %vm445_vm0, %v2515_v51 }
  0x75   :  { %655 = vmatmul.mubr.bf16.gmra.mxu0 %v2478_v52  ;;  %783 = vmatmul.mubr.bf16.gmra.mxu1 %v2517_v53 }
  0x76   :  { %1910 = vmatprep.mubr.msk.bf16.mxu0 %vm445_vm0, %v2482_v54  ;;  %1926 = vmatprep.mubr.msk.bf16.mxu1 %vm445_vm0, %v2518_v55 }
  0x7d   :  { %663 = vmatmul.mubr.bf16.gmra.mxu0 %v2484_v56  ;;  %791 = vmatmul.mubr.bf16.gmra.mxu1 %v2520_v57 }
  0x7e   :  { %1911 = vmatprep.mubr.msk.bf16.mxu0 %vm445_vm0, %v2488_v58  ;;  %1927 = vmatprep.mubr.msk.bf16.mxu1 %vm445_vm0, %v2521_v59 }
  0x85   :  { %671 = vmatmul.mubr.bf16.gmra.mxu0 %v2490_v60  ;;  %799 = vmatmul.mubr.bf16.gmra.mxu1 %v2523_v61 }
  0x86   :  { %1912 = vmatprep.mubr.msk.bf16.mxu0 %vm445_vm0, %v2494_v62  ;;  %1928 = vmatprep.mubr.msk.bf16.mxu1 %vm445_vm0, %v2524_v63 }
  0x8d   :  { %679 = vmatmul.mubr.bf16.gmra.mxu0 %v2496_v0  ;;  %807 = vmatmul.mubr.bf16.gmra.mxu1 %v2526_v1 }
  0x8e   :  { %1913 = vmatprep.mubr.msk.bf16.mxu0 %vm445_vm0, %v2500_v2  ;;  %1929 = vmatprep.mubr.msk.bf16.mxu1 %vm445_vm0, %v2527_v3 }
  0x95   :  { %687 = vmatmul.mubr.bf16.gmra.mxu0 %v2502_v4  ;;  %815 = vmatmul.mubr.bf16.gmra.mxu1 %v2529_v5 }
  0x96   :  { %1914 = vmatprep.mubr.msk.bf16.mxu0 %vm445_vm0, %v2506_v6  ;;  %1930 = vmatprep.mubr.msk.bf16.mxu1 %vm445_vm0, %v2530_v7 }
  0x9d   :  { %695 = vmatmul.mubr.bf16.gmra.mxu0 %v2508_v8  ;;  %823 = vmatmul.mubr.bf16.gmra.mxu1 %v2532_v9 }
  0xe5   :  { %v2817_v10 = vpop.f32.mrf.mxu0  ;;  %v2819_v11 = vpop.f32.mrf.mxu1 }
  0xe7   :  { %v578_v12 = vpop.f32.mrf.mxu0  ;;  %v706_v13 = vpop.f32.mrf.mxu1 }
  0xe9   :  { %v2821_v14 = vpop.f32.mrf.mxu0  ;;  %v2823_v15 = vpop.f32.mrf.mxu1 }
  0xeb   :  { %v581_v16 = vpop.f32.mrf.mxu0  ;;  %v709_v17 = vpop.f32.mrf.mxu1 }
  0xec   :  { %v833_v16 = vadd.f32 %v2821_v14, %v2817_v10 }
  0xed   :  { %v2825_v18 = vpop.f32.mrf.mxu0  ;;  %v2827_v19 = vpop.f32.mrf.mxu1 }
  0xee   :  { %4513 = vst [vmem:[#allocation2_spill] sm:$0xff] %v2825_v18 }
  0xef   :  { %v586_v20 = vpop.f32.mrf.mxu0  ;;  %v714_v21 = vpop.f32.mrf.mxu1 }
  0xf0   :  { %v834_v21 = vadd.f32 %v833_v16, %v2825_v18 }
  0xf1   :  { %v2829_v22 = vpop.f32.mrf.mxu0  ;;  %v2831_v23 = vpop.f32.mrf.mxu1 }
  0xf2   :  { %4514 = vst [vmem:[#allocation3_spill] sm:$0xff] %v2829_v22 }
  0xf3   :  { %v589_v24 = vpop.f32.mrf.mxu0  ;;  %v717_v25 = vpop.f32.mrf.mxu1 }
  0xf5   :  { %v2833_v26 = vpop.f32.mrf.mxu0  ;;  %v2835_v27 = vpop.f32.mrf.mxu1 }
  0xf6   :  { %4515 = vst [vmem:[#allocation4_spill] sm:$0xff] %v2833_v26 }
  0xf7   :  { %v594_v28 = vpop.f32.mrf.mxu0  ;;  %v722_v29 = vpop.f32.mrf.mxu1 }
  0xf8   :  { %v835_v28 = vadd.f32 %v834_v21, %v2829_v22 }
  0xf9   :  { %v2837_v30 = vpop.f32.mrf.mxu0  ;;  %v2839_v31 = vpop.f32.mrf.mxu1 }
  0xfb   :  { %v597_v32 = vpop.f32.mrf.mxu0  ;;  %v725_v33 = vpop.f32.mrf.mxu1 }
  0xfc   :  { %v836_v33 = vadd.f32 %v835_v28, %v2833_v26 }
  0xfd   :  { %v2841_v34 = vpop.f32.mrf.mxu0  ;;  %v2843_v35 = vpop.f32.mrf.mxu1 }
  0xff   :  { %v602_v36 = vpop.f32.mrf.mxu0  ;;  %v730_v37 = vpop.f32.mrf.mxu1 }
 0x101   :  { %v2845_v38 = vpop.f32.mrf.mxu0  ;;  %v2847_v39 = vpop.f32.mrf.mxu1 }
 0x103   :  { %v605_v40 = vpop.f32.mrf.mxu0  ;;  %v733_v41 = vpop.f32.mrf.mxu1 }
 0x104   :  { %v837_v40 = vadd.f32 %v836_v33, %v2837_v30 }
 0x105   :  { %v2849_v42 = vpop.f32.mrf.mxu0  ;;  %v2851_v43 = vpop.f32.mrf.mxu1 }
 0x107   :  { %v610_v44 = vpop.f32.mrf.mxu0  ;;  %v738_v45 = vpop.f32.mrf.mxu1 }
 0x108   :  { %v838_v45 = vadd.f32 %v837_v40, %v2841_v34 }
 0x109   :  { %v2853_v46 = vpop.f32.mrf.mxu0  ;;  %v2855_v47 = vpop.f32.mrf.mxu1 }
 0x10b   :  { %v613_v48 = vpop.f32.mrf.mxu0  ;;  %v741_v49 = vpop.f32.mrf.mxu1 }
 0x10d   :  { %v2857_v50 = vpop.f32.mrf.mxu0  ;;  %v2859_v51 = vpop.f32.mrf.mxu1 }
 0x10f   :  { %v618_v52 = vpop.f32.mrf.mxu0  ;;  %v746_v53 = vpop.f32.mrf.mxu1 }
 0x110   :  { %v839_v52 = vadd.f32 %v838_v45, %v2845_v38 }
 0x111   :  { %v2861_v54 = vpop.f32.mrf.mxu0  ;;  %v2863_v55 = vpop.f32.mrf.mxu1 }
 0x113   :  { %v621_v56 = vpop.f32.mrf.mxu0  ;;  %v749_v57 = vpop.f32.mrf.mxu1 }
 0x114   :  { %v840_v57 = vadd.f32 %v839_v52, %v2849_v42 }
 0x115   :  { %v2865_v58 = vpop.f32.mrf.mxu0  ;;  %v2867_v59 = vpop.f32.mrf.mxu1 }
 0x117   :  { %v626_v60 = vpop.f32.mrf.mxu0  ;;  %v754_v61 = vpop.f32.mrf.mxu1 }
 0x119   :  { %v2869_v62 = vpop.f32.mrf.mxu0  ;;  %v2871_v63 = vpop.f32.mrf.mxu1 }
 0x11b   :  { %v629_v0 = vpop.f32.mrf.mxu0  ;;  %v757_v1 = vpop.f32.mrf.mxu1 }
 0x11c   :  { %v841_v0 = vadd.f32 %v840_v57, %v2853_v46 }
 0x11d   :  { %v2873_v2 = vpop.f32.mrf.mxu0  ;;  %v2875_v3 = vpop.f32.mrf.mxu1 }
 0x11e   :  { %4516 = vst [vmem:[#allocation5_spill] sm:$0xff] %v2873_v2 }
 0x11f   :  { %v634_v4 = vpop.f32.mrf.mxu0  ;;  %v762_v5 = vpop.f32.mrf.mxu1 }
 0x120   :  { %v842_v5 = vadd.f32 %v841_v0, %v2857_v50 }
 0x121   :  { %v2877_v6 = vpop.f32.mrf.mxu0  ;;  %v2879_v7 = vpop.f32.mrf.mxu1 }
 0x122   :  { %4517 = vst [vmem:[#allocation6_spill] sm:$0xff] %v2877_v6  ;;  %v843_v16 = vadd.f32 %v842_v5, %v2861_v54 }
 0x123   :  { %v637_v8 = vpop.f32.mrf.mxu0  ;;  %v765_v9 = vpop.f32.mrf.mxu1 }
 0x124   :  { %v844_v21 = vadd.f32 %v843_v16, %v2865_v58 }
 0x125   :  { %v2881_v12 = vpop.f32.mrf.mxu0  ;;  %v2883_v13 = vpop.f32.mrf.mxu1 }
 0x126   :  { %4518 = vst [vmem:[#allocation7_spill] sm:$0xff] %v2881_v12 }
 0x127   :  { %v642_v17 = vpop.f32.mrf.mxu0  ;;  %v770_v20 = vpop.f32.mrf.mxu1 }
 0x129   :  { %v2888_v24 = vpop.f32.mrf.mxu0  ;;  %v2890_v25 = vpop.f32.mrf.mxu1 }
 0x12a   :  { %4519 = vst [vmem:[#allocation8_spill] sm:$0xff] %v2888_v24 }
 0x12b   :  { %v645_v29 = vpop.f32.mrf.mxu0  ;;  %v773_v32 = vpop.f32.mrf.mxu1 }
 0x12c   :  { %v845_v32 = vadd.f32 %v844_v21, %v2869_v62 }
 0x12d   :  { %v2894_v36 = vpop.f32.mrf.mxu0  ;;  %v2896_v37 = vpop.f32.mrf.mxu1 }
 0x12e   :  { %4520 = vst [vmem:[#allocation9_spill] sm:$0xff] %v2894_v36  ;;  %4521 = vst [vmem:[#allocation10_spill] sm:$0xff] %v2896_v37 }
 0x12f   :  { %v650_v41 = vpop.f32.mrf.mxu0  ;;  %v778_v44 = vpop.f32.mrf.mxu1 }
 0x130   :  { %v846_v41 = vadd.f32 %v845_v32, %v2873_v2 }
 0x131   :  { %v2900_v48 = vpop.f32.mrf.mxu0  ;;  %v2902_v49 = vpop.f32.mrf.mxu1 }
 0x132   :  { %4522 = vst [vmem:[#allocation11_spill] sm:$0xff] %v2900_v48  ;;  %4523 = vst [vmem:[#allocation12_spill] sm:$0xff] %v2902_v49  ;;  %v847_v52 = vadd.f32 %v846_v41, %v2877_v6 }
 0x133   :  { %v653_v53 = vpop.f32.mrf.mxu0  ;;  %v781_v56 = vpop.f32.mrf.mxu1 }
 0x134   :  { %v848_v57 = vadd.f32 %v847_v52, %v2881_v12 }
 0x135   :  { %v2906_v60 = vpop.f32.mrf.mxu0  ;;  %v2908_v61 = vpop.f32.mrf.mxu1 }
 0x136   :  { %4524 = vst [vmem:[#allocation13_spill] sm:$0xff] %v2906_v60  ;;  %4525 = vst [vmem:[#allocation14_spill] sm:$0xff] %v2908_v61 }
 0x137   :  { %v658_v1 = vpop.f32.mrf.mxu0  ;;  %v786_v4 = vpop.f32.mrf.mxu1 }
 0x138   :  { %v849_v4 = vadd.f32 %v848_v57, %v2888_v24 }
 0x139   :  { %v2912_v8 = vpop.f32.mrf.mxu0  ;;  %v2914_v9 = vpop.f32.mrf.mxu1 }
 0x13a   :  { %4526 = vst [vmem:[#allocation15_spill] sm:$0xff] %v2912_v8 }
 0x13b   :  { %v661_v17 = vpop.f32.mrf.mxu0  ;;  %v789_v20 = vpop.f32.mrf.mxu1 }
 0x13c   :  { %v850_v17 = vadd.f32 %v849_v4, %v2894_v36 }
 0x13d   :  { %v2918_v28 = vpop.f32.mrf.mxu0  ;;  %v2920_v29 = vpop.f32.mrf.mxu1 }
 0x13e   :  { %4527 = vst [vmem:[#allocation16_spill] sm:$0xff] %v2918_v28  ;;  %4528 = vst [vmem:[#allocation17_spill] sm:$0xff] %v2920_v29  ;;  %v851_v32 = vadd.f32 %v850_v17, %v2900_v48 }
 0x13f   :  { %v666_v33 = vpop.f32.mrf.mxu0  ;;  %v794_v40 = vpop.f32.mrf.mxu1 }
 0x140   :  { %v852_v41 = vadd.f32 %v851_v32, %v2906_v60 }
 0x141   :  { %v2924_v44 = vpop.f32.mrf.mxu0  ;;  %v2926_v45 = vpop.f32.mrf.mxu1 }
 0x142   :  { %4529 = vst [vmem:[#allocation18_spill] sm:$0xff] %v2924_v44  ;;  %4530 = vst [vmem:[#allocation19_spill] sm:$0xff] %v2926_v45 }
 0x143   :  { %v669_v53 = vpop.f32.mrf.mxu0  ;;  %v797_v56 = vpop.f32.mrf.mxu1 }
 0x144   :  { %v853_v56 = vadd.f32 %v852_v41, %v2912_v8 }
 0x145   :  { %v2930_v0 = vpop.f32.mrf.mxu0  ;;  %v2932_v1 = vpop.f32.mrf.mxu1 }
 0x146   :  { %4531 = vst [vmem:[#allocation20_spill] sm:$0xff] %v2930_v0  ;;  %4532 = vst [vmem:[#allocation21_spill] sm:$0xff] %v2932_v1  ;;  %v854_v4 = vadd.f32 %v853_v56, %v2918_v28 }
 0x147   :  { %v674_v5 = vpop.f32.mrf.mxu0  ;;  %v802_v16 = vpop.f32.mrf.mxu1 }
 0x148   :  { %v855_v17 = vadd.f32 %v854_v4, %v2924_v44 }
 0x149   :  { %v2936_v20 = vpop.f32.mrf.mxu0  ;;  %v2938_v21 = vpop.f32.mrf.mxu1 }
 0x14a   :  { %4533 = vst [vmem:[#allocation22_spill] sm:$0xff] %v2936_v20  ;;  %4534 = vst [vmem:[#allocation23_spill] sm:$0xff] %v2938_v21  ;;  %v856_v32 = vadd.f32 %v855_v17, %v2930_v0 }
 0x14b   :  { %v677_v33 = vpop.f32.mrf.mxu0  ;;  %v805_v40 = vpop.f32.mrf.mxu1 }
 0x14c   :  { %v857_v41 = vadd.f32 %v856_v32, %v2936_v20 }
 0x14d   :  { %v2942_v52 = vpop.f32.mrf.mxu0  ;;  %v2944_v53 = vpop.f32.mrf.mxu1 }
 0x14e   :  { %4535 = vst [vmem:[#allocation24_spill] sm:$0xff] %v2942_v52  ;;  %4536 = vst [vmem:[#allocation25_spill] sm:$0xff] %v2944_v53  ;;  %v858_v56 = vadd.f32 %v857_v41, %v2942_v52 }
 0x14f   :  { %v682_v57 = vpop.f32.mrf.mxu0  ;;  %v810_v5 = vpop.f32.mrf.mxu1 }
 0x151   :  { %v2948_v16 = vpop.f32.mrf.mxu0  ;;  %v2950_v36 = vpop.f32.mrf.mxu1 }
 0x152   :  { %4537 = vst [vmem:[#allocation26_spill] sm:$0xff] %v2948_v16  ;;  %4538 = vst [vmem:[#allocation27_spill] sm:$0xff] %v2950_v36  ;;  %v859_v4 = vadd.f32 %v858_v56, %v2948_v16 }
 0x153   :  { %v685_v33 = vpop.f32.mrf.mxu0  ;;  %v813_v40 = vpop.f32.mrf.mxu1 }
 0x155   :  { %v2954_v60 = vpop.f32.mrf.mxu0  ;;  %v2956_v48 = vpop.f32.mrf.mxu1 }
 0x156   :  { %4539 = vst [vmem:[#allocation28_spill] sm:$0xff] %v2954_v60  ;;  %4540 = vst [vmem:[#allocation29_spill] sm:$0xff] %v2956_v48  ;;  %v860_v17 = vadd.f32 %v859_v4, %v2954_v60 }
 0x157   :  { %v690_v57 = vpop.f32.mrf.mxu0  ;;  %v818_v5 = vpop.f32.mrf.mxu1 }
 0x159   :  { %v2960_v28 = vpop.f32.mrf.mxu0  ;;  %v2962_v8 = vpop.f32.mrf.mxu1 }
 0x15a   :  { %4541 = vst [vmem:[#allocation30_spill] sm:$0xff] %v2962_v8  ;;  %v861_v32 = vadd.f32 %v860_v17, %v2960_v28 }
 0x15b   :  { %v693_v33 = vpop.f32.mrf.mxu0  ;;  %v821_v40 = vpop.f32.mrf.mxu1 }
 0x15d   :  { %v2966_v0 = vpop.f32.mrf.mxu0  ;;  %v2968_v44 = vpop.f32.mrf.mxu1 }
 0x15e   :  { %4542 = vst [vmem:[#allocation31_spill] sm:$0xff] %v2966_v0  ;;  %4543 = vst [vmem:[#allocation32_spill] sm:$0xff] %v2968_v44  ;;  %v862_v41 = vadd.f32 %v861_v32, %v2966_v0 }
 0x15f   :  { %v698_v57 = vpop.f32.mrf.mxu0  ;;  %v826_v5 = vpop.f32.mrf.mxu1 }
 0x161   :  { %v2972_v52 = vpop.f32.mrf.mxu0  ;;  %v2974_v20 = vpop.f32.mrf.mxu1 }
 0x162   :  { %v863_v56 = vadd.f32 %v862_v41, %v2972_v52 }
 0x163   :  { %v701_v33 = vpop.f32.mrf.mxu0  ;;  %v829_v40 = vpop.f32.mrf.mxu1 }
 0x164   :  { %v864_v4 = vadd.f32 %v863_v56, %v2819_v11 }
 0x166   :  { %v865_v60 = vadd.f32 %v864_v4, %v2823_v15 }
 0x168   :  { %v866_v16 = vadd.f32 %v865_v60, %v2827_v19 }
 0x16a   :  { %v867_v17 = vadd.f32 %v866_v16, %v2831_v23 }
 0x16c   :  { %v868_v57 = vadd.f32 %v867_v17, %v2835_v27 }
 0x16e   :  { %v869_v32 = vadd.f32 %v868_v57, %v2839_v31 }
 0x170   :  { %v870_v5 = vadd.f32 %v869_v32, %v2843_v35 }
 0x172   :  { %v871_v0 = vadd.f32 %v870_v5, %v2847_v39 }
 0x174   :  { %v872_v41 = vadd.f32 %v871_v0, %v2851_v43 }
 0x176   :  { %v873_v33 = vadd.f32 %v872_v41, %v2855_v47 }
 0x178   :  { %v874_v56 = vadd.f32 %v873_v33, %v2859_v51 }
 0x17a   :  { %v875_v40 = vadd.f32 %v874_v56, %v2863_v55 }
 0x17c   :  { %v876_v60 = vadd.f32 %v875_v40, %v2867_v59 }
 0x17e   :  { %v877_v16 = vadd.f32 %v876_v60, %v2871_v63 }
 0x180   :  { %v878_v4 = vadd.f32 %v877_v16, %v2875_v3 }
 0x182   :  { %v879_v17 = vadd.f32 %v878_v4, %v2879_v7 }
 0x184   :  { %v880_v57 = vadd.f32 %v879_v17, %v2883_v13 }
 0x186   :  { %v881_v32 = vadd.f32 %v880_v57, %v2890_v25 }
 0x188   :  { %v882_v0 = vadd.f32 %v881_v32, %v2896_v37 }
 0x18a   :  { %v883_v5 = vadd.f32 %v882_v0, %v2902_v49 }
 0x18c   :  { %v884_v41 = vadd.f32 %v883_v5, %v2908_v61 }
 0x18e   :  { %v885_v33 = vadd.f32 %v884_v41, %v2914_v9 }
 0x190   :  { %v886_v56 = vadd.f32 %v885_v33, %v2920_v29 }
 0x192   :  { %v887_v40 = vadd.f32 %v886_v56, %v2926_v45 }
 0x194   :  { %v888_v60 = vadd.f32 %v887_v40, %v2932_v1 }
 0x196   :  { %v889_v16 = vadd.f32 %v888_v60, %v2938_v21 }
 0x198   :  { %v890_v4 = vadd.f32 %v889_v16, %v2944_v53 }
 0x19a   :  { %v891_v17 = vadd.f32 %v890_v4, %v2950_v36 }
 0x19c   :  { %v892_v57 = vadd.f32 %v891_v17, %v2956_v48 }
 0x19e   :  { %v893_v32 = vadd.f32 %v892_v57, %v2962_v8 }
 0x1a0   :  { %v894_v0 = vadd.f32 %v893_v32, %v2968_v44 }
 0x1a2   :  { %v895_v5 = vadd.f32 %v894_v0, %v2974_v20 }
 0x1a4   :  { %v896_v41 = vrot.slane %v895_v5, 4 }
 0x1a6   :  { %v897_v33 = vadd.f32 %v896_v41, %v895_v5 }
 0x1a8   :  { %v898_v29 = vrot.slane %v897_v33, 2 }
 0x1aa   :  { %v899_v56 = vadd.f32 %v898_v29, %v897_v33 }
 0x1ac   :  { %v900_v45 = vrot.slane %v899_v56, 1 }
 0x1ae   :  { %v901_v40 = vadd.f32 %v900_v45, %v899_v56 }
 0x1b0   :  { %v3009_v1 = vmul.f32 0.001953125, %v901_v40 }
 0x1b2   :  { %v903_v60 = vsub.f32 %v2817_v10, %v3009_v1  ;;  %v904_v16 = vsub.f32 %v2821_v14, %v3009_v1  ;;  %v905_v4 = vsub.f32 %v2825_v18, %v3009_v1  ;;  %v906_v32 = vsub.f32 %v2829_v22, %v3009_v1 }
 0x1b3   :  { %v907_v29 = vsub.f32 %v2833_v26, %v3009_v1  ;;  %v908_v5 = vsub.f32 %v2837_v30, %v3009_v1  ;;  %v909_v56 = vsub.f32 %v2841_v34, %v3009_v1  ;;  %v911_v26 = vsub.f32 %v2849_v42, %v3009_v1 }
 0x1b4   :  { %v967_v17 = vmul.f32 %v903_v60, %v903_v60  ;;  %v968_v57 = vmul.f32 %v904_v16, %v904_v16  ;;  %v969_v45 = vmul.f32 %v905_v4, %v905_v4  ;;  %v970_v41 = vmul.f32 %v906_v32, %v906_v32 }
 0x1b5   :  { %v971_v40 = vmul.f32 %v907_v29, %v907_v29  ;;  %v910_v60 = vsub.f32 %v2845_v38, %v3009_v1  ;;  %v972_v16 = vmul.f32 %v908_v5, %v908_v5  ;;  %v973_v4 = vmul.f32 %v909_v56, %v909_v56 }
 0x1b6   :  { %v1031_v0 = vadd.f32 %v968_v57, %v967_v17  ;;  %v912_v57 = vsub.f32 %v2853_v46, %v3009_v1  ;;  %v975_v29 = vmul.f32 %v911_v26, %v911_v26 }
 0x1b7   :  { %v974_v32 = vmul.f32 %v910_v60, %v910_v60 }
 0x1b8   :  { %v1032_v33 = vadd.f32 %v1031_v0, %v969_v45  ;;  %v913_v0 = vsub.f32 %v2857_v50, %v3009_v1  ;;  %v976_v5 = vmul.f32 %v912_v57, %v912_v57 }
 0x1ba   :  { %v1033_v18 = vadd.f32 %v1032_v33, %v970_v41  ;;  %v914_v33 = vsub.f32 %v2861_v54, %v3009_v1  ;;  %v977_v56 = vmul.f32 %v913_v0, %v913_v0 }
 0x1bc   :  { %v1034_v22 = vadd.f32 %v1033_v18, %v971_v40  ;;  %v915_v40 = vsub.f32 %v2865_v58, %v3009_v1  ;;  %v978_v60 = vmul.f32 %v914_v33, %v914_v33 }
 0x1be   :  { %v1035_v17 = vadd.f32 %v1034_v22, %v972_v16  ;;  %v916_v16 = vsub.f32 %v2869_v62, %v3009_v1  ;;  %v979_v26 = vmul.f32 %v915_v40, %v915_v40 }
 0x1c0   :  { %v1036_v45 = vadd.f32 %v1035_v17, %v973_v4  ;;  %v917_v17 = vsub.f32 %v2873_v2, %v3009_v1  ;;  %v980_v57 = vmul.f32 %v916_v16, %v916_v16 }
 0x1c2   :  { %v1037_v41 = vadd.f32 %v1036_v45, %v974_v32  ;;  %v918_v45 = vsub.f32 %v2877_v6, %v3009_v1  ;;  %v981_v0 = vmul.f32 %v917_v17, %v917_v17 }
 0x1c4   :  { %v1038_v18 = vadd.f32 %v1037_v41, %v975_v29  ;;  %v919_v41 = vsub.f32 %v2881_v12, %v3009_v1  ;;  %v982_v33 = vmul.f32 %v918_v45, %v918_v45 }
 0x1c6   :  { %v1039_v22 = vadd.f32 %v1038_v18, %v976_v5  ;;  %v920_v18 = vsub.f32 %v2888_v24, %v3009_v1  ;;  %v983_v40 = vmul.f32 %v919_v41, %v919_v41 }
 0x1c8   :  { %v1040_v4 = vadd.f32 %v1039_v22, %v977_v56  ;;  %v4544_v22 = vld [vmem:[#allocation9_spill] sm:$0xff]  ;;  %v984_v16 = vmul.f32 %v920_v18, %v920_v18 }
 0x1c9   :  { %v921_v2 = vsub.f32 %v4544_v22, %v3009_v1 }
 0x1ca   :  { %v1041_v32 = vadd.f32 %v1040_v4, %v978_v60  ;;  %v4545_v4 = vld [vmem:[#allocation11_spill] sm:$0xff] }
 0x1cb   :  { %v922_v6 = vsub.f32 %v4545_v4, %v3009_v1  ;;  %v985_v17 = vmul.f32 %v921_v2, %v921_v2 }
 0x1cc   :  { %v1042_v29 = vadd.f32 %v1041_v32, %v979_v26  ;;  %v4546_v32 = vld [vmem:[#allocation13_spill] sm:$0xff] }
 0x1cd   :  { %v923_v12 = vsub.f32 %v4546_v32, %v3009_v1  ;;  %v986_v45 = vmul.f32 %v922_v6, %v922_v6 }
 0x1ce   :  { %v1043_v5 = vadd.f32 %v1042_v29, %v980_v57  ;;  %v4547_v29 = vld [vmem:[#allocation15_spill] sm:$0xff] }
 0x1cf   :  { %v924_v24 = vsub.f32 %v4547_v29, %v3009_v1  ;;  %v987_v41 = vmul.f32 %v923_v12, %v923_v12 }
 0x1d0   :  { %v1044_v56 = vadd.f32 %v1043_v5, %v981_v0  ;;  %v4548_v5 = vld [vmem:[#allocation16_spill] sm:$0xff] }
 0x1d1   :  { %v925_v22 = vsub.f32 %v4548_v5, %v3009_v1  ;;  %v988_v18 = vmul.f32 %v924_v24, %v924_v24 }
 0x1d2   :  { %v1045_v60 = vadd.f32 %v1044_v56, %v982_v33  ;;  %v4549_v56 = vld [vmem:[#allocation18_spill] sm:$0xff] }
 0x1d3   :  { %v926_v4 = vsub.f32 %v4549_v56, %v3009_v1  ;;  %v989_v2 = vmul.f32 %v925_v22, %v925_v22 }
 0x1d4   :  { %v1046_v26 = vadd.f32 %v1045_v60, %v983_v40  ;;  %v4550_v60 = vld [vmem:[#allocation20_spill] sm:$0xff] }
 0x1d5   :  { %v927_v32 = vsub.f32 %v4550_v60, %v3009_v1  ;;  %v990_v6 = vmul.f32 %v926_v4, %v926_v4 }
 0x1d6   :  { %v1047_v57 = vadd.f32 %v1046_v26, %v984_v16  ;;  %v4551_v26 = vld [vmem:[#allocation22_spill] sm:$0xff] }
 0x1d7   :  { %v928_v29 = vsub.f32 %v4551_v26, %v3009_v1  ;;  %v991_v12 = vmul.f32 %v927_v32, %v927_v32 }
 0x1d8   :  { %v1048_v0 = vadd.f32 %v1047_v57, %v985_v17  ;;  %v4552_v57 = vld [vmem:[#allocation24_spill] sm:$0xff] }
 0x1d9   :  { %v929_v5 = vsub.f32 %v4552_v57, %v3009_v1  ;;  %v992_v24 = vmul.f32 %v928_v29, %v928_v29 }
 0x1da   :  { %v1049_v33 = vadd.f32 %v1048_v0, %v986_v45  ;;  %v4553_v0 = vld [vmem:[#allocation26_spill] sm:$0xff] }
 0x1db   :  { %v930_v56 = vsub.f32 %v4553_v0, %v3009_v1  ;;  %v993_v22 = vmul.f32 %v929_v5, %v929_v5 }
 0x1dc   :  { %v1050_v40 = vadd.f32 %v1049_v33, %v987_v41  ;;  %v4554_v33 = vld [vmem:[#allocation28_spill] sm:$0xff] }
 0x1dd   :  { %v931_v60 = vsub.f32 %v4554_v33, %v3009_v1  ;;  %v994_v4 = vmul.f32 %v930_v56, %v930_v56 }
 0x1de   :  { %v1051_v16 = vadd.f32 %v1050_v40, %v988_v18  ;;  %v932_v40 = vsub.f32 %v2960_v28, %v3009_v1 }
 0x1df   :  { %v995_v32 = vmul.f32 %v931_v60, %v931_v60 }
 0x1e0   :  { %v1052_v17 = vadd.f32 %v1051_v16, %v989_v2  ;;  %v4555_v16 = vld [vmem:[#allocation31_spill] sm:$0xff]  ;;  %v996_v29 = vmul.f32 %v932_v40, %v932_v40 }
 0x1e1   :  { %v933_v57 = vsub.f32 %v4555_v16, %v3009_v1 }
 0x1e2   :  { %v1053_v45 = vadd.f32 %v1052_v17, %v990_v6  ;;  %v934_v17 = vsub.f32 %v2972_v52, %v3009_v1 }
 0x1e3   :  { %v997_v5 = vmul.f32 %v933_v57, %v933_v57 }
 0x1e4   :  { %v1054_v41 = vadd.f32 %v1053_v45, %v991_v12  ;;  %v935_v45 = vsub.f32 %v2819_v11, %v3009_v1  ;;  %v998_v56 = vmul.f32 %v934_v17, %v934_v17 }
 0x1e6   :  { %v1055_v18 = vadd.f32 %v1054_v41, %v992_v24  ;;  %v936_v41 = vsub.f32 %v2823_v15, %v3009_v1  ;;  %v999_v60 = vmul.f32 %v935_v45, %v935_v45 }
 0x1e8   :  { %v1056_v2 = vadd.f32 %v1055_v18, %v993_v22  ;;  %v937_v18 = vsub.f32 %v2827_v19, %v3009_v1  ;;  %v1000_v40 = vmul.f32 %v936_v41, %v936_v41 }
 0x1ea   :  { %v1057_v6 = vadd.f32 %v1056_v2, %v994_v4  ;;  %v938_v2 = vsub.f32 %v2831_v23, %v3009_v1  ;;  %v1001_v57 = vmul.f32 %v937_v18, %v937_v18 }
 0x1ec   :  { %v1058_v12 = vadd.f32 %v1057_v6, %v995_v32  ;;  %v939_v6 = vsub.f32 %v2835_v27, %v3009_v1  ;;  %v1002_v17 = vmul.f32 %v938_v2, %v938_v2 }
 0x1ee   :  { %v1059_v24 = vadd.f32 %v1058_v12, %v996_v29  ;;  %v940_v12 = vsub.f32 %v2839_v31, %v3009_v1  ;;  %v1003_v45 = vmul.f32 %v939_v6, %v939_v6 }
 0x1f0   :  { %v1060_v22 = vadd.f32 %v1059_v24, %v997_v5  ;;  %v941_v24 = vsub.f32 %v2843_v35, %v3009_v1  ;;  %v1004_v41 = vmul.f32 %v940_v12, %v940_v12 }
 0x1f2   :  { %v1061_v4 = vadd.f32 %v1060_v22, %v998_v56  ;;  %v942_v22 = vsub.f32 %v2847_v39, %v3009_v1  ;;  %v1005_v18 = vmul.f32 %v941_v24, %v941_v24 }
 0x1f4   :  { %v1062_v32 = vadd.f32 %v1061_v4, %v999_v60  ;;  %v943_v4 = vsub.f32 %v2851_v43, %v3009_v1  ;;  %v1006_v2 = vmul.f32 %v942_v22, %v942_v22 }
 0x1f6   :  { %v1063_v29 = vadd.f32 %v1062_v32, %v1000_v40  ;;  %v944_v32 = vsub.f32 %v2855_v47, %v3009_v1  ;;  %v1007_v6 = vmul.f32 %v943_v4, %v943_v4 }
 0x1f8   :  { %v1064_v5 = vadd.f32 %v1063_v29, %v1001_v57  ;;  %v945_v29 = vsub.f32 %v2859_v51, %v3009_v1  ;;  %v1008_v12 = vmul.f32 %v944_v32, %v944_v32 }
 0x1fa   :  { %v1065_v56 = vadd.f32 %v1064_v5, %v1002_v17  ;;  %v946_v5 = vsub.f32 %v2863_v55, %v3009_v1  ;;  %v1009_v24 = vmul.f32 %v945_v29, %v945_v29 }
 0x1fc   :  { %v1066_v60 = vadd.f32 %v1065_v56, %v1003_v45  ;;  %v947_v56 = vsub.f32 %v2867_v59, %v3009_v1  ;;  %v1010_v22 = vmul.f32 %v946_v5, %v946_v5 }
 0x1fe   :  { %v1067_v40 = vadd.f32 %v1066_v60, %v1004_v41  ;;  %v948_v60 = vsub.f32 %v2871_v63, %v3009_v1  ;;  %v1011_v4 = vmul.f32 %v947_v56, %v947_v56 }
 0x200   :  { %v1068_v57 = vadd.f32 %v1067_v40, %v1005_v18  ;;  %v949_v40 = vsub.f32 %v2875_v3, %v3009_v1  ;;  %v1012_v32 = vmul.f32 %v948_v60, %v948_v60 }
 0x202   :  { %v1069_v17 = vadd.f32 %v1068_v57, %v1006_v2  ;;  %v950_v57 = vsub.f32 %v2879_v7, %v3009_v1  ;;  %v1013_v29 = vmul.f32 %v949_v40, %v949_v40 }
 0x204   :  { %v1070_v45 = vadd.f32 %v1069_v17, %v1007_v6  ;;  %v951_v17 = vsub.f32 %v2883_v13, %v3009_v1  ;;  %v1014_v5 = vmul.f32 %v950_v57, %v950_v57 }
 0x206   :  { %v1071_v41 = vadd.f32 %v1070_v45, %v1008_v12  ;;  %v952_v45 = vsub.f32 %v2890_v25, %v3009_v1  ;;  %v1015_v56 = vmul.f32 %v951_v17, %v951_v17 }
 0x208   :  { %v1072_v18 = vadd.f32 %v1071_v41, %v1009_v24  ;;  %v953_v41 = vsub.f32 %v2896_v37, %v3009_v1  ;;  %v1016_v60 = vmul.f32 %v952_v45, %v952_v45 }
 0x20a   :  { %v1073_v2 = vadd.f32 %v1072_v18, %v1010_v22  ;;  %v954_v18 = vsub.f32 %v2902_v49, %v3009_v1  ;;  %v1017_v40 = vmul.f32 %v953_v41, %v953_v41 }
 0x20c   :  { %v1074_v6 = vadd.f32 %v1073_v2, %v1011_v4  ;;  %v955_v2 = vsub.f32 %v2908_v61, %v3009_v1  ;;  %v1018_v57 = vmul.f32 %v954_v18, %v954_v18 }
 0x20e   :  { %v1075_v12 = vadd.f32 %v1074_v6, %v1012_v32  ;;  %v956_v6 = vsub.f32 %v2914_v9, %v3009_v1  ;;  %v1019_v17 = vmul.f32 %v955_v2, %v955_v2 }
 0x210   :  { %v1076_v24 = vadd.f32 %v1075_v12, %v1013_v29  ;;  %v4556_v12 = vld [vmem:[#allocation17_spill] sm:$0xff]  ;;  %v1020_v45 = vmul.f32 %v956_v6, %v956_v6 }
 0x211   :  { %v957_v37 = vsub.f32 %v4556_v12, %v3009_v1 }
 0x212   :  { %v1077_v22 = vadd.f32 %v1076_v24, %v1014_v5  ;;  %v4557_v24 = vld [vmem:[#allocation19_spill] sm:$0xff] }
 0x213   :  { %v958_v49 = vsub.f32 %v4557_v24, %v3009_v1  ;;  %v1021_v41 = vmul.f32 %v957_v37, %v957_v37 }
 0x214   :  { %v1078_v4 = vadd.f32 %v1077_v22, %v1015_v56  ;;  %v4558_v22 = vld [vmem:[#allocation21_spill] sm:$0xff] }
 0x215   :  { %v959_v61 = vsub.f32 %v4558_v22, %v3009_v1  ;;  %v1022_v18 = vmul.f32 %v958_v49, %v958_v49 }
 0x216   :  { %v1079_v32 = vadd.f32 %v1078_v4, %v1016_v60  ;;  %v960_v4 = vsub.f32 %v2938_v21, %v3009_v1  ;;  %v1107_v21 = vlaneseq }
 0x217   :  { %v1023_v2 = vmul.f32 %v959_v61, %v959_v61 }
 0x218   :  { %v1080_v29 = vadd.f32 %v1079_v32, %v1017_v40  ;;  %v961_v32 = vsub.f32 %v2944_v53, %v3009_v1  ;;  %v1024_v6 = vmul.f32 %v960_v4, %v960_v4 }
 0x21a   :  { %v1081_v5 = vadd.f32 %v1080_v29, %v1018_v57  ;;  %v962_v29 = vsub.f32 %v2950_v36, %v3009_v1  ;;  %v1025_v37 = vmul.f32 %v961_v32, %v961_v32 }
 0x21c   :  { %v1082_v56 = vadd.f32 %v1081_v5, %v1019_v17  ;;  %v963_v5 = vsub.f32 %v2956_v48, %v3009_v1  ;;  %v1026_v49 = vmul.f32 %v962_v29, %v962_v29 }
 0x21e   :  { %v1083_v60 = vadd.f32 %v1082_v56, %v1020_v45  ;;  %v964_v56 = vsub.f32 %v2962_v8, %v3009_v1  ;;  %v1027_v61 = vmul.f32 %v963_v5, %v963_v5 }
 0x220   :  { %v1084_v40 = vadd.f32 %v1083_v60, %v1021_v41  ;;  %v965_v60 = vsub.f32 %v2968_v44, %v3009_v1  ;;  %v1028_v4 = vmul.f32 %v964_v56, %v964_v56  ;;  %v3144_v56 = vld [vmem:[%s4394_s4] sm:$0xff]  }
 0x221   :  { %4559 = vst [vmem:[#allocation22_spill] sm:$0xff] %v3144_v56  ;;  %v4606_v56 = vld [vmem:[#allocation24_spill] sm:$0xff] }
 0x222   :  { %v1085_v57 = vadd.f32 %v1084_v40, %v1022_v18  ;;  %v966_v40 = vsub.f32 %v2974_v20, %v3009_v1 }
 0x224   :  { %v1086_v17 = vadd.f32 %v1085_v57, %v1023_v2  ;;  %v1029_v57 = vmul.f32 %v965_v60, %v965_v60  ;;  %v1030_v48 = vmul.f32 %v966_v40, %v966_v40  ;;  %v3176_v60 = vld [vmem:[%s4394_s4 + $0x30] sm:$0xff]   ;;  %v3283_v40 = vld [vmem:[%s4394_s4 + $0xa8] sm:$0xff]  }
 0x225   :  { %4565 = vst [vmem:[#allocation21_spill] sm:$0xff] %v3176_v60  ;;  %4580 = vst [vmem:[#allocation47_spill] sm:$0xff] %v3283_v40  ;;  %v3336_v60 = vld [vmem:[%s4394_s4 + $0xe0] sm:$0xff]  }
 0x226   :  { %v1087_v45 = vadd.f32 %v1086_v17, %v1024_v6  ;;  %4587 = vst [vmem:[#allocation54_spill] sm:$0xff] %v3336_v60  ;;  %v4599_v60 = vld [vmem:[#allocation9_spill] sm:$0xff] }
 0x228   :  { %v1088_v41 = vadd.f32 %v1087_v45, %v1025_v37 }
 0x22a   :  { %v1089_v18 = vadd.f32 %v1088_v41, %v1026_v49  ;;  %v3139_v49 = vshrl.u32 %v1107_v21, 7  ;;  %v3171_v41 = vld [vmem:[%s4394_s4 + $0x28] sm:$0xff]   ;;  %v3309_v21 = vld [vmem:[%s4394_s4 + $0xc0] sm:$0xff]  }
 0x22b   :  { %4564 = vst [vmem:[#allocation19_spill] sm:$0xff] %v3171_v41  ;;  %4583 = vst [vmem:[#allocation50_spill] sm:$0xff] %v3309_v21  ;;  %v3323_v41 = vld [vmem:[%s4394_s4 + $0xd0] sm:$0xff]   ;;  %v3369_v21 = vld [vmem:[%s4394_s4 + $0xf8] sm:$0xff]  }
 0x22c   :  { %v1090_v2 = vadd.f32 %v1089_v18, %v1027_v61  ;;  %v3232_v18 = vld [vmem:[%s4394_s4 + $0x70] sm:$0xff]   ;;  %4585 = vst [vmem:[#allocation52_spill] sm:$0xff] %v3323_v41  ;;  %4591 = vst [vmem:[#allocation57_spill] sm:$0xff] %v3369_v21  ;;  %v4596_v21 = vld [vmem:[#allocation6_spill] sm:$0xff] }
 0x22d   :  { %4573 = vst [vmem:[#allocation40_spill] sm:$0xff] %v3232_v18  ;;  %v3300_v18 = vld [vmem:[%s4394_s4 + $0xb8] sm:$0xff]   ;;  %v4594_v41 = vld [vmem:[#allocation4_spill] sm:$0xff] }
 0x22e   :  { %v1091_v36 = vadd.f32 %v1090_v2, %v1028_v4  ;;  %v3185_v2 = vld [vmem:[%s4394_s4 + $0x38] sm:$0xff]   ;;  %v3218_v4 = vld [vmem:[%s4394_s4 + $0x60] sm:$0xff]   ;;  %4582 = vst [vmem:[#allocation49_spill] sm:$0xff] %v3300_v18 }
 0x22f   :  { %4566 = vst [vmem:[#allocation33_spill] sm:$0xff] %v3185_v2  ;;  %4571 = vst [vmem:[#allocation38_spill] sm:$0xff] %v3218_v4  ;;  %v3331_v4 = vld [vmem:[%s4394_s4 + $0xd8] sm:$0xff]   ;;  %v3355_v2 = vld [vmem:[%s4396_s3] sm:$0x1] }
 0x230   :  { %v1092_v32 = vadd.f32 %v1091_v36, %v1029_v57  ;;  %v3149_v36 = vld [vmem:[%s4394_s4 + $0x8] sm:$0xff]   ;;  %v3190_v57 = vld [vmem:[%s4394_s4 + $0x40] sm:$0xff]   ;;  %4586 = vst [vmem:[#allocation53_spill] sm:$0xff] %v3331_v4 }
 0x231   :  { %4560 = vst [vmem:[#allocation26_spill] sm:$0xff] %v3149_v36  ;;  %4567 = vst [vmem:[#allocation34_spill] sm:$0xff] %v3190_v57  ;;  %v4600_v4 = vld [vmem:[#allocation11_spill] sm:$0xff]  ;;  %v4605_v36 = vld [vmem:[#allocation20_spill] sm:$0xff] }
 0x232   :  { %v1093_v6 = vadd.f32 %v1092_v32, %v1030_v48  ;;  %v3154_v48 = vld [vmem:[%s4394_s4 + $0x10] sm:$0xff]   ;;  %v3255_v32 = vld [vmem:[%s4394_s4 + $0x88] sm:$0xff]  }
 0x233   :  { %4561 = vst [vmem:[#allocation28_spill] sm:$0xff] %v3154_v48  ;;  %4576 = vst [vmem:[#allocation43_spill] sm:$0xff] %v3255_v32  ;;  %v4590_v32 = vsub.s32 0, %v3139_v49  ;;  %v4604_v48 = vld [vmem:[#allocation18_spill] sm:$0xff] }
 0x234   :  { %v1094_v17 = vrot.slane %v1093_v6, 4 }
 0x236   :  { %v1095_v53 = vadd.f32 %v1094_v17, %v1093_v6  ;;  %v3227_v17 = vld [vmem:[%s4394_s4 + $0x68] sm:$0xff]   ;;  %v3241_v6 = vld [vmem:[%s4394_s4 + $0x78] sm:$0xff]  }
 0x237   :  { %4572 = vst [vmem:[#allocation39_spill] sm:$0xff] %v3227_v17  ;;  %4574 = vst [vmem:[#allocation41_spill] sm:$0xff] %v3241_v6  ;;  %v3288_v17 = vld [vmem:[%s4394_s4 + $0xb0] sm:$0xff]   ;;  %v3314_v6 = vld [vmem:[%s4394_s4 + $0xc8] sm:$0xff]  }
 0x238   :  { %v1096_v8 = vrot.slane %v1095_v53, 2  ;;  %4581 = vst [vmem:[#allocation48_spill] sm:$0xff] %v3288_v17  ;;  %4584 = vst [vmem:[#allocation51_spill] sm:$0xff] %v3314_v6  ;;  %v4593_v6 = vld [vmem:[#allocation3_spill] sm:$0xff] }
 0x23a   :  { %v1097_v29 = vadd.f32 %v1096_v8, %v1095_v53  ;;  %v3159_v8 = vld [vmem:[%s4394_s4 + $0x18] sm:$0xff]   ;;  %v3246_v53 = vld [vmem:[%s4394_s4 + $0x80] sm:$0xff]  }
 0x23b   :  { %4562 = vst [vmem:[#allocation31_spill] sm:$0xff] %v3159_v8  ;;  %4575 = vst [vmem:[#allocation42_spill] sm:$0xff] %v3246_v53  ;;  %v3345_v53 = vld [vmem:[%s4394_s4 + $0xe8] sm:$0xff]   ;;  %v4603_v8 = vld [vmem:[#allocation16_spill] sm:$0xff] }
 0x23c   :  { %v1098_v37 = vrot.slane %v1097_v29, 1  ;;  %4588 = vst [vmem:[#allocation55_spill] sm:$0xff] %v3345_v53  ;;  %v4598_v53 = vld [vmem:[#allocation8_spill] sm:$0xff] }
 0x23e   :  { %v1099_v45 = vadd.f32 %v1098_v37, %v1097_v29  ;;  %v3199_v37 = vld [vmem:[%s4394_s4 + $0x48] sm:$0xff]   ;;  %v3213_v29 = vld [vmem:[%s4394_s4 + $0x58] sm:$0xff]  }
 0x23f   :  { %4568 = vst [vmem:[#allocation35_spill] sm:$0xff] %v3199_v37  ;;  %4570 = vst [vmem:[#allocation37_spill] sm:$0xff] %v3213_v29  ;;  %v3260_v37 = vld [vmem:[%s4394_s4 + $0x90] sm:$0xff]   ;;  %v3274_v29 = vld [vmem:[%s4394_s4 + $0xa0] sm:$0xff]  }
 0x240   :  { %v1100_v44 = vmul.f32 0.001953125, %v1099_v45  ;;  %v3204_v45 = vld [vmem:[%s4394_s4 + $0x50] sm:$0xff]   ;;  %4577 = vst [vmem:[#allocation44_spill] sm:$0xff] %v3260_v37  ;;  %4579 = vst [vmem:[#allocation46_spill] sm:$0xff] %v3274_v29  ;;  %v4601_v29 = vld [vmem:[#allocation13_spill] sm:$0xff] }
 0x241   :  { %4569 = vst [vmem:[#allocation36_spill] sm:$0xff] %v3204_v45  ;;  %v831_v45 = vld [vmem:[%s4395_s2] sm:$0x1]  ;;  %v3350_v37 = vld [vmem:[%s4394_s4 + $0xf0] sm:$0xff]  }
 0x242   :  { %v1101_v5 = vadd.f32 1e-05, %v1100_v44  ;;  %v3164_v44 = vld [vmem:[%s4394_s4 + $0x20] sm:$0xff]   ;;  %4589 = vst [vmem:[#allocation56_spill] sm:$0xff] %v3350_v37  ;;  %v4597_v37 = vld [vmem:[#allocation7_spill] sm:$0xff] }
 0x243   :  { %4563 = vst [vmem:[#allocation17_spill] sm:$0xff] %v3164_v44  ;;  %v4602_v44 = vld [vmem:[#allocation15_spill] sm:$0xff] }
 0x244   :  { %2533 = vrsqrt.f32 %v1101_v5  ;;  %v3269_v5 = vld [vmem:[%s4394_s4 + $0x98] sm:$0xff]  }
 0x245   :  { %4578 = vst [vmem:[#allocation45_spill] sm:$0xff] %v3269_v5 }
 0x251   :  { %v2534_v61 = vpop.eup %2533 }
 0x252   :  { %v1103_v5 = vmul.f32 %v2534_v61, %v831_v45 }
 0x254   :  { %v3358_v61 = vmul.f32 %v1103_v5, %v3009_v1  ;;  %v3362_v45 = vrot.slane %v1103_v5, %v4590_v32  ;;  %v4592_v5 = vld [vmem:[#allocation2_spill] sm:$0xff]  ;;  %v4595_v1 = vld [vmem:[#allocation5_spill] sm:$0xff] }
 0x256   :  { %v3383_v18 = vmul.f32 %v3362_v45, %v2817_v10  ;;  %v3389_v32 = vmul.f32 %v3362_v45, %v2821_v14  ;;  %v3393_v57 = vmul.f32 %v3362_v45, %v4592_v5  ;;  %v3397_v40 = vmul.f32 %v3362_v45, %v4593_v6 }
 0x257   :  { %v3401_v10 = vmul.f32 %v3362_v45, %v4594_v41  ;;  %v3405_v17 = vmul.f32 %v3362_v45, %v2837_v30  ;;  %v3409_v14 = vmul.f32 %v3362_v45, %v2841_v34  ;;  %v3413_v5 = vmul.f32 %v3362_v45, %v2845_v38 }
 0x258   :  { %v3417_v6 = vmul.f32 %v3362_v45, %v2849_v42  ;;  %v3421_v41 = vmul.f32 %v3362_v45, %v2853_v46  ;;  %v3425_v30 = vmul.f32 %v3362_v45, %v2857_v50  ;;  %v3429_v34 = vmul.f32 %v3362_v45, %v2861_v54 }
 0x259   :  { %v3433_v38 = vmul.f32 %v3362_v45, %v2865_v58  ;;  %v3437_v42 = vmul.f32 %v3362_v45, %v2869_v62  ;;  %v3441_v46 = vmul.f32 %v3362_v45, %v4595_v1  ;;  %v3445_v50 = vmul.f32 %v3362_v45, %v4596_v21 }
 0x25a   :  { %v3449_v54 = vmul.f32 %v3362_v45, %v4597_v37  ;;  %v3453_v58 = vmul.f32 %v3362_v45, %v4598_v53  ;;  %v3457_v62 = vmul.f32 %v3362_v45, %v4599_v60  ;;  %v3461_v1 = vmul.f32 %v3362_v45, %v4600_v4 }
 0x25b   :  { %v3465_v21 = vmul.f32 %v3362_v45, %v4601_v29  ;;  %v3469_v37 = vmul.f32 %v3362_v45, %v4602_v44  ;;  %v3473_v53 = vmul.f32 %v3362_v45, %v4603_v8  ;;  %v3477_v60 = vmul.f32 %v3362_v45, %v4604_v48 }
 0x25c   :  { %v3481_v4 = vmul.f32 %v3362_v45, %v4605_v36  ;;  %v3485_v29 = vmul.f32 %v3362_v45, %v4551_v26  ;;  %v3489_v44 = vmul.f32 %v3362_v45, %v4606_v56  ;;  %v3493_v8 = vmul.f32 %v3362_v45, %v4553_v0 }
 0x25d   :  { %v3497_v48 = vmul.f32 %v3362_v45, %v4554_v33  ;;  %v3501_v36 = vmul.f32 %v3362_v45, %v2960_v28  ;;  %v3505_v26 = vmul.f32 %v3362_v45, %v4555_v16  ;;  %v3509_v56 = vmul.f32 %v3362_v45, %v2972_v52 }
 0x25e   :  { %v3513_v0 = vmul.f32 %v3362_v45, %v2819_v11  ;;  %v3517_v33 = vmul.f32 %v3362_v45, %v2823_v15  ;;  %v3521_v28 = vmul.f32 %v3362_v45, %v2827_v19  ;;  %v3525_v16 = vmul.f32 %v3362_v45, %v2831_v23 }
 0x25f   :  { %v3529_v52 = vmul.f32 %v3362_v45, %v2835_v27  ;;  %v3533_v11 = vmul.f32 %v3362_v45, %v2839_v31  ;;  %v3537_v15 = vmul.f32 %v3362_v45, %v2843_v35  ;;  %v3541_v19 = vmul.f32 %v3362_v45, %v2847_v39 }
 0x260   :  { %v3545_v23 = vmul.f32 %v3362_v45, %v2851_v43  ;;  %v3549_v27 = vmul.f32 %v3362_v45, %v2855_v47  ;;  %v3553_v31 = vmul.f32 %v3362_v45, %v2859_v51  ;;  %v3557_v35 = vmul.f32 %v3362_v45, %v2863_v55 }
 0x261   :  { %v3561_v39 = vmul.f32 %v3362_v45, %v2867_v59  ;;  %v3565_v43 = vmul.f32 %v3362_v45, %v2871_v63  ;;  %v3569_v47 = vmul.f32 %v3362_v45, %v2875_v3  ;;  %v3573_v51 = vmul.f32 %v3362_v45, %v2879_v7 }
 0x262   :  { %v3577_v55 = vmul.f32 %v3362_v45, %v2883_v13  ;;  %v3581_v59 = vmul.f32 %v3362_v45, %v2890_v25  ;;  %v3597_v13 = vmul.f32 %v3362_v45, %v2914_v9  ;;  %v3601_v25 = vmul.f32 %v3362_v45, %v4556_v12 }
 0x263   :  { %4607 = vst [vmem:[#allocation2_spill] sm:$0xff] %v3561_v39  ;;  %4608 = vst [vmem:[#allocation3_spill] sm:$0xff] %v3565_v43  ;;  %v4610_v39 = vld [vmem:[#allocation10_spill] sm:$0xff]  ;;  %v4611_v43 = vld [vmem:[#allocation12_spill] sm:$0xff] }
 0x264   :  { %4609 = vst [vmem:[#allocation4_spill] sm:$0xff] %v3569_v47  ;;  %v3585_v63 = vmul.f32 %v3362_v45, %v4610_v39  ;;  %v3589_v3 = vmul.f32 %v3362_v45, %v4611_v43  ;;  %v4613_v47 = vld [vmem:[#allocation14_spill] sm:$0xff]  ;;  %4615 = vst [vmem:[#allocation7_spill] sm:$0xff] %v3597_v13  ;;  %v3605_v39 = vmul.f32 %v3362_v45, %v4557_v24  ;;  %v4623_v13 = vld [vmem:[#allocation27_spill] sm:$0xff] }
 0x265   :  { %v3593_v7 = vmul.f32 %v3362_v45, %v4613_v47  ;;  %4616 = vst [vmem:[#allocation8_spill] sm:$0xff] %v3601_v25  ;;  %v3609_v43 = vmul.f32 %v3362_v45, %v4558_v22  ;;  %v3621_v12 = vmul.f32 %v3362_v45, %v4623_v13  ;;  %v4624_v25 = vsub.s32 0, %v3139_v49  ;;  %v4626_v22 = vld [vmem:[#allocation29_spill] sm:$0xff] }
 0x266   :  { %4612 = vst [vmem:[#allocation5_spill] sm:$0xff] %v3589_v3  ;;  %4617 = vst [vmem:[#allocation9_spill] sm:$0xff] %v3605_v39  ;;  %v4619_v3 = vld [vmem:[#allocation23_spill] sm:$0xff]  ;;  %v4625_v24 = vsub.f32 %v3355_v2, %v3358_v61  ;;  %v3644_v49 = vmul.f32 %v3362_v45, %v2974_v20 }
 0x267   :  { %4614 = vst [vmem:[#allocation6_spill] sm:$0xff] %v3593_v7  ;;  %4618 = vst [vmem:[#allocation11_spill] sm:$0xff] %v3609_v43  ;;  %v3613_v47 = vmul.f32 %v3362_v45, %v4619_v3  ;;  %v4621_v7 = vld [vmem:[#allocation25_spill] sm:$0xff]  ;;  %v3632_v43 = vmul.f32 %v3362_v45, %v4626_v22  ;;  %v4627_v3 = vld [vmem:[#allocation30_spill] sm:$0xff] }
 0x268   :  { %v3617_v9 = vmul.f32 %v3362_v45, %v4621_v7  ;;  %v3628_v39 = vrot.slane %v4625_v24, %v4624_v25  ;;  %v4628_v7 = vld [vmem:[#allocation32_spill] sm:$0xff] }
 0x269   :  { %4620 = vst [vmem:[#allocation13_spill] sm:$0xff] %v3613_v47  ;;  %v3636_v47 = vmul.f32 %v3362_v45, %v4627_v3 }
 0x26a   :  { %4622 = vst [vmem:[#allocation15_spill] sm:$0xff] %v3617_v9  ;;  %v3640_v9 = vmul.f32 %v3362_v45, %v4628_v7  ;;  %v3648_v2 = vadd.f32 %v3628_v39, %v3383_v18  ;;  %v3652_v61 = vadd.f32 %v3628_v39, %v3389_v32  ;;  %v3656_v13 = vadd.f32 %v3628_v39, %v3393_v57  ;;  %v4630_v24 = vld [vmem:[#allocation3_spill] sm:$0xff] }
 0x26b   :  { %v3660_v25 = vadd.f32 %v3628_v39, %v3397_v40  ;;  %v3664_v20 = vadd.f32 %v3628_v39, %v3401_v10  ;;  %v3668_v18 = vadd.f32 %v3628_v39, %v3405_v17  ;;  %v3672_v45 = vadd.f32 %v3628_v39, %v3409_v14  ;;  %v4631_v22 = vld [vmem:[#allocation4_spill] sm:$0xff] }
 0x26c   :  { %v3676_v57 = vadd.f32 %v3628_v39, %v3413_v5  ;;  %v3680_v40 = vadd.f32 %v3628_v39, %v3417_v6  ;;  %v3684_v32 = vadd.f32 %v3628_v39, %v3421_v41  ;;  %v3688_v17 = vadd.f32 %v3628_v39, %v3425_v30 }
 0x26d   :  { %v3692_v10 = vadd.f32 %v3628_v39, %v3429_v34  ;;  %v3696_v14 = vadd.f32 %v3628_v39, %v3433_v38  ;;  %v3700_v5 = vadd.f32 %v3628_v39, %v3437_v42  ;;  %v3704_v6 = vadd.f32 %v3628_v39, %v3441_v46 }
 0x26e   :  { %v3708_v41 = vadd.f32 %v3628_v39, %v3445_v50  ;;  %v3712_v30 = vadd.f32 %v3628_v39, %v3449_v54  ;;  %v3716_v34 = vadd.f32 %v3628_v39, %v3453_v58  ;;  %v3720_v38 = vadd.f32 %v3628_v39, %v3457_v62 }
 0x26f   :  { %v3724_v42 = vadd.f32 %v3628_v39, %v3461_v1  ;;  %v3728_v46 = vadd.f32 %v3628_v39, %v3465_v21  ;;  %v3732_v50 = vadd.f32 %v3628_v39, %v3469_v37  ;;  %v3736_v54 = vadd.f32 %v3628_v39, %v3473_v53 }
 0x270   :  { %v3740_v58 = vadd.f32 %v3628_v39, %v3477_v60  ;;  %v3744_v62 = vadd.f32 %v3628_v39, %v3481_v4  ;;  %v3748_v1 = vadd.f32 %v3628_v39, %v3485_v29  ;;  %v3752_v21 = vadd.f32 %v3628_v39, %v3489_v44 }
 0x271   :  { %v3756_v37 = vadd.f32 %v3628_v39, %v3493_v8  ;;  %v3760_v53 = vadd.f32 %v3628_v39, %v3497_v48  ;;  %v3764_v60 = vadd.f32 %v3628_v39, %v3501_v36  ;;  %v3768_v4 = vadd.f32 %v3628_v39, %v3505_v26 }
 0x272   :  { %v3772_v29 = vadd.f32 %v3628_v39, %v3509_v56  ;;  %v3776_v44 = vadd.f32 %v3628_v39, %v3513_v0  ;;  %v3780_v8 = vadd.f32 %v3628_v39, %v3517_v33  ;;  %v3784_v48 = vadd.f32 %v3628_v39, %v3521_v28 }
 0x273   :  { %v3788_v36 = vadd.f32 %v3628_v39, %v3525_v16  ;;  %v3792_v26 = vadd.f32 %v3628_v39, %v3529_v52  ;;  %v3796_v56 = vadd.f32 %v3628_v39, %v3533_v11  ;;  %v3800_v0 = vadd.f32 %v3628_v39, %v3537_v15  ;;  %v4629_v15 = vld [vmem:[#allocation2_spill] sm:$0xff] }
 0x274   :  { %v3804_v33 = vadd.f32 %v3628_v39, %v3541_v19  ;;  %v3808_v28 = vadd.f32 %v3628_v39, %v3545_v23  ;;  %v3812_v16 = vadd.f32 %v3628_v39, %v3549_v27  ;;  %v3816_v52 = vadd.f32 %v3628_v39, %v3553_v31 }
 0x275   :  { %v3820_v11 = vadd.f32 %v3628_v39, %v3557_v35  ;;  %v3824_v19 = vadd.f32 %v3628_v39, %v4629_v15  ;;  %v3828_v23 = vadd.f32 %v3628_v39, %v4630_v24  ;;  %v3832_v27 = vadd.f32 %v3628_v39, %v4631_v22  ;;  %v4636_v15 = vld [vmem:[#allocation5_spill] sm:$0xff]  ;;  %v4638_v22 = vld [vmem:[#allocation6_spill] sm:$0xff] }
 0x276   :  { %v3836_v31 = vadd.f32 %v3628_v39, %v3573_v51  ;;  %v3840_v35 = vadd.f32 %v3628_v39, %v3577_v55  ;;  %v3844_v3 = vadd.f32 %v3628_v39, %v3581_v59  ;;  %v3848_v7 = vadd.f32 %v3628_v39, %v3585_v63 }
 0x277   :  { %v3852_v24 = vadd.f32 %v3628_v39, %v4636_v15  ;;  %v3856_v51 = vadd.f32 %v3628_v39, %v4638_v22 }
 0x278   :  { %4632 = vst [vmem:[#allocation16_spill] sm:$0xff] %v3836_v31  ;;  %4633 = vst [vmem:[#allocation18_spill] sm:$0xff] %v3840_v35  ;;  %v4640_v31 = vld [vmem:[#allocation7_spill] sm:$0xff]  ;;  %v4641_v35 = vld [vmem:[#allocation8_spill] sm:$0xff] }
 0x279   :  { %4634 = vst [vmem:[#allocation20_spill] sm:$0xff] %v3844_v3  ;;  %4635 = vst [vmem:[#allocation24_spill] sm:$0xff] %v3848_v7  ;;  %v3860_v55 = vadd.f32 %v3628_v39, %v4640_v31  ;;  %v3864_v59 = vadd.f32 %v3628_v39, %v4641_v35  ;;  %v4642_v3 = vld [vmem:[#allocation9_spill] sm:$0xff]  ;;  %v4643_v7 = vld [vmem:[#allocation11_spill] sm:$0xff]  ;;  %v3884_v35 = vadd.f32 %v3628_v39, %v3621_v12 }
 0x27a   :  { %4637 = vst [vmem:[#allocation10_spill] sm:$0xff] %v3852_v24  ;;  %4639 = vst [vmem:[#allocation12_spill] sm:$0xff] %v3856_v51  ;;  %v3868_v63 = vadd.f32 %v3628_v39, %v4642_v3  ;;  %v3872_v15 = vadd.f32 %v3628_v39, %v4643_v7  ;;  %v4644_v24 = vld [vmem:[#allocation13_spill] sm:$0xff]  ;;  %v4646_v51 = vld [vmem:[#allocation15_spill] sm:$0xff]  ;;  %v3888_v3 = vadd.f32 %v3628_v39, %v3632_v43 }
 0x27b   :  { %v3876_v22 = vadd.f32 %v3628_v39, %v4644_v24  ;;  %v3880_v31 = vadd.f32 %v3628_v39, %v4646_v51  ;;  %4648 = vst [vmem:[#allocation25_spill] sm:$0xff] %v3884_v35  ;;  %v3892_v7 = vadd.f32 %v3628_v39, %v3636_v47  ;;  %v3896_v24 = vadd.f32 %v3628_v39, %v3640_v9  ;;  %v4657_v47 = vld [vmem:[#allocation26_spill] sm:$0xff] }
 0x27c   :  { %4649 = vst [vmem:[#allocation27_spill] sm:$0xff] %v3888_v3  ;;  %v3900_v51 = vadd.f32 %v3628_v39, %v3644_v49  ;;  %v4660_v9 = vunpack.c.h.bf16 %v4657_v47  ;;  %v4662_v49 = vld [vmem:[#allocation28_spill] sm:$0xff] }
 0x27d   :  { %4645 = vst [vmem:[#allocation14_spill] sm:$0xff] %v3876_v22  ;;  %4647 = vst [vmem:[#allocation23_spill] sm:$0xff] %v3880_v31  ;;  %v4652_v31 = vld [vmem:[#allocation22_spill] sm:$0xff] }
 0x27e   :  { %4650 = vst [vmem:[#allocation29_spill] sm:$0xff] %v3892_v7  ;;  %4651 = vst [vmem:[#allocation30_spill] sm:$0xff] %v3900_v51  ;;  %v4653_v12 = vunpack.c.l.bf16 %v4652_v31  ;;  %v4655_v43 = vunpack.c.h.bf16 %v4652_v31  ;;  %v4658_v7 = vunpack.c.l.bf16 %v4657_v47  ;;  %v3920_v39 = vadd.f32 %v4660_v9, %v3660_v25  ;;  %v4669_v47 = vld [vmem:[#allocation17_spill] sm:$0xff] }
 0x27f   :  { %v4663_v51 = vunpack.c.l.bf16 %v4662_v49  ;;  %v4665_v31 = vunpack.c.h.bf16 %v4662_v49  ;;  %v4670_v9 = vunpack.c.l.bf16 %v4669_v47  ;;  %v4672_v49 = vld [vmem:[#allocation19_spill] sm:$0xff] }
 0x280   :  { %v3905_v35 = vadd.f32 %v4653_v12, %v3648_v2  ;;  %v3910_v3 = vadd.f32 %v4655_v43, %v3652_v61  ;;  %v3915_v22 = vadd.f32 %v4658_v7, %v3656_v13  ;;  %4661 = vst [vmem:[#allocation4_spill] sm:$0xff] %v3920_v39  ;;  %v4666_v12 = vld [vmem:[#allocation31_spill] sm:$0xff] }
 0x281   :  { %v3925_v2 = vadd.f32 %v4663_v51, %v3664_v20  ;;  %v3930_v61 = vadd.f32 %v4665_v31, %v3668_v18  ;;  %v4667_v43 = vunpack.c.l.bf16 %v4666_v12  ;;  %v4668_v7 = vunpack.c.h.bf16 %v4666_v12 }
 0x282   :  { %4654 = vst [vmem:[#allocation32_spill] sm:$0xff] %v3905_v35  ;;  %4656 = vst [vmem:[#allocation2_spill] sm:$0xff] %v3910_v3  ;;  %v3945_v20 = vadd.f32 %v4670_v9, %v3680_v40  ;;  %v4671_v51 = vunpack.c.h.bf16 %v4669_v47  ;;  %v4673_v31 = vunpack.c.l.bf16 %v4672_v49  ;;  %v4674_v12 = vunpack.c.h.bf16 %v4672_v49  ;;  %v4678_v9 = vld [vmem:[#allocation33_spill] sm:$0xff] }
 0x283   :  { %4659 = vst [vmem:[#allocation3_spill] sm:$0xff] %v3915_v22  ;;  %4664 = vst [vmem:[#allocation5_spill] sm:$0xff] %v3925_v2  ;;  %v3935_v13 = vadd.f32 %v4667_v43, %v3672_v45  ;;  %v3940_v25 = vadd.f32 %v4668_v7, %v3676_v57  ;;  %v4675_v43 = vld [vmem:[#allocation21_spill] sm:$0xff]  ;;  %v4680_v49 = vunpack.c.h.bf16 %v4678_v9 }
 0x284   :  { %v3950_v18 = vadd.f32 %v4671_v51, %v3684_v32  ;;  %v3955_v45 = vadd.f32 %v4673_v31, %v3688_v17  ;;  %v3960_v57 = vadd.f32 %v4674_v12, %v3692_v10  ;;  %v4676_v7 = vunpack.c.l.bf16 %v4675_v43  ;;  %v4681_v31 = vld [vmem:[#allocation34_spill] sm:$0xff] }
 0x285   :  { %v4677_v47 = vunpack.c.h.bf16 %v4675_v43  ;;  %v4679_v51 = vunpack.c.l.bf16 %v4678_v9  ;;  %v3980_v10 = vadd.f32 %v4680_v49, %v3708_v41  ;;  %v4682_v12 = vunpack.c.l.bf16 %v4681_v31 }
 0x286   :  { %v3965_v40 = vadd.f32 %v4676_v7, %v3696_v14  ;;  %v4683_v43 = vunpack.c.h.bf16 %v4681_v31  ;;  %v4684_v7 = vld [vmem:[#allocation35_spill] sm:$0xff] }
 0x287   :  { %v3970_v32 = vadd.f32 %v4677_v47, %v3700_v5  ;;  %v3975_v17 = vadd.f32 %v4679_v51, %v3704_v6  ;;  %v3985_v14 = vadd.f32 %v4682_v12, %v3712_v30  ;;  %v4685_v47 = vunpack.c.l.bf16 %v4684_v7  ;;  %v4687_v51 = vld [vmem:[#allocation36_spill] sm:$0xff]  ;;  %v4690_v12 = vld [vmem:[#allocation37_spill] sm:$0xff] }
 0x288   :  { %v3990_v5 = vadd.f32 %v4683_v43, %v3716_v34  ;;  %v4686_v9 = vunpack.c.h.bf16 %v4684_v7  ;;  %v4688_v49 = vunpack.c.l.bf16 %v4687_v51  ;;  %v4689_v31 = vunpack.c.h.bf16 %v4687_v51 }
 0x289   :  { %v3995_v6 = vadd.f32 %v4685_v47, %v3720_v38  ;;  %v4691_v43 = vunpack.c.l.bf16 %v4690_v12  ;;  %v4692_v7 = vunpack.c.h.bf16 %v4690_v12  ;;  %v4693_v47 = vld [vmem:[#allocation38_spill] sm:$0xff] }
 0x28a   :  { %v4000_v41 = vadd.f32 %v4686_v9, %v3724_v42  ;;  %v4005_v30 = vadd.f32 %v4688_v49, %v3728_v46  ;;  %v4010_v34 = vadd.f32 %v4689_v31, %v3732_v50  ;;  %v4694_v9 = vunpack.c.l.bf16 %v4693_v47  ;;  %v4696_v49 = vld [vmem:[#allocation39_spill] sm:$0xff] }
 0x28b   :  { %v4015_v38 = vadd.f32 %v4691_v43, %v3736_v54  ;;  %v4020_v42 = vadd.f32 %v4692_v7, %v3740_v58  ;;  %v4695_v51 = vunpack.c.h.bf16 %v4693_v47  ;;  %v4697_v31 = vunpack.c.l.bf16 %v4696_v49  ;;  %v4699_v43 = vld [vmem:[#allocation40_spill] sm:$0xff] }
 0x28c   :  { %v4025_v46 = vadd.f32 %v4694_v9, %v3744_v62  ;;  %v4698_v12 = vunpack.c.h.bf16 %v4696_v49  ;;  %v4700_v7 = vunpack.c.l.bf16 %v4699_v43  ;;  %v4701_v47 = vunpack.c.h.bf16 %v4699_v43  ;;  %v4702_v9 = vld [vmem:[#allocation41_spill] sm:$0xff] }
 0x28d   :  { %v4030_v50 = vadd.f32 %v4695_v51, %v3748_v1  ;;  %v4035_v54 = vadd.f32 %v4697_v31, %v3752_v21  ;;  %v4703_v51 = vunpack.c.l.bf16 %v4702_v9  ;;  %v4704_v49 = vunpack.c.h.bf16 %v4702_v9  ;;  %v4705_v31 = vld [vmem:[#allocation42_spill] sm:$0xff] }
 0x28e   :  { %v4040_v58 = vadd.f32 %v4698_v12, %v3756_v37  ;;  %v4045_v62 = vadd.f32 %v4700_v7, %v3760_v53  ;;  %v4050_v1 = vadd.f32 %v4701_v47, %v3764_v60  ;;  %v4706_v12 = vunpack.c.l.bf16 %v4705_v31  ;;  %v4708_v7 = vld [vmem:[#allocation43_spill] sm:$0xff] }
 0x28f   :  { %v4055_v21 = vadd.f32 %v4703_v51, %v3768_v4  ;;  %v4060_v37 = vadd.f32 %v4704_v49, %v3772_v29  ;;  %v4707_v43 = vunpack.c.h.bf16 %v4705_v31  ;;  %v4709_v47 = vunpack.c.l.bf16 %v4708_v7  ;;  %v4711_v51 = vld [vmem:[#allocation44_spill] sm:$0xff] }
 0x290   :  { %v4065_v53 = vadd.f32 %v4706_v12, %v3776_v44  ;;  %v4710_v9 = vunpack.c.h.bf16 %v4708_v7  ;;  %v4712_v49 = vunpack.c.l.bf16 %v4711_v51  ;;  %v4713_v31 = vunpack.c.h.bf16 %v4711_v51  ;;  %v4714_v12 = vld [vmem:[#allocation45_spill] sm:$0xff] }
 0x291   :  { %v4070_v60 = vadd.f32 %v4707_v43, %v3780_v8  ;;  %v4075_v4 = vadd.f32 %v4709_v47, %v3784_v48  ;;  %v4715_v43 = vunpack.c.l.bf16 %v4714_v12  ;;  %v4716_v7 = vunpack.c.h.bf16 %v4714_v12  ;;  %v4717_v47 = vld [vmem:[#allocation46_spill] sm:$0xff] }
 0x292   :  { %v4080_v29 = vadd.f32 %v4710_v9, %v3788_v36  ;;  %v4085_v44 = vadd.f32 %v4712_v49, %v3792_v26  ;;  %v4090_v8 = vadd.f32 %v4713_v31, %v3796_v56  ;;  %v4718_v9 = vunpack.c.l.bf16 %v4717_v47  ;;  %v4720_v49 = vld [vmem:[#allocation47_spill] sm:$0xff] }
 0x293   :  { %v4095_v48 = vadd.f32 %v4715_v43, %v3800_v0  ;;  %v4100_v36 = vadd.f32 %v4716_v7, %v3804_v33  ;;  %v4719_v51 = vunpack.c.h.bf16 %v4717_v47  ;;  %v4721_v31 = vunpack.c.l.bf16 %v4720_v49  ;;  %v4725_v43 = vld [vmem:[#allocation48_spill] sm:$0xff] }
 0x294   :  { %v4105_v26 = vadd.f32 %v4718_v9, %v3808_v28  ;;  %v4723_v12 = vunpack.c.h.bf16 %v4720_v49  ;;  %v4726_v7 = vunpack.c.l.bf16 %v4725_v43  ;;  %v4728_v47 = vunpack.c.h.bf16 %v4725_v43  ;;  %v4730_v9 = vld [vmem:[#allocation49_spill] sm:$0xff] }
 0x295   :  { %v4110_v56 = vadd.f32 %v4719_v51, %v3812_v16  ;;  %v4115_v0 = vadd.f32 %v4721_v31, %v3816_v52  ;;  %v4731_v51 = vunpack.c.l.bf16 %v4730_v9  ;;  %v4733_v31 = vld [vmem:[#allocation16_spill] sm:$0xff]  ;;  %v4734_v49 = vunpack.c.h.bf16 %v4730_v9 }
 0x296   :  { %v4120_v33 = vadd.f32 %v4723_v12, %v3820_v11  ;;  %v4125_v28 = vadd.f32 %v4726_v7, %v3824_v19  ;;  %v4130_v16 = vadd.f32 %v4728_v47, %v3828_v23  ;;  %v4736_v12 = vld [vmem:[#allocation18_spill] sm:$0xff]  ;;  %v4739_v7 = vld [vmem:[#allocation20_spill] sm:$0xff] }
 0x297   :  { %4722 = vst [vmem:[#allocation6_spill] sm:$0xff] %v4115_v0  ;;  %v4135_v52 = vadd.f32 %v4731_v51, %v3832_v27  ;;  %v4140_v11 = vadd.f32 %v4734_v49, %v4733_v31  ;;  %v4741_v47 = vld [vmem:[#allocation24_spill] sm:$0xff]  ;;  %v4744_v51 = vld [vmem:[#allocation10_spill] sm:$0xff] }
 0x298   :  { %4724 = vst [vmem:[#allocation7_spill] sm:$0xff] %v4120_v33  ;;  %4727 = vst [vmem:[#allocation8_spill] sm:$0xff] %v4125_v28  ;;  %v4737_v33 = vld [vmem:[#allocation50_spill] sm:$0xff]  ;;  %v4746_v49 = vld [vmem:[#allocation12_spill] sm:$0xff] }
 0x299   :  { %4729 = vst [vmem:[#allocation9_spill] sm:$0xff] %v4130_v16  ;;  %4732 = vst [vmem:[#allocation11_spill] sm:$0xff] %v4135_v52  ;;  %v4738_v0 = vunpack.c.l.bf16 %v4737_v33  ;;  %v4740_v43 = vunpack.c.h.bf16 %v4737_v33  ;;  %v4742_v16 = vld [vmem:[#allocation51_spill] sm:$0xff] }
 0x29a   :  { %4735 = vst [vmem:[#allocation13_spill] sm:$0xff] %v4140_v11  ;;  %v4743_v28 = vunpack.c.l.bf16 %v4742_v16  ;;  %v4745_v9 = vunpack.c.h.bf16 %v4742_v16  ;;  %v4747_v11 = vld [vmem:[#allocation52_spill] sm:$0xff] }
 0x29b   :  { %v4145_v19 = vadd.f32 %v4738_v0, %v4736_v12  ;;  %v4150_v23 = vadd.f32 %v4740_v43, %v4739_v7  ;;  %v4748_v52 = vunpack.c.l.bf16 %v4747_v11  ;;  %v4750_v33 = vunpack.c.h.bf16 %v4747_v11  ;;  %v4752_v7 = vld [vmem:[#allocation53_spill] sm:$0xff] }
 0x29c   :  { %v4155_v27 = vadd.f32 %v4743_v28, %v4741_v47  ;;  %v4160_v31 = vadd.f32 %v4745_v9, %v4744_v51  ;;  %v4753_v43 = vunpack.c.l.bf16 %v4752_v7  ;;  %v4755_v16 = vunpack.c.h.bf16 %v4752_v7  ;;  %v4757_v51 = vld [vmem:[#allocation54_spill] sm:$0xff] }
 0x29d   :  { %v4165_v0 = vadd.f32 %v4748_v52, %v4746_v49  ;;  %v4170_v12 = vadd.f32 %v4750_v33, %v3860_v55  ;;  %v4758_v9 = vunpack.c.l.bf16 %v4757_v51  ;;  %v4759_v49 = vld [vmem:[#allocation14_spill] sm:$0xff]  ;;  %v4760_v11 = vunpack.c.h.bf16 %v4757_v51  ;;  %v4762_v33 = vld [vmem:[#allocation23_spill] sm:$0xff] }
 0x29e   :  { %v4175_v28 = vadd.f32 %v4753_v43, %v3864_v59  ;;  %v4180_v47 = vadd.f32 %v4755_v16, %v3868_v63  ;;  %v4765_v43 = vld [vmem:[#allocation25_spill] sm:$0xff]  ;;  %v4768_v16 = vld [vmem:[#allocation27_spill] sm:$0xff] }
 0x29f   :  { %4749 = vst [vmem:[#allocation15_spill] sm:$0xff] %v4165_v0  ;;  %4751 = vst [vmem:[#allocation22_spill] sm:$0xff] %v4170_v12  ;;  %v4185_v52 = vadd.f32 %v4758_v9, %v3872_v15  ;;  %v4190_v55 = vadd.f32 %v4760_v11, %v4759_v49  ;;  %v4763_v12 = vld [vmem:[#allocation55_spill] sm:$0xff]  ;;  %v4772_v9 = vld [vmem:[#allocation29_spill] sm:$0xff] }
 0x2a0   :  { %4754 = vst [vmem:[#allocation26_spill] sm:$0xff] %v4175_v28  ;;  %4756 = vst [vmem:[#allocation28_spill] sm:$0xff] %v4180_v47  ;;  %v4764_v0 = vunpack.c.l.bf16 %v4763_v12  ;;  %v4766_v7 = vunpack.c.h.bf16 %v4763_v12  ;;  %v4769_v47 = vld [vmem:[#allocation56_spill] sm:$0xff]  ;;  %v4775_v11 = vld [vmem:[#allocation57_spill] sm:$0xff] }
 0x2a1   :  { %4761 = vst [vmem:[#allocation31_spill] sm:$0xff] %v4190_v55  ;;  %v4770_v28 = vunpack.c.l.bf16 %v4769_v47  ;;  %v4773_v51 = vunpack.c.h.bf16 %v4769_v47  ;;  %v4776_v55 = vunpack.c.l.bf16 %v4775_v11  ;;  %v4779_v12 = vunpack.c.h.bf16 %v4775_v11  ;;  %v4782_v2 = vld [vmem:[#allocation7_spill] sm:$0xff]  ;;  %v4783_v39 = vld [vmem:[#allocation8_spill] sm:$0xff]  ;;  %v4784_v22 = vld [vmem:[#allocation9_spill] sm:$0xff] }
 0x2a2   :  { %v4195_v59 = vadd.f32 %v4764_v0, %v4762_v33  ;;  %v4200_v63 = vadd.f32 %v4766_v7, %v4765_v43  ;;  %v4778_v33 = vld [vmem:[#allocation30_spill] sm:$0xff]  ;;  %v1446_v11 = vmax.f32 %v3945_v20, 0.0  ;;  %v1451_v47 = vmax.f32 %v3970_v32, 0.0  ;;  %v4785_v3 = vld [vmem:[#allocation11_spill] sm:$0xff]  ;;  %v4786_v35 = vld [vmem:[#allocation13_spill] sm:$0xff] }
 0x2a3   :  { %v4205_v15 = vadd.f32 %v4770_v28, %v4768_v16  ;;  %v4210_v49 = vadd.f32 %v4773_v51, %v4772_v9  ;;  %v4215_v0 = vadd.f32 %v4776_v55, %v3896_v24  ;;  %v4220_v43 = vadd.f32 %v4779_v12, %v4778_v33  ;;  %v4781_v7 = vld [vmem:[#allocation6_spill] sm:$0xff] }
 0x2a4   :  { %4767 = vst [vmem:[#allocation17_spill] sm:$0xff] %v4200_v63  ;;  %v1443_v51 = vmax.f32 %v3930_v61, 0.0  ;;  %v1444_v24 = vmax.f32 %v3935_v13, 0.0  ;;  %v1445_v55 = vmax.f32 %v3940_v25, 0.0  ;;  %v1447_v33 = vmax.f32 %v3950_v18, 0.0 }
 0x2a5   :  { %4771 = vst [vmem:[#allocation19_spill] sm:$0xff] %v4205_v15  ;;  %4774 = vst [vmem:[#allocation21_spill] sm:$0xff] %v4210_v49  ;;  %v1448_v12 = vmax.f32 %v3955_v45, 0.0  ;;  %v1449_v28 = vmax.f32 %v3960_v57, 0.0  ;;  %v1450_v16 = vmax.f32 %v3965_v40, 0.0  ;;  %v1452_v9 = vmax.f32 %v3975_v17, 0.0 }
 0x2a6   :  { %4777 = vst [vmem:[#allocation33_spill] sm:$0xff] %v4215_v0  ;;  %4780 = vst [vmem:[#allocation34_spill] sm:$0xff] %v4220_v43  ;;  %v1453_v61 = vmax.f32 %v3980_v10, 0.0  ;;  %v1454_v13 = vmax.f32 %v3985_v14, 0.0  ;;  %v1455_v25 = vmax.f32 %v3990_v5, 0.0  ;;  %v1456_v20 = vmax.f32 %v3995_v6, 0.0 }
 0x2a7   :  { %v1457_v18 = vmax.f32 %v4000_v41, 0.0  ;;  %v1458_v45 = vmax.f32 %v4005_v30, 0.0  ;;  %v1459_v57 = vmax.f32 %v4010_v34, 0.0  ;;  %v1460_v40 = vmax.f32 %v4015_v38, 0.0  ;;  %v4787_v43 = vld [vmem:[#allocation15_spill] sm:$0xff]  ;;  %v4788_v0 = vld [vmem:[#allocation22_spill] sm:$0xff] }
 0x2a8   :  { %v1461_v32 = vmax.f32 %v4020_v42, 0.0  ;;  %v1462_v17 = vmax.f32 %v4025_v46, 0.0  ;;  %v1463_v10 = vmax.f32 %v4030_v50, 0.0  ;;  %v1464_v14 = vmax.f32 %v4035_v54, 0.0  ;;  %v4789_v49 = vld [vmem:[#allocation26_spill] sm:$0xff]  ;;  %v4790_v15 = vld [vmem:[#allocation28_spill] sm:$0xff] }
 0x2a9   :  { %v1465_v5 = vmax.f32 %v4040_v58, 0.0  ;;  %v1466_v6 = vmax.f32 %v4045_v62, 0.0  ;;  %v1467_v41 = vmax.f32 %v4050_v1, 0.0  ;;  %v1468_v30 = vmax.f32 %v4055_v21, 0.0  ;;  %v4791_v63 = vld [vmem:[#allocation31_spill] sm:$0xff] }
 0x2aa   :  { %v1469_v34 = vmax.f32 %v4060_v37, 0.0  ;;  %v1470_v38 = vmax.f32 %v4065_v53, 0.0  ;;  %v1471_v42 = vmax.f32 %v4070_v60, 0.0  ;;  %v1472_v46 = vmax.f32 %v4075_v4, 0.0 }
 0x2ab   :  { %v1473_v50 = vmax.f32 %v4080_v29, 0.0  ;;  %v1474_v54 = vmax.f32 %v4085_v44, 0.0  ;;  %v1475_v58 = vmax.f32 %v4090_v8, 0.0  ;;  %v1476_v62 = vmax.f32 %v4095_v48, 0.0 }
 0x2ac   :  { %v1477_v1 = vmax.f32 %v4100_v36, 0.0  ;;  %v1478_v21 = vmax.f32 %v4105_v26, 0.0  ;;  %v1479_v37 = vmax.f32 %v4110_v56, 0.0  ;;  %v1480_v53 = vmax.f32 %v4781_v7, 0.0 }
 0x2ad   :  { %v1481_v60 = vmax.f32 %v4782_v2, 0.0  ;;  %v1482_v4 = vmax.f32 %v4783_v39, 0.0  ;;  %v1483_v29 = vmax.f32 %v4784_v22, 0.0  ;;  %v1484_v44 = vmax.f32 %v4785_v3, 0.0 }
 0x2ae   :  { %v1485_v8 = vmax.f32 %v4786_v35, 0.0  ;;  %v1486_v48 = vmax.f32 %v4145_v19, 0.0  ;;  %v1487_v36 = vmax.f32 %v4150_v23, 0.0  ;;  %v1488_v26 = vmax.f32 %v4155_v27, 0.0  ;;  %v4792_v23 = vld [vmem:[#allocation17_spill] sm:$0xff] }
 0x2af   :  { %v1489_v56 = vmax.f32 %v4160_v31, 0.0  ;;  %v1490_v7 = vmax.f32 %v4787_v43, 0.0  ;;  %v1491_v2 = vmax.f32 %v4788_v0, 0.0  ;;  %v1492_v39 = vmax.f32 %v4789_v49, 0.0  ;;  %v4793_v31 = vld [vmem:[#allocation19_spill] sm:$0xff]  ;;  %v4794_v0 = vld [vmem:[#allocation21_spill] sm:$0xff] }
 0x2b0   :  { %v1493_v22 = vmax.f32 %v4790_v15, 0.0  ;;  %v1494_v3 = vmax.f32 %v4185_v52, 0.0  ;;  %v1495_v35 = vmax.f32 %v4791_v63, 0.0  ;;  %v1496_v19 = vmax.f32 %v4195_v59, 0.0  ;;  %v4795_v15 = vld [vmem:[#allocation33_spill] sm:$0xff]  ;;  %v4796_v63 = vld [vmem:[#allocation34_spill] sm:$0xff] }
 0x2b1   :  { %v1497_v27 = vmax.f32 %v4792_v23, 0.0  ;;  %v1498_v43 = vmax.f32 %v4793_v31, 0.0  ;;  %v1499_v49 = vmax.f32 %v4794_v0, 0.0  ;;  %v1500_v52 = vmax.f32 %v4795_v15, 0.0  ;;  %v4797_v23 = vld [vmem:[#allocation32_spill] sm:$0xff]  ;;  %v4799_v0 = vld [vmem:[#allocation2_spill] sm:$0xff] }
 0x2b2   :  { %v1501_v59 = vmax.f32 %v4796_v63, 0.0  ;;  %v4798_v31 = vmax.f32 %v4797_v23, 0.0  ;;  %v4800_v15 = vmax.f32 %v4799_v0, 0.0  ;;  %v4801_v23 = vld [vmem:[#allocation3_spill] sm:$0xff] }
 0x2b3   :  { %v4802_v0 = vmax.f32 %v4801_v23, 0.0 }
 0x2b4   :  { %v2190_v63 = vpack.c.bf16 %v4800_v15, %v4798_v31  ;;  %v4803_v15 = vld [vmem:[#allocation4_spill] sm:$0xff] }
 0x2b5   :  { %v4804_v31 = vmax.f32 %v4803_v15, 0.0  ;;  %v4805_v15 = vld [vmem:[#allocation5_spill] sm:$0xff] }
 0x2b6   :  { %2191 = vst [vmem:[%s4397_s5] sm:$0xff] %v2190_v63  }
 0x2b7   :  { %v2195_v23 = vpack.c.bf16 %v4804_v31, %v4802_v0  ;;  %v4806_v0 = vmax.f32 %v4805_v15, 0.0  ;;  %v2205_v15 = vpack.c.bf16 %v1445_v55, %v1444_v24  ;;  %v2220_v24 = vpack.c.bf16 %v1451_v47, %v1450_v16 }
 0x2b8   :  { %v2225_v55 = vpack.c.bf16 %v1453_v61, %v1452_v9  ;;  %v2240_v16 = vpack.c.bf16 %v1459_v57, %v1458_v45  ;;  %v2245_v47 = vpack.c.bf16 %v1461_v32, %v1460_v40  ;;  %v2250_v9 = vpack.c.bf16 %v1463_v10, %v1462_v17 }
 0x2b9   :  { %v2200_v31 = vpack.c.bf16 %v1443_v51, %v4806_v0  ;;  %v2210_v0 = vpack.c.bf16 %v1447_v33, %v1446_v11  ;;  %v2215_v51 = vpack.c.bf16 %v1449_v28, %v1448_v12  ;;  %2378 = vst [vmem:[%s4397_s5 + $0x8] sm:$0xff] %v2195_v23   ;;  %2380 = vst [vmem:[%s4397_s5 + $0x18] sm:$0xff] %v2205_v15  }
 0x2ba   :  { %v2230_v11 = vpack.c.bf16 %v1455_v25, %v1454_v13  ;;  %v2235_v28 = vpack.c.bf16 %v1457_v18, %v1456_v20  ;;  %2383 = vst [vmem:[%s4397_s5 + $0x30] sm:$0xff] %v2220_v24   ;;  %2384 = vst [vmem:[%s4397_s5 + $0x38] sm:$0xff] %v2225_v55   ;;  %v2255_v33 = vpack.c.bf16 %v1465_v5, %v1464_v14 }
 0x2bb   :  { %2379 = vst [vmem:[%s4397_s5 + $0x10] sm:$0xff] %v2200_v31   ;;  %2381 = vst [vmem:[%s4397_s5 + $0x20] sm:$0xff] %v2210_v0   ;;  %v2260_v12 = vpack.c.bf16 %v1467_v41, %v1466_v6  ;;  %v2265_v61 = vpack.c.bf16 %v1469_v34, %v1468_v30  ;;  %v2270_v13 = vpack.c.bf16 %v1471_v42, %v1470_v38 }
 0x2bc   :  { %2382 = vst [vmem:[%s4397_s5 + $0x28] sm:$0xff] %v2215_v51   ;;  %2385 = vst [vmem:[%s4397_s5 + $0x40] sm:$0xff] %v2230_v11   ;;  %v2275_v25 = vpack.c.bf16 %v1473_v50, %v1472_v46  ;;  %v2280_v20 = vpack.c.bf16 %v1475_v58, %v1474_v54  ;;  %v2285_v18 = vpack.c.bf16 %v1477_v1, %v1476_v62 }
 0x2bd   :  { %2386 = vst [vmem:[%s4397_s5 + $0x48] sm:$0xff] %v2235_v28   ;;  %2387 = vst [vmem:[%s4397_s5 + $0x50] sm:$0xff] %v2240_v16   ;;  %v2290_v45 = vpack.c.bf16 %v1479_v37, %v1478_v21  ;;  %v2295_v57 = vpack.c.bf16 %v1481_v60, %v1480_v53  ;;  %v2300_v40 = vpack.c.bf16 %v1483_v29, %v1482_v4 }
 0x2be   :  { %2388 = vst [vmem:[%s4397_s5 + $0x58] sm:$0xff] %v2245_v47   ;;  %2389 = vst [vmem:[%s4397_s5 + $0x60] sm:$0xff] %v2250_v9   ;;  %v2305_v32 = vpack.c.bf16 %v1485_v8, %v1484_v44  ;;  %v2310_v17 = vpack.c.bf16 %v1487_v36, %v1486_v48  ;;  %v2315_v10 = vpack.c.bf16 %v1489_v56, %v1488_v26 }
 0x2bf   :  { %2390 = vst [vmem:[%s4397_s5 + $0x68] sm:$0xff] %v2255_v33   ;;  %2391 = vst [vmem:[%s4397_s5 + $0x70] sm:$0xff] %v2260_v12   ;;  %v2320_v14 = vpack.c.bf16 %v1491_v2, %v1490_v7  ;;  %v2325_v5 = vpack.c.bf16 %v1493_v22, %v1492_v39  ;;  %v2330_v6 = vpack.c.bf16 %v1495_v35, %v1494_v3 }
 0x2c0   :  { %2392 = vst [vmem:[%s4397_s5 + $0x78] sm:$0xff] %v2265_v61   ;;  %2393 = vst [vmem:[%s4397_s5 + $0x80] sm:$0xff] %v2270_v13   ;;  %v2335_v41 = vpack.c.bf16 %v1497_v27, %v1496_v19  ;;  %v2340_v30 = vpack.c.bf16 %v1499_v49, %v1498_v43  ;;  %v2345_v34 = vpack.c.bf16 %v1501_v59, %v1500_v52 }
 0x2c1   :  { %2394 = vst [vmem:[%s4397_s5 + $0x88] sm:$0xff] %v2275_v25   ;;  %2395 = vst [vmem:[%s4397_s5 + $0x90] sm:$0xff] %v2280_v20  }
 0x2c2   :  { %2396 = vst [vmem:[%s4397_s5 + $0x98] sm:$0xff] %v2285_v18   ;;  %2397 = vst [vmem:[%s4397_s5 + $0xa0] sm:$0xff] %v2290_v45  }
 0x2c3   :  { %2398 = vst [vmem:[%s4397_s5 + $0xa8] sm:$0xff] %v2295_v57   ;;  %2399 = vst [vmem:[%s4397_s5 + $0xb0] sm:$0xff] %v2300_v40  }
 0x2c4   :  { %2400 = vst [vmem:[%s4397_s5 + $0xb8] sm:$0xff] %v2305_v32   ;;  %2401 = vst [vmem:[%s4397_s5 + $0xc0] sm:$0xff] %v2310_v17  }
 0x2c5   :  { %2402 = vst [vmem:[%s4397_s5 + $0xc8] sm:$0xff] %v2315_v10   ;;  %2403 = vst [vmem:[%s4397_s5 + $0xd0] sm:$0xff] %v2320_v14  }
 0x2c6   :  { %2404 = vst [vmem:[%s4397_s5 + $0xd8] sm:$0xff] %v2325_v5   ;;  %2405 = vst [vmem:[%s4397_s5 + $0xe0] sm:$0xff] %v2330_v6  }
 0x2c7   :  { %2406 = vst [vmem:[%s4397_s5 + $0xe8] sm:$0xff] %v2335_v41   ;;  %2407 = vst [vmem:[%s4397_s5 + $0xf0] sm:$0xff] %v2340_v30  }
 0x2c8   :  { %2408 = vst [vmem:[%s4397_s5 + $0xf8] sm:$0xff] %v2345_v34  }

// kernel: _lambda_.34
= control target key start
LH: loop header
LB: loop body
LE: loop exit
PB: predicated region body
PF: predicated region fallthrough
CT: control target
= control target key end

     0   :  { %v693_v0 = vmov 0   ;;  %vm178_vm0 = vcmask 130048   ;;  %s931_s1 = inlined_call_operand.vmem [shape: bf16[144,128], index: 1, kind: input, shape index: {}]   ;;  %s932_s0 = inlined_call_operand.vmem [shape: bf16[128,144], index: 0, kind: input, shape index: {}]   ;;  %s933_s2 = inlined_call_operand.vmem [shape: f32[1,128], index: 2, kind: input, shape index: {}]   ;;  %s934_s3 = inlined_call_operand.vmem [shape: f32[1,128], index: 3, kind: input, shape index: {}]   ;;  %s935_s4 = inlined_call_operand.vmem [shape: bf16[128,128], index: 4, kind: output, shape index: {}]  }
   0x1   :  { %203 = vmatprep.subr.bf16.mxu0 %v693_v0  ;;  %v658_v1 = vld [vmem:[%s931_s1 + $0x38] sm:$0xff]   ;;  %639 = vmatprep.subr.bf16.mxu1 %v693_v0  ;;  %v659_v2 = vld [vmem:[%s931_s1 + $0x30] sm:$0xff]   ;;  %v660_v3 = vld [vmem:[%s931_s1 + $0x28] sm:$0xff]  }
   0x2   :  { %204 = vmatpush1.bf16.msra.mxu0 %v658_v1  ;;  %648 = vmatpush1.bf16.msra.mxu1 %v658_v1  ;;  %v661_v4 = vld [vmem:[%s931_s1 + $0x20] sm:$0xff]   ;;  %v662_v7 = vld [vmem:[%s931_s1 + $0x18] sm:$0xff]   ;;  %v663_v8 = vld [vmem:[%s931_s1 + $0x10] sm:$0xff]  }
   0x3   :  { %205 = vmatprep.subr.bf16.mxu0 %v693_v0  ;;  %640 = vmatprep.subr.bf16.mxu1 %v693_v0  ;;  %v669_v5 = vld [vmem:[%s932_s0 + $0x4] ss:$8 sps:$4 sm:$0xff]   ;;  %v667_v12 = vld [vmem:[%s932_s0] ss:$8 sps:$4 sm:$0xff]   ;;  %v670_v14 = vld [vmem:[%s932_s0 + $0x14] ss:$8 sps:$4 sm:$0xff]  }
   0x4   :  { %552 = vmatprep.mubr.msk.bf16.mxu0 %vm178_vm0, %v669_v5  ;;  %v675_v6 = vld [vmem:[%s932_s0 + $0x44] ss:$8 sps:$4 sm:$0xff]   ;;  %v673_v13 = vld [vmem:[%s932_s0 + $0x40] ss:$8 sps:$4 sm:$0xff]   ;;  %v679_v15 = vld [vmem:[%s932_s0 + $0x54] ss:$8 sps:$4 sm:$0xff]  }
   0x5   :  { %556 = vmatprep.mubr.msk.bf16.mxu1 %vm178_vm0, %v675_v6  ;;  %v664_v9 = vld [vmem:[%s931_s1 + $0x8] sm:$0xff]   ;;  %v665_v10 = vld [vmem:[%s931_s1] sm:$0xff]   ;;  %v672_v16 = vld [vmem:[%s932_s0 + $0x10] ss:$8 sps:$4 sm:$0xff]  }
   0x6   :  { %206 = vmatpush1.bf16.msra.mxu0 %v659_v2  ;;  %649 = vmatpush1.bf16.msra.mxu1 %v659_v2  ;;  %v666_v11 = vld [vmem:[%s931_s1 + $0x40] sm:$0xff]   ;;  %v681_v17 = vld [vmem:[%s932_s0 + $0x50] ss:$8 sps:$4 sm:$0xff]   ;;  %v682_v22 = vld [vmem:[%s932_s0 + $0x34] ss:$8 sps:$4 sm:$0xff]  }
   0x7   :  { %207 = vmatprep.subr.bf16.mxu0 %v693_v0  ;;  %641 = vmatprep.subr.bf16.mxu1 %v693_v0  ;;  %v676_v18 = vld [vmem:[%s932_s0 + $0x24] ss:$8 sps:$4 sm:$0xff]   ;;  %v678_v20 = vld [vmem:[%s932_s0 + $0x20] ss:$8 sps:$4 sm:$0xff]   ;;  %v688_v23 = vld [vmem:[%s932_s0 + $0x74] ss:$8 sps:$4 sm:$0xff]  }
   0x8   :  { %v685_v19 = vld [vmem:[%s932_s0 + $0x64] ss:$8 sps:$4 sm:$0xff]   ;;  %v687_v21 = vld [vmem:[%s932_s0 + $0x60] ss:$8 sps:$4 sm:$0xff]   ;;  %v684_v24 = vld [vmem:[%s932_s0 + $0x30] ss:$8 sps:$4 sm:$0xff]  }
   0x9   :  { %v690_v25 = vld [vmem:[%s932_s0 + $0x70] ss:$8 sps:$4 sm:$0xff]  }
   0xa   :  { %208 = vmatpush1.bf16.msra.mxu0 %v660_v3  ;;  %650 = vmatpush1.bf16.msra.mxu1 %v660_v3 }
   0xb   :  { %209 = vmatprep.subr.bf16.mxu0 %v693_v0  ;;  %642 = vmatprep.subr.bf16.mxu1 %v693_v0 }
   0xe   :  { %210 = vmatpush1.bf16.msra.mxu0 %v661_v4  ;;  %651 = vmatpush1.bf16.msra.mxu1 %v661_v4 }
   0xf   :  { %211 = vmatprep.subr.bf16.mxu0 %v693_v0  ;;  %643 = vmatprep.subr.bf16.mxu1 %v693_v0 }
  0x12   :  { %212 = vmatpush1.bf16.msra.mxu0 %v662_v7  ;;  %652 = vmatpush1.bf16.msra.mxu1 %v662_v7 }
  0x13   :  { %213 = vmatprep.subr.bf16.mxu0 %v693_v0  ;;  %644 = vmatprep.subr.bf16.mxu1 %v693_v0 }
  0x16   :  { %214 = vmatpush1.bf16.msra.mxu0 %v663_v8  ;;  %653 = vmatpush1.bf16.msra.mxu1 %v663_v8 }
  0x17   :  { %215 = vmatprep.subr.bf16.mxu0 %v693_v0  ;;  %645 = vmatprep.subr.bf16.mxu1 %v693_v0 }
  0x1a   :  { %216 = vmatpush1.bf16.msra.mxu0 %v664_v9  ;;  %654 = vmatpush1.bf16.msra.mxu1 %v664_v9 }
  0x1b   :  { %217 = vmatprep.subr.bf16.mxu0 %v693_v0  ;;  %646 = vmatprep.subr.bf16.mxu1 %v693_v0 }
  0x1e   :  { %218 = vmatpush1.bf16.msra.mxu0 %v665_v10  ;;  %655 = vmatpush1.bf16.msra.mxu1 %v665_v10 }
  0x1f   :  { %233 = vmatprep.subr.bf16.mxu0 %v693_v0  ;;  %647 = vmatprep.subr.bf16.mxu1 %v693_v0 }
  0x22   :  { %234 = vmatpush2.bf16.msra.mxu0 %v666_v11  ;;  %656 = vmatpush2.bf16.msra.mxu1 %v666_v11 }
  0x25   :  { %236 = vmatmul.mubr.bf16.vlgmr.msra.gmra.mxu0 %v667_v12  ;;  %268 = vmatmul.mubr.bf16.vlgmr.msra.gmra.mxu1 %v673_v13 }
  0x26   :  { %553 = vmatprep.mubr.msk.bf16.mxu0 %vm178_vm0, %v670_v14  ;;  %557 = vmatprep.mubr.msk.bf16.mxu1 %vm178_vm0, %v679_v15 }
  0x2d   :  { %244 = vmatmul.mubr.bf16.gmra.mxu0 %v672_v16  ;;  %276 = vmatmul.mubr.bf16.gmra.mxu1 %v681_v17 }
  0x2e   :  { %554 = vmatprep.mubr.msk.bf16.mxu0 %vm178_vm0, %v676_v18  ;;  %558 = vmatprep.mubr.msk.bf16.mxu1 %vm178_vm0, %v685_v19 }
  0x35   :  { %252 = vmatmul.mubr.bf16.gmra.mxu0 %v678_v20  ;;  %284 = vmatmul.mubr.bf16.gmra.mxu1 %v687_v21 }
  0x36   :  { %555 = vmatprep.mubr.msk.bf16.mxu0 %vm178_vm0, %v682_v22  ;;  %559 = vmatprep.mubr.msk.bf16.mxu1 %vm178_vm0, %v688_v23 }
  0x3d   :  { %260 = vmatmul.mubr.bf16.gmra.mxu0 %v684_v24  ;;  %292 = vmatmul.mubr.bf16.gmra.mxu1 %v690_v25 }
  0xe5   :  { %v802_v26 = vpop.f32.mrf.mxu0  ;;  %v804_v27 = vpop.f32.mrf.mxu1 }
  0xe7   :  { %v239_v28 = vpop.f32.mrf.mxu0  ;;  %v271_v29 = vpop.f32.mrf.mxu1 }
  0xe9   :  { %v806_v30 = vpop.f32.mrf.mxu0  ;;  %v808_v31 = vpop.f32.mrf.mxu1 }
  0xea   :  { %v302_v44 = vadd.f32 %v806_v30, %v802_v26 }
  0xeb   :  { %v242_v32 = vpop.f32.mrf.mxu0  ;;  %v274_v33 = vpop.f32.mrf.mxu1 }
  0xed   :  { %v810_v34 = vpop.f32.mrf.mxu0  ;;  %v812_v35 = vpop.f32.mrf.mxu1 }
  0xee   :  { %v303_v47 = vadd.f32 %v302_v44, %v810_v34 }
  0xef   :  { %v247_v36 = vpop.f32.mrf.mxu0  ;;  %v279_v37 = vpop.f32.mrf.mxu1 }
  0xf1   :  { %v814_v38 = vpop.f32.mrf.mxu0  ;;  %v816_v39 = vpop.f32.mrf.mxu1 }
  0xf2   :  { %v304_v50 = vadd.f32 %v303_v47, %v814_v38 }
  0xf3   :  { %v250_v40 = vpop.f32.mrf.mxu0  ;;  %v282_v41 = vpop.f32.mrf.mxu1 }
  0xf5   :  { %v818_v42 = vpop.f32.mrf.mxu0  ;;  %v820_v43 = vpop.f32.mrf.mxu1 }
  0xf6   :  { %v305_v53 = vadd.f32 %v304_v50, %v818_v42 }
  0xf7   :  { %v255_v45 = vpop.f32.mrf.mxu0  ;;  %v287_v46 = vpop.f32.mrf.mxu1 }
  0xf9   :  { %v825_v48 = vpop.f32.mrf.mxu0  ;;  %v827_v49 = vpop.f32.mrf.mxu1 }
  0xfa   :  { %v306_v56 = vadd.f32 %v305_v53, %v825_v48 }
  0xfb   :  { %v258_v51 = vpop.f32.mrf.mxu0  ;;  %v290_v52 = vpop.f32.mrf.mxu1 }
  0xfd   :  { %v831_v54 = vpop.f32.mrf.mxu0  ;;  %v833_v55 = vpop.f32.mrf.mxu1 }
  0xfe   :  { %v307_v59 = vadd.f32 %v306_v56, %v831_v54 }
  0xff   :  { %v263_v57 = vpop.f32.mrf.mxu0  ;;  %v295_v58 = vpop.f32.mrf.mxu1 }
 0x101   :  { %v837_v60 = vpop.f32.mrf.mxu0  ;;  %v839_v61 = vpop.f32.mrf.mxu1 }
 0x102   :  { %v308_v62 = vadd.f32 %v307_v59, %v837_v60 }
 0x103   :  { %v266_v63 = vpop.f32.mrf.mxu0  ;;  %v298_v0 = vpop.f32.mrf.mxu1 }
 0x104   :  { %v309_v1 = vadd.f32 %v308_v62, %v804_v27 }
 0x106   :  { %v310_v2 = vadd.f32 %v309_v1, %v808_v31 }
 0x108   :  { %v311_v3 = vadd.f32 %v310_v2, %v812_v35 }
 0x10a   :  { %v312_v4 = vadd.f32 %v311_v3, %v816_v39 }
 0x10c   :  { %v313_v5 = vadd.f32 %v312_v4, %v820_v43 }
 0x10e   :  { %v314_v6 = vadd.f32 %v313_v5, %v827_v49 }
 0x110   :  { %v315_v7 = vadd.f32 %v314_v6, %v833_v55 }
 0x112   :  { %v316_v8 = vadd.f32 %v315_v7, %v839_v61 }
 0x114   :  { %v317_v9 = vrot.slane %v316_v8, 4 }
 0x116   :  { %v318_v10 = vadd.f32 %v317_v9, %v316_v8 }
 0x118   :  { %v319_v11 = vrot.slane %v318_v10, 2 }
 0x11a   :  { %v320_v12 = vadd.f32 %v319_v11, %v318_v10 }
 0x11c   :  { %v321_v13 = vrot.slane %v320_v12, 1 }
 0x11e   :  { %v322_v14 = vadd.f32 %v321_v13, %v320_v12 }
 0x120   :  { %v850_v15 = vmul.f32 0.0078125, %v322_v14 }
 0x122   :  { %v324_v16 = vsub.f32 %v802_v26, %v850_v15  ;;  %v325_v17 = vsub.f32 %v806_v30, %v850_v15  ;;  %v326_v18 = vsub.f32 %v810_v34, %v850_v15  ;;  %v327_v21 = vsub.f32 %v814_v38, %v850_v15 }
 0x123   :  { %v328_v22 = vsub.f32 %v818_v42, %v850_v15  ;;  %v329_v25 = vsub.f32 %v825_v48, %v850_v15  ;;  %v330_v32 = vsub.f32 %v831_v54, %v850_v15  ;;  %v331_v37 = vsub.f32 %v837_v60, %v850_v15 }
 0x124   :  { %v340_v19 = vmul.f32 %v324_v16, %v324_v16  ;;  %v341_v20 = vmul.f32 %v325_v17, %v325_v17  ;;  %v342_v23 = vmul.f32 %v326_v18, %v326_v18  ;;  %v343_v28 = vmul.f32 %v327_v21, %v327_v21 }
 0x125   :  { %v344_v33 = vmul.f32 %v328_v22, %v328_v22  ;;  %v345_v40 = vmul.f32 %v329_v25, %v329_v25  ;;  %v332_v44 = vsub.f32 %v804_v27, %v850_v15  ;;  %v346_v45 = vmul.f32 %v330_v32, %v330_v32 }
 0x126   :  { %v356_v24 = vadd.f32 %v341_v20, %v340_v19  ;;  %v333_v47 = vsub.f32 %v808_v31, %v850_v15  ;;  %v347_v50 = vmul.f32 %v331_v37, %v331_v37  ;;  %v334_v52 = vsub.f32 %v812_v35, %v850_v15 }
 0x127   :  { %v348_v53 = vmul.f32 %v332_v44, %v332_v44  ;;  %v335_v57 = vsub.f32 %v816_v39, %v850_v15  ;;  %v336_v62 = vsub.f32 %v820_v43, %v850_v15  ;;  %v337_v1 = vsub.f32 %v827_v49, %v850_v15 }
 0x128   :  { %v357_v29 = vadd.f32 %v356_v24, %v342_v23  ;;  %v349_v58 = vmul.f32 %v333_v47, %v333_v47  ;;  %v350_v63 = vmul.f32 %v334_v52, %v334_v52  ;;  %v338_v4 = vsub.f32 %v833_v55, %v850_v15 }
 0x129   :  { %v351_v2 = vmul.f32 %v335_v57, %v335_v57  ;;  %v352_v5 = vmul.f32 %v336_v62, %v336_v62  ;;  %v339_v7 = vsub.f32 %v839_v61, %v850_v15  ;;  %v353_v8 = vmul.f32 %v337_v1, %v337_v1 }
 0x12a   :  { %v358_v36 = vadd.f32 %v357_v29, %v343_v28  ;;  %v354_v10 = vmul.f32 %v338_v4, %v338_v4  ;;  %v384_v24 = vlaneseq  ;;  %v300_v28 = vld [vmem:[%s933_s2] sm:$0x1] }
 0x12b   :  { %v355_v12 = vmul.f32 %v339_v7, %v339_v7 }
 0x12c   :  { %v359_v41 = vadd.f32 %v358_v36, %v344_v33  ;;  %v385_v25 = vshrl.u32 %v384_v24, 7  ;;  %v301_v36 = vld [vmem:[%s934_s3] sm:$0x1] }
 0x12e   :  { %v360_v46 = vadd.f32 %v359_v41, %v345_v40  ;;  %v386_v29 = vsub.s32 0, %v385_v25 }
 0x130   :  { %v361_v51 = vadd.f32 %v360_v46, %v346_v45 }
 0x132   :  { %v362_v56 = vadd.f32 %v361_v51, %v347_v50 }
 0x134   :  { %v363_v59 = vadd.f32 %v362_v56, %v348_v53 }
 0x136   :  { %v364_v0 = vadd.f32 %v363_v59, %v349_v58 }
 0x138   :  { %v365_v3 = vadd.f32 %v364_v0, %v350_v63 }
 0x13a   :  { %v366_v6 = vadd.f32 %v365_v3, %v351_v2 }
 0x13c   :  { %v367_v9 = vadd.f32 %v366_v6, %v352_v5 }
 0x13e   :  { %v368_v11 = vadd.f32 %v367_v9, %v353_v8 }
 0x140   :  { %v369_v13 = vadd.f32 %v368_v11, %v354_v10 }
 0x142   :  { %v370_v14 = vadd.f32 %v369_v13, %v355_v12 }
 0x144   :  { %v371_v16 = vrot.slane %v370_v14, 4 }
 0x146   :  { %v372_v17 = vadd.f32 %v371_v16, %v370_v14 }
 0x148   :  { %v373_v18 = vrot.slane %v372_v17, 2 }
 0x14a   :  { %v374_v19 = vadd.f32 %v373_v18, %v372_v17 }
 0x14c   :  { %v375_v20 = vrot.slane %v374_v19, 1 }
 0x14e   :  { %v376_v21 = vadd.f32 %v375_v20, %v374_v19 }
 0x150   :  { %v377_v22 = vmul.f32 0.0078125, %v376_v21 }
 0x152   :  { %v378_v23 = vadd.f32 1e-05, %v377_v22 }
 0x154   :  { %691 = vrsqrt.f32 %v378_v23 }
 0x161   :  { %v692_v32 = vpop.eup %691 }
 0x162   :  { %v380_v33 = vmul.f32 %v692_v32, %v300_v28 }
 0x164   :  { %v381_v37 = vmul.f32 %v380_v33, %v850_v15  ;;  %v387_v40 = vrot.slane %v380_v33, %v386_v29 }
 0x166   :  { %v382_v41 = vsub.f32 %v301_v36, %v381_v37  ;;  %v389_v44 = vmul.f32 %v387_v40, %v802_v26  ;;  %v390_v45 = vmul.f32 %v387_v40, %v806_v30  ;;  %v391_v46 = vmul.f32 %v387_v40, %v810_v34 }
 0x167   :  { %v392_v47 = vmul.f32 %v387_v40, %v814_v38  ;;  %v393_v50 = vmul.f32 %v387_v40, %v818_v42  ;;  %v394_v51 = vmul.f32 %v387_v40, %v825_v48  ;;  %v395_v52 = vmul.f32 %v387_v40, %v831_v54 }
 0x168   :  { %v396_v53 = vmul.f32 %v387_v40, %v837_v60  ;;  %v397_v15 = vmul.f32 %v387_v40, %v804_v27  ;;  %v398_v56 = vmul.f32 %v387_v40, %v808_v31  ;;  %v399_v26 = vmul.f32 %v387_v40, %v812_v35 }
 0x169   :  { %v400_v30 = vmul.f32 %v387_v40, %v816_v39  ;;  %v409_v57 = vrot.slane %v382_v41, %v386_v29  ;;  %v401_v34 = vmul.f32 %v387_v40, %v820_v43  ;;  %v402_v38 = vmul.f32 %v387_v40, %v827_v49 }
 0x16a   :  { %v403_v42 = vmul.f32 %v387_v40, %v833_v55  ;;  %v404_v48 = vmul.f32 %v387_v40, %v839_v61 }
 0x16b   :  { %v411_v54 = vadd.f32 %v409_v57, %v389_v44  ;;  %v412_v58 = vadd.f32 %v409_v57, %v390_v45  ;;  %v413_v60 = vadd.f32 %v409_v57, %v391_v46  ;;  %v414_v59 = vadd.f32 %v409_v57, %v392_v47 }
 0x16c   :  { %v415_v27 = vadd.f32 %v409_v57, %v393_v50  ;;  %v416_v62 = vadd.f32 %v409_v57, %v394_v51  ;;  %v417_v31 = vadd.f32 %v409_v57, %v395_v52  ;;  %v418_v63 = vadd.f32 %v409_v57, %v396_v53 }
 0x16d   :  { %v419_v35 = vadd.f32 %v409_v57, %v397_v15  ;;  %v420_v0 = vadd.f32 %v409_v57, %v398_v56  ;;  %v421_v39 = vadd.f32 %v409_v57, %v399_v26  ;;  %v422_v1 = vadd.f32 %v409_v57, %v400_v30 }
 0x16e   :  { %v423_v2 = vadd.f32 %v409_v57, %v401_v34  ;;  %v424_v43 = vadd.f32 %v409_v57, %v402_v38  ;;  %v425_v3 = vadd.f32 %v409_v57, %v403_v42  ;;  %v426_v49 = vadd.f32 %v409_v57, %v404_v48 }
 0x16f   :  { %v427_v4 = vmax.f32 %v411_v54, 0.0  ;;  %v428_v55 = vmax.f32 %v412_v58, 0.0  ;;  %v429_v5 = vmax.f32 %v413_v60, 0.0  ;;  %v430_v61 = vmax.f32 %v414_v59, 0.0 }
 0x170   :  { %v431_v6 = vmax.f32 %v415_v27, 0.0  ;;  %v432_v7 = vmax.f32 %v416_v62, 0.0  ;;  %v433_v8 = vmax.f32 %v417_v31, 0.0  ;;  %v434_v9 = vmax.f32 %v418_v63, 0.0 }
 0x171   :  { %v435_v10 = vmax.f32 %v419_v35, 0.0  ;;  %v436_v11 = vmax.f32 %v420_v0, 0.0  ;;  %v437_v12 = vmax.f32 %v421_v39, 0.0  ;;  %v438_v13 = vmax.f32 %v422_v1, 0.0 }
 0x172   :  { %v439_v14 = vmax.f32 %v423_v2, 0.0  ;;  %v440_v16 = vmax.f32 %v424_v43, 0.0  ;;  %v441_v17 = vmax.f32 %v425_v3, 0.0  ;;  %v442_v18 = vmax.f32 %v426_v49, 0.0 }
 0x173   :  { %v595_v19 = vpack.c.bf16 %v428_v55, %v427_v4  ;;  %v600_v20 = vpack.c.bf16 %v430_v61, %v429_v5  ;;  %v605_v21 = vpack.c.bf16 %v432_v7, %v431_v6  ;;  %v610_v22 = vpack.c.bf16 %v434_v9, %v433_v8 }
 0x174   :  { %v615_v23 = vpack.c.bf16 %v436_v11, %v435_v10  ;;  %v620_v24 = vpack.c.bf16 %v438_v13, %v437_v12  ;;  %v625_v25 = vpack.c.bf16 %v440_v16, %v439_v14  ;;  %v630_v28 = vpack.c.bf16 %v442_v18, %v441_v17 }
 0x175   :  { %596 = vst [vmem:[%s935_s4] sm:$0xff] %v595_v19   ;;  %632 = vst [vmem:[%s935_s4 + $0x8] sm:$0xff] %v600_v20  }
 0x176   :  { %633 = vst [vmem:[%s935_s4 + $0x10] sm:$0xff] %v605_v21   ;;  %634 = vst [vmem:[%s935_s4 + $0x18] sm:$0xff] %v610_v22  }
 0x177   :  { %635 = vst [vmem:[%s935_s4 + $0x20] sm:$0xff] %v615_v23   ;;  %636 = vst [vmem:[%s935_s4 + $0x28] sm:$0xff] %v620_v24  }
 0x178   :  { %637 = vst [vmem:[%s935_s4 + $0x30] sm:$0xff] %v625_v25   ;;  %638 = vst [vmem:[%s935_s4 + $0x38] sm:$0xff] %v630_v28  }

// kernel: _lambda_.35
= control target key start
LH: loop header
LB: loop body
LE: loop exit
PB: predicated region body
PF: predicated region fallthrough
CT: control target
= control target key end

     0   :  { %vm326_vm0 = vcmask 261120   ;;  %vm692_vm1 = vcmask 130048   ;;  %s1930_s1 = inlined_call_operand.vmem [shape: bf16[288,128], index: 1, kind: input, shape index: {}]   ;;  %s1931_s0 = inlined_call_operand.vmem [shape: bf16[128,288], index: 0, kind: input, shape index: {}]   ;;  %s1932_s5 = inlined_call_operand.vmem [shape: bf16[16,128], index: 5, kind: input, shape index: {}]   ;;  %s1933_s4 = inlined_call_operand.vmem [shape: bf16[128,16], index: 4, kind: input, shape index: {}]   ;;  %s1934_s6 = inlined_call_operand.vmem [shape: f32[1,128], index: 6, kind: input, shape index: {}]   ;;  %s1935_s7 = inlined_call_operand.vmem [shape: f32[1,128], index: 7, kind: input, shape index: {}]   ;;  %s1936_s2 = inlined_call_operand.vmem [shape: f32[1,128], index: 2, kind: input, shape index: {}]   ;;  %s1937_s3 = inlined_call_operand.vmem [shape: f32[1,128], index: 3, kind: input, shape index: {}]   ;;  %s1938_s8 = inlined_call_operand.vmem [shape: bf16[128,128], index: 8, kind: output, shape index: {}]  }
   0x1   :  { %v1368_v0 = vld [vmem:[%s1930_s1 + $0x78] sm:$0xff]   ;;  %v1369_v1 = vld [vmem:[%s1930_s1 + $0x88] sm:$0xff]   ;;  %v1371_v3 = vld [vmem:[%s1930_s1 + $0x70] sm:$0xff]  }
   0x2   :  { %1247 = vmatprep.subr.bf16.mxu0 %v1368_v0  ;;  %v1370_v2 = vld [vmem:[%s1930_s1 + $0x38] sm:$0xff]   ;;  %1330 = vmatprep.subr.bf16.mxu1 %v1369_v1  ;;  %v1372_v4 = vld [vmem:[%s1930_s1 + $0x80] sm:$0xff]   ;;  %v1373_v5 = vld [vmem:[%s1930_s1 + $0x30] sm:$0xff]  }
   0x3   :  { %1248 = vmatpush3.bf16.msra.mxu0 %v1370_v2  ;;  %1331 = vmatpush3.bf16.msra.mxu1 %v1369_v1  ;;  %v1374_v6 = vld [vmem:[%s1931_s0 + $0x8] ss:$12 sps:$4 sm:$0xff]   ;;  %v1376_v8 = vld [vmem:[%s1931_s0 + $0x20] ss:$12 sps:$4 sm:$0xff]   ;;  %v1380_v12 = vld [vmem:[%s1931_s0 + $0x38] ss:$12 sps:$4 sm:$0xff]  }
   0x4   :  { %1249 = vmatprep.subr.bf16.mxu0 %v1371_v3  ;;  %1332 = vmatprep.subr.bf16.mxu1 %v1372_v4  ;;  %v1375_v7 = vld [vmem:[%s1930_s1 + $0x68] sm:$0xff]   ;;  %v1378_v10 = vld [vmem:[%s1930_s1 + $0x60] sm:$0xff]   ;;  %v1381_v13 = vld [vmem:[%s1930_s1 + $0x58] sm:$0xff]  }
   0x5   :  { %1334 = vmatprep.mubr.msk.bf16.mxu1 %vm326_vm0, %v1374_v6  ;;  %v1377_v9 = vld [vmem:[%s1930_s1 + $0x28] sm:$0xff]   ;;  %v1379_v11 = vld [vmem:[%s1930_s1 + $0x20] sm:$0xff]   ;;  %v1382_v14 = vld [vmem:[%s1931_s0 + $0x50] ss:$12 sps:$4 sm:$0xff]  }
   0x6   :  { %v1383_v15 = vld [vmem:[%s1930_s1 + $0x18] sm:$0xff]   ;;  %v1384_v16 = vld [vmem:[%s1930_s1 + $0x50] sm:$0xff]   ;;  %v1387_v19 = vld [vmem:[%s1930_s1 + $0x48] sm:$0xff]  }
   0x7   :  { %1250 = vmatpush3.bf16.msra.mxu0 %v1373_v5  ;;  %1333 = vmatpush3.bf16.msra.mxu1 %v1372_v4  ;;  %v1386_v17 = vld [vmem:[%s1931_s0 + $0x68] ss:$12 sps:$4 sm:$0xff]   ;;  %v1388_v20 = vld [vmem:[%s1931_s0 + $0x80] ss:$12 sps:$4 sm:$0xff]   ;;  %v1394_v23 = vld [vmem:[%s1931_s0 + $0x4] ss:$12 sps:$4 sm:$0xff]  }
   0x8   :  { %1251 = vmatprep.subr.bf16.mxu0 %v1375_v7  ;;  %v1385_v18 = vld [vmem:[%s1930_s1 + $0x10] sm:$0xff]   ;;  %v1389_v21 = vld [vmem:[%s1930_s1 + $0x8] sm:$0xff]   ;;  %v1390_v22 = vld [vmem:[%s1930_s1 + $0x40] sm:$0xff]   ;;  %383 = vmatprep.mubr.bf16.mxu0 %v1394_v23 }
   0x9   :  { %v1395_v24 = vld [vmem:[%s1931_s0 + $0x98] ss:$12 sps:$4 sm:$0xff]   ;;  %v1392_v27 = vld [vmem:[%s1931_s0] ss:$12 sps:$4 sm:$0xff]   ;;  %v1397_v28 = vld [vmem:[%s1931_s0 + $0xb0] ss:$12 sps:$4 sm:$0xff]  }
   0xa   :  { %1335 = vmatmul.mubr.msk.bf16.vlgmr.msra.gmra.mxu1 %vm326_vm0, %v1376_v8  ;;  %v1396_v25 = vld [vmem:[%s1932_s5] sm:$0xff]   ;;  %v1398_v29 = vld [vmem:[%s1931_s0 + $0x1c] ss:$12 sps:$4 sm:$0xff]   ;;  %v1405_v34 = vld [vmem:[%s1933_s4 + $0x10] sm:$0xff]  }
   0xb   :  { %1252 = vmatpush3.bf16.msra.mxu0 %v1377_v9  ;;  %1338 = vmatprep.mubr.msk.bf16.mxu1 %vm326_vm0, %v1380_v12  ;;  %v1391_v26 = vld [vmem:[%s1930_s1] sm:$0xff]   ;;  %v1402_v32 = vld [vmem:[%s1933_s4 + $0x8] sm:$0xff]   ;;  %v1406_v35 = vld [vmem:[%s1931_s0 + $0x30] ss:$12 sps:$4 sm:$0xff]  }
   0xc   :  { %1253 = vmatprep.subr.bf16.mxu0 %v1378_v10  ;;  %1350 = vmatprep.subr.bf16.mxu1 %v1396_v25  ;;  %v1400_v30 = vld [vmem:[%s1933_s4] sm:$0xff]   ;;  %v1407_v36 = vld [vmem:[%s1933_s4 + $0x18] sm:$0xff]   ;;  %v1411_v39 = vld [vmem:[%s1931_s0 + $0x48] ss:$12 sps:$4 sm:$0xff]  }
   0xd   :  { %1351 = vmatpush3.bf16.msra.mxu1 %v1396_v25  ;;  %v1401_v31 = vld [vmem:[%s1931_s0 + $0x18] ss:$12 sps:$4 sm:$0xff]   ;;  %v1403_v33 = vld [vmem:[%s1931_s0 + $0x34] ss:$12 sps:$4 sm:$0xff]   ;;  %v1412_v40 = vld [vmem:[%s1933_s4 + $0x28] sm:$0xff]  }
   0xe   :  { %v1408_v37 = vld [vmem:[%s1931_s0 + $0x4c] ss:$12 sps:$4 sm:$0xff]   ;;  %v1410_v38 = vld [vmem:[%s1933_s4 + $0x20] sm:$0xff]   ;;  %v1415_v42 = vld [vmem:[%s1933_s4 + $0x30] sm:$0xff]  }
   0xf   :  { %1254 = vmatpush3.bf16.msra.mxu0 %v1379_v11  ;;  %v1413_v41 = vld [vmem:[%s1931_s0 + $0x64] ss:$12 sps:$4 sm:$0xff]   ;;  %v1416_v43 = vld [vmem:[%s1931_s0 + $0x60] ss:$12 sps:$4 sm:$0xff]   ;;  %v1417_v44 = vld [vmem:[%s1933_s4 + $0x38] sm:$0xff]  }
  0x10   :  { %1255 = vmatprep.subr.bf16.mxu0 %v1381_v13  ;;  %v1418_v45 = vld [vmem:[%s1931_s0 + $0x7c] ss:$12 sps:$4 sm:$0xff]   ;;  %v1420_v46 = vld [vmem:[%s1931_s0 + $0x78] ss:$12 sps:$4 sm:$0xff]   ;;  %v1421_v47 = vld [vmem:[%s1931_s0 + $0x94] ss:$12 sps:$4 sm:$0xff]  }
  0x11   :  { %v1423_v48 = vld [vmem:[%s1931_s0 + $0x90] ss:$12 sps:$4 sm:$0xff]   ;;  %v1424_v49 = vld [vmem:[%s1931_s0 + $0xac] ss:$12 sps:$4 sm:$0xff]   ;;  %v1426_v50 = vld [vmem:[%s1931_s0 + $0xa8] ss:$12 sps:$4 sm:$0xff]  }
  0x12   :  { %1339 = vmatmul.mubr.msk.bf16.gmra.mxu1 %vm326_vm0, %v1382_v14 }
  0x13   :  { %1256 = vmatpush3.bf16.msra.mxu0 %v1383_v15  ;;  %1342 = vmatprep.mubr.msk.bf16.mxu1 %vm326_vm0, %v1386_v17 }
  0x14   :  { %1257 = vmatprep.subr.bf16.mxu0 %v1384_v16 }
  0x17   :  { %1258 = vmatpush3.bf16.msra.mxu0 %v1385_v18 }
  0x18   :  { %1259 = vmatprep.subr.bf16.mxu0 %v1387_v19 }
  0x1a   :  { %1343 = vmatmul.mubr.msk.bf16.gmra.mxu1 %vm326_vm0, %v1388_v20 }
  0x1b   :  { %1260 = vmatpush3.bf16.msra.mxu0 %v1389_v21  ;;  %1346 = vmatprep.mubr.msk.bf16.mxu1 %vm326_vm0, %v1395_v24 }
  0x1c   :  { %1261 = vmatprep.subr.bf16.mxu0 %v1390_v22 }
  0x1f   :  { %1262 = vmatpush3.bf16.msra.mxu0 %v1391_v26 }
  0x22   :  { %384 = vmatmul.mubr.bf16.vlgmr.msra.gmra.mxu0 %v1392_v27  ;;  %1347 = vmatmul.mubr.msk.bf16.gmra.mxu1 %vm326_vm0, %v1397_v28 }
  0x23   :  { %391 = vmatprep.mubr.bf16.mxu0 %v1398_v29  ;;  %1352 = vmatprep.mubr.msk.bf16.mxu1 %vm692_vm1, %v1400_v30 }
  0x2a   :  { %392 = vmatmul.mubr.bf16.gmra.mxu0 %v1401_v31  ;;  %1353 = vmatmul.mubr.msk.bf16.vlgmr.msra.gmra.mxu1 %vm692_vm1, %v1402_v32 }
  0x2b   :  { %399 = vmatprep.mubr.bf16.mxu0 %v1403_v33  ;;  %1356 = vmatprep.mubr.msk.bf16.mxu1 %vm692_vm1, %v1405_v34 }
  0x32   :  { %400 = vmatmul.mubr.bf16.gmra.mxu0 %v1406_v35  ;;  %1357 = vmatmul.mubr.msk.bf16.gmra.mxu1 %vm692_vm1, %v1407_v36 }
  0x33   :  { %407 = vmatprep.mubr.bf16.mxu0 %v1408_v37  ;;  %1360 = vmatprep.mubr.msk.bf16.mxu1 %vm692_vm1, %v1410_v38 }
  0x3a   :  { %408 = vmatmul.mubr.bf16.gmra.mxu0 %v1411_v39  ;;  %1361 = vmatmul.mubr.msk.bf16.gmra.mxu1 %vm692_vm1, %v1412_v40 }
  0x3b   :  { %415 = vmatprep.mubr.bf16.mxu0 %v1413_v41  ;;  %1364 = vmatprep.mubr.msk.bf16.mxu1 %vm692_vm1, %v1415_v42 }
  0x42   :  { %416 = vmatmul.mubr.bf16.gmra.mxu0 %v1416_v43  ;;  %1365 = vmatmul.mubr.msk.bf16.gmra.mxu1 %vm692_vm1, %v1417_v44 }
  0x43   :  { %423 = vmatprep.mubr.bf16.mxu0 %v1418_v45 }
  0x4a   :  { %424 = vmatmul.mubr.bf16.gmra.mxu0 %v1420_v46 }
  0x4b   :  { %431 = vmatprep.mubr.bf16.mxu0 %v1421_v47 }
  0x52   :  { %432 = vmatmul.mubr.bf16.gmra.mxu0 %v1423_v48 }
  0x53   :  { %439 = vmatprep.mubr.bf16.mxu0 %v1424_v49 }
  0x5a   :  { %440 = vmatmul.mubr.bf16.gmra.mxu0 %v1426_v50 }
  0xca   :  { %v1645_v51 = vpop.f32.mrf.mxu1 }
  0xcc   :  { %v1647_v52 = vpop.f32.mrf.mxu1 }
  0xce   :  { %v1649_v53 = vpop.f32.mrf.mxu1 }
  0xd0   :  { %v1651_v54 = vpop.f32.mrf.mxu1 }
  0xd2   :  { %v1653_v55 = vpop.f32.mrf.mxu1 }
  0xd4   :  { %v1655_v56 = vpop.f32.mrf.mxu1 }
  0xd6   :  { %v1657_v57 = vpop.f32.mrf.mxu1 }
  0xd8   :  { %v1659_v58 = vpop.f32.mrf.mxu1 }
  0xda   :  { %v1661_v59 = vpop.f32.mrf.mxu1 }
  0xdc   :  { %v1663_v60 = vpop.f32.mrf.mxu1 }
  0xde   :  { %v1665_v61 = vpop.f32.mrf.mxu1 }
  0xe0   :  { %v1667_v62 = vpop.f32.mrf.mxu1 }
  0xe2   :  { %v1263_v63 = vpop.f32.mrf.mxu0  ;;  %v1669_v0 = vpop.f32.mrf.mxu1 }
  0xe4   :  { %v1264_v1 = vpop.f32.mrf.mxu0  ;;  %v1671_v2 = vpop.f32.mrf.mxu1 }
  0xe5   :  { %v1265_v50 = vadd.f32 %v1264_v1, %v1263_v63 }
  0xe6   :  { %v1266_v3 = vpop.f32.mrf.mxu0  ;;  %v1673_v4 = vpop.f32.mrf.mxu1 }
  0xe8   :  { %v1267_v5 = vpop.f32.mrf.mxu0  ;;  %v1675_v6 = vpop.f32.mrf.mxu1 }
  0xe9   :  { %v1268_v46 = vadd.f32 %v1267_v5, %v1266_v3  ;;  %v1728_v3 = vadd.f32 %v1265_v50, %v1647_v52 }
  0xea   :  { %v1269_v7 = vpop.f32.mrf.mxu0  ;;  %v1677_v8 = vpop.f32.mrf.mxu1 }
  0xec   :  { %v1270_v9 = vpop.f32.mrf.mxu0  ;;  %v1679_v10 = vpop.f32.mrf.mxu1 }
  0xee   :  { %v1272_v11 = vpop.f32.mrf.mxu0  ;;  %v1681_v12 = vpop.f32.mrf.mxu1 }
  0xf0   :  { %v1273_v13 = vpop.f32.mrf.mxu0  ;;  %v1683_v14 = vpop.f32.mrf.mxu1 }
  0xf1   :  { %v816_v15 = vadd.f32 %v1683_v14, %v1679_v10 }
  0xf2   :  { %v1275_v16 = vpop.f32.mrf.mxu0  ;;  %v1687_v17 = vpop.f32.mrf.mxu1 }
  0xf3   :  { %v817_v18 = vadd.f32 %v1677_v8, %v816_v15  ;;  %v1271_v15 = vadd.f32 %v1270_v9, %v1269_v7 }
  0xf4   :  { %v1276_v19 = vpop.f32.mrf.mxu0  ;;  %v1690_v20 = vpop.f32.mrf.mxu1 }
  0xf5   :  { %v818_v21 = vadd.f32 %v1681_v12, %v817_v18  ;;  %v1731_v5 = vadd.f32 %v1645_v51, %v1271_v15  ;;  %v1277_v63 = vadd.f32 %v1276_v19, %v1275_v16 }
  0xf6   :  { %v1278_v22 = vpop.f32.mrf.mxu0  ;;  %v1693_v23 = vpop.f32.mrf.mxu1 }
  0xf7   :  { %v819_v24 = vadd.f32 %v818_v21, %v1690_v20  ;;  %v1741_v52 = vadd.f32 %v1277_v63, %v1655_v56 }
  0xf8   :  { %v1279_v25 = vpop.f32.mrf.mxu0  ;;  %v1696_v26 = vpop.f32.mrf.mxu1 }
  0xf9   :  { %v820_v27 = vadd.f32 %v819_v24, %v1696_v26 }
  0xfa   :  { %v1281_v28 = vpop.f32.mrf.mxu0  ;;  %v1699_v29 = vpop.f32.mrf.mxu1 }
  0xfb   :  { %v821_v30 = vadd.f32 %v1687_v17, %v820_v27  ;;  %v1724_v27 = vadd.f32 %v1268_v46, %v1651_v54 }
  0xfc   :  { %v1282_v31 = vpop.f32.mrf.mxu0  ;;  %v1702_v32 = vpop.f32.mrf.mxu1 }
  0xfd   :  { %v822_v33 = vadd.f32 %v1693_v23, %v821_v30  ;;  %v1274_v30 = vadd.f32 %v1273_v13, %v1272_v11  ;;  %v547_v9 = vadd.f32 %v1724_v27, %v1728_v3  ;;  %v1280_v11 = vadd.f32 %v1279_v25, %v1278_v22 }
  0xfe   :  { %v1284_v34 = vpop.f32.mrf.mxu0  ;;  %v1705_v35 = vpop.f32.mrf.mxu1  ;;  %v1283_v51 = vadd.f32 %v1282_v31, %v1281_v28 }
  0xff   :  { %v823_v36 = vadd.f32 %v822_v33, %v1702_v32  ;;  %v1737_v54 = vadd.f32 %v1649_v53, %v1274_v30  ;;  %v1745_v46 = vadd.f32 %v1280_v11, %v1659_v58 }
 0x100   :  { %v1285_v37 = vpop.f32.mrf.mxu0  ;;  %v1708_v38 = vpop.f32.mrf.mxu1  ;;  %v1749_v25 = vadd.f32 %v1653_v55, %v1283_v51 }
 0x101   :  { %v824_v39 = vadd.f32 %v823_v36, %v1708_v38 }
 0x102   :  { %v1287_v40 = vpop.f32.mrf.mxu0  ;;  %v1711_v41 = vpop.f32.mrf.mxu1 }
 0x103   :  { %v825_v42 = vadd.f32 %v1699_v29, %v824_v39 }
 0x104   :  { %v1288_v43 = vpop.f32.mrf.mxu0  ;;  %v1714_v44 = vpop.f32.mrf.mxu1 }
 0x105   :  { %v826_v45 = vadd.f32 %v1705_v35, %v825_v42  ;;  %v548_v42 = vadd.f32 %v547_v9, %v1731_v5  ;;  %v1289_v15 = vadd.f32 %v1288_v43, %v1287_v40 }
 0x106   :  { %v1290_v47 = vpop.f32.mrf.mxu0  ;;  %v1717_v48 = vpop.f32.mrf.mxu1 }
 0x107   :  { %v827_v49 = vadd.f32 %v826_v45, %v1714_v44  ;;  %v549_v19 = vadd.f32 %v548_v42, %v1737_v54 }
 0x108   :  { %v1291_v18 = vpop.f32.mrf.mxu0  ;;  %v1720_v21 = vpop.f32.mrf.mxu1 }
 0x109   :  { %v828_v24 = vadd.f32 %v827_v49, %v1720_v21  ;;  %v1286_v49 = vadd.f32 %v1285_v37, %v1284_v34  ;;  %v550_v22 = vadd.f32 %v549_v19, %v1741_v52  ;;  %v1292_v30 = vadd.f32 %v1291_v18, %v1290_v47 }
 0x10a   :  { %v1293_v33 = vpop.f32.mrf.mxu0  ;;  %v1757_v37 = vadd.f32 %v1289_v15, %v1663_v60 }
 0x10b   :  { %v829_v36 = vadd.f32 %v1711_v41, %v828_v24  ;;  %v551_v28 = vadd.f32 %v550_v22, %v1745_v46  ;;  %v1753_v31 = vadd.f32 %v1657_v57, %v1286_v49  ;;  %v1761_v43 = vadd.f32 %v1292_v30, %v1667_v62 }
 0x10c   :  { %v1294_v1 = vpop.f32.mrf.mxu0 }
 0x10d   :  { %v830_v7 = vadd.f32 %v1717_v48, %v829_v36  ;;  %v552_v34 = vadd.f32 %v551_v28, %v1749_v25  ;;  %v1295_v63 = vadd.f32 %v1294_v1, %v1293_v33 }
 0x10e   :  { %v1296_v13 = vpop.f32.mrf.mxu0 }
 0x10f   :  { %v831_v39 = vrot.slane %v830_v7, 4  ;;  %v553_v40 = vadd.f32 %v552_v34, %v1753_v31  ;;  %v1767_v18 = vadd.f32 %v1661_v59, %v1295_v63 }
 0x110   :  { %v1297_v45 = vpop.f32.mrf.mxu0 }
 0x111   :  { %v832_v16 = vadd.f32 %v831_v39, %v830_v7  ;;  %v1298_v9 = vadd.f32 %v1297_v45, %v1296_v13  ;;  %v554_v47 = vadd.f32 %v553_v40, %v1757_v37 }
 0x112   :  { %v1299_v50 = vpop.f32.mrf.mxu0 }
 0x113   :  { %v833_v53 = vrot.slane %v832_v16, 2  ;;  %v555_v62 = vadd.f32 %v554_v47, %v1761_v43  ;;  %v1775_v13 = vadd.f32 %v1665_v61, %v1298_v9 }
 0x114   :  { %v1300_v24 = vpop.f32.mrf.mxu0 }
 0x115   :  { %v834_v56 = vadd.f32 %v833_v53, %v832_v16  ;;  %v1301_v39 = vadd.f32 %v1300_v24, %v1299_v50  ;;  %v556_v45 = vadd.f32 %v555_v62, %v1767_v18 }
 0x116   :  { %v1302_v36 = vpop.f32.mrf.mxu0 }
 0x117   :  { %v835_v58 = vrot.slane %v834_v56, 1  ;;  %v1779_v59 = vadd.f32 %v1301_v39, %v1671_v2  ;;  %v557_v53 = vadd.f32 %v556_v45, %v1775_v13 }
 0x118   :  { %v1303_v7 = vpop.f32.mrf.mxu0 }
 0x119   :  { %v836_v55 = vadd.f32 %v835_v58, %v834_v56  ;;  %v1304_v51 = vadd.f32 %v1303_v7, %v1302_v36  ;;  %v558_v2 = vadd.f32 %v557_v53, %v1779_v59 }
 0x11a   :  { %v1305_v11 = vpop.f32.mrf.mxu0 }
 0x11b   :  { %v1763_v57 = vmul.f32 0.0078125, %v836_v55  ;;  %v1787_v61 = vadd.f32 %v1304_v51, %v1675_v6 }
 0x11c   :  { %v1306_v60 = vpop.f32.mrf.mxu0 }
 0x11d   :  { %v838_v33 = vsub.f32 %v1679_v10, %v1763_v57  ;;  %v839_v1 = vsub.f32 %v1683_v14, %v1763_v57  ;;  %v840_v16 = vsub.f32 %v1677_v8, %v1763_v57  ;;  %v841_v50 = vsub.f32 %v1681_v12, %v1763_v57 }
 0x11e   :  { %v1308_v42 = vpop.f32.mrf.mxu0  ;;  %v842_v15 = vsub.f32 %v1690_v20, %v1763_v57  ;;  %v1307_v28 = vadd.f32 %v1306_v60, %v1305_v11  ;;  %v843_v36 = vsub.f32 %v1696_v26, %v1763_v57  ;;  %v559_v63 = vadd.f32 %v558_v2, %v1787_v61 }
 0x11f   :  { %v854_v19 = vmul.f32 %v838_v33, %v838_v33  ;;  %v855_v49 = vmul.f32 %v839_v1, %v839_v1  ;;  %v856_v24 = vmul.f32 %v840_v16, %v840_v16  ;;  %v857_v58 = vmul.f32 %v841_v50, %v841_v50 }
 0x120   :  { %v1309_v22 = vpop.f32.mrf.mxu0  ;;  %v1796_v7 = vadd.f32 %v1669_v0, %v1307_v28  ;;  %v844_v55 = vsub.f32 %v1687_v17, %v1763_v57  ;;  %v858_v40 = vmul.f32 %v842_v15, %v842_v15  ;;  %v845_v47 = vsub.f32 %v1693_v23, %v1763_v57 }
 0x121   :  { %v870_v56 = vadd.f32 %v855_v49, %v854_v19  ;;  %v1310_v30 = vadd.f32 %v1309_v22, %v1308_v42  ;;  %v859_v39 = vmul.f32 %v843_v36, %v843_v36  ;;  %v846_v0 = vsub.f32 %v1702_v32, %v1763_v57 }
 0x122   :  { %v560_v11 = vadd.f32 %v559_v63, %v1796_v7  ;;  %v860_v1 = vmul.f32 %v844_v55, %v844_v55  ;;  %v847_v42 = vsub.f32 %v1708_v38, %v1763_v57  ;;  %v861_v51 = vmul.f32 %v845_v47, %v845_v47 }
 0x123   :  { %v871_v34 = vadd.f32 %v870_v56, %v856_v24  ;;  %v1799_v6 = vadd.f32 %v1673_v4, %v1310_v30  ;;  %v848_v19 = vsub.f32 %v1699_v29, %v1763_v57  ;;  %v862_v49 = vmul.f32 %v846_v0, %v846_v0 }
 0x124   :  { %v849_v22 = vsub.f32 %v1705_v35, %v1763_v57  ;;  %v863_v15 = vmul.f32 %v847_v42, %v847_v42  ;;  %v850_v56 = vsub.f32 %v1714_v44, %v1763_v57 }
 0x125   :  { %v872_v9 = vadd.f32 %v871_v34, %v857_v58  ;;  %v561_v33 = vadd.f32 %v560_v11, %v1799_v6  ;;  %v864_v28 = vmul.f32 %v848_v19, %v848_v19  ;;  %v851_v58 = vsub.f32 %v1720_v21, %v1763_v57 }
 0x126   :  { %v865_v34 = vmul.f32 %v849_v22, %v849_v22 }
 0x127   :  { %v873_v60 = vadd.f32 %v872_v9, %v858_v40  ;;  %v562_v62 = vrot.slane %v561_v33, 4  ;;  %v852_v40 = vsub.f32 %v1711_v41, %v1763_v57  ;;  %v866_v9 = vmul.f32 %v850_v56, %v850_v56 }
 0x129   :  { %v874_v4 = vadd.f32 %v873_v60, %v859_v39  ;;  %v563_v16 = vadd.f32 %v562_v62, %v561_v33  ;;  %v853_v39 = vsub.f32 %v1717_v48, %v1763_v57  ;;  %v867_v60 = vmul.f32 %v851_v58, %v851_v58 }
 0x12b   :  { %v875_v45 = vadd.f32 %v874_v4, %v860_v1  ;;  %v564_v53 = vrot.slane %v563_v16, 2  ;;  %v868_v4 = vmul.f32 %v852_v40, %v852_v40  ;;  %v869_v42 = vmul.f32 %v853_v39, %v853_v39 }
 0x12d   :  { %v876_v50 = vadd.f32 %v875_v45, %v861_v51  ;;  %v565_v24 = vadd.f32 %v564_v53, %v563_v16 }
 0x12f   :  { %v877_v2 = vadd.f32 %v876_v50, %v862_v49  ;;  %v566_v36 = vrot.slane %v565_v24, 1 }
 0x131   :  { %v878_v30 = vadd.f32 %v877_v2, %v863_v15  ;;  %v567_v55 = vadd.f32 %v566_v36, %v565_v24 }
 0x133   :  { %v879_v63 = vadd.f32 %v878_v30, %v864_v28  ;;  %v1821_v47 = vmul.f32 0.0078125, %v567_v55 }
 0x135   :  { %v880_v11 = vadd.f32 %v879_v63, %v865_v34  ;;  %v569_v0 = vsub.f32 %v1728_v3, %v1821_v47  ;;  %v570_v1 = vsub.f32 %v1724_v27, %v1821_v47  ;;  %v571_v45 = vsub.f32 %v1731_v5, %v1821_v47 }
 0x136   :  { %v572_v50 = vsub.f32 %v1737_v54, %v1821_v47  ;;  %v573_v22 = vsub.f32 %v1741_v52, %v1821_v47  ;;  %v574_v56 = vsub.f32 %v1745_v46, %v1821_v47  ;;  %v575_v58 = vsub.f32 %v1749_v25, %v1821_v47 }
 0x137   :  { %v881_v33 = vadd.f32 %v880_v11, %v866_v9  ;;  %v585_v16 = vmul.f32 %v569_v0, %v569_v0  ;;  %v586_v19 = vmul.f32 %v570_v1, %v570_v1  ;;  %v587_v15 = vmul.f32 %v571_v45, %v571_v45 }
 0x138   :  { %v588_v28 = vmul.f32 %v572_v50, %v572_v50  ;;  %v589_v34 = vmul.f32 %v573_v22, %v573_v22  ;;  %v576_v55 = vsub.f32 %v1753_v31, %v1821_v47  ;;  %v590_v40 = vmul.f32 %v574_v56, %v574_v56 }
 0x139   :  { %v882_v62 = vadd.f32 %v881_v33, %v867_v60  ;;  %v601_v2 = vadd.f32 %v586_v19, %v585_v16  ;;  %v577_v39 = vsub.f32 %v1757_v37, %v1821_v47  ;;  %v591_v60 = vmul.f32 %v575_v58, %v575_v58 }
 0x13a   :  { %v578_v0 = vsub.f32 %v1761_v43, %v1821_v47  ;;  %v592_v1 = vmul.f32 %v576_v55, %v576_v55  ;;  %v580_v16 = vsub.f32 %v1775_v13, %v1821_v47 }
 0x13b   :  { %v883_v51 = vadd.f32 %v882_v62, %v868_v4  ;;  %v602_v30 = vadd.f32 %v601_v2, %v587_v15  ;;  %v582_v2 = vsub.f32 %v1787_v61, %v1821_v47 }
 0x13c   :  { %v594_v19 = vmul.f32 %v578_v0, %v578_v0 }
 0x13d   :  { %v884_v49 = vadd.f32 %v883_v51, %v869_v42  ;;  %v603_v63 = vadd.f32 %v602_v30, %v588_v28  ;;  %v579_v42 = vsub.f32 %v1767_v18, %v1821_v47  ;;  %v593_v51 = vmul.f32 %v577_v39, %v577_v39 }
 0x13e   :  { %v583_v30 = vsub.f32 %v1796_v7, %v1821_v47 }
 0x13f   :  { %v885_v53 = vrot.slane %v884_v49, 4  ;;  %v604_v9 = vadd.f32 %v603_v63, %v589_v34  ;;  %v595_v22 = vmul.f32 %v579_v42, %v579_v42  ;;  %v584_v34 = vsub.f32 %v1799_v6, %v1821_v47 }
 0x140   :  { %v598_v63 = vmul.f32 %v582_v2, %v582_v2  ;;  %v815_v2 = vld [vmem:[%s1935_s7] sm:$0x1] }
 0x141   :  { %v886_v24 = vadd.f32 %v885_v53, %v884_v49  ;;  %v605_v33 = vadd.f32 %v604_v9, %v590_v40  ;;  %v581_v53 = vsub.f32 %v1779_v59, %v1821_v47  ;;  %v599_v9 = vmul.f32 %v583_v30, %v583_v30 }
 0x142   :  { %v600_v39 = vmul.f32 %v584_v34, %v584_v34 }
 0x143   :  { %v887_v36 = vrot.slane %v886_v24, 2  ;;  %v606_v4 = vadd.f32 %v605_v33, %v591_v60 }
 0x145   :  { %v888_v11 = vadd.f32 %v887_v36, %v886_v24  ;;  %v607_v45 = vadd.f32 %v606_v4, %v592_v1  ;;  %v596_v24 = vmul.f32 %v580_v16, %v580_v16  ;;  %v597_v36 = vmul.f32 %v581_v53, %v581_v53 }
 0x146   :  { %v898_v16 = vlaneseq }
 0x147   :  { %v889_v62 = vrot.slane %v888_v11, 1  ;;  %v608_v49 = vadd.f32 %v607_v45, %v593_v51  ;;  %v814_v45 = vld [vmem:[%s1934_s6] sm:$0x1] }
 0x148   :  { %v899_v53 = vshrl.u32 %v898_v16, 7 }
 0x149   :  { %v890_v50 = vadd.f32 %v889_v62, %v888_v11  ;;  %v609_v15 = vadd.f32 %v608_v49, %v594_v19 }
 0x14b   :  { %v610_v56 = vadd.f32 %v609_v15, %v595_v22  ;;  %v891_v28 = vmul.f32 0.0078125, %v890_v50 }
 0x14d   :  { %v611_v58 = vadd.f32 %v610_v56, %v596_v24  ;;  %v892_v40 = vadd.f32 1e-05, %v891_v28  ;;  %v900_v24 = vsub.s32 0, %v899_v53 }
 0x14f   :  { %v612_v55 = vadd.f32 %v611_v58, %v597_v36  ;;  %1427 = vrsqrt.f32 %v892_v40  ;;  %v545_v58 = vld [vmem:[%s1936_s2] sm:$0x1] }
 0x151   :  { %v613_v11 = vadd.f32 %v612_v55, %v598_v63 }
 0x153   :  { %v614_v60 = vadd.f32 %v613_v11, %v599_v9 }
 0x155   :  { %v615_v33 = vadd.f32 %v614_v60, %v600_v39 }
 0x157   :  { %v616_v0 = vrot.slane %v615_v33, 4 }
 0x159   :  { %v617_v1 = vadd.f32 %v616_v0, %v615_v33 }
 0x15b   :  { %v618_v4 = vrot.slane %v617_v1, 2 }
 0x15c   :  { %v1428_v51 = vpop.eup %1427 }
 0x15d   :  { %v619_v62 = vadd.f32 %v618_v4, %v617_v1  ;;  %v894_v50 = vmul.f32 %v1428_v51, %v814_v45 }
 0x15f   :  { %v620_v42 = vrot.slane %v619_v62, 1  ;;  %v895_v15 = vmul.f32 %v894_v50, %v1763_v57  ;;  %v945_v28 = vrot.slane %v894_v50, %v900_v24 }
 0x161   :  { %v621_v19 = vadd.f32 %v620_v42, %v619_v62  ;;  %v896_v56 = vsub.f32 %v815_v2, %v895_v15  ;;  %v960_v36 = vmul.f32 %v945_v28, %v1720_v21  ;;  %v947_v34 = vmul.f32 %v945_v28, %v1679_v10 }
 0x162   :  { %v948_v63 = vmul.f32 %v945_v28, %v1683_v14  ;;  %v949_v57 = vmul.f32 %v1677_v8, %v945_v28  ;;  %v950_v55 = vmul.f32 %v1681_v12, %v945_v28  ;;  %v951_v40 = vmul.f32 %v945_v28, %v1690_v20 }
 0x163   :  { %v622_v49 = vmul.f32 0.0078125, %v621_v19  ;;  %v967_v30 = vrot.slane %v896_v56, %v900_v24  ;;  %v952_v9 = vmul.f32 %v945_v28, %v1696_v26  ;;  %v953_v11 = vmul.f32 %v1687_v17, %v945_v28  ;;  %v546_v17 = vld [vmem:[%s1937_s3] sm:$0x1] }
 0x164   :  { %v954_v21 = vmul.f32 %v1693_v23, %v945_v28  ;;  %v955_v33 = vmul.f32 %v945_v28, %v1702_v32  ;;  %v956_v10 = vmul.f32 %v945_v28, %v1708_v38  ;;  %v957_v14 = vmul.f32 %v1699_v29, %v945_v28 }
 0x165   :  { %v623_v22 = vadd.f32 1e-05, %v622_v49  ;;  %v1876_v60 = vadd.f32 %v967_v30, %v960_v36  ;;  %v958_v12 = vmul.f32 %v1705_v35, %v945_v28  ;;  %v959_v20 = vmul.f32 %v945_v28, %v1714_v44 }
 0x166   :  { %v961_v26 = vmul.f32 %v1711_v41, %v945_v28  ;;  %v962_v23 = vmul.f32 %v1717_v48, %v945_v28  ;;  %v969_v0 = vadd.f32 %v967_v30, %v947_v34  ;;  %v970_v1 = vadd.f32 %v967_v30, %v948_v63 }
 0x167   :  { %1429 = vrsqrt.f32 %v623_v22  ;;  %v971_v32 = vadd.f32 %v967_v30, %v949_v57  ;;  %v972_v29 = vadd.f32 %v967_v30, %v950_v55  ;;  %v973_v62 = vadd.f32 %v967_v30, %v951_v40 }
 0x168   :  { %v974_v42 = vadd.f32 %v967_v30, %v952_v9  ;;  %v975_v35 = vadd.f32 %v967_v30, %v953_v11  ;;  %v976_v51 = vadd.f32 %v967_v30, %v954_v21  ;;  %v977_v44 = vadd.f32 %v967_v30, %v955_v33 }
 0x169   :  { %v978_v41 = vadd.f32 %v967_v30, %v956_v10  ;;  %v979_v16 = vadd.f32 %v967_v30, %v957_v14  ;;  %v980_v19 = vadd.f32 %v967_v30, %v958_v12  ;;  %v981_v50 = vadd.f32 %v967_v30, %v959_v20 }
 0x16a   :  { %v983_v48 = vadd.f32 %v967_v30, %v961_v26  ;;  %v984_v53 = vadd.f32 %v967_v30, %v962_v23 }
 0x174   :  { %v1430_v39 = vpop.eup %1429 }
 0x175   :  { %v625_v8 = vmul.f32 %v1430_v39, %v545_v58 }
 0x177   :  { %v626_v38 = vmul.f32 %v625_v8, %v1821_v47  ;;  %v901_v4 = vrot.slane %v625_v8, %v900_v24 }
 0x179   :  { %v627_v45 = vsub.f32 %v546_v17, %v626_v38  ;;  %v903_v49 = vmul.f32 %v901_v4, %v1728_v3  ;;  %v904_v22 = vmul.f32 %v901_v4, %v1724_v27  ;;  %v905_v47 = vmul.f32 %v901_v4, %v1731_v5 }
 0x17a   :  { %v906_v15 = vmul.f32 %v901_v4, %v1737_v54  ;;  %v907_v2 = vmul.f32 %v901_v4, %v1741_v52  ;;  %v908_v56 = vmul.f32 %v901_v4, %v1745_v46  ;;  %v909_v28 = vmul.f32 %v901_v4, %v1749_v25 }
 0x17b   :  { %v910_v36 = vmul.f32 %v901_v4, %v1753_v31  ;;  %v911_v58 = vmul.f32 %v901_v4, %v1757_v37  ;;  %v912_v3 = vmul.f32 %v901_v4, %v1761_v43  ;;  %v913_v30 = vmul.f32 %v901_v4, %v1767_v18 }
 0x17c   :  { %v914_v27 = vmul.f32 %v901_v4, %v1775_v13  ;;  %v923_v34 = vrot.slane %v627_v45, %v900_v24  ;;  %v915_v5 = vmul.f32 %v901_v4, %v1779_v59  ;;  %v916_v54 = vmul.f32 %v901_v4, %v1787_v61 }
 0x17d   :  { %v917_v52 = vmul.f32 %v901_v4, %v1796_v7  ;;  %v918_v46 = vmul.f32 %v901_v4, %v1799_v6 }
 0x17e   :  { %v925_v25 = vadd.f32 %v923_v34, %v903_v49  ;;  %v926_v63 = vadd.f32 %v923_v34, %v904_v22  ;;  %v927_v31 = vadd.f32 %v923_v34, %v905_v47  ;;  %v928_v57 = vadd.f32 %v923_v34, %v906_v15 }
 0x17f   :  { %v929_v37 = vadd.f32 %v923_v34, %v907_v2  ;;  %v930_v55 = vadd.f32 %v923_v34, %v908_v56  ;;  %v931_v43 = vadd.f32 %v923_v34, %v909_v28  ;;  %v932_v40 = vadd.f32 %v923_v34, %v910_v36 }
 0x180   :  { %v933_v18 = vadd.f32 %v923_v34, %v911_v58  ;;  %v934_v9 = vadd.f32 %v923_v34, %v912_v3  ;;  %v935_v13 = vadd.f32 %v923_v34, %v913_v30  ;;  %v936_v24 = vadd.f32 %v923_v34, %v914_v27 }
 0x181   :  { %v937_v11 = vadd.f32 %v923_v34, %v915_v5  ;;  %v938_v59 = vadd.f32 %v923_v34, %v916_v54  ;;  %v939_v21 = vadd.f32 %v923_v34, %v917_v52  ;;  %v940_v61 = vadd.f32 %v923_v34, %v918_v46 }
 0x182   :  { %v985_v39 = vadd.f32 %v969_v0, %v925_v25  ;;  %v986_v7 = vadd.f32 %v970_v1, %v926_v63  ;;  %v987_v33 = vadd.f32 %v971_v32, %v927_v31  ;;  %v988_v6 = vadd.f32 %v972_v29, %v928_v57 }
 0x183   :  { %v989_v10 = vadd.f32 %v973_v62, %v929_v37  ;;  %v990_v14 = vadd.f32 %v974_v42, %v930_v55  ;;  %v991_v8 = vadd.f32 %v975_v35, %v931_v43  ;;  %v992_v12 = vadd.f32 %v976_v51, %v932_v40 }
 0x184   :  { %v993_v20 = vadd.f32 %v977_v44, %v933_v18  ;;  %v994_v26 = vadd.f32 %v978_v41, %v934_v9  ;;  %v995_v17 = vadd.f32 %v979_v16, %v935_v13  ;;  %v996_v23 = vadd.f32 %v980_v19, %v936_v24 }
 0x185   :  { %v997_v38 = vadd.f32 %v981_v50, %v937_v11  ;;  %v998_v4 = vadd.f32 %v1876_v60, %v938_v59  ;;  %v999_v45 = vadd.f32 %v983_v48, %v939_v21  ;;  %v1000_v49 = vadd.f32 %v984_v53, %v940_v61 }
 0x186   :  { %v1001_v22 = vmax.f32 %v985_v39, 0.0  ;;  %v1002_v47 = vmax.f32 %v986_v7, 0.0  ;;  %v1003_v15 = vmax.f32 %v987_v33, 0.0  ;;  %v1004_v0 = vmax.f32 %v988_v6, 0.0 }
 0x187   :  { %v1005_v1 = vmax.f32 %v989_v10, 0.0  ;;  %v1006_v32 = vmax.f32 %v990_v14, 0.0  ;;  %v1007_v29 = vmax.f32 %v991_v8, 0.0  ;;  %v1008_v62 = vmax.f32 %v992_v12, 0.0 }
 0x188   :  { %v1009_v42 = vmax.f32 %v993_v20, 0.0  ;;  %v1010_v35 = vmax.f32 %v994_v26, 0.0  ;;  %v1011_v51 = vmax.f32 %v995_v17, 0.0  ;;  %v1012_v44 = vmax.f32 %v996_v23, 0.0 }
 0x189   :  { %v1013_v41 = vmax.f32 %v997_v38, 0.0  ;;  %v1014_v16 = vmax.f32 %v998_v4, 0.0  ;;  %v1015_v19 = vmax.f32 %v999_v45, 0.0  ;;  %v1016_v50 = vmax.f32 %v1000_v49, 0.0 }
 0x18a   :  { %v1203_v2 = vpack.c.bf16 %v1002_v47, %v1001_v22  ;;  %v1208_v60 = vpack.c.bf16 %v1004_v0, %v1003_v15  ;;  %v1213_v48 = vpack.c.bf16 %v1006_v32, %v1005_v1  ;;  %v1218_v53 = vpack.c.bf16 %v1008_v62, %v1007_v29 }
 0x18b   :  { %v1223_v56 = vpack.c.bf16 %v1010_v35, %v1009_v42  ;;  %v1228_v28 = vpack.c.bf16 %v1012_v44, %v1011_v51  ;;  %v1233_v36 = vpack.c.bf16 %v1014_v16, %v1013_v41  ;;  %v1238_v58 = vpack.c.bf16 %v1016_v50, %v1015_v19 }
 0x18c   :  { %1204 = vst [vmem:[%s1938_s8] sm:$0xff] %v1203_v2   ;;  %1240 = vst [vmem:[%s1938_s8 + $0x8] sm:$0xff] %v1208_v60  }
 0x18d   :  { %1241 = vst [vmem:[%s1938_s8 + $0x10] sm:$0xff] %v1213_v48   ;;  %1242 = vst [vmem:[%s1938_s8 + $0x18] sm:$0xff] %v1218_v53  }
 0x18e   :  { %1243 = vst [vmem:[%s1938_s8 + $0x20] sm:$0xff] %v1223_v56   ;;  %1244 = vst [vmem:[%s1938_s8 + $0x28] sm:$0xff] %v1228_v28  }
 0x18f   :  { %1245 = vst [vmem:[%s1938_s8 + $0x30] sm:$0xff] %v1233_v36   ;;  %1246 = vst [vmem:[%s1938_s8 + $0x38] sm:$0xff] %v1238_v58  }

// kernel: _lambda_.36
= control target key start
LH: loop header
LB: loop body
LE: loop exit
PB: predicated region body
PF: predicated region fallthrough
CT: control target
= control target key end

     0   :  { %vm314_vm0 = vcmask 261120   ;;  %s1363_s1 = inlined_call_operand.vmem [shape: bf16[288,128], index: 1, kind: input, shape index: {}]   ;;  %s1364_s0 = inlined_call_operand.vmem [shape: bf16[128,288], index: 0, kind: input, shape index: {}]   ;;  %s1365_s2 = inlined_call_operand.vmem [shape: f32[1,128], index: 2, kind: input, shape index: {}]   ;;  %s1366_s3 = inlined_call_operand.vmem [shape: f32[1,128], index: 3, kind: input, shape index: {}]   ;;  %s1367_s4 = inlined_call_operand.vmem [shape: bf16[128,128], index: 4, kind: output, shape index: {}]  }
   0x1   :  { %v999_v0 = vld [vmem:[%s1363_s1 + $0x78] sm:$0xff]   ;;  %v1001_v2 = vld [vmem:[%s1363_s1 + $0x70] sm:$0xff]   ;;  %v1003_v4 = vld [vmem:[%s1363_s1 + $0x68] sm:$0xff]  }
   0x2   :  { %v1000_v1 = vld [vmem:[%s1363_s1 + $0x38] sm:$0xff]   ;;  %889 = vmatprep.subr.bf16.mxu0 %v999_v0  ;;  %983 = vmatprep.subr.bf16.mxu1 %v999_v0  ;;  %v1002_v3 = vld [vmem:[%s1363_s1 + $0x30] sm:$0xff]   ;;  %v1004_v5 = vld [vmem:[%s1363_s1 + $0x28] sm:$0xff]  }
   0x3   :  { %890 = vmatpush3.bf16.msra.mxu0 %v1000_v1  ;;  %991 = vmatpush3.bf16.msra.mxu1 %v1000_v1  ;;  %v1005_v6 = vld [vmem:[%s1363_s1 + $0x60] sm:$0xff]   ;;  %v1007_v8 = vld [vmem:[%s1363_s1 + $0x58] sm:$0xff]   ;;  %v1009_v10 = vld [vmem:[%s1363_s1 + $0x50] sm:$0xff]  }
   0x4   :  { %891 = vmatprep.subr.bf16.mxu0 %v1001_v2  ;;  %984 = vmatprep.subr.bf16.mxu1 %v1001_v2  ;;  %v1006_v7 = vld [vmem:[%s1363_s1 + $0x20] sm:$0xff]   ;;  %v1008_v9 = vld [vmem:[%s1363_s1 + $0x18] sm:$0xff]   ;;  %v1010_v13 = vld [vmem:[%s1363_s1 + $0x10] sm:$0xff]  }
   0x5   :  { %v1017_v11 = vld [vmem:[%s1364_s0 + $0x4] ss:$12 sps:$4 sm:$0xff]   ;;  %v1020_v12 = vld [vmem:[%s1364_s0 + $0x94] ss:$12 sps:$4 sm:$0xff]   ;;  %v1011_v14 = vld [vmem:[%s1363_s1 + $0x48] sm:$0xff]  }
   0x6   :  { %371 = vmatprep.mubr.bf16.mxu0 %v1017_v11  ;;  %419 = vmatprep.mubr.bf16.mxu1 %v1020_v12  ;;  %v1012_v15 = vld [vmem:[%s1363_s1 + $0x8] sm:$0xff]   ;;  %v1013_v16 = vld [vmem:[%s1363_s1 + $0x40] sm:$0xff]   ;;  %v1018_v20 = vld [vmem:[%s1364_s0 + $0x90] ss:$12 sps:$4 sm:$0xff]  }
   0x7   :  { %892 = vmatpush3.bf16.msra.mxu0 %v1002_v3  ;;  %992 = vmatpush3.bf16.msra.mxu1 %v1002_v3  ;;  %v1014_v17 = vld [vmem:[%s1363_s1] sm:$0xff]   ;;  %v1021_v19 = vld [vmem:[%s1363_s1 + $0x88] sm:$0xff]   ;;  %v1032_v28 = vld [vmem:[%s1364_s0 + $0x30] ss:$12 sps:$4 sm:$0xff]  }
   0x8   :  { %893 = vmatprep.subr.bf16.mxu0 %v1003_v4  ;;  %985 = vmatprep.subr.bf16.mxu1 %v1003_v4  ;;  %v1015_v18 = vld [vmem:[%s1364_s0] ss:$12 sps:$4 sm:$0xff]   ;;  %v1022_v21 = vld [vmem:[%s1364_s0 + $0x1c] ss:$12 sps:$4 sm:$0xff]   ;;  %v1026_v24 = vld [vmem:[%s1364_s0 + $0x18] ss:$12 sps:$4 sm:$0xff]  }
   0x9   :  { %v1024_v22 = vld [vmem:[%s1364_s0 + $0xac] ss:$12 sps:$4 sm:$0xff]   ;;  %v1028_v23 = vld [vmem:[%s1363_s1 + $0x80] sm:$0xff]   ;;  %v1027_v25 = vld [vmem:[%s1364_s0 + $0xa8] ss:$12 sps:$4 sm:$0xff]  }
   0xa   :  { %v1029_v26 = vld [vmem:[%s1364_s0 + $0x34] ss:$12 sps:$4 sm:$0xff]   ;;  %v1034_v30 = vld [vmem:[%s1364_s0 + $0x4c] ss:$12 sps:$4 sm:$0xff]   ;;  %v1038_v33 = vld [vmem:[%s1364_s0 + $0x50] ss:$12 sps:$4 sm:$0xff]  }
   0xb   :  { %894 = vmatpush3.bf16.msra.mxu0 %v1004_v5  ;;  %993 = vmatpush3.bf16.msra.mxu1 %v1004_v5  ;;  %v1031_v27 = vld [vmem:[%s1364_s0 + $0x8] ss:$12 sps:$4 sm:$0xff]   ;;  %v1033_v29 = vld [vmem:[%s1364_s0 + $0x20] ss:$12 sps:$4 sm:$0xff]   ;;  %v1036_v31 = vld [vmem:[%s1364_s0 + $0x38] ss:$12 sps:$4 sm:$0xff]  }
   0xc   :  { %895 = vmatprep.subr.bf16.mxu0 %v1005_v6  ;;  %986 = vmatprep.subr.bf16.mxu1 %v1005_v6  ;;  %v1037_v32 = vld [vmem:[%s1364_s0 + $0x48] ss:$12 sps:$4 sm:$0xff]   ;;  %v1039_v34 = vld [vmem:[%s1364_s0 + $0x64] ss:$12 sps:$4 sm:$0xff]   ;;  %v1042_v36 = vld [vmem:[%s1364_s0 + $0x60] ss:$12 sps:$4 sm:$0xff]  }
   0xd   :  { %v1041_v35 = vld [vmem:[%s1364_s0 + $0x68] ss:$12 sps:$4 sm:$0xff]   ;;  %v1043_v37 = vld [vmem:[%s1364_s0 + $0x80] ss:$12 sps:$4 sm:$0xff]   ;;  %v1046_v39 = vld [vmem:[%s1364_s0 + $0x98] ss:$12 sps:$4 sm:$0xff]  }
   0xe   :  { %v1044_v38 = vld [vmem:[%s1364_s0 + $0x7c] ss:$12 sps:$4 sm:$0xff]   ;;  %v1047_v40 = vld [vmem:[%s1364_s0 + $0x78] ss:$12 sps:$4 sm:$0xff]  }
   0xf   :  { %896 = vmatpush3.bf16.msra.mxu0 %v1006_v7  ;;  %994 = vmatpush3.bf16.msra.mxu1 %v1006_v7  ;;  %v1048_v41 = vld [vmem:[%s1364_s0 + $0xb0] ss:$12 sps:$4 sm:$0xff]  }
  0x10   :  { %897 = vmatprep.subr.bf16.mxu0 %v1007_v8  ;;  %987 = vmatprep.subr.bf16.mxu1 %v1007_v8 }
  0x13   :  { %898 = vmatpush3.bf16.msra.mxu0 %v1008_v9  ;;  %995 = vmatpush3.bf16.msra.mxu1 %v1008_v9 }
  0x14   :  { %899 = vmatprep.subr.bf16.mxu0 %v1009_v10  ;;  %988 = vmatprep.subr.bf16.mxu1 %v1009_v10 }
  0x17   :  { %900 = vmatpush3.bf16.msra.mxu0 %v1010_v13  ;;  %996 = vmatpush3.bf16.msra.mxu1 %v1010_v13 }
  0x18   :  { %901 = vmatprep.subr.bf16.mxu0 %v1011_v14  ;;  %989 = vmatprep.subr.bf16.mxu1 %v1011_v14 }
  0x1b   :  { %902 = vmatpush3.bf16.msra.mxu0 %v1012_v15  ;;  %997 = vmatpush3.bf16.msra.mxu1 %v1012_v15 }
  0x1c   :  { %903 = vmatprep.subr.bf16.mxu0 %v1013_v16  ;;  %990 = vmatprep.subr.bf16.mxu1 %v1013_v16 }
  0x1f   :  { %904 = vmatpush3.bf16.msra.mxu0 %v1014_v17  ;;  %998 = vmatpush3.bf16.msra.mxu1 %v1014_v17 }
  0x20   :  { %963 = vmatprep.subr.bf16.mxu1 %v1021_v19 }
  0x22   :  { %372 = vmatmul.mubr.bf16.vlgmr.msra.gmra.mxu0 %v1015_v18  ;;  %420 = vmatmul.mubr.bf16.vlgmr.msra.gmra.mxu1 %v1018_v20 }
  0x23   :  { %964 = vmatpush3.bf16.msra.mxu1 %v1021_v19  ;;  %379 = vmatprep.mubr.bf16.mxu0 %v1022_v21 }
  0x24   :  { %427 = vmatprep.mubr.bf16.mxu1 %v1024_v22  ;;  %965 = vmatprep.subr.bf16.mxu1 %v1028_v23 }
  0x27   :  { %966 = vmatpush3.bf16.msra.mxu1 %v1028_v23 }
  0x2a   :  { %380 = vmatmul.mubr.bf16.gmra.mxu0 %v1026_v24  ;;  %428 = vmatmul.mubr.bf16.gmra.mxu1 %v1027_v25 }
  0x2b   :  { %387 = vmatprep.mubr.bf16.mxu0 %v1029_v26  ;;  %967 = vmatprep.mubr.msk.bf16.mxu1 %vm314_vm0, %v1031_v27 }
  0x32   :  { %388 = vmatmul.mubr.bf16.gmra.mxu0 %v1032_v28  ;;  %968 = vmatmul.mubr.msk.bf16.vlgmr.msra.gmra.mxu1 %vm314_vm0, %v1033_v29 }
  0x33   :  { %395 = vmatprep.mubr.bf16.mxu0 %v1034_v30  ;;  %971 = vmatprep.mubr.msk.bf16.mxu1 %vm314_vm0, %v1036_v31 }
  0x3a   :  { %396 = vmatmul.mubr.bf16.gmra.mxu0 %v1037_v32  ;;  %972 = vmatmul.mubr.msk.bf16.gmra.mxu1 %vm314_vm0, %v1038_v33 }
  0x3b   :  { %403 = vmatprep.mubr.bf16.mxu0 %v1039_v34  ;;  %975 = vmatprep.mubr.msk.bf16.mxu1 %vm314_vm0, %v1041_v35 }
  0x42   :  { %404 = vmatmul.mubr.bf16.gmra.mxu0 %v1042_v36  ;;  %976 = vmatmul.mubr.msk.bf16.gmra.mxu1 %vm314_vm0, %v1043_v37 }
  0x43   :  { %411 = vmatprep.mubr.bf16.mxu0 %v1044_v38  ;;  %979 = vmatprep.mubr.msk.bf16.mxu1 %vm314_vm0, %v1046_v39 }
  0x4a   :  { %412 = vmatmul.mubr.bf16.gmra.mxu0 %v1047_v40  ;;  %980 = vmatmul.mubr.msk.bf16.gmra.mxu1 %vm314_vm0, %v1048_v41 }
  0xe2   :  { %v905_v42 = vpop.f32.mrf.mxu0  ;;  %v1210_v43 = vpop.f32.mrf.mxu1 }
  0xe4   :  { %v906_v44 = vpop.f32.mrf.mxu0  ;;  %v1212_v45 = vpop.f32.mrf.mxu1 }
  0xe5   :  { %v907_v0 = vadd.f32 %v906_v44, %v905_v42 }
  0xe6   :  { %v908_v46 = vpop.f32.mrf.mxu0  ;;  %v1214_v47 = vpop.f32.mrf.mxu1 }
  0xe8   :  { %v909_v48 = vpop.f32.mrf.mxu0  ;;  %v1216_v49 = vpop.f32.mrf.mxu1 }
  0xe9   :  { %v910_v1 = vadd.f32 %v909_v48, %v908_v46 }
  0xea   :  { %v911_v50 = vpop.f32.mrf.mxu0  ;;  %v1218_v51 = vpop.f32.mrf.mxu1 }
  0xec   :  { %v912_v52 = vpop.f32.mrf.mxu0  ;;  %v1220_v53 = vpop.f32.mrf.mxu1 }
  0xed   :  { %v913_v4 = vadd.f32 %v912_v52, %v911_v50 }
  0xee   :  { %v914_v54 = vpop.f32.mrf.mxu0  ;;  %v1222_v55 = vpop.f32.mrf.mxu1 }
  0xf0   :  { %v915_v56 = vpop.f32.mrf.mxu0  ;;  %v1224_v57 = vpop.f32.mrf.mxu1 }
  0xf1   :  { %v916_v9 = vadd.f32 %v915_v56, %v914_v54 }
  0xf2   :  { %v917_v58 = vpop.f32.mrf.mxu0  ;;  %v969_v59 = vpop.f32.mrf.mxu1 }
  0xf3   :  { %v1230_v10 = vadd.f32 %v969_v59, %v913_v4 }
  0xf4   :  { %v918_v60 = vpop.f32.mrf.mxu0  ;;  %v470_v61 = vpop.f32.mrf.mxu1 }
  0xf5   :  { %v1226_v5 = vadd.f32 %v907_v0, %v470_v61  ;;  %v919_v14 = vadd.f32 %v918_v60, %v917_v58 }
  0xf6   :  { %v920_v62 = vpop.f32.mrf.mxu0  ;;  %v970_v63 = vpop.f32.mrf.mxu1 }
  0xf7   :  { %v1234_v15 = vadd.f32 %v970_v63, %v916_v9 }
  0xf8   :  { %v921_v2 = vpop.f32.mrf.mxu0  ;;  %v473_v3 = vpop.f32.mrf.mxu1 }
  0xf9   :  { %v1228_v6 = vadd.f32 %v910_v1, %v473_v3  ;;  %v922_v19 = vadd.f32 %v921_v2, %v920_v62  ;;  %v943_v1 = vadd.f32 %v1212_v45, %v1210_v43  ;;  %v952_v43 = vadd.f32 %v1224_v57, %v1222_v55 }
  0xfa   :  { %v923_v7 = vpop.f32.mrf.mxu0  ;;  %v973_v8 = vpop.f32.mrf.mxu1 }
  0xfb   :  { %v535_v11 = vadd.f32 %v1228_v6, %v1226_v5 }
  0xfc   :  { %v924_v12 = vpop.f32.mrf.mxu0  ;;  %v486_v13 = vpop.f32.mrf.mxu1 }
  0xfd   :  { %v536_v16 = vadd.f32 %v535_v11, %v1230_v10  ;;  %v1237_v20 = vadd.f32 %v919_v14, %v486_v13  ;;  %v925_v24 = vadd.f32 %v924_v12, %v923_v7  ;;  %v946_v7 = vadd.f32 %v1216_v49, %v1214_v47 }
  0xfe   :  { %v926_v17 = vpop.f32.mrf.mxu0  ;;  %v974_v18 = vpop.f32.mrf.mxu1  ;;  %v949_v11 = vadd.f32 %v1220_v53, %v1218_v51 }
  0xff   :  { %v537_v21 = vadd.f32 %v536_v16, %v1234_v15  ;;  %v1244_v32 = vadd.f32 %v973_v8, %v925_v24 }
 0x100   :  { %v927_v22 = vpop.f32.mrf.mxu0  ;;  %v489_v23 = vpop.f32.mrf.mxu1 }
 0x101   :  { %v538_v25 = vadd.f32 %v537_v21, %v1237_v20  ;;  %v1241_v26 = vadd.f32 %v922_v19, %v489_v23  ;;  %v928_v33 = vadd.f32 %v927_v22, %v926_v17 }
 0x102   :  { %v929_v27 = vpop.f32.mrf.mxu0  ;;  %v977_v28 = vpop.f32.mrf.mxu1 }
 0x103   :  { %v539_v29 = vadd.f32 %v538_v25, %v1241_v26  ;;  %v1247_v40 = vadd.f32 %v974_v18, %v928_v33 }
 0x104   :  { %v930_v30 = vpop.f32.mrf.mxu0  ;;  %v502_v31 = vpop.f32.mrf.mxu1 }
 0x105   :  { %v540_v36 = vadd.f32 %v539_v29, %v1244_v32  ;;  %v931_v37 = vadd.f32 %v930_v30, %v929_v27 }
 0x106   :  { %v932_v34 = vpop.f32.mrf.mxu0  ;;  %v978_v35 = vpop.f32.mrf.mxu1 }
 0x107   :  { %v1249_v46 = vadd.f32 %v931_v37, %v502_v31  ;;  %v541_v48 = vadd.f32 %v540_v36, %v1247_v40 }
 0x108   :  { %v933_v38 = vpop.f32.mrf.mxu0  ;;  %v505_v39 = vpop.f32.mrf.mxu1 }
 0x109   :  { %v934_v41 = vadd.f32 %v933_v38, %v932_v34  ;;  %v542_v59 = vadd.f32 %v541_v48, %v1249_v46 }
 0x10a   :  { %v935_v42 = vpop.f32.mrf.mxu0  ;;  %v981_v44 = vpop.f32.mrf.mxu1 }
 0x10b   :  { %v1252_v54 = vadd.f32 %v934_v41, %v505_v39  ;;  %v1275_v45 = vadd.f32 %v981_v44, %v949_v11 }
 0x10c   :  { %v936_v50 = vpop.f32.mrf.mxu0  ;;  %v518_v52 = vpop.f32.mrf.mxu1 }
 0x10d   :  { %v937_v56 = vadd.f32 %v936_v50, %v935_v42  ;;  %v543_v63 = vadd.f32 %v542_v59, %v1252_v54  ;;  %v1265_v8 = vadd.f32 %v943_v1, %v518_v52 }
 0x10e   :  { %v938_v58 = vpop.f32.mrf.mxu0  ;;  %v982_v61 = vpop.f32.mrf.mxu1 }
 0x10f   :  { %v1255_v60 = vadd.f32 %v977_v28, %v937_v56  ;;  %v1278_v16 = vadd.f32 %v982_v61, %v952_v43 }
 0x110   :  { %v939_v62 = vpop.f32.mrf.mxu0  ;;  %v521_v4 = vpop.f32.mrf.mxu1 }
 0x111   :  { %v940_v0 = vadd.f32 %v939_v62, %v938_v58  ;;  %v544_v2 = vadd.f32 %v543_v63, %v1255_v60  ;;  %v1270_v12 = vadd.f32 %v946_v7, %v521_v4 }
 0x113   :  { %v1261_v3 = vadd.f32 %v978_v35, %v940_v0 }
 0x115   :  { %v545_v9 = vadd.f32 %v544_v2, %v1261_v3 }
 0x117   :  { %v546_v13 = vadd.f32 %v545_v9, %v1265_v8 }
 0x119   :  { %v547_v14 = vadd.f32 %v546_v13, %v1270_v12 }
 0x11b   :  { %v548_v47 = vadd.f32 %v547_v14, %v1275_v45 }
 0x11d   :  { %v549_v49 = vadd.f32 %v548_v47, %v1278_v16 }
 0x11f   :  { %v550_v17 = vrot.slane %v549_v49, 4 }
 0x121   :  { %v551_v18 = vadd.f32 %v550_v17, %v549_v49 }
 0x123   :  { %v552_v51 = vrot.slane %v551_v18, 2 }
 0x125   :  { %v553_v53 = vadd.f32 %v552_v51, %v551_v18 }
 0x127   :  { %v554_v19 = vrot.slane %v553_v53, 1 }
 0x129   :  { %v555_v21 = vadd.f32 %v554_v19, %v553_v53 }
 0x12b   :  { %v1282_v22 = vmul.f32 0.0078125, %v555_v21 }
 0x12d   :  { %v557_v55 = vsub.f32 %v1226_v5, %v1282_v22  ;;  %v558_v57 = vsub.f32 %v1228_v6, %v1282_v22  ;;  %v559_v23 = vsub.f32 %v1230_v10, %v1282_v22  ;;  %v560_v27 = vsub.f32 %v1234_v15, %v1282_v22 }
 0x12e   :  { %v561_v28 = vsub.f32 %v1237_v20, %v1282_v22  ;;  %v562_v31 = vsub.f32 %v1241_v26, %v1282_v22  ;;  %v563_v35 = vsub.f32 %v1244_v32, %v1282_v22  ;;  %v564_v38 = vsub.f32 %v1247_v40, %v1282_v22 }
 0x12f   :  { %v573_v24 = vmul.f32 %v557_v55, %v557_v55  ;;  %v574_v25 = vmul.f32 %v558_v57, %v558_v57  ;;  %v575_v29 = vmul.f32 %v559_v23, %v559_v23  ;;  %v576_v33 = vmul.f32 %v560_v27, %v560_v27 }
 0x130   :  { %v577_v36 = vmul.f32 %v561_v28, %v561_v28  ;;  %v578_v39 = vmul.f32 %v562_v31, %v562_v31  ;;  %v565_v42 = vsub.f32 %v1249_v46, %v1282_v22  ;;  %v579_v44 = vmul.f32 %v563_v35, %v563_v35 }
 0x131   :  { %v589_v30 = vadd.f32 %v574_v25, %v573_v24  ;;  %v566_v50 = vsub.f32 %v1252_v54, %v1282_v22  ;;  %v580_v52 = vmul.f32 %v564_v38, %v564_v38  ;;  %v567_v58 = vsub.f32 %v1255_v60, %v1282_v22 }
 0x132   :  { %v581_v59 = vmul.f32 %v565_v42, %v565_v42  ;;  %v568_v62 = vsub.f32 %v1261_v3, %v1282_v22  ;;  %v569_v1 = vsub.f32 %v1265_v8, %v1282_v22  ;;  %v570_v7 = vsub.f32 %v1270_v12, %v1282_v22 }
 0x133   :  { %v590_v34 = vadd.f32 %v589_v30, %v575_v29  ;;  %v582_v63 = vmul.f32 %v566_v50, %v566_v50  ;;  %v583_v2 = vmul.f32 %v567_v58, %v567_v58  ;;  %v571_v13 = vsub.f32 %v1275_v45, %v1282_v22 }
 0x134   :  { %v584_v9 = vmul.f32 %v568_v62, %v568_v62  ;;  %v585_v43 = vmul.f32 %v569_v1, %v569_v1  ;;  %v572_v47 = vsub.f32 %v1278_v16, %v1282_v22  ;;  %v586_v49 = vmul.f32 %v570_v7, %v570_v7 }
 0x135   :  { %v591_v37 = vadd.f32 %v590_v34, %v576_v33  ;;  %v587_v18 = vmul.f32 %v571_v13, %v571_v13  ;;  %v617_v30 = vlaneseq  ;;  %v533_v33 = vld [vmem:[%s1365_s2] sm:$0x1] }
 0x136   :  { %v588_v53 = vmul.f32 %v572_v47, %v572_v47 }
 0x137   :  { %v592_v41 = vadd.f32 %v591_v37, %v577_v36  ;;  %v618_v31 = vshrl.u32 %v617_v30, 7  ;;  %v534_v37 = vld [vmem:[%s1366_s3] sm:$0x1] }
 0x139   :  { %v593_v48 = vadd.f32 %v592_v41, %v578_v39  ;;  %v619_v34 = vsub.s32 0, %v618_v31 }
 0x13b   :  { %v594_v56 = vadd.f32 %v593_v48, %v579_v44 }
 0x13d   :  { %v595_v61 = vadd.f32 %v594_v56, %v580_v52 }
 0x13f   :  { %v596_v0 = vadd.f32 %v595_v61, %v581_v59 }
 0x141   :  { %v597_v4 = vadd.f32 %v596_v0, %v582_v63 }
 0x143   :  { %v598_v11 = vadd.f32 %v597_v4, %v583_v2 }
 0x145   :  { %v599_v14 = vadd.f32 %v598_v11, %v584_v9 }
 0x147   :  { %v600_v17 = vadd.f32 %v599_v14, %v585_v43 }
 0x149   :  { %v601_v51 = vadd.f32 %v600_v17, %v586_v49 }
 0x14b   :  { %v602_v19 = vadd.f32 %v601_v51, %v587_v18 }
 0x14d   :  { %v603_v21 = vadd.f32 %v602_v19, %v588_v53 }
 0x14f   :  { %v604_v55 = vrot.slane %v603_v21, 4 }
 0x151   :  { %v605_v57 = vadd.f32 %v604_v55, %v603_v21 }
 0x153   :  { %v606_v23 = vrot.slane %v605_v57, 2 }
 0x155   :  { %v607_v24 = vadd.f32 %v606_v23, %v605_v57 }
 0x157   :  { %v608_v25 = vrot.slane %v607_v24, 1 }
 0x159   :  { %v609_v27 = vadd.f32 %v608_v25, %v607_v24 }
 0x15b   :  { %v610_v28 = vmul.f32 0.0078125, %v609_v27 }
 0x15d   :  { %v611_v29 = vadd.f32 1e-05, %v610_v28 }
 0x15f   :  { %1049 = vrsqrt.f32 %v611_v29 }
 0x16c   :  { %v1050_v35 = vpop.eup %1049 }
 0x16d   :  { %v613_v36 = vmul.f32 %v1050_v35, %v533_v33 }
 0x16f   :  { %v614_v38 = vmul.f32 %v613_v36, %v1282_v22  ;;  %v620_v39 = vrot.slane %v613_v36, %v619_v34 }
 0x171   :  { %v615_v41 = vsub.f32 %v534_v37, %v614_v38  ;;  %v622_v42 = vmul.f32 %v620_v39, %v1226_v5  ;;  %v623_v44 = vmul.f32 %v620_v39, %v1228_v6  ;;  %v624_v48 = vmul.f32 %v620_v39, %v1230_v10 }
 0x172   :  { %v625_v50 = vmul.f32 %v620_v39, %v1234_v15  ;;  %v626_v52 = vmul.f32 %v620_v39, %v1237_v20  ;;  %v627_v56 = vmul.f32 %v620_v39, %v1241_v26  ;;  %v628_v58 = vmul.f32 %v620_v39, %v1244_v32 }
 0x173   :  { %v629_v59 = vmul.f32 %v620_v39, %v1247_v40  ;;  %v630_v22 = vmul.f32 %v620_v39, %v1249_v46  ;;  %v631_v61 = vmul.f32 %v620_v39, %v1252_v54  ;;  %v632_v5 = vmul.f32 %v620_v39, %v1255_v60 }
 0x174   :  { %v633_v6 = vmul.f32 %v620_v39, %v1261_v3  ;;  %v642_v62 = vrot.slane %v615_v41, %v619_v34  ;;  %v634_v10 = vmul.f32 %v620_v39, %v1265_v8  ;;  %v635_v15 = vmul.f32 %v620_v39, %v1270_v12 }
 0x175   :  { %v636_v20 = vmul.f32 %v620_v39, %v1275_v45  ;;  %v637_v26 = vmul.f32 %v620_v39, %v1278_v16 }
 0x176   :  { %v644_v32 = vadd.f32 %v642_v62, %v622_v42  ;;  %v645_v63 = vadd.f32 %v642_v62, %v623_v44  ;;  %v646_v40 = vadd.f32 %v642_v62, %v624_v48  ;;  %v647_v0 = vadd.f32 %v642_v62, %v625_v50 }
 0x177   :  { %v648_v46 = vadd.f32 %v642_v62, %v626_v52  ;;  %v649_v1 = vadd.f32 %v642_v62, %v627_v56  ;;  %v650_v54 = vadd.f32 %v642_v62, %v628_v58  ;;  %v651_v2 = vadd.f32 %v642_v62, %v629_v59 }
 0x178   :  { %v652_v60 = vadd.f32 %v642_v62, %v630_v22  ;;  %v653_v4 = vadd.f32 %v642_v62, %v631_v61  ;;  %v654_v3 = vadd.f32 %v642_v62, %v632_v5  ;;  %v655_v7 = vadd.f32 %v642_v62, %v633_v6 }
 0x179   :  { %v656_v9 = vadd.f32 %v642_v62, %v634_v10  ;;  %v657_v8 = vadd.f32 %v642_v62, %v635_v15  ;;  %v658_v11 = vadd.f32 %v642_v62, %v636_v20  ;;  %v659_v12 = vadd.f32 %v642_v62, %v637_v26 }
 0x17a   :  { %v660_v13 = vmax.f32 %v644_v32, 0.0  ;;  %v661_v45 = vmax.f32 %v645_v63, 0.0  ;;  %v662_v43 = vmax.f32 %v646_v40, 0.0  ;;  %v663_v16 = vmax.f32 %v647_v0, 0.0 }
 0x17b   :  { %v664_v14 = vmax.f32 %v648_v46, 0.0  ;;  %v665_v47 = vmax.f32 %v649_v1, 0.0  ;;  %v666_v49 = vmax.f32 %v650_v54, 0.0  ;;  %v667_v17 = vmax.f32 %v651_v2, 0.0 }
 0x17c   :  { %v668_v18 = vmax.f32 %v652_v60, 0.0  ;;  %v669_v51 = vmax.f32 %v653_v4, 0.0  ;;  %v670_v53 = vmax.f32 %v654_v3, 0.0  ;;  %v671_v19 = vmax.f32 %v655_v7, 0.0 }
 0x17d   :  { %v672_v21 = vmax.f32 %v656_v9, 0.0  ;;  %v673_v55 = vmax.f32 %v657_v8, 0.0  ;;  %v674_v57 = vmax.f32 %v658_v11, 0.0  ;;  %v675_v23 = vmax.f32 %v659_v12, 0.0 }
 0x17e   :  { %v845_v24 = vpack.c.bf16 %v661_v45, %v660_v13  ;;  %v850_v25 = vpack.c.bf16 %v663_v16, %v662_v43  ;;  %v855_v27 = vpack.c.bf16 %v665_v47, %v664_v14  ;;  %v860_v28 = vpack.c.bf16 %v667_v17, %v666_v49 }
 0x17f   :  { %v865_v29 = vpack.c.bf16 %v669_v51, %v668_v18  ;;  %v870_v30 = vpack.c.bf16 %v671_v19, %v670_v53  ;;  %v875_v31 = vpack.c.bf16 %v673_v55, %v672_v21  ;;  %v880_v33 = vpack.c.bf16 %v675_v23, %v674_v57 }
 0x180   :  { %846 = vst [vmem:[%s1367_s4] sm:$0xff] %v845_v24   ;;  %882 = vst [vmem:[%s1367_s4 + $0x8] sm:$0xff] %v850_v25  }
 0x181   :  { %883 = vst [vmem:[%s1367_s4 + $0x10] sm:$0xff] %v855_v27   ;;  %884 = vst [vmem:[%s1367_s4 + $0x18] sm:$0xff] %v860_v28  }
 0x182   :  { %885 = vst [vmem:[%s1367_s4 + $0x20] sm:$0xff] %v865_v29   ;;  %886 = vst [vmem:[%s1367_s4 + $0x28] sm:$0xff] %v870_v30  }
 0x183   :  { %887 = vst [vmem:[%s1367_s4 + $0x30] sm:$0xff] %v875_v31   ;;  %888 = vst [vmem:[%s1367_s4 + $0x38] sm:$0xff] %v880_v33  }

// kernel: _lambda_.37
= control target key start
LH: loop header
LB: loop body
LE: loop exit
PB: predicated region body
PF: predicated region fallthrough
CT: control target
= control target key end

     0   :  { %vm317_vm0 = vcmask 261120   ;;  %s1510_s1 = inlined_call_operand.vmem [shape: bf16[288,128], index: 1, kind: input, shape index: {}]   ;;  %s1511_s0 = inlined_call_operand.vmem [shape: bf16[128,288], index: 0, kind: input, shape index: {}]   ;;  %s1512_s2 = inlined_call_operand.vmem [shape: f32[1,128], index: 2, kind: input, shape index: {}]   ;;  %s1513_s4 = inlined_call_operand.vmem [shape: bf16[128,128], index: 4, kind: input, shape index: {}]   ;;  %s1514_s3 = inlined_call_operand.vmem [shape: f32[1,128], index: 3, kind: input, shape index: {}]   ;;  %s1515_s5 = inlined_call_operand.vmem [shape: bf16[128,128], index: 5, kind: output, shape index: {}]  }
   0x1   :  { %v1089_v0 = vld [vmem:[%s1510_s1 + $0x78] sm:$0xff]   ;;  %v1091_v2 = vld [vmem:[%s1510_s1 + $0x70] sm:$0xff]   ;;  %v1093_v4 = vld [vmem:[%s1510_s1 + $0x68] sm:$0xff]  }
   0x2   :  { %v1090_v1 = vld [vmem:[%s1510_s1 + $0x38] sm:$0xff]   ;;  %979 = vmatprep.subr.bf16.mxu0 %v1089_v0  ;;  %1073 = vmatprep.subr.bf16.mxu1 %v1089_v0  ;;  %v1092_v3 = vld [vmem:[%s1510_s1 + $0x30] sm:$0xff]   ;;  %v1094_v5 = vld [vmem:[%s1510_s1 + $0x28] sm:$0xff]  }
   0x3   :  { %980 = vmatpush3.bf16.msra.mxu0 %v1090_v1  ;;  %1081 = vmatpush3.bf16.msra.mxu1 %v1090_v1  ;;  %v1095_v6 = vld [vmem:[%s1510_s1 + $0x60] sm:$0xff]   ;;  %v1097_v8 = vld [vmem:[%s1510_s1 + $0x58] sm:$0xff]   ;;  %v1099_v10 = vld [vmem:[%s1510_s1 + $0x50] sm:$0xff]  }
   0x4   :  { %981 = vmatprep.subr.bf16.mxu0 %v1091_v2  ;;  %1074 = vmatprep.subr.bf16.mxu1 %v1091_v2  ;;  %v1096_v7 = vld [vmem:[%s1510_s1 + $0x20] sm:$0xff]   ;;  %v1098_v9 = vld [vmem:[%s1510_s1 + $0x18] sm:$0xff]   ;;  %v1100_v13 = vld [vmem:[%s1510_s1 + $0x10] sm:$0xff]  }
   0x5   :  { %v1107_v11 = vld [vmem:[%s1511_s0 + $0x4] ss:$12 sps:$4 sm:$0xff]   ;;  %v1110_v12 = vld [vmem:[%s1511_s0 + $0x94] ss:$12 sps:$4 sm:$0xff]   ;;  %v1101_v14 = vld [vmem:[%s1510_s1 + $0x48] sm:$0xff]  }
   0x6   :  { %374 = vmatprep.mubr.bf16.mxu0 %v1107_v11  ;;  %422 = vmatprep.mubr.bf16.mxu1 %v1110_v12  ;;  %v1102_v15 = vld [vmem:[%s1510_s1 + $0x8] sm:$0xff]   ;;  %v1103_v16 = vld [vmem:[%s1510_s1 + $0x40] sm:$0xff]   ;;  %v1108_v20 = vld [vmem:[%s1511_s0 + $0x90] ss:$12 sps:$4 sm:$0xff]  }
   0x7   :  { %982 = vmatpush3.bf16.msra.mxu0 %v1092_v3  ;;  %1082 = vmatpush3.bf16.msra.mxu1 %v1092_v3  ;;  %v1104_v17 = vld [vmem:[%s1510_s1] sm:$0xff]   ;;  %v1111_v19 = vld [vmem:[%s1510_s1 + $0x88] sm:$0xff]   ;;  %v1122_v28 = vld [vmem:[%s1511_s0 + $0x30] ss:$12 sps:$4 sm:$0xff]  }
   0x8   :  { %983 = vmatprep.subr.bf16.mxu0 %v1093_v4  ;;  %1075 = vmatprep.subr.bf16.mxu1 %v1093_v4  ;;  %v1105_v18 = vld [vmem:[%s1511_s0] ss:$12 sps:$4 sm:$0xff]   ;;  %v1112_v21 = vld [vmem:[%s1511_s0 + $0x1c] ss:$12 sps:$4 sm:$0xff]   ;;  %v1116_v24 = vld [vmem:[%s1511_s0 + $0x18] ss:$12 sps:$4 sm:$0xff]  }
   0x9   :  { %v1114_v22 = vld [vmem:[%s1511_s0 + $0xac] ss:$12 sps:$4 sm:$0xff]   ;;  %v1118_v23 = vld [vmem:[%s1510_s1 + $0x80] sm:$0xff]   ;;  %v1117_v25 = vld [vmem:[%s1511_s0 + $0xa8] ss:$12 sps:$4 sm:$0xff]  }
   0xa   :  { %v1119_v26 = vld [vmem:[%s1511_s0 + $0x34] ss:$12 sps:$4 sm:$0xff]   ;;  %v1124_v30 = vld [vmem:[%s1511_s0 + $0x4c] ss:$12 sps:$4 sm:$0xff]   ;;  %v1128_v33 = vld [vmem:[%s1511_s0 + $0x50] ss:$12 sps:$4 sm:$0xff]  }
   0xb   :  { %984 = vmatpush3.bf16.msra.mxu0 %v1094_v5  ;;  %1083 = vmatpush3.bf16.msra.mxu1 %v1094_v5  ;;  %v1121_v27 = vld [vmem:[%s1511_s0 + $0x8] ss:$12 sps:$4 sm:$0xff]   ;;  %v1123_v29 = vld [vmem:[%s1511_s0 + $0x20] ss:$12 sps:$4 sm:$0xff]   ;;  %v1126_v31 = vld [vmem:[%s1511_s0 + $0x38] ss:$12 sps:$4 sm:$0xff]  }
   0xc   :  { %985 = vmatprep.subr.bf16.mxu0 %v1095_v6  ;;  %1076 = vmatprep.subr.bf16.mxu1 %v1095_v6  ;;  %v1127_v32 = vld [vmem:[%s1511_s0 + $0x48] ss:$12 sps:$4 sm:$0xff]   ;;  %v1129_v34 = vld [vmem:[%s1511_s0 + $0x64] ss:$12 sps:$4 sm:$0xff]   ;;  %v1132_v36 = vld [vmem:[%s1511_s0 + $0x60] ss:$12 sps:$4 sm:$0xff]  }
   0xd   :  { %v1131_v35 = vld [vmem:[%s1511_s0 + $0x68] ss:$12 sps:$4 sm:$0xff]   ;;  %v1133_v37 = vld [vmem:[%s1511_s0 + $0x80] ss:$12 sps:$4 sm:$0xff]   ;;  %v1136_v39 = vld [vmem:[%s1511_s0 + $0x98] ss:$12 sps:$4 sm:$0xff]  }
   0xe   :  { %v1134_v38 = vld [vmem:[%s1511_s0 + $0x7c] ss:$12 sps:$4 sm:$0xff]   ;;  %v1137_v40 = vld [vmem:[%s1511_s0 + $0x78] ss:$12 sps:$4 sm:$0xff]  }
   0xf   :  { %986 = vmatpush3.bf16.msra.mxu0 %v1096_v7  ;;  %1084 = vmatpush3.bf16.msra.mxu1 %v1096_v7  ;;  %v1138_v41 = vld [vmem:[%s1511_s0 + $0xb0] ss:$12 sps:$4 sm:$0xff]  }
  0x10   :  { %987 = vmatprep.subr.bf16.mxu0 %v1097_v8  ;;  %1077 = vmatprep.subr.bf16.mxu1 %v1097_v8 }
  0x13   :  { %988 = vmatpush3.bf16.msra.mxu0 %v1098_v9  ;;  %1085 = vmatpush3.bf16.msra.mxu1 %v1098_v9 }
  0x14   :  { %989 = vmatprep.subr.bf16.mxu0 %v1099_v10  ;;  %1078 = vmatprep.subr.bf16.mxu1 %v1099_v10 }
  0x17   :  { %990 = vmatpush3.bf16.msra.mxu0 %v1100_v13  ;;  %1086 = vmatpush3.bf16.msra.mxu1 %v1100_v13 }
  0x18   :  { %991 = vmatprep.subr.bf16.mxu0 %v1101_v14  ;;  %1079 = vmatprep.subr.bf16.mxu1 %v1101_v14 }
  0x1b   :  { %992 = vmatpush3.bf16.msra.mxu0 %v1102_v15  ;;  %1087 = vmatpush3.bf16.msra.mxu1 %v1102_v15 }
  0x1c   :  { %993 = vmatprep.subr.bf16.mxu0 %v1103_v16  ;;  %1080 = vmatprep.subr.bf16.mxu1 %v1103_v16 }
  0x1f   :  { %994 = vmatpush3.bf16.msra.mxu0 %v1104_v17  ;;  %1088 = vmatpush3.bf16.msra.mxu1 %v1104_v17 }
  0x20   :  { %1053 = vmatprep.subr.bf16.mxu1 %v1111_v19 }
  0x22   :  { %375 = vmatmul.mubr.bf16.vlgmr.msra.gmra.mxu0 %v1105_v18  ;;  %423 = vmatmul.mubr.bf16.vlgmr.msra.gmra.mxu1 %v1108_v20 }
  0x23   :  { %1054 = vmatpush3.bf16.msra.mxu1 %v1111_v19  ;;  %382 = vmatprep.mubr.bf16.mxu0 %v1112_v21 }
  0x24   :  { %430 = vmatprep.mubr.bf16.mxu1 %v1114_v22  ;;  %1055 = vmatprep.subr.bf16.mxu1 %v1118_v23 }
  0x27   :  { %1056 = vmatpush3.bf16.msra.mxu1 %v1118_v23 }
  0x2a   :  { %383 = vmatmul.mubr.bf16.gmra.mxu0 %v1116_v24  ;;  %431 = vmatmul.mubr.bf16.gmra.mxu1 %v1117_v25 }
  0x2b   :  { %390 = vmatprep.mubr.bf16.mxu0 %v1119_v26  ;;  %1057 = vmatprep.mubr.msk.bf16.mxu1 %vm317_vm0, %v1121_v27 }
  0x32   :  { %391 = vmatmul.mubr.bf16.gmra.mxu0 %v1122_v28  ;;  %1058 = vmatmul.mubr.msk.bf16.vlgmr.msra.gmra.mxu1 %vm317_vm0, %v1123_v29 }
  0x33   :  { %398 = vmatprep.mubr.bf16.mxu0 %v1124_v30  ;;  %1061 = vmatprep.mubr.msk.bf16.mxu1 %vm317_vm0, %v1126_v31 }
  0x3a   :  { %399 = vmatmul.mubr.bf16.gmra.mxu0 %v1127_v32  ;;  %1062 = vmatmul.mubr.msk.bf16.gmra.mxu1 %vm317_vm0, %v1128_v33 }
  0x3b   :  { %406 = vmatprep.mubr.bf16.mxu0 %v1129_v34  ;;  %1065 = vmatprep.mubr.msk.bf16.mxu1 %vm317_vm0, %v1131_v35 }
  0x42   :  { %407 = vmatmul.mubr.bf16.gmra.mxu0 %v1132_v36  ;;  %1066 = vmatmul.mubr.msk.bf16.gmra.mxu1 %vm317_vm0, %v1133_v37 }
  0x43   :  { %414 = vmatprep.mubr.bf16.mxu0 %v1134_v38  ;;  %1069 = vmatprep.mubr.msk.bf16.mxu1 %vm317_vm0, %v1136_v39 }
  0x4a   :  { %415 = vmatmul.mubr.bf16.gmra.mxu0 %v1137_v40  ;;  %1070 = vmatmul.mubr.msk.bf16.gmra.mxu1 %vm317_vm0, %v1138_v41 }
  0xe2   :  { %v995_v42 = vpop.f32.mrf.mxu0  ;;  %v1305_v43 = vpop.f32.mrf.mxu1 }
  0xe4   :  { %v996_v44 = vpop.f32.mrf.mxu0  ;;  %v1307_v45 = vpop.f32.mrf.mxu1 }
  0xe5   :  { %v997_v0 = vadd.f32 %v996_v44, %v995_v42 }
  0xe6   :  { %v998_v46 = vpop.f32.mrf.mxu0  ;;  %v1309_v47 = vpop.f32.mrf.mxu1 }
  0xe8   :  { %v999_v48 = vpop.f32.mrf.mxu0  ;;  %v1311_v49 = vpop.f32.mrf.mxu1 }
  0xe9   :  { %v1000_v1 = vadd.f32 %v999_v48, %v998_v46 }
  0xea   :  { %v1001_v50 = vpop.f32.mrf.mxu0  ;;  %v1313_v51 = vpop.f32.mrf.mxu1 }
  0xec   :  { %v1002_v52 = vpop.f32.mrf.mxu0  ;;  %v1315_v53 = vpop.f32.mrf.mxu1 }
  0xed   :  { %v1003_v4 = vadd.f32 %v1002_v52, %v1001_v50 }
  0xee   :  { %v1004_v54 = vpop.f32.mrf.mxu0  ;;  %v1317_v55 = vpop.f32.mrf.mxu1 }
  0xf0   :  { %v1005_v56 = vpop.f32.mrf.mxu0  ;;  %v1319_v57 = vpop.f32.mrf.mxu1 }
  0xf1   :  { %v1006_v9 = vadd.f32 %v1005_v56, %v1004_v54 }
  0xf2   :  { %v1007_v58 = vpop.f32.mrf.mxu0  ;;  %v1059_v59 = vpop.f32.mrf.mxu1 }
  0xf3   :  { %v1325_v10 = vadd.f32 %v1059_v59, %v1003_v4 }
  0xf4   :  { %v1008_v60 = vpop.f32.mrf.mxu0  ;;  %v473_v61 = vpop.f32.mrf.mxu1 }
  0xf5   :  { %v1321_v5 = vadd.f32 %v997_v0, %v473_v61  ;;  %v1009_v14 = vadd.f32 %v1008_v60, %v1007_v58 }
  0xf6   :  { %v1010_v62 = vpop.f32.mrf.mxu0  ;;  %v1060_v63 = vpop.f32.mrf.mxu1 }
  0xf7   :  { %v1329_v15 = vadd.f32 %v1060_v63, %v1006_v9 }
  0xf8   :  { %v1011_v2 = vpop.f32.mrf.mxu0  ;;  %v476_v3 = vpop.f32.mrf.mxu1 }
  0xf9   :  { %v1323_v6 = vadd.f32 %v1000_v1, %v476_v3  ;;  %v1012_v19 = vadd.f32 %v1011_v2, %v1010_v62  ;;  %v1033_v1 = vadd.f32 %v1307_v45, %v1305_v43  ;;  %v1042_v43 = vadd.f32 %v1319_v57, %v1317_v55 }
  0xfa   :  { %v1013_v7 = vpop.f32.mrf.mxu0  ;;  %v1063_v8 = vpop.f32.mrf.mxu1 }
  0xfb   :  { %v538_v11 = vadd.f32 %v1323_v6, %v1321_v5 }
  0xfc   :  { %v1014_v12 = vpop.f32.mrf.mxu0  ;;  %v489_v13 = vpop.f32.mrf.mxu1 }
  0xfd   :  { %v539_v16 = vadd.f32 %v538_v11, %v1325_v10  ;;  %v1332_v20 = vadd.f32 %v1009_v14, %v489_v13  ;;  %v1015_v24 = vadd.f32 %v1014_v12, %v1013_v7  ;;  %v1036_v7 = vadd.f32 %v1311_v49, %v1309_v47 }
  0xfe   :  { %v1016_v17 = vpop.f32.mrf.mxu0  ;;  %v1064_v18 = vpop.f32.mrf.mxu1  ;;  %v1039_v11 = vadd.f32 %v1315_v53, %v1313_v51 }
  0xff   :  { %v540_v21 = vadd.f32 %v539_v16, %v1329_v15  ;;  %v1339_v32 = vadd.f32 %v1063_v8, %v1015_v24 }
 0x100   :  { %v1017_v22 = vpop.f32.mrf.mxu0  ;;  %v492_v23 = vpop.f32.mrf.mxu1 }
 0x101   :  { %v541_v25 = vadd.f32 %v540_v21, %v1332_v20  ;;  %v1336_v26 = vadd.f32 %v1012_v19, %v492_v23  ;;  %v1018_v33 = vadd.f32 %v1017_v22, %v1016_v17 }
 0x102   :  { %v1019_v27 = vpop.f32.mrf.mxu0  ;;  %v1067_v28 = vpop.f32.mrf.mxu1 }
 0x103   :  { %v542_v29 = vadd.f32 %v541_v25, %v1336_v26  ;;  %v1342_v40 = vadd.f32 %v1064_v18, %v1018_v33 }
 0x104   :  { %v1020_v30 = vpop.f32.mrf.mxu0  ;;  %v505_v31 = vpop.f32.mrf.mxu1 }
 0x105   :  { %v543_v36 = vadd.f32 %v542_v29, %v1339_v32  ;;  %v1021_v37 = vadd.f32 %v1020_v30, %v1019_v27 }
 0x106   :  { %v1022_v34 = vpop.f32.mrf.mxu0  ;;  %v1068_v35 = vpop.f32.mrf.mxu1 }
 0x107   :  { %v1344_v46 = vadd.f32 %v1021_v37, %v505_v31  ;;  %v544_v48 = vadd.f32 %v543_v36, %v1342_v40 }
 0x108   :  { %v1023_v38 = vpop.f32.mrf.mxu0  ;;  %v508_v39 = vpop.f32.mrf.mxu1 }
 0x109   :  { %v1024_v41 = vadd.f32 %v1023_v38, %v1022_v34  ;;  %v545_v59 = vadd.f32 %v544_v48, %v1344_v46 }
 0x10a   :  { %v1025_v42 = vpop.f32.mrf.mxu0  ;;  %v1071_v44 = vpop.f32.mrf.mxu1 }
 0x10b   :  { %v1347_v54 = vadd.f32 %v1024_v41, %v508_v39  ;;  %v1370_v45 = vadd.f32 %v1071_v44, %v1039_v11 }
 0x10c   :  { %v1026_v50 = vpop.f32.mrf.mxu0  ;;  %v521_v52 = vpop.f32.mrf.mxu1 }
 0x10d   :  { %v1027_v56 = vadd.f32 %v1026_v50, %v1025_v42  ;;  %v546_v63 = vadd.f32 %v545_v59, %v1347_v54  ;;  %v1360_v8 = vadd.f32 %v1033_v1, %v521_v52 }
 0x10e   :  { %v1028_v58 = vpop.f32.mrf.mxu0  ;;  %v1072_v61 = vpop.f32.mrf.mxu1 }
 0x10f   :  { %v1350_v60 = vadd.f32 %v1067_v28, %v1027_v56  ;;  %v1373_v16 = vadd.f32 %v1072_v61, %v1042_v43 }
 0x110   :  { %v1029_v62 = vpop.f32.mrf.mxu0  ;;  %v524_v4 = vpop.f32.mrf.mxu1 }
 0x111   :  { %v1030_v0 = vadd.f32 %v1029_v62, %v1028_v58  ;;  %v547_v2 = vadd.f32 %v546_v63, %v1350_v60  ;;  %v1365_v12 = vadd.f32 %v1036_v7, %v524_v4 }
 0x113   :  { %v1356_v3 = vadd.f32 %v1068_v35, %v1030_v0 }
 0x115   :  { %v548_v9 = vadd.f32 %v547_v2, %v1356_v3 }
 0x117   :  { %v549_v13 = vadd.f32 %v548_v9, %v1360_v8 }
 0x119   :  { %v550_v14 = vadd.f32 %v549_v13, %v1365_v12 }
 0x11b   :  { %v551_v47 = vadd.f32 %v550_v14, %v1370_v45 }
 0x11d   :  { %v552_v49 = vadd.f32 %v551_v47, %v1373_v16 }
 0x11f   :  { %v553_v17 = vrot.slane %v552_v49, 4 }
 0x121   :  { %v554_v18 = vadd.f32 %v553_v17, %v552_v49 }
 0x123   :  { %v555_v51 = vrot.slane %v554_v18, 2 }
 0x125   :  { %v556_v53 = vadd.f32 %v555_v51, %v554_v18 }
 0x127   :  { %v557_v19 = vrot.slane %v556_v53, 1 }
 0x129   :  { %v558_v21 = vadd.f32 %v557_v19, %v556_v53 }
 0x12b   :  { %v1377_v22 = vmul.f32 0.0078125, %v558_v21 }
 0x12d   :  { %v560_v55 = vsub.f32 %v1321_v5, %v1377_v22  ;;  %v561_v57 = vsub.f32 %v1323_v6, %v1377_v22  ;;  %v562_v23 = vsub.f32 %v1325_v10, %v1377_v22  ;;  %v563_v27 = vsub.f32 %v1329_v15, %v1377_v22 }
 0x12e   :  { %v564_v28 = vsub.f32 %v1332_v20, %v1377_v22  ;;  %v565_v31 = vsub.f32 %v1336_v26, %v1377_v22  ;;  %v566_v35 = vsub.f32 %v1339_v32, %v1377_v22  ;;  %v567_v38 = vsub.f32 %v1342_v40, %v1377_v22 }
 0x12f   :  { %v576_v24 = vmul.f32 %v560_v55, %v560_v55  ;;  %v577_v25 = vmul.f32 %v561_v57, %v561_v57  ;;  %v578_v29 = vmul.f32 %v562_v23, %v562_v23  ;;  %v579_v33 = vmul.f32 %v563_v27, %v563_v27 }
 0x130   :  { %v580_v36 = vmul.f32 %v564_v28, %v564_v28  ;;  %v581_v39 = vmul.f32 %v565_v31, %v565_v31  ;;  %v568_v42 = vsub.f32 %v1344_v46, %v1377_v22  ;;  %v582_v44 = vmul.f32 %v566_v35, %v566_v35  ;;  %v1417_v35 = vld [vmem:[%s1513_s4] sm:$0xff]  }
 0x131   :  { %v592_v30 = vadd.f32 %v577_v25, %v576_v24  ;;  %v569_v50 = vsub.f32 %v1347_v54, %v1377_v22  ;;  %v583_v52 = vmul.f32 %v567_v38, %v567_v38  ;;  %v570_v58 = vsub.f32 %v1350_v60, %v1377_v22  ;;  %v1427_v38 = vld [vmem:[%s1513_s4 + $0x10] sm:$0xff]  }
 0x132   :  { %v584_v59 = vmul.f32 %v568_v42, %v568_v42  ;;  %v571_v62 = vsub.f32 %v1356_v3, %v1377_v22  ;;  %v572_v1 = vsub.f32 %v1360_v8, %v1377_v22  ;;  %v573_v7 = vsub.f32 %v1365_v12, %v1377_v22  ;;  %v1437_v42 = vld [vmem:[%s1513_s4 + $0x20] sm:$0xff]  }
 0x133   :  { %v593_v34 = vadd.f32 %v592_v30, %v578_v29  ;;  %v585_v63 = vmul.f32 %v569_v50, %v569_v50  ;;  %v586_v2 = vmul.f32 %v570_v58, %v570_v58  ;;  %v574_v13 = vsub.f32 %v1370_v45, %v1377_v22  ;;  %v1449_v58 = vld [vmem:[%s1513_s4 + $0x28] sm:$0xff]  }
 0x134   :  { %v587_v9 = vmul.f32 %v571_v62, %v571_v62  ;;  %v588_v43 = vmul.f32 %v572_v1, %v572_v1  ;;  %v575_v47 = vsub.f32 %v1373_v16, %v1377_v22  ;;  %v589_v49 = vmul.f32 %v573_v7, %v573_v7  ;;  %v971_v1 = vld [vmem:[%s1513_s4 + $0x38] sm:$0xff]  }
 0x135   :  { %v594_v37 = vadd.f32 %v593_v34, %v579_v33  ;;  %v590_v18 = vmul.f32 %v574_v13, %v574_v13  ;;  %v620_v30 = vlaneseq  ;;  %v536_v33 = vld [vmem:[%s1512_s2] sm:$0x1]  ;;  %v896_v50 = vunpack.c.h.bf16 %v1417_v35 }
 0x136   :  { %v591_v53 = vmul.f32 %v575_v47, %v575_v47  ;;  %v911_v7 = vunpack.c.l.bf16 %v1437_v42  ;;  %v916_v13 = vunpack.c.h.bf16 %v1449_v58 }
 0x137   :  { %v595_v41 = vadd.f32 %v594_v37, %v580_v36  ;;  %v621_v31 = vshrl.u32 %v620_v30, 7  ;;  %v1422_v36 = vld [vmem:[%s1513_s4 + $0x8] sm:$0xff]  }
 0x139   :  { %v596_v48 = vadd.f32 %v595_v41, %v581_v39  ;;  %v622_v34 = vsub.s32 0, %v621_v31  ;;  %v1432_v41 = vld [vmem:[%s1513_s4 + $0x18] sm:$0xff]  }
 0x13b   :  { %v597_v56 = vadd.f32 %v596_v48, %v582_v44  ;;  %v537_v44 = vld [vmem:[%s1514_s3] sm:$0x1]  ;;  %v895_v48 = vunpack.c.l.bf16 %v1417_v35 }
 0x13d   :  { %v598_v61 = vadd.f32 %v597_v56, %v583_v52  ;;  %v899_v52 = vunpack.c.l.bf16 %v1422_v36  ;;  %v900_v56 = vunpack.c.h.bf16 %v1422_v36 }
 0x13f   :  { %v599_v0 = vadd.f32 %v598_v61, %v584_v59  ;;  %v1454_v59 = vld [vmem:[%s1513_s4 + $0x30] sm:$0xff]  }
 0x140   :  { %v920_v47 = vunpack.c.h.bf16 %v1454_v59 }
 0x141   :  { %v600_v4 = vadd.f32 %v599_v0, %v585_v63  ;;  %v903_v63 = vunpack.c.l.bf16 %v1427_v38  ;;  %v904_v0 = vunpack.c.h.bf16 %v1427_v38 }
 0x143   :  { %v601_v11 = vadd.f32 %v600_v4, %v586_v2  ;;  %v907_v2 = vunpack.c.l.bf16 %v1432_v41  ;;  %v908_v4 = vunpack.c.h.bf16 %v1432_v41 }
 0x145   :  { %v602_v14 = vadd.f32 %v601_v11, %v587_v9  ;;  %v912_v9 = vunpack.c.h.bf16 %v1437_v42 }
 0x147   :  { %v603_v17 = vadd.f32 %v602_v14, %v588_v43  ;;  %v919_v43 = vunpack.c.l.bf16 %v1454_v59 }
 0x149   :  { %v604_v51 = vadd.f32 %v603_v17, %v589_v49  ;;  %v923_v49 = vunpack.c.l.bf16 %v971_v1  ;;  %v924_v17 = vunpack.c.h.bf16 %v971_v1 }
 0x14b   :  { %v605_v19 = vadd.f32 %v604_v51, %v590_v18 }
 0x14d   :  { %v606_v21 = vadd.f32 %v605_v19, %v591_v53 }
 0x14f   :  { %v607_v55 = vrot.slane %v606_v21, 4 }
 0x151   :  { %v608_v57 = vadd.f32 %v607_v55, %v606_v21 }
 0x153   :  { %v609_v23 = vrot.slane %v608_v57, 2 }
 0x155   :  { %v610_v24 = vadd.f32 %v609_v23, %v608_v57 }
 0x157   :  { %v611_v25 = vrot.slane %v610_v24, 1 }
 0x159   :  { %v612_v27 = vadd.f32 %v611_v25, %v610_v24 }
 0x15b   :  { %v613_v28 = vmul.f32 0.0078125, %v612_v27 }
 0x15d   :  { %v614_v29 = vadd.f32 1e-05, %v613_v28 }
 0x15f   :  { %1139 = vrsqrt.f32 %v614_v29 }
 0x16c   :  { %v1140_v37 = vpop.eup %1139 }
 0x16d   :  { %v616_v39 = vmul.f32 %v1140_v37, %v536_v33 }
 0x16f   :  { %v617_v61 = vmul.f32 %v616_v39, %v1377_v22  ;;  %v623_v62 = vrot.slane %v616_v39, %v622_v34  ;;  %v915_v22 = vunpack.c.l.bf16 %v1449_v58 }
 0x171   :  { %v618_v11 = vsub.f32 %v537_v44, %v617_v61  ;;  %v625_v14 = vmul.f32 %v623_v62, %v1321_v5  ;;  %v626_v18 = vmul.f32 %v623_v62, %v1323_v6  ;;  %v627_v51 = vmul.f32 %v623_v62, %v1325_v10 }
 0x172   :  { %v628_v53 = vmul.f32 %v623_v62, %v1329_v15  ;;  %v629_v19 = vmul.f32 %v623_v62, %v1332_v20  ;;  %v630_v21 = vmul.f32 %v623_v62, %v1336_v26  ;;  %v631_v55 = vmul.f32 %v623_v62, %v1339_v32 }
 0x173   :  { %v632_v57 = vmul.f32 %v623_v62, %v1342_v40  ;;  %v633_v5 = vmul.f32 %v623_v62, %v1344_v46  ;;  %v634_v23 = vmul.f32 %v623_v62, %v1347_v54  ;;  %v635_v24 = vmul.f32 %v623_v62, %v1350_v60 }
 0x174   :  { %v636_v6 = vmul.f32 %v623_v62, %v1356_v3  ;;  %v645_v25 = vrot.slane %v618_v11, %v622_v34  ;;  %v637_v10 = vmul.f32 %v623_v62, %v1360_v8  ;;  %v638_v15 = vmul.f32 %v623_v62, %v1365_v12 }
 0x175   :  { %v639_v20 = vmul.f32 %v623_v62, %v1370_v45  ;;  %v640_v26 = vmul.f32 %v623_v62, %v1373_v16 }
 0x176   :  { %v647_v32 = vadd.f32 %v645_v25, %v625_v14  ;;  %v648_v27 = vadd.f32 %v645_v25, %v626_v18  ;;  %v649_v40 = vadd.f32 %v645_v25, %v627_v51  ;;  %v650_v28 = vadd.f32 %v645_v25, %v628_v53 }
 0x177   :  { %v651_v46 = vadd.f32 %v645_v25, %v629_v19  ;;  %v652_v29 = vadd.f32 %v645_v25, %v630_v21  ;;  %v653_v54 = vadd.f32 %v645_v25, %v631_v55  ;;  %v654_v30 = vadd.f32 %v645_v25, %v632_v57 }
 0x178   :  { %v655_v60 = vadd.f32 %v645_v25, %v633_v5  ;;  %v656_v31 = vadd.f32 %v645_v25, %v634_v23  ;;  %v657_v3 = vadd.f32 %v645_v25, %v635_v24  ;;  %v658_v33 = vadd.f32 %v645_v25, %v636_v6 }
 0x179   :  { %v659_v34 = vadd.f32 %v645_v25, %v637_v10  ;;  %v660_v8 = vadd.f32 %v645_v25, %v638_v15  ;;  %v661_v35 = vadd.f32 %v645_v25, %v639_v20  ;;  %v662_v12 = vadd.f32 %v645_v25, %v640_v26 }
 0x17a   :  { %v695_v36 = vadd.f32 %v895_v48, %v647_v32  ;;  %v696_v45 = vadd.f32 %v896_v50, %v648_v27  ;;  %v697_v37 = vadd.f32 %v899_v52, %v649_v40  ;;  %v698_v16 = vadd.f32 %v900_v56, %v650_v28 }
 0x17b   :  { %v699_v38 = vadd.f32 %v903_v63, %v651_v46  ;;  %v700_v39 = vadd.f32 %v904_v0, %v652_v29  ;;  %v701_v41 = vadd.f32 %v907_v2, %v653_v54  ;;  %v702_v42 = vadd.f32 %v908_v4, %v654_v30 }
 0x17c   :  { %v703_v44 = vadd.f32 %v911_v7, %v655_v60  ;;  %v704_v58 = vadd.f32 %v912_v9, %v656_v31  ;;  %v705_v59 = vadd.f32 %v915_v22, %v657_v3  ;;  %v706_v61 = vadd.f32 %v916_v13, %v658_v33 }
 0x17d   :  { %v707_v62 = vadd.f32 %v919_v43, %v659_v34  ;;  %v708_v1 = vadd.f32 %v920_v47, %v660_v8  ;;  %v709_v11 = vadd.f32 %v923_v49, %v661_v35  ;;  %v710_v14 = vadd.f32 %v924_v17, %v662_v12 }
 0x17e   :  { %v711_v18 = vmax.f32 %v695_v36, 0.0  ;;  %v712_v51 = vmax.f32 %v696_v45, 0.0  ;;  %v713_v53 = vmax.f32 %v697_v37, 0.0  ;;  %v714_v19 = vmax.f32 %v698_v16, 0.0 }
 0x17f   :  { %v715_v48 = vmax.f32 %v699_v38, 0.0  ;;  %v716_v50 = vmax.f32 %v700_v39, 0.0  ;;  %v717_v52 = vmax.f32 %v701_v41, 0.0  ;;  %v718_v56 = vmax.f32 %v702_v42, 0.0 }
 0x180   :  { %v719_v63 = vmax.f32 %v703_v44, 0.0  ;;  %v720_v0 = vmax.f32 %v704_v58, 0.0  ;;  %v721_v2 = vmax.f32 %v705_v59, 0.0  ;;  %v722_v4 = vmax.f32 %v706_v61, 0.0 }
 0x181   :  { %v723_v7 = vmax.f32 %v707_v62, 0.0  ;;  %v724_v9 = vmax.f32 %v708_v1, 0.0  ;;  %v725_v22 = vmax.f32 %v709_v11, 0.0  ;;  %v726_v13 = vmax.f32 %v710_v14, 0.0 }
 0x182   :  { %v928_v43 = vpack.c.bf16 %v712_v51, %v711_v18  ;;  %v933_v47 = vpack.c.bf16 %v714_v19, %v713_v53  ;;  %v938_v49 = vpack.c.bf16 %v716_v50, %v715_v48  ;;  %v943_v17 = vpack.c.bf16 %v718_v56, %v717_v52 }
 0x183   :  { %v948_v21 = vpack.c.bf16 %v720_v0, %v719_v63  ;;  %v953_v55 = vpack.c.bf16 %v722_v4, %v721_v2  ;;  %v958_v57 = vpack.c.bf16 %v724_v9, %v723_v7  ;;  %v963_v5 = vpack.c.bf16 %v726_v13, %v725_v22 }
 0x184   :  { %929 = vst [vmem:[%s1515_s5] sm:$0xff] %v928_v43   ;;  %972 = vst [vmem:[%s1515_s5 + $0x8] sm:$0xff] %v933_v47  }
 0x185   :  { %973 = vst [vmem:[%s1515_s5 + $0x10] sm:$0xff] %v938_v49   ;;  %974 = vst [vmem:[%s1515_s5 + $0x18] sm:$0xff] %v943_v17  }
 0x186   :  { %975 = vst [vmem:[%s1515_s5 + $0x20] sm:$0xff] %v948_v21   ;;  %976 = vst [vmem:[%s1515_s5 + $0x28] sm:$0xff] %v953_v55  }
 0x187   :  { %977 = vst [vmem:[%s1515_s5 + $0x30] sm:$0xff] %v958_v57   ;;  %978 = vst [vmem:[%s1515_s5 + $0x38] sm:$0xff] %v963_v5  }

// kernel: _lambda_.42
= control target key start
LH: loop header
LB: loop body
LE: loop exit
PB: predicated region body
PF: predicated region fallthrough
CT: control target
= control target key end

     0   :  { %vm200_vm0 = vcmask 261120   ;;  %s610_s1 = inlined_call_operand.vmem [shape: bf16[288,128], index: 1, kind: input, shape index: {}]   ;;  %s611_s0 = inlined_call_operand.vmem [shape: bf16[32,288], index: 0, kind: input, shape index: {}]   ;;  %s612_s2 = inlined_call_operand.vmem [shape: f32[1,128], index: 2, kind: input, shape index: {}]   ;;  %s613_s3 = inlined_call_operand.vmem [shape: f32[1,128], index: 3, kind: input, shape index: {}]   ;;  %s614_s4 = inlined_call_operand.vmem [shape: bf16[32,128], index: 4, kind: output, shape index: {}]  }
   0x1   :  { %v473_v0 = vld [vmem:[%s610_s1 + $0x78] sm:$0xff]   ;;  %v475_v2 = vld [vmem:[%s610_s1 + $0x70] sm:$0xff]   ;;  %v477_v4 = vld [vmem:[%s610_s1 + $0x68] sm:$0xff]  }
   0x2   :  { %v474_v1 = vld [vmem:[%s610_s1 + $0x38] sm:$0xff]   ;;  %433 = vmatprep.subr.bf16.mxu0 %v473_v0  ;;  %v476_v3 = vld [vmem:[%s610_s1 + $0x30] sm:$0xff]   ;;  %v478_v5 = vld [vmem:[%s610_s1 + $0x28] sm:$0xff]  }
   0x3   :  { %434 = vmatpush3.bf16.msra.mxu0 %v474_v1  ;;  %v479_v6 = vld [vmem:[%s610_s1 + $0x60] sm:$0xff]   ;;  %v481_v8 = vld [vmem:[%s610_s1 + $0x58] sm:$0xff]   ;;  %v486_v9 = vld [vmem:[%s610_s1 + $0x88] sm:$0xff]  }
   0x4   :  { %435 = vmatprep.subr.bf16.mxu0 %v475_v2  ;;  %v480_v7 = vld [vmem:[%s610_s1 + $0x20] sm:$0xff]   ;;  %v482_v10 = vld [vmem:[%s610_s1 + $0x18] sm:$0xff]   ;;  %v483_v11 = vld [vmem:[%s610_s1 + $0x50] sm:$0xff]   ;;  %465 = vmatprep.subr.bf16.mxu1 %v486_v9 }
   0x5   :  { %466 = vmatpush3.bf16.msra.mxu1 %v486_v9  ;;  %v489_v12 = vld [vmem:[%s610_s1 + $0x80] sm:$0xff]   ;;  %v484_v13 = vld [vmem:[%s610_s1 + $0x10] sm:$0xff]   ;;  %v485_v14 = vld [vmem:[%s610_s1 + $0x48] sm:$0xff]   ;;  %v341_v9 = vlaneseq }
   0x6   :  { %467 = vmatprep.subr.bf16.mxu1 %v489_v12  ;;  %v493_v15 = vld [vmem:[%s611_s0 + $0x4] ss:$12 sps:$4 sm:$0xff]   ;;  %v494_v16 = vld [vmem:[%s611_s0 + $0x8] ss:$12 sps:$4 sm:$0xff]   ;;  %v495_v17 = vld [vmem:[%s611_s0 + $0x20] ss:$12 sps:$4 sm:$0xff]  }
   0x7   :  { %436 = vmatpush3.bf16.msra.mxu0 %v476_v3  ;;  %239 = vmatprep.mubr.bf16.mxu0 %v493_v15  ;;  %v487_v18 = vld [vmem:[%s610_s1 + $0x8] sm:$0xff]   ;;  %v488_v19 = vld [vmem:[%s610_s1 + $0x40] sm:$0xff]  }
   0x8   :  { %437 = vmatprep.subr.bf16.mxu0 %v477_v4  ;;  %469 = vmatprep.mubr.msk.bf16.mxu1 %vm200_vm0, %v494_v16  ;;  %v490_v20 = vld [vmem:[%s610_s1] sm:$0xff]   ;;  %v496_v22 = vld [vmem:[%s611_s0 + $0x1c] ss:$12 sps:$4 sm:$0xff]  }
   0x9   :  { %468 = vmatpush3.bf16.msra.mxu1 %v489_v12  ;;  %v491_v21 = vld [vmem:[%s611_s0] ss:$12 sps:$4 sm:$0xff]   ;;  %v498_v23 = vld [vmem:[%s611_s0 + $0x18] ss:$12 sps:$4 sm:$0xff]  }
   0xa   :  { %v306_v15 = vld [vmem:[%s613_s3] sm:$0x1] }
   0xb   :  { %438 = vmatpush3.bf16.msra.mxu0 %v478_v5 }
   0xc   :  { %439 = vmatprep.subr.bf16.mxu0 %v479_v6  ;;  %470 = vmatmul.mubr.msk.bf16.vlgmr.msra.gmra.mxu1 %vm200_vm0, %v495_v17 }
   0xf   :  { %440 = vmatpush3.bf16.msra.mxu0 %v480_v7 }
  0x10   :  { %441 = vmatprep.subr.bf16.mxu0 %v481_v8 }
  0x13   :  { %442 = vmatpush3.bf16.msra.mxu0 %v482_v10  ;;  %v342_v10 = vshrl.u32 %v341_v9, 7 }
  0x14   :  { %443 = vmatprep.subr.bf16.mxu0 %v483_v11  ;;  %v305_v11 = vld [vmem:[%s612_s2] sm:$0x1] }
  0x15   :  { %v343_v12 = vsub.s32 0, %v342_v10 }
  0x17   :  { %444 = vmatpush3.bf16.msra.mxu0 %v484_v13 }
  0x18   :  { %445 = vmatprep.subr.bf16.mxu0 %v485_v14 }
  0x1b   :  { %446 = vmatpush3.bf16.msra.mxu0 %v487_v18 }
  0x1c   :  { %447 = vmatprep.subr.bf16.mxu0 %v488_v19 }
  0x1f   :  { %448 = vmatpush3.bf16.msra.mxu0 %v490_v20 }
  0x22   :  { %240 = vmatmul.mubr.bf16.vlgmr.msra.gmra.mxu0 %v491_v21 }
  0x23   :  { %247 = vmatprep.mubr.bf16.mxu0 %v496_v22 }
  0x2a   :  { %248 = vmatmul.mubr.bf16.gmra.mxu0 %v498_v23 }
  0xcc   :  { %v471_v24 = vpop.f32.mrf.mxu1 }
  0xce   :  { %v290_v27 = vpop.f32.mrf.mxu1 }
  0xd0   :  { %v472_v29 = vpop.f32.mrf.mxu1 }
  0xd2   :  { %v293_v34 = vpop.f32.mrf.mxu1 }
  0xe2   :  { %v449_v25 = vpop.f32.mrf.mxu0 }
  0xe4   :  { %v450_v26 = vpop.f32.mrf.mxu0 }
  0xe5   :  { %v451_v33 = vadd.f32 %v450_v26, %v449_v25 }
  0xe6   :  { %v452_v28 = vpop.f32.mrf.mxu0 }
  0xe7   :  { %v291_v39 = vadd.f32 %v451_v33, %v290_v27 }
  0xe8   :  { %v453_v30 = vpop.f32.mrf.mxu0 }
  0xe9   :  { %v454_v31 = vadd.f32 %v453_v30, %v452_v28 }
  0xea   :  { %v455_v32 = vpop.f32.mrf.mxu0 }
  0xeb   :  { %v294_v36 = vadd.f32 %v454_v31, %v293_v34 }
  0xec   :  { %v456_v35 = vpop.f32.mrf.mxu0 }
  0xed   :  { %v457_v37 = vadd.f32 %v456_v35, %v455_v32  ;;  %v307_v42 = vadd.f32 %v294_v36, %v291_v39 }
  0xee   :  { %v458_v38 = vpop.f32.mrf.mxu0 }
  0xef   :  { %v299_v40 = vadd.f32 %v471_v24, %v457_v37 }
  0xf0   :  { %v459_v41 = vpop.f32.mrf.mxu0 }
  0xf1   :  { %v460_v43 = vadd.f32 %v459_v41, %v458_v38  ;;  %v308_v44 = vadd.f32 %v307_v42, %v299_v40 }
  0xf3   :  { %v302_v45 = vadd.f32 %v472_v29, %v460_v43 }
  0xf5   :  { %v309_v46 = vadd.f32 %v308_v44, %v302_v45 }
  0xf7   :  { %v310_v47 = vrot.slane %v309_v46, 4 }
  0xf9   :  { %v311_v48 = vadd.f32 %v310_v47, %v309_v46 }
  0xfb   :  { %v312_v49 = vrot.slane %v311_v48, 2 }
  0xfd   :  { %v313_v50 = vadd.f32 %v312_v49, %v311_v48 }
  0xff   :  { %v314_v51 = vrot.slane %v313_v50, 1 }
 0x101   :  { %v315_v52 = vadd.f32 %v314_v51, %v313_v50 }
 0x103   :  { %v316_v53 = vmul.f32 0.03125, %v315_v52 }
 0x105   :  { %v317_v54 = vsub.f32 %v291_v39, %v316_v53  ;;  %v318_v55 = vsub.f32 %v294_v36, %v316_v53  ;;  %v319_v56 = vsub.f32 %v299_v40, %v316_v53  ;;  %v320_v57 = vsub.f32 %v302_v45, %v316_v53 }
 0x107   :  { %v321_v58 = vmul.f32 %v317_v54, %v317_v54  ;;  %v322_v59 = vmul.f32 %v318_v55, %v318_v55  ;;  %v323_v60 = vmul.f32 %v319_v56, %v319_v56  ;;  %v324_v62 = vmul.f32 %v320_v57, %v320_v57 }
 0x109   :  { %v325_v61 = vadd.f32 %v322_v59, %v321_v58 }
 0x10b   :  { %v326_v63 = vadd.f32 %v325_v61, %v323_v60 }
 0x10d   :  { %v327_v0 = vadd.f32 %v326_v63, %v324_v62 }
 0x10f   :  { %v328_v1 = vrot.slane %v327_v0, 4 }
 0x111   :  { %v329_v2 = vadd.f32 %v328_v1, %v327_v0 }
 0x113   :  { %v330_v3 = vrot.slane %v329_v2, 2 }
 0x115   :  { %v331_v4 = vadd.f32 %v330_v3, %v329_v2 }
 0x117   :  { %v332_v5 = vrot.slane %v331_v4, 1 }
 0x119   :  { %v333_v6 = vadd.f32 %v332_v5, %v331_v4 }
 0x11b   :  { %v334_v7 = vmul.f32 0.03125, %v333_v6 }
 0x11d   :  { %v335_v8 = vadd.f32 1e-05, %v334_v7 }
 0x11f   :  { %499 = vrsqrt.f32 %v335_v8 }
 0x12c   :  { %v500_v13 = vpop.eup %499 }
 0x12d   :  { %v337_v14 = vmul.f32 %v500_v13, %v305_v11 }
 0x12f   :  { %v338_v16 = vmul.f32 %v337_v14, %v316_v53  ;;  %v344_v17 = vrot.slane %v337_v14, %v343_v12 }
 0x131   :  { %v339_v18 = vsub.f32 %v306_v15, %v338_v16  ;;  %v346_v19 = vmul.f32 %v344_v17, %v291_v39  ;;  %v347_v20 = vmul.f32 %v344_v17, %v294_v36  ;;  %v348_v21 = vmul.f32 %v344_v17, %v299_v40 }
 0x132   :  { %v349_v22 = vmul.f32 %v344_v17, %v302_v45 }
 0x133   :  { %v354_v23 = vrot.slane %v339_v18, %v343_v12 }
 0x135   :  { %v356_v24 = vadd.f32 %v354_v23, %v346_v19  ;;  %v357_v25 = vadd.f32 %v354_v23, %v347_v20  ;;  %v358_v26 = vadd.f32 %v354_v23, %v348_v21  ;;  %v359_v27 = vadd.f32 %v354_v23, %v349_v22 }
 0x137   :  { %v360_v28 = vmax.f32 %v356_v24, 0.0  ;;  %v361_v29 = vmax.f32 %v357_v25, 0.0  ;;  %v362_v30 = vmax.f32 %v358_v26, 0.0  ;;  %v363_v31 = vmax.f32 %v359_v27, 0.0 }
 0x139   :  { %v425_v32 = vpack.c.bf16 %v361_v29, %v360_v28  ;;  %v430_v33 = vpack.c.bf16 %v363_v31, %v362_v30 }
 0x13b   :  { %426 = vst [vmem:[%s614_s4] sm:$0xff] %v425_v32   ;;  %432 = vst [vmem:[%s614_s4 + $0x8] sm:$0xff] %v430_v33  }

// kernel: _lambda_.43
= control target key start
LH: loop header
LB: loop body
LE: loop exit
PB: predicated region body
PF: predicated region fallthrough
CT: control target
= control target key end

     0   :  { %vm380_vm0 = vcmask 523264   ;;  %vm599_vm1 = vcmask 261120   ;;  %s1232_s1 = inlined_call_operand.vmem [shape: bf16[576,128], index: 1, kind: input, shape index: {}]   ;;  %s1233_s0 = inlined_call_operand.vmem [shape: bf16[32,576], index: 0, kind: input, shape index: {}]   ;;  %s1234_s5 = inlined_call_operand.vmem [shape: bf16[32,128], index: 5, kind: input, shape index: {}]   ;;  %s1235_s4 = inlined_call_operand.vmem [shape: bf16[32,32], index: 4, kind: input, shape index: {}]   ;;  %s1236_s6 = inlined_call_operand.vmem [shape: f32[1,128], index: 6, kind: input, shape index: {}]   ;;  %s1237_s2 = inlined_call_operand.vmem [shape: f32[1,128], index: 2, kind: input, shape index: {}]   ;;  %s1238_s7 = inlined_call_operand.vmem [shape: f32[1,128], index: 7, kind: input, shape index: {}]   ;;  %s1239_s3 = inlined_call_operand.vmem [shape: f32[1,128], index: 3, kind: input, shape index: {}]   ;;  %s1240_s8 = inlined_call_operand.vmem [shape: bf16[32,128], index: 8, kind: output, shape index: {}]  }
   0x1   :  { %v921_v0 = vld [vmem:[%s1232_s1 + $0x78] sm:$0xff]   ;;  %v925_v4 = vld [vmem:[%s1232_s1 + $0x70] sm:$0xff]   ;;  %v929_v8 = vld [vmem:[%s1232_s1 + $0x68] sm:$0xff]  }
   0x2   :  { %v922_v1 = vld [vmem:[%s1232_s1 + $0xf8] sm:$0xff]   ;;  %835 = vmatprep.subr.bf16.mxu0 %v921_v0  ;;  %v926_v5 = vld [vmem:[%s1232_s1 + $0xf0] sm:$0xff]   ;;  %v930_v9 = vld [vmem:[%s1232_s1 + $0xe8] sm:$0xff]  }
   0x3   :  { %v923_v2 = vld [vmem:[%s1232_s1 + $0x38] sm:$0xff]   ;;  %863 = vmatprep.subr.bf16.mxu1 %v922_v1  ;;  %v927_v6 = vld [vmem:[%s1232_s1 + $0x30] sm:$0xff]   ;;  %v931_v10 = vld [vmem:[%s1232_s1 + $0x28] sm:$0xff]  }
   0x4   :  { %v924_v3 = vld [vmem:[%s1232_s1 + $0xb8] sm:$0xff]   ;;  %836 = vmatpush3.bf16.msra.mxu0 %v923_v2  ;;  %v928_v7 = vld [vmem:[%s1232_s1 + $0xb0] sm:$0xff]   ;;  %v932_v11 = vld [vmem:[%s1232_s1 + $0xa8] sm:$0xff]  }
   0x5   :  { %864 = vmatpush3.bf16.msra.mxu1 %v924_v3  ;;  %837 = vmatprep.subr.bf16.mxu0 %v925_v4  ;;  %v933_v12 = vld [vmem:[%s1232_s1 + $0x60] sm:$0xff]   ;;  %v937_v16 = vld [vmem:[%s1232_s1 + $0x58] sm:$0xff]   ;;  %v941_v20 = vld [vmem:[%s1232_s1 + $0x50] sm:$0xff]  }
   0x6   :  { %865 = vmatprep.subr.bf16.mxu1 %v926_v5  ;;  %v934_v13 = vld [vmem:[%s1232_s1 + $0xe0] sm:$0xff]   ;;  %v938_v17 = vld [vmem:[%s1232_s1 + $0xd8] sm:$0xff]   ;;  %v942_v21 = vld [vmem:[%s1232_s1 + $0xd0] sm:$0xff]  }
   0x7   :  { %v935_v14 = vld [vmem:[%s1232_s1 + $0x20] sm:$0xff]   ;;  %v939_v18 = vld [vmem:[%s1232_s1 + $0x18] sm:$0xff]   ;;  %v943_v22 = vld [vmem:[%s1232_s1 + $0x10] sm:$0xff]  }
   0x8   :  { %838 = vmatpush3.bf16.msra.mxu0 %v927_v6  ;;  %v936_v15 = vld [vmem:[%s1232_s1 + $0xa0] sm:$0xff]   ;;  %v940_v19 = vld [vmem:[%s1232_s1 + $0x98] sm:$0xff]   ;;  %v944_v23 = vld [vmem:[%s1232_s1 + $0x90] sm:$0xff]  }
   0x9   :  { %866 = vmatpush3.bf16.msra.mxu1 %v928_v7  ;;  %839 = vmatprep.subr.bf16.mxu0 %v929_v8  ;;  %v945_v24 = vld [vmem:[%s1232_s1 + $0x48] sm:$0xff]   ;;  %v949_v28 = vld [vmem:[%s1232_s1 + $0x40] sm:$0xff]   ;;  %v959_v36 = vld [vmem:[%s1232_s1 + $0x118] sm:$0xff]  }
   0xa   :  { %867 = vmatprep.subr.bf16.mxu1 %v930_v9  ;;  %v946_v25 = vld [vmem:[%s1232_s1 + $0xc8] sm:$0xff]   ;;  %v950_v29 = vld [vmem:[%s1232_s1 + $0xc0] sm:$0xff]   ;;  %v961_v38 = vld [vmem:[%s1232_s1 + $0x110] sm:$0xff]  }
   0xb   :  { %v947_v26 = vld [vmem:[%s1232_s1 + $0x8] sm:$0xff]   ;;  %v951_v30 = vld [vmem:[%s1232_s1] sm:$0xff]  }
   0xc   :  { %840 = vmatpush3.bf16.msra.mxu0 %v931_v10  ;;  %v948_v27 = vld [vmem:[%s1232_s1 + $0x88] sm:$0xff]   ;;  %v952_v31 = vld [vmem:[%s1232_s1 + $0x80] sm:$0xff]  }
   0xd   :  { %868 = vmatpush3.bf16.msra.mxu1 %v932_v11  ;;  %841 = vmatprep.subr.bf16.mxu0 %v933_v12  ;;  %v953_v32 = vld [vmem:[%s1233_s0] ss:$20 sps:$4 sm:$0xff]   ;;  %v955_v33 = vld [vmem:[%s1233_s0 + $0x4] ss:$20 sps:$4 sm:$0xff]   ;;  %v956_v34 = vld [vmem:[%s1233_s0 + $0x8] ss:$20 sps:$4 sm:$0xff]  }
   0xe   :  { %869 = vmatprep.subr.bf16.mxu1 %v934_v13  ;;  %v958_v35 = vld [vmem:[%s1233_s0 + $0xc] ss:$20 sps:$4 sm:$0xff]   ;;  %419 = vmatprep.mubr.bf16.mxu0 %v955_v33  ;;  %v964_v40 = vld [vmem:[%s1233_s0 + $0x34] ss:$20 sps:$4 sm:$0xff]   ;;  %v967_v42 = vld [vmem:[%s1233_s0 + $0x30] ss:$20 sps:$4 sm:$0xff]  }
   0xf   :  { %468 = vmatprep.mubr.bf16.mxu1 %v958_v35  ;;  %v960_v37 = vld [vmem:[%s1234_s5 + $0x8] sm:$0xff]   ;;  %v969_v44 = vld [vmem:[%s1234_s5] sm:$0xff]  }
  0x10   :  { %842 = vmatpush3.bf16.msra.mxu0 %v935_v14  ;;  %v962_v39 = vld [vmem:[%s1233_s0 + $0x2c] ss:$20 sps:$4 sm:$0xff]   ;;  %v966_v41 = vld [vmem:[%s1233_s0 + $0x28] ss:$20 sps:$4 sm:$0xff]   ;;  %v971_v46 = vld [vmem:[%s1233_s0 + $0x10] ss:$20 sps:$4 sm:$0xff]  }
  0x11   :  { %870 = vmatpush3.bf16.msra.mxu1 %v936_v15  ;;  %843 = vmatprep.subr.bf16.mxu0 %v937_v16  ;;  %v968_v43 = vld [vmem:[%s1232_s1 + $0x108] sm:$0xff]   ;;  %v970_v45 = vld [vmem:[%s1232_s1 + $0x100] sm:$0xff]  }
  0x12   :  { %871 = vmatprep.subr.bf16.mxu1 %v938_v17  ;;  %v972_v47 = vld [vmem:[%s1235_s4] sm:$0xff]   ;;  %v973_v48 = vld [vmem:[%s1233_s0 + $0x38] ss:$20 sps:$4 sm:$0xff]  }
  0x13   :  { %v974_v49 = vld [vmem:[%s1235_s4 + $0x8] sm:$0xff]  }
  0x14   :  { %844 = vmatpush3.bf16.msra.mxu0 %v939_v18 }
  0x15   :  { %872 = vmatpush3.bf16.msra.mxu1 %v940_v19  ;;  %845 = vmatprep.subr.bf16.mxu0 %v941_v20 }
  0x16   :  { %873 = vmatprep.subr.bf16.mxu1 %v942_v21 }
  0x18   :  { %846 = vmatpush3.bf16.msra.mxu0 %v943_v22 }
  0x19   :  { %874 = vmatpush3.bf16.msra.mxu1 %v944_v23  ;;  %847 = vmatprep.subr.bf16.mxu0 %v945_v24 }
  0x1a   :  { %875 = vmatprep.subr.bf16.mxu1 %v946_v25 }
  0x1c   :  { %848 = vmatpush3.bf16.msra.mxu0 %v947_v26 }
  0x1d   :  { %876 = vmatpush3.bf16.msra.mxu1 %v948_v27  ;;  %849 = vmatprep.subr.bf16.mxu0 %v949_v28 }
  0x1e   :  { %877 = vmatprep.subr.bf16.mxu1 %v950_v29 }
  0x20   :  { %850 = vmatpush3.bf16.msra.mxu0 %v951_v30 }
  0x21   :  { %878 = vmatpush3.bf16.msra.mxu1 %v952_v31  ;;  %901 = vmatprep.subr.bf16.mxu0 %v959_v36 }
  0x22   :  { %913 = vmatprep.subr.bf16.mxu1 %v960_v37 }
  0x23   :  { %420 = vmatmul.mubr.bf16.vlgmr.msra.gmra.mxu0 %v953_v32 }
  0x24   :  { %469 = vmatmul.mubr.bf16.vlgmr.msra.gmra.mxu1 %v956_v34  ;;  %902 = vmatpush3.bf16.msra.mxu0 %v959_v36 }
  0x25   :  { %914 = vmatpush3.bf16.msra.mxu1 %v960_v37  ;;  %903 = vmatprep.subr.bf16.mxu0 %v961_v38 }
  0x26   :  { %427 = vmatprep.mubr.bf16.mxu0 %v962_v39  ;;  %476 = vmatprep.mubr.bf16.mxu1 %v964_v40 }
  0x27   :  { %915 = vmatprep.subr.bf16.mxu1 %v969_v44 }
  0x28   :  { %904 = vmatpush3.bf16.msra.mxu0 %v961_v38 }
  0x29   :  { %905 = vmatprep.subr.bf16.mxu0 %v968_v43  ;;  %916 = vmatpush3.bf16.msra.mxu1 %v969_v44 }
  0x2b   :  { %428 = vmatmul.mubr.bf16.gmra.mxu0 %v966_v41 }
  0x2c   :  { %477 = vmatmul.mubr.bf16.gmra.mxu1 %v967_v42  ;;  %906 = vmatpush3.bf16.msra.mxu0 %v968_v43 }
  0x2d   :  { %907 = vmatprep.subr.bf16.mxu0 %v970_v45  ;;  %909 = vmatprep.mubr.msk.bf16.mxu0 %vm380_vm0, %v971_v46 }
  0x2e   :  { %917 = vmatprep.mubr.msk.bf16.mxu1 %vm599_vm1, %v972_v47 }
  0x30   :  { %908 = vmatpush3.bf16.msra.mxu0 %v970_v45 }
  0x33   :  { %910 = vmatmul.mubr.msk.bf16.vlgmr.msra.gmra.mxu0 %vm380_vm0, %v973_v48 }
  0x34   :  { %918 = vmatmul.mubr.msk.bf16.vlgmr.msra.gmra.mxu1 %vm599_vm1, %v974_v49 }
  0xe3   :  { %v851_v50 = vpop.f32.mrf.mxu0 }
  0xe4   :  { %v879_v51 = vpop.f32.mrf.mxu1 }
  0xe5   :  { %v852_v52 = vpop.f32.mrf.mxu0 }
  0xe6   :  { %v880_v53 = vpop.f32.mrf.mxu1  ;;  %v853_v4 = vadd.f32 %v852_v52, %v851_v50 }
  0xe7   :  { %v854_v54 = vpop.f32.mrf.mxu0  ;;  %v881_v5 = vadd.f32 %v880_v53, %v879_v51 }
  0xe8   :  { %v882_v55 = vpop.f32.mrf.mxu1 }
  0xe9   :  { %v855_v56 = vpop.f32.mrf.mxu0  ;;  %v471_v16 = vadd.f32 %v881_v5, %v853_v4 }
  0xea   :  { %v883_v57 = vpop.f32.mrf.mxu1  ;;  %v856_v6 = vadd.f32 %v855_v56, %v854_v54 }
  0xeb   :  { %v857_v58 = vpop.f32.mrf.mxu0  ;;  %v884_v7 = vadd.f32 %v883_v57, %v882_v55 }
  0xec   :  { %v885_v59 = vpop.f32.mrf.mxu1 }
  0xed   :  { %v858_v60 = vpop.f32.mrf.mxu0  ;;  %v474_v17 = vadd.f32 %v884_v7, %v856_v6 }
  0xee   :  { %v886_v61 = vpop.f32.mrf.mxu1  ;;  %v859_v10 = vadd.f32 %v858_v60, %v857_v58 }
  0xef   :  { %v860_v62 = vpop.f32.mrf.mxu0  ;;  %v887_v11 = vadd.f32 %v886_v61, %v885_v59 }
  0xf0   :  { %v888_v63 = vpop.f32.mrf.mxu1 }
  0xf1   :  { %v861_v0 = vpop.f32.mrf.mxu0  ;;  %v479_v20 = vadd.f32 %v887_v11, %v859_v10 }
  0xf2   :  { %v889_v1 = vpop.f32.mrf.mxu1  ;;  %v862_v14 = vadd.f32 %v861_v0, %v860_v62 }
  0xf3   :  { %v911_v2 = vpop.f32.mrf.mxu0  ;;  %v890_v15 = vadd.f32 %v889_v1, %v888_v63 }
  0xf4   :  { %v1174_v3 = vpop.f32.mrf.mxu1  ;;  %v1188_v24 = vadd.f32 %v911_v2, %v479_v20 }
  0xf5   :  { %v519_v8 = vpop.f32.mrf.mxu0  ;;  %v482_v25 = vadd.f32 %v890_v15, %v862_v14 }
  0xf6   :  { %v1176_v9 = vpop.f32.mrf.mxu1  ;;  %v1182_v21 = vadd.f32 %v519_v8, %v471_v16 }
  0xf7   :  { %v912_v12 = vpop.f32.mrf.mxu0 }
  0xf8   :  { %v1178_v13 = vpop.f32.mrf.mxu1  ;;  %v1193_v28 = vadd.f32 %v912_v12, %v482_v25 }
  0xf9   :  { %v522_v18 = vpop.f32.mrf.mxu0 }
  0xfa   :  { %v1180_v19 = vpop.f32.mrf.mxu1  ;;  %v1184_v22 = vadd.f32 %v522_v18, %v474_v17 }
  0xfb   :  { %v657_v23 = vadd.f32 %v1180_v19, %v1176_v9 }
  0xfc   :  { %v536_v26 = vadd.f32 %v1184_v22, %v1182_v21 }
  0xfd   :  { %v658_v27 = vadd.f32 %v1174_v3, %v657_v23 }
  0xfe   :  { %v537_v29 = vadd.f32 %v536_v26, %v1188_v24 }
  0xff   :  { %v659_v30 = vadd.f32 %v1178_v13, %v658_v27  ;;  %v691_v27 = vlaneseq }
 0x100   :  { %v538_v31 = vadd.f32 %v537_v29, %v1193_v28 }
 0x101   :  { %v660_v32 = vrot.slane %v659_v30, 4  ;;  %v692_v29 = vshrl.u32 %v691_v27, 7 }
 0x102   :  { %v539_v33 = vrot.slane %v538_v31, 4 }
 0x103   :  { %v661_v34 = vadd.f32 %v660_v32, %v659_v30  ;;  %v655_v30 = vld [vmem:[%s1236_s6] sm:$0x1]  ;;  %v693_v32 = vsub.s32 0, %v692_v29 }
 0x104   :  { %v540_v35 = vadd.f32 %v539_v33, %v538_v31  ;;  %v534_v31 = vld [vmem:[%s1237_s2] sm:$0x1] }
 0x105   :  { %v662_v36 = vrot.slane %v661_v34, 2 }
 0x106   :  { %v541_v37 = vrot.slane %v540_v35, 2 }
 0x107   :  { %v663_v38 = vadd.f32 %v662_v36, %v661_v34 }
 0x108   :  { %v542_v39 = vadd.f32 %v541_v37, %v540_v35  ;;  %v656_v37 = vld [vmem:[%s1238_s7] sm:$0x1] }
 0x109   :  { %v664_v40 = vrot.slane %v663_v38, 1 }
 0x10a   :  { %v543_v41 = vrot.slane %v542_v39, 1 }
 0x10b   :  { %v665_v42 = vadd.f32 %v664_v40, %v663_v38  ;;  %v535_v38 = vld [vmem:[%s1239_s3] sm:$0x1] }
 0x10c   :  { %v544_v43 = vadd.f32 %v543_v41, %v542_v39 }
 0x10d   :  { %v666_v44 = vmul.f32 0.03125, %v665_v42 }
 0x10e   :  { %v545_v45 = vmul.f32 0.03125, %v544_v43 }
 0x10f   :  { %v667_v46 = vsub.f32 %v1176_v9, %v666_v44  ;;  %v668_v47 = vsub.f32 %v1180_v19, %v666_v44  ;;  %v669_v48 = vsub.f32 %v1174_v3, %v666_v44  ;;  %v670_v52 = vsub.f32 %v1178_v13, %v666_v44 }
 0x110   :  { %v546_v49 = vsub.f32 %v1182_v21, %v545_v45  ;;  %v547_v50 = vsub.f32 %v1184_v22, %v545_v45  ;;  %v548_v51 = vsub.f32 %v1188_v24, %v545_v45  ;;  %v549_v55 = vsub.f32 %v1193_v28, %v545_v45 }
 0x111   :  { %v671_v53 = vmul.f32 %v667_v46, %v667_v46  ;;  %v672_v54 = vmul.f32 %v668_v47, %v668_v47  ;;  %v673_v58 = vmul.f32 %v669_v48, %v669_v48  ;;  %v674_v62 = vmul.f32 %v670_v52, %v670_v52 }
 0x112   :  { %v550_v56 = vmul.f32 %v546_v49, %v546_v49  ;;  %v551_v57 = vmul.f32 %v547_v50, %v547_v50  ;;  %v552_v60 = vmul.f32 %v548_v51, %v548_v51  ;;  %v553_v0 = vmul.f32 %v549_v55, %v549_v55 }
 0x113   :  { %v675_v59 = vadd.f32 %v672_v54, %v671_v53 }
 0x114   :  { %v554_v61 = vadd.f32 %v551_v57, %v550_v56 }
 0x115   :  { %v676_v63 = vadd.f32 %v675_v59, %v673_v58 }
 0x116   :  { %v555_v1 = vadd.f32 %v554_v61, %v552_v60 }
 0x117   :  { %v677_v2 = vadd.f32 %v676_v63, %v674_v62 }
 0x118   :  { %v556_v4 = vadd.f32 %v555_v1, %v553_v0 }
 0x119   :  { %v678_v5 = vrot.slane %v677_v2, 4 }
 0x11a   :  { %v557_v6 = vrot.slane %v556_v4, 4 }
 0x11b   :  { %v679_v7 = vadd.f32 %v678_v5, %v677_v2 }
 0x11c   :  { %v558_v8 = vadd.f32 %v557_v6, %v556_v4 }
 0x11d   :  { %v680_v10 = vrot.slane %v679_v7, 2 }
 0x11e   :  { %v559_v11 = vrot.slane %v558_v8, 2 }
 0x11f   :  { %v681_v12 = vadd.f32 %v680_v10, %v679_v7 }
 0x120   :  { %v560_v14 = vadd.f32 %v559_v11, %v558_v8 }
 0x121   :  { %v682_v15 = vrot.slane %v681_v12, 1 }
 0x122   :  { %v561_v16 = vrot.slane %v560_v14, 1 }
 0x123   :  { %v683_v17 = vadd.f32 %v682_v15, %v681_v12 }
 0x124   :  { %v562_v18 = vadd.f32 %v561_v16, %v560_v14 }
 0x125   :  { %v684_v20 = vmul.f32 0.03125, %v683_v17 }
 0x126   :  { %v563_v23 = vmul.f32 0.03125, %v562_v18 }
 0x127   :  { %v685_v25 = vadd.f32 1e-05, %v684_v20 }
 0x128   :  { %v564_v26 = vadd.f32 1e-05, %v563_v23 }
 0x129   :  { %975 = vrsqrt.f32 %v685_v25 }
 0x12a   :  { %977 = vrsqrt.f32 %v564_v26 }
 0x136   :  { %v976_v33 = vpop.eup %975 }
 0x137   :  { %v978_v34 = vpop.eup %977  ;;  %v687_v35 = vmul.f32 %v976_v33, %v655_v30 }
 0x138   :  { %v566_v36 = vmul.f32 %v978_v34, %v534_v31 }
 0x139   :  { %v688_v39 = vmul.f32 %v687_v35, %v666_v44  ;;  %v714_v40 = vrot.slane %v687_v35, %v693_v32 }
 0x13a   :  { %v567_v41 = vmul.f32 %v566_v36, %v545_v45  ;;  %v694_v42 = vrot.slane %v566_v36, %v693_v32 }
 0x13b   :  { %v689_v43 = vsub.f32 %v656_v37, %v688_v39  ;;  %v716_v47 = vmul.f32 %v714_v40, %v1176_v9  ;;  %v717_v48 = vmul.f32 %v714_v40, %v1180_v19  ;;  %v718_v50 = vmul.f32 %v1174_v3, %v714_v40 }
 0x13c   :  { %v568_v46 = vsub.f32 %v535_v38, %v567_v41  ;;  %v697_v49 = vmul.f32 %v694_v42, %v1184_v22  ;;  %v719_v51 = vmul.f32 %v1178_v13, %v714_v40  ;;  %v696_v54 = vmul.f32 %v694_v42, %v1182_v21 }
 0x13d   :  { %v724_v52 = vrot.slane %v689_v43, %v693_v32  ;;  %v698_v44 = vmul.f32 %v694_v42, %v1188_v24  ;;  %v699_v45 = vmul.f32 %v694_v42, %v1193_v28 }
 0x13e   :  { %v704_v53 = vrot.slane %v568_v46, %v693_v32 }
 0x13f   :  { %v726_v55 = vadd.f32 %v724_v52, %v716_v47  ;;  %v727_v56 = vadd.f32 %v724_v52, %v717_v48  ;;  %v728_v57 = vadd.f32 %v724_v52, %v718_v50  ;;  %v729_v9 = vadd.f32 %v724_v52, %v719_v51 }
 0x140   :  { %v707_v58 = vadd.f32 %v704_v53, %v697_v49  ;;  %v706_v19 = vadd.f32 %v704_v53, %v696_v54  ;;  %v708_v59 = vadd.f32 %v704_v53, %v698_v44  ;;  %v709_v22 = vadd.f32 %v704_v53, %v699_v45 }
 0x142   :  { %v730_v60 = vadd.f32 %v726_v55, %v706_v19  ;;  %v731_v3 = vadd.f32 %v727_v56, %v707_v58  ;;  %v732_v61 = vadd.f32 %v728_v57, %v708_v59  ;;  %v733_v13 = vadd.f32 %v729_v9, %v709_v22 }
 0x144   :  { %v734_v62 = vmax.f32 %v730_v60, 0.0  ;;  %v735_v63 = vmax.f32 %v731_v3, 0.0  ;;  %v736_v0 = vmax.f32 %v732_v61, 0.0  ;;  %v737_v21 = vmax.f32 %v733_v13, 0.0 }
 0x146   :  { %v827_v1 = vpack.c.bf16 %v735_v63, %v734_v62  ;;  %v832_v24 = vpack.c.bf16 %v737_v21, %v736_v0 }
 0x148   :  { %828 = vst [vmem:[%s1240_s8] sm:$0xff] %v827_v1   ;;  %834 = vst [vmem:[%s1240_s8 + $0x8] sm:$0xff] %v832_v24  }

// kernel: _lambda_.44
= control target key start
LH: loop header
LB: loop body
LE: loop exit
PB: predicated region body
PF: predicated region fallthrough
CT: control target
= control target key end

     0   :  { %vm368_vm0 = vcmask 523264   ;;  %s973_s1 = inlined_call_operand.vmem [shape: bf16[576,128], index: 1, kind: input, shape index: {}]   ;;  %s974_s0 = inlined_call_operand.vmem [shape: bf16[32,576], index: 0, kind: input, shape index: {}]   ;;  %s975_s2 = inlined_call_operand.vmem [shape: f32[1,128], index: 2, kind: input, shape index: {}]   ;;  %s976_s3 = inlined_call_operand.vmem [shape: f32[1,128], index: 3, kind: input, shape index: {}]   ;;  %s977_s4 = inlined_call_operand.vmem [shape: bf16[32,128], index: 4, kind: output, shape index: {}]  }
   0x1   :  { %v746_v0 = vld [vmem:[%s973_s1 + $0x78] sm:$0xff]   ;;  %v750_v4 = vld [vmem:[%s973_s1 + $0x70] sm:$0xff]   ;;  %v754_v8 = vld [vmem:[%s973_s1 + $0x68] sm:$0xff]  }
   0x2   :  { %v747_v1 = vld [vmem:[%s973_s1 + $0xf8] sm:$0xff]   ;;  %672 = vmatprep.subr.bf16.mxu0 %v746_v0  ;;  %v751_v5 = vld [vmem:[%s973_s1 + $0xf0] sm:$0xff]   ;;  %v755_v9 = vld [vmem:[%s973_s1 + $0xe8] sm:$0xff]  }
   0x3   :  { %v748_v2 = vld [vmem:[%s973_s1 + $0x38] sm:$0xff]   ;;  %700 = vmatprep.subr.bf16.mxu1 %v747_v1  ;;  %v752_v6 = vld [vmem:[%s973_s1 + $0x30] sm:$0xff]   ;;  %v756_v10 = vld [vmem:[%s973_s1 + $0x28] sm:$0xff]  }
   0x4   :  { %v749_v3 = vld [vmem:[%s973_s1 + $0xb8] sm:$0xff]   ;;  %673 = vmatpush3.bf16.msra.mxu0 %v748_v2  ;;  %v753_v7 = vld [vmem:[%s973_s1 + $0xb0] sm:$0xff]   ;;  %v757_v11 = vld [vmem:[%s973_s1 + $0xa8] sm:$0xff]  }
   0x5   :  { %701 = vmatpush3.bf16.msra.mxu1 %v749_v3  ;;  %674 = vmatprep.subr.bf16.mxu0 %v750_v4  ;;  %v758_v12 = vld [vmem:[%s973_s1 + $0x60] sm:$0xff]   ;;  %v762_v16 = vld [vmem:[%s973_s1 + $0x58] sm:$0xff]   ;;  %v766_v20 = vld [vmem:[%s973_s1 + $0x50] sm:$0xff]  }
   0x6   :  { %702 = vmatprep.subr.bf16.mxu1 %v751_v5  ;;  %v759_v13 = vld [vmem:[%s973_s1 + $0xe0] sm:$0xff]   ;;  %v763_v17 = vld [vmem:[%s973_s1 + $0xd8] sm:$0xff]   ;;  %v767_v21 = vld [vmem:[%s973_s1 + $0xd0] sm:$0xff]  }
   0x7   :  { %v760_v14 = vld [vmem:[%s973_s1 + $0x20] sm:$0xff]   ;;  %v764_v18 = vld [vmem:[%s973_s1 + $0x18] sm:$0xff]   ;;  %v768_v22 = vld [vmem:[%s973_s1 + $0x10] sm:$0xff]  }
   0x8   :  { %675 = vmatpush3.bf16.msra.mxu0 %v752_v6  ;;  %v761_v15 = vld [vmem:[%s973_s1 + $0xa0] sm:$0xff]   ;;  %v765_v19 = vld [vmem:[%s973_s1 + $0x98] sm:$0xff]   ;;  %v769_v23 = vld [vmem:[%s973_s1 + $0x90] sm:$0xff]  }
   0x9   :  { %703 = vmatpush3.bf16.msra.mxu1 %v753_v7  ;;  %676 = vmatprep.subr.bf16.mxu0 %v754_v8  ;;  %v770_v24 = vld [vmem:[%s973_s1 + $0x48] sm:$0xff]   ;;  %v774_v28 = vld [vmem:[%s973_s1 + $0x40] sm:$0xff]   ;;  %v784_v36 = vld [vmem:[%s973_s1 + $0x118] sm:$0xff]  }
   0xa   :  { %704 = vmatprep.subr.bf16.mxu1 %v755_v9  ;;  %v771_v25 = vld [vmem:[%s973_s1 + $0xc8] sm:$0xff]   ;;  %v775_v29 = vld [vmem:[%s973_s1 + $0xc0] sm:$0xff]   ;;  %v785_v37 = vld [vmem:[%s973_s1 + $0x110] sm:$0xff]  }
   0xb   :  { %v772_v26 = vld [vmem:[%s973_s1 + $0x8] sm:$0xff]   ;;  %v776_v30 = vld [vmem:[%s973_s1] sm:$0xff]  }
   0xc   :  { %677 = vmatpush3.bf16.msra.mxu0 %v756_v10  ;;  %v773_v27 = vld [vmem:[%s973_s1 + $0x88] sm:$0xff]   ;;  %v777_v31 = vld [vmem:[%s973_s1 + $0x80] sm:$0xff]  }
   0xd   :  { %705 = vmatpush3.bf16.msra.mxu1 %v757_v11  ;;  %678 = vmatprep.subr.bf16.mxu0 %v758_v12  ;;  %v778_v32 = vld [vmem:[%s974_s0] ss:$20 sps:$4 sm:$0xff]   ;;  %v780_v33 = vld [vmem:[%s974_s0 + $0x4] ss:$20 sps:$4 sm:$0xff]   ;;  %v781_v34 = vld [vmem:[%s974_s0 + $0x8] ss:$20 sps:$4 sm:$0xff]  }
   0xe   :  { %706 = vmatprep.subr.bf16.mxu1 %v759_v13  ;;  %v783_v35 = vld [vmem:[%s974_s0 + $0xc] ss:$20 sps:$4 sm:$0xff]   ;;  %407 = vmatprep.mubr.bf16.mxu0 %v780_v33  ;;  %v788_v39 = vld [vmem:[%s974_s0 + $0x34] ss:$20 sps:$4 sm:$0xff]   ;;  %v791_v42 = vld [vmem:[%s974_s0 + $0x30] ss:$20 sps:$4 sm:$0xff]  }
   0xf   :  { %456 = vmatprep.mubr.bf16.mxu1 %v783_v35  ;;  %v786_v38 = vld [vmem:[%s974_s0 + $0x2c] ss:$20 sps:$4 sm:$0xff]   ;;  %v790_v40 = vld [vmem:[%s974_s0 + $0x28] ss:$20 sps:$4 sm:$0xff]   ;;  %v794_v43 = vld [vmem:[%s974_s0 + $0x10] ss:$20 sps:$4 sm:$0xff]  }
  0x10   :  { %679 = vmatpush3.bf16.msra.mxu0 %v760_v14  ;;  %v792_v41 = vld [vmem:[%s973_s1 + $0x108] sm:$0xff]   ;;  %v793_v44 = vld [vmem:[%s973_s1 + $0x100] sm:$0xff]  }
  0x11   :  { %707 = vmatpush3.bf16.msra.mxu1 %v761_v15  ;;  %680 = vmatprep.subr.bf16.mxu0 %v762_v16  ;;  %v795_v45 = vld [vmem:[%s974_s0 + $0x38] ss:$20 sps:$4 sm:$0xff]  }
  0x12   :  { %708 = vmatprep.subr.bf16.mxu1 %v763_v17 }
  0x14   :  { %681 = vmatpush3.bf16.msra.mxu0 %v764_v18 }
  0x15   :  { %709 = vmatpush3.bf16.msra.mxu1 %v765_v19  ;;  %682 = vmatprep.subr.bf16.mxu0 %v766_v20 }
  0x16   :  { %710 = vmatprep.subr.bf16.mxu1 %v767_v21 }
  0x18   :  { %683 = vmatpush3.bf16.msra.mxu0 %v768_v22 }
  0x19   :  { %711 = vmatpush3.bf16.msra.mxu1 %v769_v23  ;;  %684 = vmatprep.subr.bf16.mxu0 %v770_v24 }
  0x1a   :  { %712 = vmatprep.subr.bf16.mxu1 %v771_v25 }
  0x1c   :  { %685 = vmatpush3.bf16.msra.mxu0 %v772_v26 }
  0x1d   :  { %713 = vmatpush3.bf16.msra.mxu1 %v773_v27  ;;  %686 = vmatprep.subr.bf16.mxu0 %v774_v28 }
  0x1e   :  { %714 = vmatprep.subr.bf16.mxu1 %v775_v29 }
  0x20   :  { %687 = vmatpush3.bf16.msra.mxu0 %v776_v30 }
  0x21   :  { %715 = vmatpush3.bf16.msra.mxu1 %v777_v31  ;;  %734 = vmatprep.subr.bf16.mxu0 %v784_v36 }
  0x23   :  { %408 = vmatmul.mubr.bf16.vlgmr.msra.gmra.mxu0 %v778_v32 }
  0x24   :  { %457 = vmatmul.mubr.bf16.vlgmr.msra.gmra.mxu1 %v781_v34  ;;  %735 = vmatpush3.bf16.msra.mxu0 %v784_v36 }
  0x25   :  { %736 = vmatprep.subr.bf16.mxu0 %v785_v37  ;;  %415 = vmatprep.mubr.bf16.mxu0 %v786_v38 }
  0x26   :  { %464 = vmatprep.mubr.bf16.mxu1 %v788_v39 }
  0x28   :  { %737 = vmatpush3.bf16.msra.mxu0 %v785_v37 }
  0x29   :  { %738 = vmatprep.subr.bf16.mxu0 %v792_v41 }
  0x2b   :  { %416 = vmatmul.mubr.bf16.gmra.mxu0 %v790_v40 }
  0x2c   :  { %465 = vmatmul.mubr.bf16.gmra.mxu1 %v791_v42  ;;  %742 = vmatprep.mubr.msk.bf16.mxu0 %vm368_vm0, %v794_v43 }
  0x2d   :  { %739 = vmatpush3.bf16.msra.mxu0 %v792_v41 }
  0x2e   :  { %740 = vmatprep.subr.bf16.mxu0 %v793_v44 }
  0x31   :  { %741 = vmatpush3.bf16.msra.mxu0 %v793_v44 }
  0x34   :  { %743 = vmatmul.mubr.msk.bf16.vlgmr.msra.gmra.mxu0 %vm368_vm0, %v795_v45 }
  0xe3   :  { %v688_v46 = vpop.f32.mrf.mxu0 }
  0xe4   :  { %v716_v47 = vpop.f32.mrf.mxu1 }
  0xe5   :  { %v689_v48 = vpop.f32.mrf.mxu0 }
  0xe6   :  { %v717_v49 = vpop.f32.mrf.mxu1  ;;  %v690_v62 = vadd.f32 %v689_v48, %v688_v46 }
  0xe7   :  { %v691_v50 = vpop.f32.mrf.mxu0  ;;  %v718_v63 = vadd.f32 %v717_v49, %v716_v47  ;;  %v558_v47 = vlaneseq  ;;  %v522_v49 = vld [vmem:[%s975_s2] sm:$0x1] }
  0xe8   :  { %v719_v51 = vpop.f32.mrf.mxu1 }
  0xe9   :  { %v692_v52 = vpop.f32.mrf.mxu0  ;;  %v459_v9 = vadd.f32 %v718_v63, %v690_v62  ;;  %v559_v48 = vshrl.u32 %v558_v47, 7 }
  0xea   :  { %v720_v53 = vpop.f32.mrf.mxu1  ;;  %v693_v0 = vadd.f32 %v692_v52, %v691_v50 }
  0xeb   :  { %v694_v54 = vpop.f32.mrf.mxu0  ;;  %v721_v1 = vadd.f32 %v720_v53, %v719_v51  ;;  %v560_v50 = vsub.s32 0, %v559_v48  ;;  %v523_v53 = vld [vmem:[%s976_s3] sm:$0x1] }
  0xec   :  { %v722_v55 = vpop.f32.mrf.mxu1 }
  0xed   :  { %v695_v56 = vpop.f32.mrf.mxu0  ;;  %v462_v10 = vadd.f32 %v721_v1, %v693_v0 }
  0xee   :  { %v723_v57 = vpop.f32.mrf.mxu1  ;;  %v696_v4 = vadd.f32 %v695_v56, %v694_v54 }
  0xef   :  { %v697_v58 = vpop.f32.mrf.mxu0  ;;  %v724_v5 = vadd.f32 %v723_v57, %v722_v55 }
  0xf0   :  { %v725_v60 = vpop.f32.mrf.mxu1 }
  0xf1   :  { %v698_v59 = vpop.f32.mrf.mxu0  ;;  %v467_v12 = vadd.f32 %v724_v5, %v696_v4 }
  0xf2   :  { %v726_v2 = vpop.f32.mrf.mxu1  ;;  %v699_v7 = vadd.f32 %v698_v59, %v697_v58 }
  0xf3   :  { %v727_v8 = vadd.f32 %v726_v2, %v725_v60 }
  0xf4   :  { %v744_v61 = vpop.f32.mrf.mxu0 }
  0xf5   :  { %v516_v15 = vadd.f32 %v744_v61, %v467_v12  ;;  %v470_v16 = vadd.f32 %v727_v8, %v699_v7 }
  0xf6   :  { %v507_v3 = vpop.f32.mrf.mxu0 }
  0xf7   :  { %v508_v13 = vadd.f32 %v507_v3, %v459_v9 }
  0xf8   :  { %v745_v6 = vpop.f32.mrf.mxu0 }
  0xf9   :  { %v519_v18 = vadd.f32 %v745_v6, %v470_v16 }
  0xfa   :  { %v510_v11 = vpop.f32.mrf.mxu0 }
  0xfb   :  { %v511_v14 = vadd.f32 %v510_v11, %v462_v10 }
  0xfd   :  { %v524_v17 = vadd.f32 %v511_v14, %v508_v13 }
  0xff   :  { %v525_v19 = vadd.f32 %v524_v17, %v516_v15 }
 0x101   :  { %v526_v20 = vadd.f32 %v525_v19, %v519_v18 }
 0x103   :  { %v527_v21 = vrot.slane %v526_v20, 4 }
 0x105   :  { %v528_v22 = vadd.f32 %v527_v21, %v526_v20 }
 0x107   :  { %v529_v23 = vrot.slane %v528_v22, 2 }
 0x109   :  { %v530_v24 = vadd.f32 %v529_v23, %v528_v22 }
 0x10b   :  { %v531_v25 = vrot.slane %v530_v24, 1 }
 0x10d   :  { %v532_v26 = vadd.f32 %v531_v25, %v530_v24 }
 0x10f   :  { %v533_v27 = vmul.f32 0.03125, %v532_v26 }
 0x111   :  { %v534_v28 = vsub.f32 %v508_v13, %v533_v27  ;;  %v535_v29 = vsub.f32 %v511_v14, %v533_v27  ;;  %v536_v30 = vsub.f32 %v516_v15, %v533_v27  ;;  %v537_v31 = vsub.f32 %v519_v18, %v533_v27 }
 0x113   :  { %v538_v32 = vmul.f32 %v534_v28, %v534_v28  ;;  %v539_v33 = vmul.f32 %v535_v29, %v535_v29  ;;  %v540_v34 = vmul.f32 %v536_v30, %v536_v30  ;;  %v541_v36 = vmul.f32 %v537_v31, %v537_v31 }
 0x115   :  { %v542_v35 = vadd.f32 %v539_v33, %v538_v32 }
 0x117   :  { %v543_v37 = vadd.f32 %v542_v35, %v540_v34 }
 0x119   :  { %v544_v38 = vadd.f32 %v543_v37, %v541_v36 }
 0x11b   :  { %v545_v39 = vrot.slane %v544_v38, 4 }
 0x11d   :  { %v546_v40 = vadd.f32 %v545_v39, %v544_v38 }
 0x11f   :  { %v547_v41 = vrot.slane %v546_v40, 2 }
 0x121   :  { %v548_v42 = vadd.f32 %v547_v41, %v546_v40 }
 0x123   :  { %v549_v43 = vrot.slane %v548_v42, 1 }
 0x125   :  { %v550_v44 = vadd.f32 %v549_v43, %v548_v42 }
 0x127   :  { %v551_v45 = vmul.f32 0.03125, %v550_v44 }
 0x129   :  { %v552_v46 = vadd.f32 1e-05, %v551_v45 }
 0x12b   :  { %796 = vrsqrt.f32 %v552_v46 }
 0x138   :  { %v797_v51 = vpop.eup %796 }
 0x139   :  { %v554_v52 = vmul.f32 %v797_v51, %v522_v49 }
 0x13b   :  { %v555_v54 = vmul.f32 %v554_v52, %v533_v27  ;;  %v561_v55 = vrot.slane %v554_v52, %v560_v50 }
 0x13d   :  { %v556_v56 = vsub.f32 %v523_v53, %v555_v54  ;;  %v563_v57 = vmul.f32 %v561_v55, %v508_v13  ;;  %v564_v58 = vmul.f32 %v561_v55, %v511_v14  ;;  %v565_v59 = vmul.f32 %v561_v55, %v516_v15 }
 0x13e   :  { %v566_v60 = vmul.f32 %v561_v55, %v519_v18 }
 0x13f   :  { %v571_v61 = vrot.slane %v556_v56, %v560_v50 }
 0x141   :  { %v573_v62 = vadd.f32 %v571_v61, %v563_v57  ;;  %v574_v63 = vadd.f32 %v571_v61, %v564_v58  ;;  %v575_v0 = vadd.f32 %v571_v61, %v565_v59  ;;  %v576_v1 = vadd.f32 %v571_v61, %v566_v60 }
 0x143   :  { %v577_v2 = vmax.f32 %v573_v62, 0.0  ;;  %v578_v3 = vmax.f32 %v574_v63, 0.0  ;;  %v579_v4 = vmax.f32 %v575_v0, 0.0  ;;  %v580_v5 = vmax.f32 %v576_v1, 0.0 }
 0x145   :  { %v664_v6 = vpack.c.bf16 %v578_v3, %v577_v2  ;;  %v669_v7 = vpack.c.bf16 %v580_v5, %v579_v4 }
 0x147   :  { %665 = vst [vmem:[%s977_s4] sm:$0xff] %v664_v6   ;;  %671 = vst [vmem:[%s977_s4 + $0x8] sm:$0xff] %v669_v7  }

// kernel: _lambda_.45
= control target key start
LH: loop header
LB: loop body
LE: loop exit
PB: predicated region body
PF: predicated region fallthrough
CT: control target
= control target key end

     0   :  { %vm371_vm0 = vcmask 523264   ;;  %s1008_s1 = inlined_call_operand.vmem [shape: bf16[576,128], index: 1, kind: input, shape index: {}]   ;;  %s1009_s0 = inlined_call_operand.vmem [shape: bf16[32,576], index: 0, kind: input, shape index: {}]   ;;  %s1010_s2 = inlined_call_operand.vmem [shape: f32[1,128], index: 2, kind: input, shape index: {}]   ;;  %s1011_s3 = inlined_call_operand.vmem [shape: f32[1,128], index: 3, kind: input, shape index: {}]   ;;  %s1012_s4 = inlined_call_operand.vmem [shape: bf16[32,128], index: 4, kind: input, shape index: {}]   ;;  %s1013_s5 = inlined_call_operand.vmem [shape: bf16[32,128], index: 5, kind: output, shape index: {}]  }
   0x1   :  { %v770_v0 = vld [vmem:[%s1008_s1 + $0x78] sm:$0xff]   ;;  %v774_v4 = vld [vmem:[%s1008_s1 + $0x70] sm:$0xff]   ;;  %v778_v8 = vld [vmem:[%s1008_s1 + $0x68] sm:$0xff]  }
   0x2   :  { %v771_v1 = vld [vmem:[%s1008_s1 + $0xf8] sm:$0xff]   ;;  %696 = vmatprep.subr.bf16.mxu0 %v770_v0  ;;  %v775_v5 = vld [vmem:[%s1008_s1 + $0xf0] sm:$0xff]   ;;  %v779_v9 = vld [vmem:[%s1008_s1 + $0xe8] sm:$0xff]  }
   0x3   :  { %v772_v2 = vld [vmem:[%s1008_s1 + $0x38] sm:$0xff]   ;;  %724 = vmatprep.subr.bf16.mxu1 %v771_v1  ;;  %v776_v6 = vld [vmem:[%s1008_s1 + $0x30] sm:$0xff]   ;;  %v780_v10 = vld [vmem:[%s1008_s1 + $0x28] sm:$0xff]  }
   0x4   :  { %v773_v3 = vld [vmem:[%s1008_s1 + $0xb8] sm:$0xff]   ;;  %697 = vmatpush3.bf16.msra.mxu0 %v772_v2  ;;  %v777_v7 = vld [vmem:[%s1008_s1 + $0xb0] sm:$0xff]   ;;  %v781_v11 = vld [vmem:[%s1008_s1 + $0xa8] sm:$0xff]  }
   0x5   :  { %725 = vmatpush3.bf16.msra.mxu1 %v773_v3  ;;  %698 = vmatprep.subr.bf16.mxu0 %v774_v4  ;;  %v782_v12 = vld [vmem:[%s1008_s1 + $0x60] sm:$0xff]   ;;  %v786_v16 = vld [vmem:[%s1008_s1 + $0x58] sm:$0xff]   ;;  %v790_v20 = vld [vmem:[%s1008_s1 + $0x50] sm:$0xff]  }
   0x6   :  { %726 = vmatprep.subr.bf16.mxu1 %v775_v5  ;;  %v783_v13 = vld [vmem:[%s1008_s1 + $0xe0] sm:$0xff]   ;;  %v787_v17 = vld [vmem:[%s1008_s1 + $0xd8] sm:$0xff]   ;;  %v791_v21 = vld [vmem:[%s1008_s1 + $0xd0] sm:$0xff]  }
   0x7   :  { %v784_v14 = vld [vmem:[%s1008_s1 + $0x20] sm:$0xff]   ;;  %v788_v18 = vld [vmem:[%s1008_s1 + $0x18] sm:$0xff]   ;;  %v792_v22 = vld [vmem:[%s1008_s1 + $0x10] sm:$0xff]  }
   0x8   :  { %699 = vmatpush3.bf16.msra.mxu0 %v776_v6  ;;  %v785_v15 = vld [vmem:[%s1008_s1 + $0xa0] sm:$0xff]   ;;  %v789_v19 = vld [vmem:[%s1008_s1 + $0x98] sm:$0xff]   ;;  %v793_v23 = vld [vmem:[%s1008_s1 + $0x90] sm:$0xff]  }
   0x9   :  { %727 = vmatpush3.bf16.msra.mxu1 %v777_v7  ;;  %700 = vmatprep.subr.bf16.mxu0 %v778_v8  ;;  %v794_v24 = vld [vmem:[%s1008_s1 + $0x48] sm:$0xff]   ;;  %v798_v28 = vld [vmem:[%s1008_s1 + $0x40] sm:$0xff]   ;;  %v808_v36 = vld [vmem:[%s1008_s1 + $0x118] sm:$0xff]  }
   0xa   :  { %728 = vmatprep.subr.bf16.mxu1 %v779_v9  ;;  %v795_v25 = vld [vmem:[%s1008_s1 + $0xc8] sm:$0xff]   ;;  %v799_v29 = vld [vmem:[%s1008_s1 + $0xc0] sm:$0xff]   ;;  %v809_v37 = vld [vmem:[%s1008_s1 + $0x110] sm:$0xff]  }
   0xb   :  { %v796_v26 = vld [vmem:[%s1008_s1 + $0x8] sm:$0xff]   ;;  %v800_v30 = vld [vmem:[%s1008_s1] sm:$0xff]  }
   0xc   :  { %701 = vmatpush3.bf16.msra.mxu0 %v780_v10  ;;  %v797_v27 = vld [vmem:[%s1008_s1 + $0x88] sm:$0xff]   ;;  %v801_v31 = vld [vmem:[%s1008_s1 + $0x80] sm:$0xff]  }
   0xd   :  { %729 = vmatpush3.bf16.msra.mxu1 %v781_v11  ;;  %702 = vmatprep.subr.bf16.mxu0 %v782_v12  ;;  %v802_v32 = vld [vmem:[%s1009_s0] ss:$20 sps:$4 sm:$0xff]   ;;  %v804_v33 = vld [vmem:[%s1009_s0 + $0x4] ss:$20 sps:$4 sm:$0xff]   ;;  %v805_v34 = vld [vmem:[%s1009_s0 + $0x8] ss:$20 sps:$4 sm:$0xff]  }
   0xe   :  { %730 = vmatprep.subr.bf16.mxu1 %v783_v13  ;;  %v807_v35 = vld [vmem:[%s1009_s0 + $0xc] ss:$20 sps:$4 sm:$0xff]   ;;  %410 = vmatprep.mubr.bf16.mxu0 %v804_v33  ;;  %v812_v39 = vld [vmem:[%s1009_s0 + $0x34] ss:$20 sps:$4 sm:$0xff]   ;;  %v815_v42 = vld [vmem:[%s1009_s0 + $0x30] ss:$20 sps:$4 sm:$0xff]  }
   0xf   :  { %459 = vmatprep.mubr.bf16.mxu1 %v807_v35  ;;  %v810_v38 = vld [vmem:[%s1009_s0 + $0x2c] ss:$20 sps:$4 sm:$0xff]   ;;  %v814_v40 = vld [vmem:[%s1009_s0 + $0x28] ss:$20 sps:$4 sm:$0xff]   ;;  %v818_v43 = vld [vmem:[%s1009_s0 + $0x10] ss:$20 sps:$4 sm:$0xff]  }
  0x10   :  { %703 = vmatpush3.bf16.msra.mxu0 %v784_v14  ;;  %v816_v41 = vld [vmem:[%s1008_s1 + $0x108] sm:$0xff]   ;;  %v817_v44 = vld [vmem:[%s1008_s1 + $0x100] sm:$0xff]  }
  0x11   :  { %731 = vmatpush3.bf16.msra.mxu1 %v785_v15  ;;  %704 = vmatprep.subr.bf16.mxu0 %v786_v16  ;;  %v819_v45 = vld [vmem:[%s1009_s0 + $0x38] ss:$20 sps:$4 sm:$0xff]  }
  0x12   :  { %732 = vmatprep.subr.bf16.mxu1 %v787_v17 }
  0x14   :  { %705 = vmatpush3.bf16.msra.mxu0 %v788_v18 }
  0x15   :  { %733 = vmatpush3.bf16.msra.mxu1 %v789_v19  ;;  %706 = vmatprep.subr.bf16.mxu0 %v790_v20 }
  0x16   :  { %734 = vmatprep.subr.bf16.mxu1 %v791_v21 }
  0x18   :  { %707 = vmatpush3.bf16.msra.mxu0 %v792_v22 }
  0x19   :  { %735 = vmatpush3.bf16.msra.mxu1 %v793_v23  ;;  %708 = vmatprep.subr.bf16.mxu0 %v794_v24 }
  0x1a   :  { %736 = vmatprep.subr.bf16.mxu1 %v795_v25 }
  0x1c   :  { %709 = vmatpush3.bf16.msra.mxu0 %v796_v26 }
  0x1d   :  { %737 = vmatpush3.bf16.msra.mxu1 %v797_v27  ;;  %710 = vmatprep.subr.bf16.mxu0 %v798_v28 }
  0x1e   :  { %738 = vmatprep.subr.bf16.mxu1 %v799_v29 }
  0x20   :  { %711 = vmatpush3.bf16.msra.mxu0 %v800_v30 }
  0x21   :  { %739 = vmatpush3.bf16.msra.mxu1 %v801_v31  ;;  %758 = vmatprep.subr.bf16.mxu0 %v808_v36 }
  0x23   :  { %411 = vmatmul.mubr.bf16.vlgmr.msra.gmra.mxu0 %v802_v32 }
  0x24   :  { %460 = vmatmul.mubr.bf16.vlgmr.msra.gmra.mxu1 %v805_v34  ;;  %759 = vmatpush3.bf16.msra.mxu0 %v808_v36 }
  0x25   :  { %760 = vmatprep.subr.bf16.mxu0 %v809_v37  ;;  %418 = vmatprep.mubr.bf16.mxu0 %v810_v38 }
  0x26   :  { %467 = vmatprep.mubr.bf16.mxu1 %v812_v39 }
  0x28   :  { %761 = vmatpush3.bf16.msra.mxu0 %v809_v37 }
  0x29   :  { %762 = vmatprep.subr.bf16.mxu0 %v816_v41 }
  0x2b   :  { %419 = vmatmul.mubr.bf16.gmra.mxu0 %v814_v40 }
  0x2c   :  { %468 = vmatmul.mubr.bf16.gmra.mxu1 %v815_v42  ;;  %766 = vmatprep.mubr.msk.bf16.mxu0 %vm371_vm0, %v818_v43 }
  0x2d   :  { %763 = vmatpush3.bf16.msra.mxu0 %v816_v41 }
  0x2e   :  { %764 = vmatprep.subr.bf16.mxu0 %v817_v44 }
  0x31   :  { %765 = vmatpush3.bf16.msra.mxu0 %v817_v44 }
  0x34   :  { %767 = vmatmul.mubr.msk.bf16.vlgmr.msra.gmra.mxu0 %vm371_vm0, %v819_v45 }
  0xe3   :  { %v712_v46 = vpop.f32.mrf.mxu0 }
  0xe4   :  { %v740_v47 = vpop.f32.mrf.mxu1 }
  0xe5   :  { %v713_v48 = vpop.f32.mrf.mxu0 }
  0xe6   :  { %v741_v49 = vpop.f32.mrf.mxu1  ;;  %v714_v62 = vadd.f32 %v713_v48, %v712_v46 }
  0xe7   :  { %v715_v50 = vpop.f32.mrf.mxu0  ;;  %v742_v63 = vadd.f32 %v741_v49, %v740_v47  ;;  %v561_v47 = vlaneseq  ;;  %v525_v49 = vld [vmem:[%s1010_s2] sm:$0x1] }
  0xe8   :  { %v743_v51 = vpop.f32.mrf.mxu1 }
  0xe9   :  { %v716_v52 = vpop.f32.mrf.mxu0  ;;  %v462_v9 = vadd.f32 %v742_v63, %v714_v62  ;;  %v562_v48 = vshrl.u32 %v561_v47, 7 }
  0xea   :  { %v744_v53 = vpop.f32.mrf.mxu1  ;;  %v717_v0 = vadd.f32 %v716_v52, %v715_v50 }
  0xeb   :  { %v718_v54 = vpop.f32.mrf.mxu0  ;;  %v745_v1 = vadd.f32 %v744_v53, %v743_v51  ;;  %v563_v50 = vsub.s32 0, %v562_v48  ;;  %v526_v53 = vld [vmem:[%s1011_s3] sm:$0x1] }
  0xec   :  { %v746_v55 = vpop.f32.mrf.mxu1 }
  0xed   :  { %v719_v56 = vpop.f32.mrf.mxu0  ;;  %v465_v10 = vadd.f32 %v745_v1, %v717_v0 }
  0xee   :  { %v747_v57 = vpop.f32.mrf.mxu1  ;;  %v720_v4 = vadd.f32 %v719_v56, %v718_v54  ;;  %v677_v54 = vld [vmem:[%s1012_s4] sm:$0xff]  }
  0xef   :  { %v721_v58 = vpop.f32.mrf.mxu0  ;;  %v748_v5 = vadd.f32 %v747_v57, %v746_v55  ;;  %v694_v57 = vld [vmem:[%s1012_s4 + $0x8] sm:$0xff]  }
  0xf0   :  { %v749_v60 = vpop.f32.mrf.mxu1  ;;  %v682_v62 = vunpack.c.l.bf16 %v694_v57  ;;  %v683_v63 = vunpack.c.h.bf16 %v694_v57 }
  0xf1   :  { %v722_v59 = vpop.f32.mrf.mxu0  ;;  %v470_v12 = vadd.f32 %v748_v5, %v720_v4 }
  0xf2   :  { %v750_v2 = vpop.f32.mrf.mxu1  ;;  %v723_v7 = vadd.f32 %v722_v59, %v721_v58  ;;  %v678_v59 = vunpack.c.l.bf16 %v677_v54 }
  0xf3   :  { %v751_v8 = vadd.f32 %v750_v2, %v749_v60 }
  0xf4   :  { %v768_v61 = vpop.f32.mrf.mxu0 }
  0xf5   :  { %v519_v15 = vadd.f32 %v768_v61, %v470_v12  ;;  %v473_v16 = vadd.f32 %v751_v8, %v723_v7  ;;  %v679_v61 = vunpack.c.h.bf16 %v677_v54 }
  0xf6   :  { %v510_v3 = vpop.f32.mrf.mxu0 }
  0xf7   :  { %v511_v13 = vadd.f32 %v510_v3, %v462_v9 }
  0xf8   :  { %v769_v6 = vpop.f32.mrf.mxu0 }
  0xf9   :  { %v522_v18 = vadd.f32 %v769_v6, %v473_v16 }
  0xfa   :  { %v513_v11 = vpop.f32.mrf.mxu0 }
  0xfb   :  { %v514_v14 = vadd.f32 %v513_v11, %v465_v10 }
  0xfd   :  { %v527_v17 = vadd.f32 %v514_v14, %v511_v13 }
  0xff   :  { %v528_v19 = vadd.f32 %v527_v17, %v519_v15 }
 0x101   :  { %v529_v20 = vadd.f32 %v528_v19, %v522_v18 }
 0x103   :  { %v530_v21 = vrot.slane %v529_v20, 4 }
 0x105   :  { %v531_v22 = vadd.f32 %v530_v21, %v529_v20 }
 0x107   :  { %v532_v23 = vrot.slane %v531_v22, 2 }
 0x109   :  { %v533_v24 = vadd.f32 %v532_v23, %v531_v22 }
 0x10b   :  { %v534_v25 = vrot.slane %v533_v24, 1 }
 0x10d   :  { %v535_v26 = vadd.f32 %v534_v25, %v533_v24 }
 0x10f   :  { %v536_v27 = vmul.f32 0.03125, %v535_v26 }
 0x111   :  { %v537_v28 = vsub.f32 %v511_v13, %v536_v27  ;;  %v538_v29 = vsub.f32 %v514_v14, %v536_v27  ;;  %v539_v30 = vsub.f32 %v519_v15, %v536_v27  ;;  %v540_v31 = vsub.f32 %v522_v18, %v536_v27 }
 0x113   :  { %v541_v32 = vmul.f32 %v537_v28, %v537_v28  ;;  %v542_v33 = vmul.f32 %v538_v29, %v538_v29  ;;  %v543_v34 = vmul.f32 %v539_v30, %v539_v30  ;;  %v544_v36 = vmul.f32 %v540_v31, %v540_v31 }
 0x115   :  { %v545_v35 = vadd.f32 %v542_v33, %v541_v32 }
 0x117   :  { %v546_v37 = vadd.f32 %v545_v35, %v543_v34 }
 0x119   :  { %v547_v38 = vadd.f32 %v546_v37, %v544_v36 }
 0x11b   :  { %v548_v39 = vrot.slane %v547_v38, 4 }
 0x11d   :  { %v549_v40 = vadd.f32 %v548_v39, %v547_v38 }
 0x11f   :  { %v550_v41 = vrot.slane %v549_v40, 2 }
 0x121   :  { %v551_v42 = vadd.f32 %v550_v41, %v549_v40 }
 0x123   :  { %v552_v43 = vrot.slane %v551_v42, 1 }
 0x125   :  { %v553_v44 = vadd.f32 %v552_v43, %v551_v42 }
 0x127   :  { %v554_v45 = vmul.f32 0.03125, %v553_v44 }
 0x129   :  { %v555_v46 = vadd.f32 1e-05, %v554_v45 }
 0x12b   :  { %820 = vrsqrt.f32 %v555_v46 }
 0x138   :  { %v821_v51 = vpop.eup %820 }
 0x139   :  { %v557_v52 = vmul.f32 %v821_v51, %v525_v49 }
 0x13b   :  { %v558_v55 = vmul.f32 %v557_v52, %v536_v27  ;;  %v564_v56 = vrot.slane %v557_v52, %v563_v50 }
 0x13d   :  { %v559_v58 = vsub.f32 %v526_v53, %v558_v55  ;;  %v566_v60 = vmul.f32 %v564_v56, %v511_v13  ;;  %v567_v0 = vmul.f32 %v564_v56, %v514_v14  ;;  %v568_v1 = vmul.f32 %v564_v56, %v519_v15 }
 0x13e   :  { %v569_v2 = vmul.f32 %v564_v56, %v522_v18 }
 0x13f   :  { %v574_v3 = vrot.slane %v559_v58, %v563_v50 }
 0x141   :  { %v576_v4 = vadd.f32 %v574_v3, %v566_v60  ;;  %v577_v5 = vadd.f32 %v574_v3, %v567_v0  ;;  %v578_v6 = vadd.f32 %v574_v3, %v568_v1  ;;  %v579_v7 = vadd.f32 %v574_v3, %v569_v2 }
 0x143   :  { %v588_v8 = vadd.f32 %v678_v59, %v576_v4  ;;  %v589_v9 = vadd.f32 %v679_v61, %v577_v5  ;;  %v590_v10 = vadd.f32 %v682_v62, %v578_v6  ;;  %v591_v11 = vadd.f32 %v683_v63, %v579_v7 }
 0x145   :  { %v592_v12 = vmax.f32 %v588_v8, 0.0  ;;  %v593_v16 = vmax.f32 %v589_v9, 0.0  ;;  %v594_v17 = vmax.f32 %v590_v10, 0.0  ;;  %v595_v19 = vmax.f32 %v591_v11, 0.0 }
 0x147   :  { %v687_v13 = vpack.c.bf16 %v593_v16, %v592_v12  ;;  %v692_v20 = vpack.c.bf16 %v595_v19, %v594_v17 }
 0x149   :  { %688 = vst [vmem:[%s1013_s5] sm:$0xff] %v687_v13   ;;  %695 = vst [vmem:[%s1013_s5 + $0x8] sm:$0xff] %v692_v20  }

// kernel: _lambda_.53
= control target key start
LH: loop header
LB: loop body
LE: loop exit
PB: predicated region body
PF: predicated region fallthrough
CT: control target
= control target key end

     0   :  { %vm377_vm0 = vcmask 523264   ;;  %v1001_v62 = vmov 0   ;;  %s1269_s1 = inlined_call_operand.vmem [shape: bf16[576,128], index: 1, kind: input, shape index: {}]   ;;  %s1270_s0 = inlined_call_operand.vmem [shape: bf16[32,576], index: 0, kind: input, shape index: {}]   ;;  %s1271_s5 = inlined_call_operand.vmem [shape: bf16[128,256], index: 5, kind: input, shape index: {}]   ;;  %s1272_s2 = inlined_call_operand.vmem [shape: f32[1,128], index: 2, kind: input, shape index: {}]   ;;  %s1273_s3 = inlined_call_operand.vmem [shape: f32[1,128], index: 3, kind: input, shape index: {}]   ;;  %s1274_s4 = inlined_call_operand.vmem [shape: bf16[32,128], index: 4, kind: input, shape index: {}]   ;;  %s1275_s6 = inlined_call_operand.vmem [shape: f32[1,256], index: 6, kind: input, shape index: {}]   ;;  %s1276_s7 = inlined_call_operand.vmem [shape: f32[32,256], index: 7, kind: output, shape index: {}]  }
   0x1   :  { %v925_v0 = vld [vmem:[%s1269_s1 + $0x78] sm:$0xff]   ;;  %v929_v4 = vld [vmem:[%s1269_s1 + $0x70] sm:$0xff]   ;;  %v933_v8 = vld [vmem:[%s1269_s1 + $0x68] sm:$0xff]  }
   0x2   :  { %v926_v1 = vld [vmem:[%s1269_s1 + $0xf8] sm:$0xff]   ;;  %850 = vmatprep.subr.bf16.mxu0 %v925_v0  ;;  %v930_v5 = vld [vmem:[%s1269_s1 + $0xf0] sm:$0xff]   ;;  %v934_v9 = vld [vmem:[%s1269_s1 + $0xe8] sm:$0xff]  }
   0x3   :  { %v927_v2 = vld [vmem:[%s1269_s1 + $0x38] sm:$0xff]   ;;  %878 = vmatprep.subr.bf16.mxu1 %v926_v1  ;;  %v931_v6 = vld [vmem:[%s1269_s1 + $0x30] sm:$0xff]   ;;  %v935_v10 = vld [vmem:[%s1269_s1 + $0x28] sm:$0xff]  }
   0x4   :  { %v928_v3 = vld [vmem:[%s1269_s1 + $0xb8] sm:$0xff]   ;;  %851 = vmatpush3.bf16.msra.mxu0 %v927_v2  ;;  %v932_v7 = vld [vmem:[%s1269_s1 + $0xb0] sm:$0xff]   ;;  %v936_v11 = vld [vmem:[%s1269_s1 + $0xa8] sm:$0xff]  }
   0x5   :  { %879 = vmatpush3.bf16.msra.mxu1 %v928_v3  ;;  %852 = vmatprep.subr.bf16.mxu0 %v929_v4  ;;  %v937_v12 = vld [vmem:[%s1269_s1 + $0x60] sm:$0xff]   ;;  %v941_v16 = vld [vmem:[%s1269_s1 + $0x58] sm:$0xff]   ;;  %v945_v20 = vld [vmem:[%s1269_s1 + $0x50] sm:$0xff]  }
   0x6   :  { %880 = vmatprep.subr.bf16.mxu1 %v930_v5  ;;  %v938_v13 = vld [vmem:[%s1269_s1 + $0xe0] sm:$0xff]   ;;  %v942_v17 = vld [vmem:[%s1269_s1 + $0xd8] sm:$0xff]   ;;  %v946_v21 = vld [vmem:[%s1269_s1 + $0xd0] sm:$0xff]  }
   0x7   :  { %v939_v14 = vld [vmem:[%s1269_s1 + $0x20] sm:$0xff]   ;;  %v943_v18 = vld [vmem:[%s1269_s1 + $0x18] sm:$0xff]   ;;  %v947_v22 = vld [vmem:[%s1269_s1 + $0x10] sm:$0xff]  }
   0x8   :  { %853 = vmatpush3.bf16.msra.mxu0 %v931_v6  ;;  %v940_v15 = vld [vmem:[%s1269_s1 + $0xa0] sm:$0xff]   ;;  %v944_v19 = vld [vmem:[%s1269_s1 + $0x98] sm:$0xff]   ;;  %v948_v23 = vld [vmem:[%s1269_s1 + $0x90] sm:$0xff]  }
   0x9   :  { %881 = vmatpush3.bf16.msra.mxu1 %v932_v7  ;;  %854 = vmatprep.subr.bf16.mxu0 %v933_v8  ;;  %v949_v24 = vld [vmem:[%s1269_s1 + $0x48] sm:$0xff]   ;;  %v953_v28 = vld [vmem:[%s1269_s1 + $0x40] sm:$0xff]   ;;  %v963_v36 = vld [vmem:[%s1269_s1 + $0x118] sm:$0xff]  }
   0xa   :  { %882 = vmatprep.subr.bf16.mxu1 %v934_v9  ;;  %v950_v25 = vld [vmem:[%s1269_s1 + $0xc8] sm:$0xff]   ;;  %v954_v29 = vld [vmem:[%s1269_s1 + $0xc0] sm:$0xff]   ;;  %v964_v37 = vld [vmem:[%s1269_s1 + $0x110] sm:$0xff]  }
   0xb   :  { %v951_v26 = vld [vmem:[%s1269_s1 + $0x8] sm:$0xff]   ;;  %v955_v30 = vld [vmem:[%s1269_s1] sm:$0xff]   ;;  %v977_v46 = vld [vmem:[%s1271_s5 + $0x74] ss:$8 sps:$4 sm:$0xff]  }
   0xc   :  { %855 = vmatpush3.bf16.msra.mxu0 %v935_v10  ;;  %v952_v27 = vld [vmem:[%s1269_s1 + $0x88] sm:$0xff]   ;;  %v956_v31 = vld [vmem:[%s1269_s1 + $0x80] sm:$0xff]   ;;  %v975_v47 = vld [vmem:[%s1271_s5 + $0x70] ss:$8 sps:$4 sm:$0xff]  }
   0xd   :  { %883 = vmatpush3.bf16.msra.mxu1 %v936_v11  ;;  %856 = vmatprep.subr.bf16.mxu0 %v937_v12  ;;  %v957_v32 = vld [vmem:[%s1270_s0] ss:$20 sps:$4 sm:$0xff]   ;;  %v959_v33 = vld [vmem:[%s1270_s0 + $0x4] ss:$20 sps:$4 sm:$0xff]   ;;  %v960_v34 = vld [vmem:[%s1270_s0 + $0x8] ss:$20 sps:$4 sm:$0xff]  }
   0xe   :  { %884 = vmatprep.subr.bf16.mxu1 %v938_v13  ;;  %v962_v35 = vld [vmem:[%s1270_s0 + $0xc] ss:$20 sps:$4 sm:$0xff]   ;;  %416 = vmatprep.mubr.bf16.mxu0 %v959_v33  ;;  %v967_v39 = vld [vmem:[%s1270_s0 + $0x34] ss:$20 sps:$4 sm:$0xff]   ;;  %v970_v42 = vld [vmem:[%s1270_s0 + $0x30] ss:$20 sps:$4 sm:$0xff]  }
   0xf   :  { %465 = vmatprep.mubr.bf16.mxu1 %v962_v35  ;;  %v965_v38 = vld [vmem:[%s1270_s0 + $0x2c] ss:$20 sps:$4 sm:$0xff]   ;;  %v969_v40 = vld [vmem:[%s1270_s0 + $0x28] ss:$20 sps:$4 sm:$0xff]   ;;  %v973_v43 = vld [vmem:[%s1270_s0 + $0x10] ss:$20 sps:$4 sm:$0xff]  }
  0x10   :  { %857 = vmatpush3.bf16.msra.mxu0 %v939_v14  ;;  %v971_v41 = vld [vmem:[%s1269_s1 + $0x108] sm:$0xff]   ;;  %v972_v44 = vld [vmem:[%s1269_s1 + $0x100] sm:$0xff]   ;;  %v983_v50 = vld [vmem:[%s1271_s5 + $0x54] ss:$8 sps:$4 sm:$0xff]  }
  0x11   :  { %885 = vmatpush3.bf16.msra.mxu1 %v940_v15  ;;  %858 = vmatprep.subr.bf16.mxu0 %v941_v16  ;;  %v974_v45 = vld [vmem:[%s1270_s0 + $0x38] ss:$20 sps:$4 sm:$0xff]   ;;  %v978_v49 = vld [vmem:[%s1271_s5 + $0x60] ss:$8 sps:$4 sm:$0xff]   ;;  %v989_v54 = vld [vmem:[%s1271_s5 + $0x34] ss:$8 sps:$4 sm:$0xff]  }
  0x12   :  { %886 = vmatprep.subr.bf16.mxu1 %v942_v17  ;;  %v980_v48 = vld [vmem:[%s1271_s5 + $0x64] ss:$8 sps:$4 sm:$0xff]   ;;  %v981_v51 = vld [vmem:[%s1271_s5 + $0x50] ss:$8 sps:$4 sm:$0xff]   ;;  %v984_v53 = vld [vmem:[%s1271_s5 + $0x40] ss:$8 sps:$4 sm:$0xff]  }
  0x13   :  { %v986_v52 = vld [vmem:[%s1271_s5 + $0x44] ss:$8 sps:$4 sm:$0xff]   ;;  %v987_v55 = vld [vmem:[%s1271_s5 + $0x30] ss:$8 sps:$4 sm:$0xff]   ;;  %v990_v57 = vld [vmem:[%s1271_s5 + $0x20] ss:$8 sps:$4 sm:$0xff]  }
  0x14   :  { %859 = vmatpush3.bf16.msra.mxu0 %v943_v18  ;;  %v992_v56 = vld [vmem:[%s1271_s5 + $0x24] ss:$8 sps:$4 sm:$0xff]   ;;  %v995_v58 = vld [vmem:[%s1271_s5 + $0x14] ss:$8 sps:$4 sm:$0xff]   ;;  %v993_v59 = vld [vmem:[%s1271_s5 + $0x10] ss:$8 sps:$4 sm:$0xff]  }
  0x15   :  { %887 = vmatpush3.bf16.msra.mxu1 %v944_v19  ;;  %860 = vmatprep.subr.bf16.mxu0 %v945_v20  ;;  %v998_v60 = vld [vmem:[%s1271_s5 + $0x4] ss:$8 sps:$4 sm:$0xff]   ;;  %v996_v61 = vld [vmem:[%s1271_s5] ss:$8 sps:$4 sm:$0xff]  }
  0x16   :  { %888 = vmatprep.subr.bf16.mxu1 %v946_v21 }
  0x18   :  { %861 = vmatpush3.bf16.msra.mxu0 %v947_v22 }
  0x19   :  { %889 = vmatpush3.bf16.msra.mxu1 %v948_v23  ;;  %862 = vmatprep.subr.bf16.mxu0 %v949_v24 }
  0x1a   :  { %890 = vmatprep.subr.bf16.mxu1 %v950_v25 }
  0x1c   :  { %863 = vmatpush3.bf16.msra.mxu0 %v951_v26 }
  0x1d   :  { %891 = vmatpush3.bf16.msra.mxu1 %v952_v27  ;;  %864 = vmatprep.subr.bf16.mxu0 %v953_v28 }
  0x1e   :  { %892 = vmatprep.subr.bf16.mxu1 %v954_v29 }
  0x20   :  { %865 = vmatpush3.bf16.msra.mxu0 %v955_v30 }
  0x21   :  { %893 = vmatpush3.bf16.msra.mxu1 %v956_v31  ;;  %912 = vmatprep.subr.bf16.mxu0 %v963_v36 }
  0x22   :  { %712 = vmatprep.subr.bf16.mxu1 %v977_v46 }
  0x23   :  { %417 = vmatmul.mubr.bf16.vlgmr.msra.gmra.mxu0 %v957_v32 }
  0x24   :  { %466 = vmatmul.mubr.bf16.vlgmr.msra.gmra.mxu1 %v960_v34  ;;  %913 = vmatpush3.bf16.msra.mxu0 %v963_v36 }
  0x25   :  { %914 = vmatprep.subr.bf16.mxu0 %v964_v37  ;;  %424 = vmatprep.mubr.bf16.mxu0 %v965_v38 }
  0x26   :  { %473 = vmatprep.mubr.bf16.mxu1 %v967_v39  ;;  %713 = vmatpush1.bf16.msra.mxu1 %v975_v47 }
  0x27   :  { %714 = vmatprep.subr.bf16.mxu1 %v980_v48 }
  0x28   :  { %915 = vmatpush3.bf16.msra.mxu0 %v964_v37 }
  0x29   :  { %916 = vmatprep.subr.bf16.mxu0 %v971_v41 }
  0x2a   :  { %715 = vmatpush1.bf16.msra.mxu1 %v978_v49 }
  0x2b   :  { %425 = vmatmul.mubr.bf16.gmra.mxu0 %v969_v40  ;;  %716 = vmatprep.subr.bf16.mxu1 %v983_v50 }
  0x2c   :  { %474 = vmatmul.mubr.bf16.gmra.mxu1 %v970_v42  ;;  %920 = vmatprep.mubr.msk.bf16.mxu0 %vm377_vm0, %v973_v43 }
  0x2d   :  { %917 = vmatpush3.bf16.msra.mxu0 %v971_v41  ;;  %744 = vmatprep.mubr.bf16.mxu1 %v1001_v62 }
  0x2e   :  { %918 = vmatprep.subr.bf16.mxu0 %v972_v44  ;;  %717 = vmatpush1.bf16.msra.mxu1 %v981_v51 }
  0x2f   :  { %718 = vmatprep.subr.bf16.mxu1 %v986_v52 }
  0x31   :  { %919 = vmatpush3.bf16.msra.mxu0 %v972_v44 }
  0x32   :  { %719 = vmatpush1.bf16.msra.mxu1 %v984_v53 }
  0x33   :  { %720 = vmatprep.subr.bf16.mxu1 %v989_v54 }
  0x34   :  { %921 = vmatmul.mubr.msk.bf16.vlgmr.msra.gmra.mxu0 %vm377_vm0, %v974_v45 }
  0x36   :  { %721 = vmatpush1.bf16.msra.mxu1 %v987_v55 }
  0x37   :  { %722 = vmatprep.subr.bf16.mxu1 %v992_v56 }
  0x3a   :  { %723 = vmatpush1.bf16.msra.mxu1 %v990_v57 }
  0x3b   :  { %724 = vmatprep.subr.bf16.mxu1 %v995_v58 }
  0x3e   :  { %725 = vmatpush1.bf16.msra.mxu1 %v993_v59 }
  0x3f   :  { %726 = vmatprep.subr.bf16.mxu1 %v998_v60 }
  0x42   :  { %727 = vmatpush1.bf16.msra.mxu1 %v996_v61 }
  0xe3   :  { %v866_v63 = vpop.f32.mrf.mxu0 }
  0xe4   :  { %v894_v0 = vpop.f32.mrf.mxu1 }
  0xe5   :  { %v867_v1 = vpop.f32.mrf.mxu0 }
  0xe6   :  { %v895_v2 = vpop.f32.mrf.mxu1  ;;  %v868_v15 = vadd.f32 %v867_v1, %v866_v63  ;;  %v567_v1 = vlaneseq }
  0xe7   :  { %v869_v3 = vpop.f32.mrf.mxu0  ;;  %v896_v16 = vadd.f32 %v895_v2, %v894_v0 }
  0xe8   :  { %v897_v4 = vpop.f32.mrf.mxu1  ;;  %v568_v2 = vshrl.u32 %v567_v1, 7 }
  0xe9   :  { %v870_v5 = vpop.f32.mrf.mxu0  ;;  %v468_v26 = vadd.f32 %v896_v16, %v868_v15 }
  0xea   :  { %v898_v6 = vpop.f32.mrf.mxu1  ;;  %v871_v17 = vadd.f32 %v870_v5, %v869_v3  ;;  %v531_v3 = vld [vmem:[%s1272_s2] sm:$0x1] }
  0xeb   :  { %v872_v7 = vpop.f32.mrf.mxu0  ;;  %v899_v18 = vadd.f32 %v898_v6, %v897_v4  ;;  %v569_v4 = vsub.s32 0, %v568_v2 }
  0xec   :  { %v900_v8 = vpop.f32.mrf.mxu1 }
  0xed   :  { %v873_v9 = vpop.f32.mrf.mxu0  ;;  %v471_v27 = vadd.f32 %v899_v18, %v871_v17 }
  0xee   :  { %v901_v10 = vpop.f32.mrf.mxu1  ;;  %v874_v21 = vadd.f32 %v873_v9, %v872_v7  ;;  %v532_v7 = vld [vmem:[%s1273_s3] sm:$0x1] }
  0xef   :  { %v875_v11 = vpop.f32.mrf.mxu0  ;;  %v902_v22 = vadd.f32 %v901_v10, %v900_v8  ;;  %v842_v8 = vld [vmem:[%s1274_s4] sm:$0xff]  }
  0xf0   :  { %v903_v13 = vpop.f32.mrf.mxu1  ;;  %v844_v15 = vunpack.c.h.bf16 %v842_v8 }
  0xf1   :  { %v876_v12 = vpop.f32.mrf.mxu0  ;;  %v476_v29 = vadd.f32 %v902_v22, %v874_v21 }
  0xf2   :  { %v904_v19 = vpop.f32.mrf.mxu1  ;;  %v877_v24 = vadd.f32 %v876_v12, %v875_v11  ;;  %v849_v11 = vld [vmem:[%s1274_s4 + $0x8] sm:$0xff]  }
  0xf3   :  { %v905_v25 = vadd.f32 %v904_v19, %v903_v13  ;;  %v843_v13 = vunpack.c.l.bf16 %v842_v8  ;;  %v847_v16 = vunpack.c.l.bf16 %v849_v11  ;;  %v848_v17 = vunpack.c.h.bf16 %v849_v11 }
  0xf4   :  { %v922_v14 = vpop.f32.mrf.mxu0 }
  0xf5   :  { %v525_v32 = vadd.f32 %v922_v14, %v476_v29  ;;  %v479_v33 = vadd.f32 %v905_v25, %v877_v24 }
  0xf6   :  { %v516_v20 = vpop.f32.mrf.mxu0 }
  0xf7   :  { %v517_v30 = vadd.f32 %v516_v20, %v468_v26 }
  0xf8   :  { %v923_v23 = vpop.f32.mrf.mxu0 }
  0xf9   :  { %v528_v35 = vadd.f32 %v923_v23, %v479_v33 }
  0xfa   :  { %v519_v28 = vpop.f32.mrf.mxu0 }
  0xfb   :  { %v520_v31 = vadd.f32 %v519_v28, %v471_v27 }
  0xfd   :  { %v533_v34 = vadd.f32 %v520_v31, %v517_v30 }
  0xff   :  { %v534_v36 = vadd.f32 %v533_v34, %v525_v32 }
 0x101   :  { %v535_v37 = vadd.f32 %v534_v36, %v528_v35 }
 0x103   :  { %v536_v38 = vrot.slane %v535_v37, 4 }
 0x105   :  { %v537_v39 = vadd.f32 %v536_v38, %v535_v37 }
 0x107   :  { %v538_v40 = vrot.slane %v537_v39, 2 }
 0x109   :  { %v539_v41 = vadd.f32 %v538_v40, %v537_v39 }
 0x10b   :  { %v540_v42 = vrot.slane %v539_v41, 1 }
 0x10d   :  { %v541_v43 = vadd.f32 %v540_v42, %v539_v41 }
 0x10f   :  { %v542_v44 = vmul.f32 0.03125, %v541_v43 }
 0x111   :  { %v543_v45 = vsub.f32 %v517_v30, %v542_v44  ;;  %v544_v46 = vsub.f32 %v520_v31, %v542_v44  ;;  %v545_v47 = vsub.f32 %v525_v32, %v542_v44  ;;  %v546_v48 = vsub.f32 %v528_v35, %v542_v44 }
 0x113   :  { %v547_v49 = vmul.f32 %v543_v45, %v543_v45  ;;  %v548_v50 = vmul.f32 %v544_v46, %v544_v46  ;;  %v549_v51 = vmul.f32 %v545_v47, %v545_v47  ;;  %v550_v53 = vmul.f32 %v546_v48, %v546_v48 }
 0x115   :  { %v551_v52 = vadd.f32 %v548_v50, %v547_v49 }
 0x117   :  { %v552_v54 = vadd.f32 %v551_v52, %v549_v51 }
 0x119   :  { %v553_v55 = vadd.f32 %v552_v54, %v550_v53 }
 0x11b   :  { %v554_v56 = vrot.slane %v553_v55, 4 }
 0x11d   :  { %v555_v57 = vadd.f32 %v554_v56, %v553_v55 }
 0x11f   :  { %v556_v58 = vrot.slane %v555_v57, 2 }
 0x121   :  { %v557_v59 = vadd.f32 %v556_v58, %v555_v57 }
 0x123   :  { %v558_v60 = vrot.slane %v557_v59, 1 }
 0x125   :  { %v559_v61 = vadd.f32 %v558_v60, %v557_v59 }
 0x127   :  { %v560_v63 = vmul.f32 0.03125, %v559_v61 }
 0x129   :  { %v561_v0 = vadd.f32 1e-05, %v560_v63 }
 0x12b   :  { %999 = vrsqrt.f32 %v561_v0 }
 0x138   :  { %v1000_v5 = vpop.eup %999 }
 0x139   :  { %v563_v6 = vmul.f32 %v1000_v5, %v531_v3 }
 0x13b   :  { %v564_v9 = vmul.f32 %v563_v6, %v542_v44  ;;  %v570_v10 = vrot.slane %v563_v6, %v569_v4 }
 0x13d   :  { %v565_v12 = vsub.f32 %v532_v7, %v564_v9  ;;  %v572_v14 = vmul.f32 %v570_v10, %v517_v30  ;;  %v573_v18 = vmul.f32 %v570_v10, %v520_v31  ;;  %v574_v20 = vmul.f32 %v570_v10, %v525_v32  ;;  %v620_v31 = vld [vmem:[%s1275_s6] sm:$0x3] }
 0x13e   :  { %v575_v21 = vmul.f32 %v570_v10, %v528_v35  ;;  %v628_v32 = vsub.s32 1, %v568_v2  ;;  %v625_v35 = vrot.slane %v620_v31, %v569_v4 }
 0x13f   :  { %v580_v19 = vrot.slane %v565_v12, %v569_v4 }
 0x140   :  { %v629_v39 = vrot.slane %v620_v31, %v628_v32 }
 0x141   :  { %v582_v22 = vadd.f32 %v580_v19, %v572_v14  ;;  %v583_v23 = vadd.f32 %v580_v19, %v573_v18  ;;  %v584_v24 = vadd.f32 %v580_v19, %v574_v20  ;;  %v585_v25 = vadd.f32 %v580_v19, %v575_v21 }
 0x143   :  { %v594_v26 = vadd.f32 %v843_v13, %v582_v22  ;;  %v595_v27 = vadd.f32 %v844_v15, %v583_v23  ;;  %v596_v28 = vadd.f32 %v847_v16, %v584_v24  ;;  %v597_v29 = vadd.f32 %v848_v17, %v585_v25 }
 0x145   :  { %v598_v33 = vmax.f32 %v594_v26, 0.0  ;;  %v599_v34 = vmax.f32 %v595_v27, 0.0  ;;  %v600_v36 = vmax.f32 %v596_v28, 0.0  ;;  %v601_v37 = vmax.f32 %v597_v29, 0.0 }
 0x147   :  { %v602_v30 = vpack.c.bf16 %v599_v34, %v598_v33  ;;  %v603_v38 = vpack.c.bf16 %v601_v37, %v600_v36 }
 0x149   :  { %745 = vmatmul.mubr.bf16.vlgmr.msra.gmra.mxu1 %v602_v30 }
 0x14a   :  { %754 = vmatprep.mubr.bf16.mxu1 %v1001_v62 }
 0x151   :  { %755 = vmatmul.mubr.bf16.gmra.mxu1 %v603_v38 }
 0x209   :  { %v746_v40 = vpop.f32.mrf.mxu1 }
 0x20a   :  { %v747_v41 = vadd.f32 %v746_v40, %v625_v35 }
 0x20b   :  { %v748_v42 = vpop.f32.mrf.mxu1 }
 0x20c   :  { %765 = vst [vmem:[%s1276_s7] sm:$0xff] %v747_v41  ;;  %v749_v43 = vadd.f32 %v748_v42, %v629_v39 }
 0x20d   :  { %v750_v44 = vpop.f32.mrf.mxu1 }
 0x20e   :  { %766 = vst [vmem:[%s1276_s7 + $0x8] sm:$0xff] %v749_v43  ;;  %v751_v62 = vadd.f32 %v750_v44, %v625_v35 }
 0x20f   :  { %v752_v45 = vpop.f32.mrf.mxu1 }
 0x210   :  { %767 = vst [vmem:[%s1276_s7 + $0x10] sm:$0xff] %v751_v62  ;;  %v753_v46 = vadd.f32 %v752_v45, %v629_v39 }
 0x211   :  { %v756_v47 = vpop.f32.mrf.mxu1 }
 0x212   :  { %768 = vst [vmem:[%s1276_s7 + $0x18] sm:$0xff] %v753_v46  ;;  %v757_v48 = vadd.f32 %v756_v47, %v625_v35 }
 0x213   :  { %v758_v49 = vpop.f32.mrf.mxu1 }
 0x214   :  { %769 = vst [vmem:[%s1276_s7 + $0x20] sm:$0xff] %v757_v48  ;;  %v759_v50 = vadd.f32 %v758_v49, %v629_v39 }
 0x215   :  { %v760_v51 = vpop.f32.mrf.mxu1 }
 0x216   :  { %770 = vst [vmem:[%s1276_s7 + $0x28] sm:$0xff] %v759_v50  ;;  %v761_v52 = vadd.f32 %v760_v51, %v625_v35 }
 0x217   :  { %v762_v53 = vpop.f32.mrf.mxu1 }
 0x218   :  { %771 = vst [vmem:[%s1276_s7 + $0x30] sm:$0xff] %v761_v52  ;;  %v763_v54 = vadd.f32 %v762_v53, %v629_v39 }
 0x21a   :  { %772 = vst [vmem:[%s1276_s7 + $0x38] sm:$0xff] %v763_v54 }

</bundles_post_ra>
